<compile_context>
chip_gen: v7x
topology: tpu7x:2x2x1
jax: 0.10.0
libtpu: 0.0.40
codegen_flags: <defaults>
</compile_context>

<pallas_src>
import functools

import numpy as np
import jax
import jax.numpy as jnp
from jax.experimental import pallas as pl
from jax.experimental.pallas import tpu as pltpu

# ---------------- module config (defaults of the torch module: D=1, N=1) ----------------
INPUT_SIZE = (84, 84, 4)           # (H, W, C_in); 84x84 so conv1/2/3 produce 7x7
OUTPUT_SIZE = 6                    # number of actions
EMBED_DIM = OUTPUT_SIZE + 2        # = 8
HIDDEN = 32                        # ConvLSTM hidden channels
D = 1                              # ConvLSTM num_layers (D=1 implemented)
N_STEPS = 1                        # temporal repeats of the frame fed to the ConvLSTM
FC_DIM = 256
SPATIAL = 7                        # ConvLSTM spatial size (7, 7)
P = SPATIAL * SPATIAL              # 49 spatial positions
LSTM_CIN = 64 + EMBED_DIM + HIDDEN         # 104 = conv3(64) + embed(8) + h(32)
LSTM_CIN_PAD = 128                         # lane-aligned padded channel count

VMEM_LIMIT = 32 * 1024 * 1024
VMEM_SPEC = pl.BlockSpec(memory_space=pltpu.MemorySpace.VMEM)


def _round_up(x, m):
    return (x + m - 1) // m * m


# -------------------- Pallas kernel 1: fused matmul + bias + activation -------------------
def _matmul_bias_act_kernel(x_ref, w_ref, b_ref, o_ref, *, act):
    y = jnp.dot(x_ref[...], w_ref[...], preferred_element_type=jnp.float32)
    y = y + b_ref[...]
    if act == "relu":
        y = jnp.maximum(y, 0.0)
    o_ref[...] = y.astype(o_ref.dtype)


def matmul_bias_act(x, w, b, act="none", block_m=1024):
    """(M,K)@(K,N) + bias (+ReLU). bf16 MXU operands, f32 accumulate, M-tiled parallel grid."""
    M, K = x.shape
    Kw, Nc = w.shape
    assert K == Kw
    Mp = _round_up(M, 8)
    tm = Mp
    if Mp > block_m:
        Mp = _round_up(M, block_m)
        tm = block_m
    if Mp != M:
        x = jnp.pad(x, ((0, Mp - M), (0, 0)))
    out = pl.pallas_call(
        functools.partial(_matmul_bias_act_kernel, act=act),
        out_shape=jax.ShapeDtypeStruct((Mp, Nc), jnp.float32),
        grid=(Mp // tm,),
        in_specs=[pl.BlockSpec((tm, K), lambda i: (i, 0)),
                  pl.BlockSpec((K, Nc), lambda i: (0, 0)),
                  pl.BlockSpec((1, Nc), lambda i: (0, 0))],
        out_specs=pl.BlockSpec((tm, Nc), lambda i: (i, 0)),
        compiler_params=pltpu.CompilerParams(
            dimension_semantics=("parallel",),
            vmem_limit_bytes=VMEM_LIMIT),
    )(x.astype(jnp.bfloat16), w.astype(jnp.bfloat16), b.reshape(1, Nc).astype(jnp.float32))
    return out[:M] if Mp != M else out


# ------------- Pallas kernel 2: fused tail (conv3 -> ConvLSTM -> fc -> pi|v head) ----------
def _tail_kernel(p3_ref, embed_ref, h0_ref, c0_ref, mask_ref,
                 c3w_ref, c3b_ref, lw_ref, lb_ref,
                 fcw_ref, fcb_ref, hw_ref, hb_ref,
                 logits_ref, value_ref, h_out_ref, c_out_ref,
                 *, batch, n_steps):
    rows = batch * P                                           # B * 49

    # conv3 (im2col matmul) + bias + ReLU  -> (rows, 64)
    y3 = jnp.dot(p3_ref[...], c3w_ref[...], preferred_element_type=jnp.float32)
    y3 = jnp.maximum(y3 + c3b_ref[...], 0.0)

    # embed broadcast per spatial position, channel concat (torch cat along C == lane concat)
    e = embed_ref[...]                                         # (B, 8)
    e_rows = jnp.concatenate(
        [jnp.broadcast_to(e[b:b + 1, :], (P, EMBED_DIM)) for b in range(batch)], axis=0)
    frame = jnp.concatenate([y3, e_rows], axis=1)              # (rows, 72)

    h = h0_ref[...]                                            # (rows, 32) NHWC-flat
    c = c0_ref[...]                                            # (rows, 32)
    mask = mask_ref[...]                                       # (rows, 9) validity per offset

    cpad = jnp.zeros((rows, LSTM_CIN_PAD - LSTM_CIN), jnp.float32)   # channel pad 104 -> 128
    zpad = jnp.zeros((8, LSTM_CIN_PAD), jnp.float32)                 # row pad for +-8 shifts
    lane = jax.lax.broadcasted_iota(jnp.int32, (rows, 4 * HIDDEN), 1)
    sig_mask = lane < 3 * HIDDEN                               # sigmoid on i,f,o; tanh on g

    lw = lw_ref[...]                                           # (9*128, 128) bf16
    lb = lb_ref[...]                                           # (1, 128)    f32

    # TODO(synk): for N_STEPS > 1 the `frame` contribution to the gate pre-activation is
    # constant across time steps and could be computed once outside this loop.
    for _ in range(n_steps):
        combined = jnp.concatenate([frame, h, cpad], axis=1)          # (rows, 128)
        padded = jnp.concatenate([zpad, combined, zpad], axis=0)      # (rows+16, 128)
        # in-kernel im2col for the 3x3 "same" conv: 9 row-shifted, spatially-masked views,
        # concatenated on the lane axis -> (rows, 9*128)
        pieces = []
        for ki in range(3):
            for kj in range(3):
                s = (ki - 1) * SPATIAL + (kj - 1)
                shifted = padded[8 + s: 8 + s + rows, :]
                m = mask[:, ki * 3 + kj: ki * 3 + kj + 1]
                pieces.append(shifted * m)
        patches = jnp.concatenate(pieces, axis=1).astype(jnp.bfloat16)
        gates = jnp.dot(patches, lw, preferred_element_type=jnp.float32) + lb   # (rows, 128)

        # lane-dense nonlinearities before any 32-lane slicing (gate order: i, f, o, g)
        act = jnp.where(sig_mask, jax.nn.sigmoid(gates), jnp.tanh(gates))
        i_g = act[:, 0 * HIDDEN:1 * HIDDEN]
        f_g = act[:, 1 * HIDDEN:2 * HIDDEN]
        o_g = act[:, 2 * HIDDEN:3 * HIDDEN]
        g_g = act[:, 3 * HIDDEN:4 * HIDDEN]
        c = f_g * c + i_g * g_g
        h = o_g * jnp.tanh(c)                                          # (rows, 32)

    h_out_ref[...] = h
    c_out_ref[...] = c

    # fc head: build the (B, 49*32) HWC-flat feature by lane concatenation (no minor-dim
    # reshape), matching the pre-permuted fc weight rows.
    feat = jnp.concatenate(
        [jnp.concatenate([h[b * P + p: b * P + p + 1, :] for b in range(batch)], axis=0)
         for p in range(P)],
        axis=1)                                                        # (B, 1568)
    fc = jnp.dot(feat.astype(jnp.bfloat16), fcw_ref[...], preferred_element_type=jnp.float32)
    fc = jnp.maximum(fc + fcb_ref[...], 0.0)                           # (B, 256)

    # merged pi|v head: columns [pi(6) | v(1) | zero pad(1)]
    head = jnp.dot(fc.astype(jnp.bfloat16), hw_ref[...], preferred_element_type=jnp.float32)
    head = head + hb_ref[...]                                          # (B, 8)
    logits_ref[...] = head[:, :OUTPUT_SIZE]
    value_ref[...] = head[:, OUTPUT_SIZE:OUTPUT_SIZE + 1]


def _shift_mask(batch):
    """(batch*49, 9) validity mask of each 3x3 offset for every spatial position (pad=1 conv)."""
    r = np.arange(P)
    i, j = r // SPATIAL, r % SPATIAL
    cols = []
    for ki in range(3):
        for kj in range(3):
            di, dj = ki - 1, kj - 1
            cols.append(((i + di >= 0) & (i + di < SPATIAL) &
                         (j + dj >= 0) & (j + dj < SPATIAL)).astype(np.float32))
    m = np.stack(cols, axis=1)                       # (49, 9)
    return jnp.asarray(np.tile(m, (batch, 1)))       # (batch*49, 9)


def fused_tail(params, p3, embed, h0, c0, batch):
    rows = batch * P
    kernel = functools.partial(_tail_kernel, batch=batch, n_steps=N_STEPS)
    return pl.pallas_call(
        kernel,
        out_shape=(jax.ShapeDtypeStruct((batch, OUTPUT_SIZE), jnp.float32),
                   jax.ShapeDtypeStruct((batch, 1), jnp.float32),
                   jax.ShapeDtypeStruct((rows, HIDDEN), jnp.float32),
                   jax.ShapeDtypeStruct((rows, HIDDEN), jnp.float32)),
        in_specs=[VMEM_SPEC] * 13,
        out_specs=(VMEM_SPEC, VMEM_SPEC, VMEM_SPEC, VMEM_SPEC),
        compiler_params=pltpu.CompilerParams(vmem_limit_bytes=VMEM_LIMIT),
    )(p3.astype(jnp.bfloat16), embed, h0, c0, _shift_mask(batch),
      params["conv3_w"], params["conv3_b"],
      params["lstm_w"], params["lstm_b"],
      params["fc_w"], params["fc_b"],
      params["head_w"], params["head_b"])


# ----------------------------------- JAX glue ---------------------------------------------
def im2col(x_nhwc, kh, kw, stride):
    """Conv patches -> ((B*OH*OW, kh*kw*C), OH, OW) with (kh, kw, C) ordering."""
    B, H, W, C = x_nhwc.shape
    OH = (H - kh) // stride + 1
    OW = (W - kw) // stride + 1
    ih = (jnp.arange(OH) * stride)[:, None] + jnp.arange(kh)[None, :]   # (OH, kh)
    iw = (jnp.arange(OW) * stride)[:, None] + jnp.arange(kw)[None, :]   # (OW, kw)
    patches = x_nhwc[:, ih[:, None, :, None], iw[None, :, None, :], :]  # (B,OH,OW,kh,kw,C)
    return patches.reshape(B * OH * OW, kh * kw * C), OH, OW


def conv_w_to_mat(w_oihw):
    """PyTorch Conv2d weight (O, I, kh, kw) -> im2col matmul weight (kh*kw*I, O)."""
    O, I, kh, kw = w_oihw.shape
    return jnp.transpose(w_oihw, (2, 3, 1, 0)).reshape(kh * kw * I, O)


def init_params(key):
    """Deterministic synthetic params, generated in PyTorch layouts then converted."""
    ks = jax.random.split(key, 14)
    sc = 0.05

    def w(k, shape):
        return sc * jax.random.normal(k, shape, dtype=jnp.float32)

    c_in = INPUT_SIZE[-1]

    # ConvLSTM gate conv weight: (4*H, 104, 3, 3) -> rows (offset-major, channel padded to 128)
    lw_t = w(ks[6], (4 * HIDDEN, LSTM_CIN, 3, 3))
    lw = jnp.transpose(lw_t, (2, 3, 1, 0))                                    # (3,3,104,128)
    lw = jnp.pad(lw, ((0, 0), (0, 0), (0, LSTM_CIN_PAD - LSTM_CIN), (0, 0)))
    lw = lw.reshape(9 * LSTM_CIN_PAD, 4 * HIDDEN)                             # (1152, 128)

    # fc weight: torch acts on NCHW-flat h; pre-permute rows to (H,W,C)-flat order.
    fc_w_t = w(ks[8], (FC_DIM, P * HIDDEN))
    fc_w = jnp.transpose(fc_w_t.reshape(FC_DIM, HIDDEN, SPATIAL, SPATIAL),
                         (2, 3, 1, 0)).reshape(P * HIDDEN, FC_DIM)            # (1568, 256)

    # merged pi|v head: (256, 8) = [pi(6) | v(1) | zero(1)]
    pi_w = w(ks[10], (OUTPUT_SIZE, FC_DIM))
    v_w = w(ks[12], (1, FC_DIM))
    head_w = jnp.concatenate([pi_w.T, v_w.T, jnp.zeros((FC_DIM, 1), jnp.float32)], axis=1)
    head_b = jnp.concatenate([w(ks[11], (OUTPUT_SIZE,)), w(ks[13], (1,)),
                              jnp.zeros((1,), jnp.float32)])

    return {
        "conv1_w": conv_w_to_mat(w(ks[0], (32, c_in, 8, 8))).astype(jnp.bfloat16),
        "conv1_b": w(ks[1], (32,)),
        "conv2_w": conv_w_to_mat(w(ks[2], (64, 32, 4, 4))).astype(jnp.bfloat16),
        "conv2_b": w(ks[3], (64,)),
        "conv3_w": conv_w_to_mat(w(ks[4], (64, 64, 3, 3))).astype(jnp.bfloat16),
        "conv3_b": w(ks[5], (64,)).reshape(1, 64),
        "lstm_w": lw.astype(jnp.bfloat16),
        "lstm_b": w(ks[7], (4 * HIDDEN,)).reshape(1, 4 * HIDDEN),
        "fc_w": fc_w.astype(jnp.bfloat16),
        "fc_b": w(ks[9], (FC_DIM,)).reshape(1, FC_DIM),
        "head_w": head_w.astype(jnp.bfloat16),
        "head_b": head_b.reshape(1, OUTPUT_SIZE + 2),
    }


def forward_impl(params, x, hx, cx, embed):
    """x: (B,84,84,C_in) NHWC; hx,cx: (B,32,7,7) NCHW; embed: (B,8).
    Returns (pi_logits, value, h_out, c_out); Categorical(logits=...) is represented by logits."""
    B = x.shape[0]

    # conv1 + ReLU : (B,84,84,4) -> (B,20,20,32)
    p1, oh1, ow1 = im2col(x, 8, 8, 4)
    y1 = matmul_bias_act(p1, params["conv1_w"], params["conv1_b"], "relu").reshape(B, oh1, ow1, 32)
    # conv2 + ReLU : -> (B,9,9,64)
    p2, oh2, ow2 = im2col(y1, 4, 4, 2)
    y2 = matmul_bias_act(p2, params["conv2_w"], params["conv2_b"], "relu").reshape(B, oh2, ow2, 64)
    # conv3 patches; the conv3 matmul + everything after runs inside the fused tail kernel.
    p3, oh3, ow3 = im2col(y2, 3, 3, 1)                                        # (B*49, 576)

    # NCHW -> NHWC-flat state (tiny transposes; the reverse for h_out/c_out is off the MXU path)
    h0 = jnp.transpose(hx, (0, 2, 3, 1)).reshape(B * oh3 * ow3, HIDDEN)
    c0 = jnp.transpose(cx, (0, 2, 3, 1)).reshape(B * oh3 * ow3, HIDDEN)

    logits, value, h_nhwc, c_nhwc = fused_tail(params, p3, embed, h0, c0, B)

    h_out = jnp.transpose(h_nhwc.reshape(B, oh3, ow3, HIDDEN), (0, 3, 1, 2))  # (B,32,7,7)
    c_out = jnp.transpose(c_nhwc.reshape(B, oh3, ow3, HIDDEN), (0, 3, 1, 2))
    return logits, value, h_out, c_out


forward = jax.jit(forward_impl)


if __name__ == "__main__":
    key = jax.random.PRNGKey(0)
    kx, ke, kh, kc, kp = jax.random.split(key, 5)
    B = 2

    x = jax.random.normal(kx, (B,) + INPUT_SIZE, dtype=jnp.float32)               # (2,84,84,4)
    embed = jax.random.normal(ke, (B, EMBED_DIM), dtype=jnp.float32)              # (2,8)
    hx = jax.random.normal(kh, (B, HIDDEN, SPATIAL, SPATIAL), dtype=jnp.float32)  # (2,32,7,7)
    cx = jax.random.normal(kc, (B, HIDDEN, SPATIAL, SPATIAL), dtype=jnp.float32)  # (2,32,7,7)
    params = init_params(kp)

    logits, value, h_out, c_out = jax.block_until_ready(forward(params, x, hx, cx, embed))

    assert logits.shape == (B, OUTPUT_SIZE) and logits.dtype == jnp.float32
    assert value.shape == (B, 1) and value.dtype == jnp.float32
    assert h_out.shape == (B, HIDDEN, SPATIAL, SPATIAL)
    assert c_out.shape == (B, HIDDEN, SPATIAL, SPATIAL)
    assert bool(jnp.all(jnp.isfinite(logits))) and bool(jnp.all(jnp.isfinite(value)))
    assert bool(jnp.all(jnp.isfinite(h_out))) and bool(jnp.all(jnp.isfinite(c_out)))
    print("KERNEL_OK")
</pallas_src>

<mosaic_0001>
module attributes {stable_mosaic.version = 11 : i64} {
  func.func @_matmul_bias_act_kernel(%arg0: i32, %arg1: memref<800x256xbf16, #tpu.memory_space<vmem>>, %arg2: memref<256x32xbf16, #tpu.memory_space<vmem>>, %arg3: memref<1x32xf32, #tpu.memory_space<vmem>>, %arg4: memref<800x32xf32, #tpu.memory_space<vmem>>) attributes {dimension_semantics = [#tpu.dimension_semantics<parallel>], iteration_bounds = array<i64: 1>, scalar_prefetch = 0 : i64, scratch_operands = 0 : i64, tpu.core_type = #tpu.core_type<tc>, window_params = [{transform_indices = @transform_0, window_bounds = array<i64: 800, 256>}, {pipeline_mode = #tpu.pipeline_mode<synchronous>, transform_indices = @transform_1, window_bounds = array<i64: 256, 32>}, {pipeline_mode = #tpu.pipeline_mode<synchronous>, transform_indices = @transform_2, window_bounds = array<i64: 1, 32>}, {transform_indices = @transform_3, window_bounds = array<i64: 800, 32>}]} {
    %c0 = arith.constant 0 : index
    %c0_0 = arith.constant 0 : index
    %0 = vector.load %arg1[%c0, %c0_0] : memref<800x256xbf16, #tpu.memory_space<vmem>>, vector<800x256xbf16>
    %c0_1 = arith.constant 0 : index
    %c0_2 = arith.constant 0 : index
    %1 = vector.load %arg2[%c0_1, %c0_2] : memref<256x32xbf16, #tpu.memory_space<vmem>>, vector<256x32xbf16>
    %cst = arith.constant dense<0.000000e+00> : vector<800x32xf32>
    %2 = tpu.matmul %0, %1, %cst {dimension_numbers = #tpu.dot_dimension_numbers<[1], [0], [0], [1], [0, 0, 1, 1], [], []>} : vector<800x256xbf16>, vector<256x32xbf16>, vector<800x32xf32> -> vector<800x32xf32>
    %c0_3 = arith.constant 0 : index
    %c0_4 = arith.constant 0 : index
    %3 = vector.load %arg3[%c0_3, %c0_4] : memref<1x32xf32, #tpu.memory_space<vmem>>, vector<1x32xf32>
    %4 = vector.broadcast %3 : vector<1x32xf32> to vector<800x32xf32>
    %5 = arith.addf %2, %4 : vector<800x32xf32>
    %cst_5 = arith.constant 0.000000e+00 : f32
    %6 = vector.broadcast %cst_5 : f32 to vector<800x32xf32>
    %7 = arith.maximumf %5, %6 : vector<800x32xf32>
    %c0_6 = arith.constant 0 : index
    %c0_7 = arith.constant 0 : index
    %8 = vector.load %arg4[%c0_6, %c0_7] : memref<800x32xf32, #tpu.memory_space<vmem>>, vector<800x32xf32>
    tpu.vector_store %arg4[%c0_6, %c0_7], %7 {strides = array<i32>} : memref<800x32xf32, #tpu.memory_space<vmem>>, vector<800x32xf32>,
    return
  }
  func.func @transform_0(%arg0: i32) -> (i32, i32) {
    %c0_i32 = arith.constant 0 : i32
    %c0_i32_0 = arith.constant 0 : i32
    return %arg0, %c0_i32 : i32, i32
  }
  func.func @transform_1(%arg0: i32) -> (i32, i32) {
    %c0_i32 = arith.constant 0 : i32
    %c0_i32_0 = arith.constant 0 : i32
    %c0_i32_1 = arith.constant 0 : i32
    return %c0_i32, %c0_i32_0 : i32, i32
  }
  func.func @transform_2(%arg0: i32) -> (i32, i32) {
    %c0_i32 = arith.constant 0 : i32
    %c0_i32_0 = arith.constant 0 : i32
    %c0_i32_1 = arith.constant 0 : i32
    return %c0_i32, %c0_i32_0 : i32, i32
  }
  func.func @transform_3(%arg0: i32) -> (i32, i32) {
    %c0_i32 = arith.constant 0 : i32
    %c0_i32_0 = arith.constant 0 : i32
    return %arg0, %c0_i32 : i32, i32
  }
}

module attributes {stable_mosaic.version = 11 : i64} {
  func.func @_matmul_bias_act_kernel(%arg0: i32, %arg1: memref<168x512xbf16, #tpu.memory_space<vmem>>, %arg2: memref<512x64xbf16, #tpu.memory_space<vmem>>, %arg3: memref<1x64xf32, #tpu.memory_space<vmem>>, %arg4: memref<168x64xf32, #tpu.memory_space<vmem>>) attributes {dimension_semantics = [#tpu.dimension_semantics<parallel>], iteration_bounds = array<i64: 1>, scalar_prefetch = 0 : i64, scratch_operands = 0 : i64, tpu.core_type = #tpu.core_type<tc>, window_params = [{transform_indices = @transform_0, window_bounds = array<i64: 168, 512>}, {pipeline_mode = #tpu.pipeline_mode<synchronous>, transform_indices = @transform_1, window_bounds = array<i64: 512, 64>}, {pipeline_mode = #tpu.pipeline_mode<synchronous>, transform_indices = @transform_2, window_bounds = array<i64: 1, 64>}, {transform_indices = @transform_3, window_bounds = array<i64: 168, 64>}]} {
    %c0 = arith.constant 0 : index
    %c0_0 = arith.constant 0 : index
    %0 = vector.load %arg1[%c0, %c0_0] : memref<168x512xbf16, #tpu.memory_space<vmem>>, vector<168x512xbf16>
    %c0_1 = arith.constant 0 : index
    %c0_2 = arith.constant 0 : index
    %1 = vector.load %arg2[%c0_1, %c0_2] : memref<512x64xbf16, #tpu.memory_space<vmem>>, vector<512x64xbf16>
    %cst = arith.constant dense<0.000000e+00> : vector<168x64xf32>
    %2 = tpu.matmul %0, %1, %cst {dimension_numbers = #tpu.dot_dimension_numbers<[1], [0], [0], [1], [0, 0, 1, 1], [], []>} : vector<168x512xbf16>, vector<512x64xbf16>, vector<168x64xf32> -> vector<168x64xf32>
    %c0_3 = arith.constant 0 : index
    %c0_4 = arith.constant 0 : index
    %3 = vector.load %arg3[%c0_3, %c0_4] : memref<1x64xf32, #tpu.memory_space<vmem>>, vector<1x64xf32>
    %4 = vector.broadcast %3 : vector<1x64xf32> to vector<168x64xf32>
    %5 = arith.addf %2, %4 : vector<168x64xf32>
    %cst_5 = arith.constant 0.000000e+00 : f32
    %6 = vector.broadcast %cst_5 : f32 to vector<168x64xf32>
    %7 = arith.maximumf %5, %6 : vector<168x64xf32>
    %c0_6 = arith.constant 0 : index
    %c0_7 = arith.constant 0 : index
    %8 = vector.load %arg4[%c0_6, %c0_7] : memref<168x64xf32, #tpu.memory_space<vmem>>, vector<168x64xf32>
    tpu.vector_store %arg4[%c0_6, %c0_7], %7 {strides = array<i32>} : memref<168x64xf32, #tpu.memory_space<vmem>>, vector<168x64xf32>,
    return
  }
  func.func @transform_0(%arg0: i32) -> (i32, i32) {
    %c0_i32 = arith.constant 0 : i32
    %c0_i32_0 = arith.constant 0 : i32
    return %arg0, %c0_i32 : i32, i32
  }
  func.func @transform_1(%arg0: i32) -> (i32, i32) {
    %c0_i32 = arith.constant 0 : i32
    %c0_i32_0 = arith.constant 0 : i32
    %c0_i32_1 = arith.constant 0 : i32
    return %c0_i32, %c0_i32_0 : i32, i32
  }
  func.func @transform_2(%arg0: i32) -> (i32, i32) {
    %c0_i32 = arith.constant 0 : i32
    %c0_i32_0 = arith.constant 0 : i32
    %c0_i32_1 = arith.constant 0 : i32
    return %c0_i32, %c0_i32_0 : i32, i32
  }
  func.func @transform_3(%arg0: i32) -> (i32, i32) {
    %c0_i32 = arith.constant 0 : i32
    %c0_i32_0 = arith.constant 0 : i32
    return %arg0, %c0_i32 : i32, i32
  }
}

module attributes {stable_mosaic.version = 11 : i64} {
  func.func @_tail_kernel(%arg0: memref<98x576xbf16, #tpu.memory_space<vmem>>, %arg1: memref<2x8xf32, #tpu.memory_space<vmem>>, %arg2: memref<98x32xf32, #tpu.memory_space<vmem>>, %arg3: memref<98x32xf32, #tpu.memory_space<vmem>>, %arg4: memref<98x9xf32, #tpu.memory_space<vmem>>, %arg5: memref<576x64xbf16, #tpu.memory_space<vmem>>, %arg6: memref<1x64xf32, #tpu.memory_space<vmem>>, %arg7: memref<1152x128xbf16, #tpu.memory_space<vmem>>, %arg8: memref<1x128xf32, #tpu.memory_space<vmem>>, %arg9: memref<1568x256xbf16, #tpu.memory_space<vmem>>, %arg10: memref<1x256xf32, #tpu.memory_space<vmem>>, %arg11: memref<256x8xbf16, #tpu.memory_space<vmem>>, %arg12: memref<1x8xf32, #tpu.memory_space<vmem>>, %arg13: memref<2x6xf32, #tpu.memory_space<vmem>>, %arg14: memref<2x1xf32, #tpu.memory_space<vmem>>, %arg15: memref<98x32xf32, #tpu.memory_space<vmem>>, %arg16: memref<98x32xf32, #tpu.memory_space<vmem>>) attributes {dimension_semantics = [], scalar_prefetch = 0 : i64, scratch_operands = 0 : i64, tpu.core_type = #tpu.core_type<tc>} {
    %c0 = arith.constant 0 : index
    %c0_0 = arith.constant 0 : index
    %0 = vector.load %arg0[%c0, %c0_0] : memref<98x576xbf16, #tpu.memory_space<vmem>>, vector<98x576xbf16>
    %c0_1 = arith.constant 0 : index
    %c0_2 = arith.constant 0 : index
    %1 = vector.load %arg5[%c0_1, %c0_2] : memref<576x64xbf16, #tpu.memory_space<vmem>>, vector<576x64xbf16>
    %cst = arith.constant dense<0.000000e+00> : vector<98x64xf32>
    %2 = tpu.matmul %0, %1, %cst {dimension_numbers = #tpu.dot_dimension_numbers<[1], [0], [0], [1], [0, 0, 1, 1], [], []>} : vector<98x576xbf16>, vector<576x64xbf16>, vector<98x64xf32> -> vector<98x64xf32>
    %c0_3 = arith.constant 0 : index
    %c0_4 = arith.constant 0 : index
    %3 = vector.load %arg6[%c0_3, %c0_4] : memref<1x64xf32, #tpu.memory_space<vmem>>, vector<1x64xf32>
    %4 = vector.broadcast %3 : vector<1x64xf32> to vector<98x64xf32>
    %5 = arith.addf %2, %4 : vector<98x64xf32>
    %cst_5 = arith.constant 0.000000e+00 : f32
    %6 = vector.broadcast %cst_5 : f32 to vector<98x64xf32>
    %7 = arith.maximumf %5, %6 : vector<98x64xf32>
    %c0_6 = arith.constant 0 : index
    %c0_7 = arith.constant 0 : index
    %8 = vector.load %arg1[%c0_6, %c0_7] : memref<2x8xf32, #tpu.memory_space<vmem>>, vector<2x8xf32>
    %9 = vector.extract_strided_slice %8 {offsets = [0, 0], sizes = [1, 8], strides = [1, 1]} : vector<2x8xf32> to vector<1x8xf32>
    %10 = vector.shape_cast %9 : vector<1x8xf32> to vector<1x8xf32>
    %11 = vector.broadcast %10 : vector<1x8xf32> to vector<49x8xf32>
    %12 = vector.extract_strided_slice %8 {offsets = [1, 0], sizes = [1, 8], strides = [1, 1]} : vector<2x8xf32> to vector<1x8xf32>
    %13 = vector.shape_cast %12 : vector<1x8xf32> to vector<1x8xf32>
    %14 = vector.broadcast %13 : vector<1x8xf32> to vector<49x8xf32>
    %15 = tpu.concatenate %11, %14 in 0 : vector<49x8xf32>, vector<49x8xf32> -> vector<98x8xf32>
    %16 = tpu.concatenate %7, %15 in 1 : vector<98x64xf32>, vector<98x8xf32> -> vector<98x72xf32>
    %c0_8 = arith.constant 0 : index
    %c0_9 = arith.constant 0 : index
    %17 = vector.load %arg2[%c0_8, %c0_9] : memref<98x32xf32, #tpu.memory_space<vmem>>, vector<98x32xf32>
    %c0_10 = arith.constant 0 : index
    %c0_11 = arith.constant 0 : index
    %18 = vector.load %arg3[%c0_10, %c0_11] : memref<98x32xf32, #tpu.memory_space<vmem>>, vector<98x32xf32>
    %c0_12 = arith.constant 0 : index
    %c0_13 = arith.constant 0 : index
    %19 = vector.load %arg4[%c0_12, %c0_13] : memref<98x9xf32, #tpu.memory_space<vmem>>, vector<98x9xf32>
    %cst_14 = arith.constant 0.000000e+00 : f32
    %20 = vector.broadcast %cst_14 : f32 to vector<98x24xf32>
    %cst_15 = arith.constant 0.000000e+00 : f32
    %21 = vector.broadcast %cst_15 : f32 to vector<8x128xf32>
    %22 = tpu.iota {dimensions = array<i32: 1>} : vector<98x128xi32>
    %c96_i32 = arith.constant 96 : i32
    %23 = vector.broadcast %c96_i32 : i32 to vector<98x128xi32>
    %24 = arith.cmpi slt, %22, %23 : vector<98x128xi32>
    %c0_16 = arith.constant 0 : index
    %c0_17 = arith.constant 0 : index
    %25 = vector.load %arg7[%c0_16, %c0_17] : memref<1152x128xbf16, #tpu.memory_space<vmem>>, vector<1152x128xbf16>
    %c0_18 = arith.constant 0 : index
    %c0_19 = arith.constant 0 : index
    %26 = vector.load %arg8[%c0_18, %c0_19] : memref<1x128xf32, #tpu.memory_space<vmem>>, vector<1x128xf32>
    %27 = tpu.concatenate %16, %17, %20 in 1 : vector<98x72xf32>, vector<98x32xf32>, vector<98x24xf32> -> vector<98x128xf32>
    %28 = tpu.concatenate %21, %27, %21 in 0 : vector<8x128xf32>, vector<98x128xf32>, vector<8x128xf32> -> vector<114x128xf32>
    %29 = vector.extract_strided_slice %28 {offsets = [0, 0], sizes = [98, 128], strides = [1, 1]} : vector<114x128xf32> to vector<98x128xf32>
    %30 = vector.extract_strided_slice %19 {offsets = [0, 0], sizes = [98, 1], strides = [1, 1]} : vector<98x9xf32> to vector<98x1xf32>
    %31 = vector.broadcast %30 : vector<98x1xf32> to vector<98x128xf32>
    %32 = arith.mulf %29, %31 : vector<98x128xf32>
    %33 = vector.extract_strided_slice %28 {offsets = [1, 0], sizes = [98, 128], strides = [1, 1]} : vector<114x128xf32> to vector<98x128xf32>
    %34 = vector.extract_strided_slice %19 {offsets = [0, 1], sizes = [98, 1], strides = [1, 1]} : vector<98x9xf32> to vector<98x1xf32>
    %35 = vector.broadcast %34 : vector<98x1xf32> to vector<98x128xf32>
    %36 = arith.mulf %33, %35 : vector<98x128xf32>
    %37 = vector.extract_strided_slice %28 {offsets = [2, 0], sizes = [98, 128], strides = [1, 1]} : vector<114x128xf32> to vector<98x128xf32>
    %38 = vector.extract_strided_slice %19 {offsets = [0, 2], sizes = [98, 1], strides = [1, 1]} : vector<98x9xf32> to vector<98x1xf32>
    %39 = vector.broadcast %38 : vector<98x1xf32> to vector<98x128xf32>
    %40 = arith.mulf %37, %39 : vector<98x128xf32>
    %41 = vector.extract_strided_slice %28 {offsets = [7, 0], sizes = [98, 128], strides = [1, 1]} : vector<114x128xf32> to vector<98x128xf32>
    %42 = vector.extract_strided_slice %19 {offsets = [0, 3], sizes = [98, 1], strides = [1, 1]} : vector<98x9xf32> to vector<98x1xf32>
    %43 = vector.broadcast %42 : vector<98x1xf32> to vector<98x128xf32>
    %44 = arith.mulf %41, %43 : vector<98x128xf32>
    %45 = vector.extract_strided_slice %28 {offsets = [8, 0], sizes = [98, 128], strides = [1, 1]} : vector<114x128xf32> to vector<98x128xf32>
    %46 = vector.extract_strided_slice %19 {offsets = [0, 4], sizes = [98, 1], strides = [1, 1]} : vector<98x9xf32> to vector<98x1xf32>
    %47 = vector.broadcast %46 : vector<98x1xf32> to vector<98x128xf32>
    %48 = arith.mulf %45, %47 : vector<98x128xf32>
    %49 = vector.extract_strided_slice %28 {offsets = [9, 0], sizes = [98, 128], strides = [1, 1]} : vector<114x128xf32> to vector<98x128xf32>
    %50 = vector.extract_strided_slice %19 {offsets = [0, 5], sizes = [98, 1], strides = [1, 1]} : vector<98x9xf32> to vector<98x1xf32>
    %51 = vector.broadcast %50 : vector<98x1xf32> to vector<98x128xf32>
    %52 = arith.mulf %49, %51 : vector<98x128xf32>
    %53 = vector.extract_strided_slice %28 {offsets = [14, 0], sizes = [98, 128], strides = [1, 1]} : vector<114x128xf32> to vector<98x128xf32>
    %54 = vector.extract_strided_slice %19 {offsets = [0, 6], sizes = [98, 1], strides = [1, 1]} : vector<98x9xf32> to vector<98x1xf32>
    %55 = vector.broadcast %54 : vector<98x1xf32> to vector<98x128xf32>
    %56 = arith.mulf %53, %55 : vector<98x128xf32>
    %57 = vector.extract_strided_slice %28 {offsets = [15, 0], sizes = [98, 128], strides = [1, 1]} : vector<114x128xf32> to vector<98x128xf32>
    %58 = vector.extract_strided_slice %19 {offsets = [0, 7], sizes = [98, 1], strides = [1, 1]} : vector<98x9xf32> to vector<98x1xf32>
    %59 = vector.broadcast %58 : vector<98x1xf32> to vector<98x128xf32>
    %60 = arith.mulf %57, %59 : vector<98x128xf32>
    %61 = vector.extract_strided_slice %28 {offsets = [16, 0], sizes = [98, 128], strides = [1, 1]} : vector<114x128xf32> to vector<98x128xf32>
    %62 = vector.extract_strided_slice %19 {offsets = [0, 8], sizes = [98, 1], strides = [1, 1]} : vector<98x9xf32> to vector<98x1xf32>
    %63 = vector.broadcast %62 : vector<98x1xf32> to vector<98x128xf32>
    %64 = arith.mulf %61, %63 : vector<98x128xf32>
    %65 = tpu.concatenate %32, %36, %40, %44, %48, %52, %56, %60, %64 in 1 : vector<98x128xf32>, vector<98x128xf32>, vector<98x128xf32>, vector<98x128xf32>, vector<98x128xf32>, vector<98x128xf32>, vector<98x128xf32>, vector<98x128xf32>, vector<98x128xf32> -> vector<98x1152xf32>
    %66 = arith.truncf %65 : vector<98x1152xf32> to vector<98x1152xbf16>
    %cst_20 = arith.constant dense<0.000000e+00> : vector<98x128xf32>
    %67 = tpu.matmul %66, %25, %cst_20 {dimension_numbers = #tpu.dot_dimension_numbers<[1], [0], [0], [1], [0, 0, 1, 1], [], []>} : vector<98x1152xbf16>, vector<1152x128xbf16>, vector<98x128xf32> -> vector<98x128xf32>
    %68 = vector.broadcast %26 : vector<1x128xf32> to vector<98x128xf32>
    %69 = arith.addf %67, %68 : vector<98x128xf32>
    %70 = arith.negf %69 : vector<98x128xf32>
    %71 = math.exp %70 : vector<98x128xf32>
    %cst_21 = arith.constant 1.000000e+00 : f32
    %72 = vector.broadcast %cst_21 : f32 to vector<98x128xf32>
    %73 = arith.addf %72, %71 : vector<98x128xf32>
    %74 = arith.divf %72, %73 : vector<98x128xf32>
    %75 = math.tanh %69 : vector<98x128xf32>
    %76 = arith.select %24, %74, %75 : vector<98x128xi1>, vector<98x128xf32>
    %77 = vector.extract_strided_slice %76 {offsets = [0, 0], sizes = [98, 32], strides = [1, 1]} : vector<98x128xf32> to vector<98x32xf32>
    %78 = vector.extract_strided_slice %76 {offsets = [0, 32], sizes = [98, 32], strides = [1, 1]} : vector<98x128xf32> to vector<98x32xf32>
    %79 = vector.extract_strided_slice %76 {offsets = [0, 64], sizes = [98, 32], strides = [1, 1]} : vector<98x128xf32> to vector<98x32xf32>
    %80 = vector.extract_strided_slice %76 {offsets = [0, 96], sizes = [98, 32], strides = [1, 1]} : vector<98x128xf32> to vector<98x32xf32>
    %81 = arith.mulf %78, %18 : vector<98x32xf32>
    %82 = arith.mulf %77, %80 : vector<98x32xf32>
    %83 = arith.addf %81, %82 : vector<98x32xf32>
    %84 = math.tanh %83 : vector<98x32xf32>
    %85 = arith.mulf %79, %84 : vector<98x32xf32>
    %c0_22 = arith.constant 0 : index
    %c0_23 = arith.constant 0 : index
    %86 = vector.load %arg15[%c0_22, %c0_23] : memref<98x32xf32, #tpu.memory_space<vmem>>, vector<98x32xf32>
    tpu.vector_store %arg15[%c0_22, %c0_23], %85 {strides = array<i32>} : memref<98x32xf32, #tpu.memory_space<vmem>>, vector<98x32xf32>,
    %c0_24 = arith.constant 0 : index
    %c0_25 = arith.constant 0 : index
    %87 = vector.load %arg16[%c0_24, %c0_25] : memref<98x32xf32, #tpu.memory_space<vmem>>, vector<98x32xf32>
    tpu.vector_store %arg16[%c0_24, %c0_25], %83 {strides = array<i32>} : memref<98x32xf32, #tpu.memory_space<vmem>>, vector<98x32xf32>,
    %88 = vector.extract_strided_slice %85 {offsets = [0, 0], sizes = [1, 32], strides = [1, 1]} : vector<98x32xf32> to vector<1x32xf32>
    %89 = vector.extract_strided_slice %85 {offsets = [49, 0], sizes = [1, 32], strides = [1, 1]} : vector<98x32xf32> to vector<1x32xf32>
    %90 = tpu.concatenate %88, %89 in 0 : vector<1x32xf32>, vector<1x32xf32> -> vector<2x32xf32>
    %91 = vector.extract_strided_slice %85 {offsets = [1, 0], sizes = [1, 32], strides = [1, 1]} : vector<98x32xf32> to vector<1x32xf32>
    %92 = vector.extract_strided_slice %85 {offsets = [50, 0], sizes = [1, 32], strides = [1, 1]} : vector<98x32xf32> to vector<1x32xf32>
    %93 = tpu.concatenate %91, %92 in 0 : vector<1x32xf32>, vector<1x32xf32> -> vector<2x32xf32>
    %94 = vector.extract_strided_slice %85 {offsets = [2, 0], sizes = [1, 32], strides = [1, 1]} : vector<98x32xf32> to vector<1x32xf32>
    %95 = vector.extract_strided_slice %85 {offsets = [51, 0], sizes = [1, 32], strides = [1, 1]} : vector<98x32xf32> to vector<1x32xf32>
    %96 = tpu.concatenate %94, %95 in 0 : vector<1x32xf32>, vector<1x32xf32> -> vector<2x32xf32>
    %97 = vector.extract_strided_slice %85 {offsets = [3, 0], sizes = [1, 32], strides = [1, 1]} : vector<98x32xf32> to vector<1x32xf32>
    %98 = vector.extract_strided_slice %85 {offsets = [52, 0], sizes = [1, 32], strides = [1, 1]} : vector<98x32xf32> to vector<1x32xf32>
    %99 = tpu.concatenate %97, %98 in 0 : vector<1x32xf32>, vector<1x32xf32> -> vector<2x32xf32>
    %100 = vector.extract_strided_slice %85 {offsets = [4, 0], sizes = [1, 32], strides = [1, 1]} : vector<98x32xf32> to vector<1x32xf32>
    %101 = vector.extract_strided_slice %85 {offsets = [53, 0], sizes = [1, 32], strides = [1, 1]} : vector<98x32xf32> to vector<1x32xf32>
    %102 = tpu.concatenate %100, %101 in 0 : vector<1x32xf32>, vector<1x32xf32> -> vector<2x32xf32>
    %103 = vector.extract_strided_slice %85 {offsets = [5, 0], sizes = [1, 32], strides = [1, 1]} : vector<98x32xf32> to vector<1x32xf32>
    %104 = vector.extract_strided_slice %85 {offsets = [54, 0], sizes = [1, 32], strides = [1, 1]} : vector<98x32xf32> to vector<1x32xf32>
    %105 = tpu.concatenate %103, %104 in 0 : vector<1x32xf32>, vector<1x32xf32> -> vector<2x32xf32>
    %106 = vector.extract_strided_slice %85 {offsets = [6, 0], sizes = [1, 32], strides = [1, 1]} : vector<98x32xf32> to vector<1x32xf32>
    %107 = vector.extract_strided_slice %85 {offsets = [55, 0], sizes = [1, 32], strides = [1, 1]} : vector<98x32xf32> to vector<1x32xf32>
    %108 = tpu.concatenate %106, %107 in 0 : vector<1x32xf32>, vector<1x32xf32> -> vector<2x32xf32>
    %109 = vector.extract_strided_slice %85 {offsets = [7, 0], sizes = [1, 32], strides = [1, 1]} : vector<98x32xf32> to vector<1x32xf32>
    %110 = vector.extract_strided_slice %85 {offsets = [56, 0], sizes = [1, 32], strides = [1, 1]} : vector<98x32xf32> to vector<1x32xf32>
    %111 = tpu.concatenate %109, %110 in 0 : vector<1x32xf32>, vector<1x32xf32> -> vector<2x32xf32>
    %112 = vector.extract_strided_slice %85 {offsets = [8, 0], sizes = [1, 32], strides = [1, 1]} : vector<98x32xf32> to vector<1x32xf32>
    %113 = vector.extract_strided_slice %85 {offsets = [57, 0], sizes = [1, 32], strides = [1, 1]} : vector<98x32xf32> to vector<1x32xf32>
    %114 = tpu.concatenate %112, %113 in 0 : vector<1x32xf32>, vector<1x32xf32> -> vector<2x32xf32>
    %115 = vector.extract_strided_slice %85 {offsets = [9, 0], sizes = [1, 32], strides = [1, 1]} : vector<98x32xf32> to vector<1x32xf32>
    %116 = vector.extract_strided_slice %85 {offsets = [58, 0], sizes = [1, 32], strides = [1, 1]} : vector<98x32xf32> to vector<1x32xf32>
    %117 = tpu.concatenate %115, %116 in 0 : vector<1x32xf32>, vector<1x32xf32> -> vector<2x32xf32>
    %118 = vector.extract_strided_slice %85 {offsets = [10, 0], sizes = [1, 32], strides = [1, 1]} : vector<98x32xf32> to vector<1x32xf32>
    %119 = vector.extract_strided_slice %85 {offsets = [59, 0], sizes = [1, 32], strides = [1, 1]} : vector<98x32xf32> to vector<1x32xf32>
    %120 = tpu.concatenate %118, %119 in 0 : vector<1x32xf32>, vector<1x32xf32> -> vector<2x32xf32>
    %121 = vector.extract_strided_slice %85 {offsets = [11, 0], sizes = [1, 32], strides = [1, 1]} : vector<98x32xf32> to vector<1x32xf32>
    %122 = vector.extract_strided_slice %85 {offsets = [60, 0], sizes = [1, 32], strides = [1, 1]} : vector<98x32xf32> to vector<1x32xf32>
    %123 = tpu.concatenate %121, %122 in 0 : vector<1x32xf32>, vector<1x32xf32> -> vector<2x32xf32>
    %124 = vector.extract_strided_slice %85 {offsets = [12, 0], sizes = [1, 32], strides = [1, 1]} : vector<98x32xf32> to vector<1x32xf32>
    %125 = vector.extract_strided_slice %85 {offsets = [61, 0], sizes = [1, 32], strides = [1, 1]} : vector<98x32xf32> to vector<1x32xf32>
    %126 = tpu.concatenate %124, %125 in 0 : vector<1x32xf32>, vector<1x32xf32> -> vector<2x32xf32>
    %127 = vector.extract_strided_slice %85 {offsets = [13, 0], sizes = [1, 32], strides = [1, 1]} : vector<98x32xf32> to vector<1x32xf32>
    %128 = vector.extract_strided_slice %85 {offsets = [62, 0], sizes = [1, 32], strides = [1, 1]} : vector<98x32xf32> to vector<1x32xf32>
    %129 = tpu.concatenate %127, %128 in 0 : vector<1x32xf32>, vector<1x32xf32> -> vector<2x32xf32>
    %130 = vector.extract_strided_slice %85 {offsets = [14, 0], sizes = [1, 32], strides = [1, 1]} : vector<98x32xf32> to vector<1x32xf32>
    %131 = vector.extract_strided_slice %85 {offsets = [63, 0], sizes = [1, 32], strides = [1, 1]} : vector<98x32xf32> to vector<1x32xf32>
    %132 = tpu.concatenate %130, %131 in 0 : vector<1x32xf32>, vector<1x32xf32> -> vector<2x32xf32>
    %133 = vector.extract_strided_slice %85 {offsets = [15, 0], sizes = [1, 32], strides = [1, 1]} : vector<98x32xf32> to vector<1x32xf32>
    %134 = vector.extract_strided_slice %85 {offsets = [64, 0], sizes = [1, 32], strides = [1, 1]} : vector<98x32xf32> to vector<1x32xf32>
    %135 = tpu.concatenate %133, %134 in 0 : vector<1x32xf32>, vector<1x32xf32> -> vector<2x32xf32>
    %136 = vector.extract_strided_slice %85 {offsets = [16, 0], sizes = [1, 32], strides = [1, 1]} : vector<98x32xf32> to vector<1x32xf32>
    %137 = vector.extract_strided_slice %85 {offsets = [65, 0], sizes = [1, 32], strides = [1, 1]} : vector<98x32xf32> to vector<1x32xf32>
    %138 = tpu.concatenate %136, %137 in 0 : vector<1x32xf32>, vector<1x32xf32> -> vector<2x32xf32>
    %139 = vector.extract_strided_slice %85 {offsets = [17, 0], sizes = [1, 32], strides = [1, 1]} : vector<98x32xf32> to vector<1x32xf32>
    %140 = vector.extract_strided_slice %85 {offsets = [66, 0], sizes = [1, 32], strides = [1, 1]} : vector<98x32xf32> to vector<1x32xf32>
    %141 = tpu.concatenate %139, %140 in 0 : vector<1x32xf32>, vector<1x32xf32> -> vector<2x32xf32>
    %142 = vector.extract_strided_slice %85 {offsets = [18, 0], sizes = [1, 32], strides = [1, 1]} : vector<98x32xf32> to vector<1x32xf32>
    %143 = vector.extract_strided_slice %85 {offsets = [67, 0], sizes = [1, 32], strides = [1, 1]} : vector<98x32xf32> to vector<1x32xf32>
    %144 = tpu.concatenate %142, %143 in 0 : vector<1x32xf32>, vector<1x32xf32> -> vector<2x32xf32>
    %145 = vector.extract_strided_slice %85 {offsets = [19, 0], sizes = [1, 32], strides = [1, 1]} : vector<98x32xf32> to vector<1x32xf32>
    %146 = vector.extract_strided_slice %85 {offsets = [68, 0], sizes = [1, 32], strides = [1, 1]} : vector<98x32xf32> to vector<1x32xf32>
    %147 = tpu.concatenate %145, %146 in 0 : vector<1x32xf32>, vector<1x32xf32> -> vector<2x32xf32>
    %148 = vector.extract_strided_slice %85 {offsets = [20, 0], sizes = [1, 32], strides = [1, 1]} : vector<98x32xf32> to vector<1x32xf32>
    %149 = vector.extract_strided_slice %85 {offsets = [69, 0], sizes = [1, 32], strides = [1, 1]} : vector<98x32xf32> to vector<1x32xf32>
    %150 = tpu.concatenate %148, %149 in 0 : vector<1x32xf32>, vector<1x32xf32> -> vector<2x32xf32>
    %151 = vector.extract_strided_slice %85 {offsets = [21, 0], sizes = [1, 32], strides = [1, 1]} : vector<98x32xf32> to vector<1x32xf32>
    %152 = vector.extract_strided_slice %85 {offsets = [70, 0], sizes = [1, 32], strides = [1, 1]} : vector<98x32xf32> to vector<1x32xf32>
    %153 = tpu.concatenate %151, %152 in 0 : vector<1x32xf32>, vector<1x32xf32> -> vector<2x32xf32>
    %154 = vector.extract_strided_slice %85 {offsets = [22, 0], sizes = [1, 32], strides = [1, 1]} : vector<98x32xf32> to vector<1x32xf32>
    %155 = vector.extract_strided_slice %85 {offsets = [71, 0], sizes = [1, 32], strides = [1, 1]} : vector<98x32xf32> to vector<1x32xf32>
    %156 = tpu.concatenate %154, %155 in 0 : vector<1x32xf32>, vector<1x32xf32> -> vector<2x32xf32>
    %157 = vector.extract_strided_slice %85 {offsets = [23, 0], sizes = [1, 32], strides = [1, 1]} : vector<98x32xf32> to vector<1x32xf32>
    %158 = vector.extract_strided_slice %85 {offsets = [72, 0], sizes = [1, 32], strides = [1, 1]} : vector<98x32xf32> to vector<1x32xf32>
    %159 = tpu.concatenate %157, %158 in 0 : vector<1x32xf32>, vector<1x32xf32> -> vector<2x32xf32>
    %160 = vector.extract_strided_slice %85 {offsets = [24, 0], sizes = [1, 32], strides = [1, 1]} : vector<98x32xf32> to vector<1x32xf32>
    %161 = vector.extract_strided_slice %85 {offsets = [73, 0], sizes = [1, 32], strides = [1, 1]} : vector<98x32xf32> to vector<1x32xf32>
    %162 = tpu.concatenate %160, %161 in 0 : vector<1x32xf32>, vector<1x32xf32> -> vector<2x32xf32>
    %163 = vector.extract_strided_slice %85 {offsets = [25, 0], sizes = [1, 32], strides = [1, 1]} : vector<98x32xf32> to vector<1x32xf32>
    %164 = vector.extract_strided_slice %85 {offsets = [74, 0], sizes = [1, 32], strides = [1, 1]} : vector<98x32xf32> to vector<1x32xf32>
    %165 = tpu.concatenate %163, %164 in 0 : vector<1x32xf32>, vector<1x32xf32> -> vector<2x32xf32>
    %166 = vector.extract_strided_slice %85 {offsets = [26, 0], sizes = [1, 32], strides = [1, 1]} : vector<98x32xf32> to vector<1x32xf32>
    %167 = vector.extract_strided_slice %85 {offsets = [75, 0], sizes = [1, 32], strides = [1, 1]} : vector<98x32xf32> to vector<1x32xf32>
    %168 = tpu.concatenate %166, %167 in 0 : vector<1x32xf32>, vector<1x32xf32> -> vector<2x32xf32>
    %169 = vector.extract_strided_slice %85 {offsets = [27, 0], sizes = [1, 32], strides = [1, 1]} : vector<98x32xf32> to vector<1x32xf32>
    %170 = vector.extract_strided_slice %85 {offsets = [76, 0], sizes = [1, 32], strides = [1, 1]} : vector<98x32xf32> to vector<1x32xf32>
    %171 = tpu.concatenate %169, %170 in 0 : vector<1x32xf32>, vector<1x32xf32> -> vector<2x32xf32>
    %172 = vector.extract_strided_slice %85 {offsets = [28, 0], sizes = [1, 32], strides = [1, 1]} : vector<98x32xf32> to vector<1x32xf32>
    %173 = vector.extract_strided_slice %85 {offsets = [77, 0], sizes = [1, 32], strides = [1, 1]} : vector<98x32xf32> to vector<1x32xf32>
    %174 = tpu.concatenate %172, %173 in 0 : vector<1x32xf32>, vector<1x32xf32> -> vector<2x32xf32>
    %175 = vector.extract_strided_slice %85 {offsets = [29, 0], sizes = [1, 32], strides = [1, 1]} : vector<98x32xf32> to vector<1x32xf32>
    %176 = vector.extract_strided_slice %85 {offsets = [78, 0], sizes = [1, 32], strides = [1, 1]} : vector<98x32xf32> to vector<1x32xf32>
    %177 = tpu.concatenate %175, %176 in 0 : vector<1x32xf32>, vector<1x32xf32> -> vector<2x32xf32>
    %178 = vector.extract_strided_slice %85 {offsets = [30, 0], sizes = [1, 32], strides = [1, 1]} : vector<98x32xf32> to vector<1x32xf32>
    %179 = vector.extract_strided_slice %85 {offsets = [79, 0], sizes = [1, 32], strides = [1, 1]} : vector<98x32xf32> to vector<1x32xf32>
    %180 = tpu.concatenate %178, %179 in 0 : vector<1x32xf32>, vector<1x32xf32> -> vector<2x32xf32>
    %181 = vector.extract_strided_slice %85 {offsets = [31, 0], sizes = [1, 32], strides = [1, 1]} : vector<98x32xf32> to vector<1x32xf32>
    %182 = vector.extract_strided_slice %85 {offsets = [80, 0], sizes = [1, 32], strides = [1, 1]} : vector<98x32xf32> to vector<1x32xf32>
    %183 = tpu.concatenate %181, %182 in 0 : vector<1x32xf32>, vector<1x32xf32> -> vector<2x32xf32>
    %184 = vector.extract_strided_slice %85 {offsets = [32, 0], sizes = [1, 32], strides = [1, 1]} : vector<98x32xf32> to vector<1x32xf32>
    %185 = vector.extract_strided_slice %85 {offsets = [81, 0], sizes = [1, 32], strides = [1, 1]} : vector<98x32xf32> to vector<1x32xf32>
    %186 = tpu.concatenate %184, %185 in 0 : vector<1x32xf32>, vector<1x32xf32> -> vector<2x32xf32>
    %187 = vector.extract_strided_slice %85 {offsets = [33, 0], sizes = [1, 32], strides = [1, 1]} : vector<98x32xf32> to vector<1x32xf32>
    %188 = vector.extract_strided_slice %85 {offsets = [82, 0], sizes = [1, 32], strides = [1, 1]} : vector<98x32xf32> to vector<1x32xf32>
    %189 = tpu.concatenate %187, %188 in 0 : vector<1x32xf32>, vector<1x32xf32> -> vector<2x32xf32>
    %190 = vector.extract_strided_slice %85 {offsets = [34, 0], sizes = [1, 32], strides = [1, 1]} : vector<98x32xf32> to vector<1x32xf32>
    %191 = vector.extract_strided_slice %85 {offsets = [83, 0], sizes = [1, 32], strides = [1, 1]} : vector<98x32xf32> to vector<1x32xf32>
    %192 = tpu.concatenate %190, %191 in 0 : vector<1x32xf32>, vector<1x32xf32> -> vector<2x32xf32>
    %193 = vector.extract_strided_slice %85 {offsets = [35, 0], sizes = [1, 32], strides = [1, 1]} : vector<98x32xf32> to vector<1x32xf32>
    %194 = vector.extract_strided_slice %85 {offsets = [84, 0], sizes = [1, 32], strides = [1, 1]} : vector<98x32xf32> to vector<1x32xf32>
    %195 = tpu.concatenate %193, %194 in 0 : vector<1x32xf32>, vector<1x32xf32> -> vector<2x32xf32>
    %196 = vector.extract_strided_slice %85 {offsets = [36, 0], sizes = [1, 32], strides = [1, 1]} : vector<98x32xf32> to vector<1x32xf32>
    %197 = vector.extract_strided_slice %85 {offsets = [85, 0], sizes = [1, 32], strides = [1, 1]} : vector<98x32xf32> to vector<1x32xf32>
    %198 = tpu.concatenate %196, %197 in 0 : vector<1x32xf32>, vector<1x32xf32> -> vector<2x32xf32>
    %199 = vector.extract_strided_slice %85 {offsets = [37, 0], sizes = [1, 32], strides = [1, 1]} : vector<98x32xf32> to vector<1x32xf32>
    %200 = vector.extract_strided_slice %85 {offsets = [86, 0], sizes = [1, 32], strides = [1, 1]} : vector<98x32xf32> to vector<1x32xf32>
    %201 = tpu.concatenate %199, %200 in 0 : vector<1x32xf32>, vector<1x32xf32> -> vector<2x32xf32>
    %202 = vector.extract_strided_slice %85 {offsets = [38, 0], sizes = [1, 32], strides = [1, 1]} : vector<98x32xf32> to vector<1x32xf32>
    %203 = vector.extract_strided_slice %85 {offsets = [87, 0], sizes = [1, 32], strides = [1, 1]} : vector<98x32xf32> to vector<1x32xf32>
    %204 = tpu.concatenate %202, %203 in 0 : vector<1x32xf32>, vector<1x32xf32> -> vector<2x32xf32>
    %205 = vector.extract_strided_slice %85 {offsets = [39, 0], sizes = [1, 32], strides = [1, 1]} : vector<98x32xf32> to vector<1x32xf32>
    %206 = vector.extract_strided_slice %85 {offsets = [88, 0], sizes = [1, 32], strides = [1, 1]} : vector<98x32xf32> to vector<1x32xf32>
    %207 = tpu.concatenate %205, %206 in 0 : vector<1x32xf32>, vector<1x32xf32> -> vector<2x32xf32>
    %208 = vector.extract_strided_slice %85 {offsets = [40, 0], sizes = [1, 32], strides = [1, 1]} : vector<98x32xf32> to vector<1x32xf32>
    %209 = vector.extract_strided_slice %85 {offsets = [89, 0], sizes = [1, 32], strides = [1, 1]} : vector<98x32xf32> to vector<1x32xf32>
    %210 = tpu.concatenate %208, %209 in 0 : vector<1x32xf32>, vector<1x32xf32> -> vector<2x32xf32>
    %211 = vector.extract_strided_slice %85 {offsets = [41, 0], sizes = [1, 32], strides = [1, 1]} : vector<98x32xf32> to vector<1x32xf32>
    %212 = vector.extract_strided_slice %85 {offsets = [90, 0], sizes = [1, 32], strides = [1, 1]} : vector<98x32xf32> to vector<1x32xf32>
    %213 = tpu.concatenate %211, %212 in 0 : vector<1x32xf32>, vector<1x32xf32> -> vector<2x32xf32>
    %214 = vector.extract_strided_slice %85 {offsets = [42, 0], sizes = [1, 32], strides = [1, 1]} : vector<98x32xf32> to vector<1x32xf32>
    %215 = vector.extract_strided_slice %85 {offsets = [91, 0], sizes = [1, 32], strides = [1, 1]} : vector<98x32xf32> to vector<1x32xf32>
    %216 = tpu.concatenate %214, %215 in 0 : vector<1x32xf32>, vector<1x32xf32> -> vector<2x32xf32>
    %217 = vector.extract_strided_slice %85 {offsets = [43, 0], sizes = [1, 32], strides = [1, 1]} : vector<98x32xf32> to vector<1x32xf32>
    %218 = vector.extract_strided_slice %85 {offsets = [92, 0], sizes = [1, 32], strides = [1, 1]} : vector<98x32xf32> to vector<1x32xf32>
    %219 = tpu.concatenate %217, %218 in 0 : vector<1x32xf32>, vector<1x32xf32> -> vector<2x32xf32>
    %220 = vector.extract_strided_slice %85 {offsets = [44, 0], sizes = [1, 32], strides = [1, 1]} : vector<98x32xf32> to vector<1x32xf32>
    %221 = vector.extract_strided_slice %85 {offsets = [93, 0], sizes = [1, 32], strides = [1, 1]} : vector<98x32xf32> to vector<1x32xf32>
    %222 = tpu.concatenate %220, %221 in 0 : vector<1x32xf32>, vector<1x32xf32> -> vector<2x32xf32>
    %223 = vector.extract_strided_slice %85 {offsets = [45, 0], sizes = [1, 32], strides = [1, 1]} : vector<98x32xf32> to vector<1x32xf32>
    %224 = vector.extract_strided_slice %85 {offsets = [94, 0], sizes = [1, 32], strides = [1, 1]} : vector<98x32xf32> to vector<1x32xf32>
    %225 = tpu.concatenate %223, %224 in 0 : vector<1x32xf32>, vector<1x32xf32> -> vector<2x32xf32>
    %226 = vector.extract_strided_slice %85 {offsets = [46, 0], sizes = [1, 32], strides = [1, 1]} : vector<98x32xf32> to vector<1x32xf32>
    %227 = vector.extract_strided_slice %85 {offsets = [95, 0], sizes = [1, 32], strides = [1, 1]} : vector<98x32xf32> to vector<1x32xf32>
    %228 = tpu.concatenate %226, %227 in 0 : vector<1x32xf32>, vector<1x32xf32> -> vector<2x32xf32>
    %229 = vector.extract_strided_slice %85 {offsets = [47, 0], sizes = [1, 32], strides = [1, 1]} : vector<98x32xf32> to vector<1x32xf32>
    %230 = vector.extract_strided_slice %85 {offsets = [96, 0], sizes = [1, 32], strides = [1, 1]} : vector<98x32xf32> to vector<1x32xf32>
    %231 = tpu.concatenate %229, %230 in 0 : vector<1x32xf32>, vector<1x32xf32> -> vector<2x32xf32>
    %232 = vector.extract_strided_slice %85 {offsets = [48, 0], sizes = [1, 32], strides = [1, 1]} : vector<98x32xf32> to vector<1x32xf32>
    %233 = vector.extract_strided_slice %85 {offsets = [97, 0], sizes = [1, 32], strides = [1, 1]} : vector<98x32xf32> to vector<1x32xf32>
    %234 = tpu.concatenate %232, %233 in 0 : vector<1x32xf32>, vector<1x32xf32> -> vector<2x32xf32>
    %235 = tpu.concatenate %90, %93, %96, %99, %102, %105, %108, %111, %114, %117, %120, %123, %126, %129, %132, %135 in 1 : vector<2x32xf32>, vector<2x32xf32>, vector<2x32xf32>, vector<2x32xf32>, vector<2x32xf32>, vector<2x32xf32>, vector<2x32xf32>, vector<2x32xf32>, vector<2x32xf32>, vector<2x32xf32>, vector<2x32xf32>, vector<2x32xf32>, vector<2x32xf32>, vector<2x32xf32>, vector<2x32xf32>, vector<2x32xf32> -> vector<2x512xf32>
    %236 = tpu.concatenate %138, %141, %144, %147, %150, %153, %156, %159, %162, %165, %168, %171, %174, %177, %180, %183 in 1 : vector<2x32xf32>, vector<2x32xf32>, vector<2x32xf32>, vector<2x32xf32>, vector<2x32xf32>, vector<2x32xf32>, vector<2x32xf32>, vector<2x32xf32>, vector<2x32xf32>, vector<2x32xf32>, vector<2x32xf32>, vector<2x32xf32>, vector<2x32xf32>, vector<2x32xf32>, vector<2x32xf32>, vector<2x32xf32> -> vector<2x512xf32>
    %237 = tpu.concatenate %186, %189, %192, %195, %198, %201, %204, %207, %210, %213, %216, %219, %222, %225, %228, %231 in 1 : vector<2x32xf32>, vector<2x32xf32>, vector<2x32xf32>, vector<2x32xf32>, vector<2x32xf32>, vector<2x32xf32>, vector<2x32xf32>, vector<2x32xf32>, vector<2x32xf32>, vector<2x32xf32>, vector<2x32xf32>, vector<2x32xf32>, vector<2x32xf32>, vector<2x32xf32>, vector<2x32xf32>, vector<2x32xf32> -> vector<2x512xf32>
    %238 = tpu.concatenate %235, %236, %237, %234 in 1 : vector<2x512xf32>, vector<2x512xf32>, vector<2x512xf32>, vector<2x32xf32> -> vector<2x1568xf32>
    %239 = arith.truncf %238 : vector<2x1568xf32> to vector<2x1568xbf16>
    %c0_26 = arith.constant 0 : index
    %c0_27 = arith.constant 0 : index
    %240 = vector.load %arg9[%c0_26, %c0_27] : memref<1568x256xbf16, #tpu.memory_space<vmem>>, vector<1568x256xbf16>
    %cst_28 = arith.constant dense<0.000000e+00> : vector<2x256xf32>
    %241 = tpu.matmul %239, %240, %cst_28 {dimension_numbers = #tpu.dot_dimension_numbers<[1], [0], [0], [1], [0, 0, 1, 1], [], []>} : vector<2x1568xbf16>, vector<1568x256xbf16>, vector<2x256xf32> -> vector<2x256xf32>
    %c0_29 = arith.constant 0 : index
    %c0_30 = arith.constant 0 : index
    %242 = vector.load %arg10[%c0_29, %c0_30] : memref<1x256xf32, #tpu.memory_space<vmem>>, vector<1x256xf32>
    %243 = vector.broadcast %242 : vector<1x256xf32> to vector<2x256xf32>
    %244 = arith.addf %241, %243 : vector<2x256xf32>
    %cst_31 = arith.constant 0.000000e+00 : f32
    %245 = vector.broadcast %cst_31 : f32 to vector<2x256xf32>
    %246 = arith.maximumf %244, %245 : vector<2x256xf32>
    %247 = arith.truncf %246 : vector<2x256xf32> to vector<2x256xbf16>
    %c0_32 = arith.constant 0 : index
    %c0_33 = arith.constant 0 : index
    %248 = vector.load %arg11[%c0_32, %c0_33] : memref<256x8xbf16, #tpu.memory_space<vmem>>, vector<256x8xbf16>
    %cst_34 = arith.constant dense<0.000000e+00> : vector<2x8xf32>
    %249 = tpu.matmul %247, %248, %cst_34 {dimension_numbers = #tpu.dot_dimension_numbers<[1], [0], [0], [1], [0, 0, 1, 1], [], []>} : vector<2x256xbf16>, vector<256x8xbf16>, vector<2x8xf32> -> vector<2x8xf32>
    %c0_35 = arith.constant 0 : index
    %c0_36 = arith.constant 0 : index
    %250 = vector.load %arg12[%c0_35, %c0_36] : memref<1x8xf32, #tpu.memory_space<vmem>>, vector<1x8xf32>
    %251 = vector.broadcast %250 : vector<1x8xf32> to vector<2x8xf32>
    %252 = arith.addf %249, %251 : vector<2x8xf32>
    %253 = vector.extract_strided_slice %252 {offsets = [0, 0], sizes = [2, 6], strides = [1, 1]} : vector<2x8xf32> to vector<2x6xf32>
    %c0_37 = arith.constant 0 : index
    %c0_38 = arith.constant 0 : index
    %254 = vector.load %arg13[%c0_37, %c0_38] : memref<2x6xf32, #tpu.memory_space<vmem>>, vector<2x6xf32>
    tpu.vector_store %arg13[%c0_37, %c0_38], %253 {strides = array<i32>} : memref<2x6xf32, #tpu.memory_space<vmem>>, vector<2x6xf32>,
    %255 = vector.extract_strided_slice %252 {offsets = [0, 6], sizes = [2, 1], strides = [1, 1]} : vector<2x8xf32> to vector<2x1xf32>
    %c0_39 = arith.constant 0 : index
    %c0_40 = arith.constant 0 : index
    %256 = vector.load %arg14[%c0_39, %c0_40] : memref<2x1xf32, #tpu.memory_space<vmem>>, vector<2x1xf32>
    tpu.vector_store %arg14[%c0_39, %c0_40], %255 {strides = array<i32>} : memref<2x1xf32, #tpu.memory_space<vmem>>, vector<2x1xf32>,
    return
  }
}

</mosaic_0001>

<bundles_post_ra>
// kernel: forward_impl.3
= control target key start
LH: loop header
LB: loop body
LE: loop exit
PB: predicated region body
PF: predicated region fallthrough
CT: control target
= control target key end

     0   :  { %v1704_v0 = vmov 0   ;;  %vm1283_vm0 = vcmask 261120   ;;  %s2610_s1 = inlined_call_operand.vmem [shape: bf16[256,32], index: 1, kind: input, shape index: {}]   ;;  %s2611_s0 = inlined_call_operand.vmem [shape: bf16[800,256], index: 0, kind: input, shape index: {}]   ;;  %s2612_s2 = inlined_call_operand.vmem [shape: f32[1,32], index: 2, kind: input, shape index: {}]   ;;  %s2613_s3 = inlined_call_operand.vmem [shape: f32[800,32], index: 3, kind: output, shape index: {}]  }
   0x1   :  { %750 = vmatprep.subr.bf16.mxu0 %v1704_v0  ;;  %1505 = vmatprep.subr.bf16.mxu1 %v1704_v0  ;;  %v1538_v1 = vld [vmem:[%s2610_s1] sm:$0xff]   ;;  %v1539_v2 = vld [vmem:[%s2610_s1 + $0x8] sm:$0xff]   ;;  %v1540_v3 = vld [vmem:[%s2610_s1 + $0x10] sm:$0xff]  }
   0x2   :  { %751 = vmatpush1.bf16.msra.mxu0 %v1538_v1  ;;  %1521 = vmatpush1.bf16.msra.mxu1 %v1538_v1  ;;  %v1541_v4 = vld [vmem:[%s2610_s1 + $0x18] sm:$0xff]   ;;  %v1542_v5 = vld [vmem:[%s2610_s1 + $0x20] sm:$0xff]   ;;  %v1543_v7 = vld [vmem:[%s2610_s1 + $0x28] sm:$0xff]  }
   0x3   :  { %752 = vmatprep.subr.bf16.mxu0 %v1704_v0  ;;  %1506 = vmatprep.subr.bf16.mxu1 %v1704_v0  ;;  %v1556_v6 = vld [vmem:[%s2611_s0 + $0x4] ss:$8 sps:$4 sm:$0xff]   ;;  %v1559_v8 = vld [vmem:[%s2611_s0 + $0x194] ss:$8 sps:$4 sm:$0xff]   ;;  %v1554_v19 = vld [vmem:[%s2611_s0] ss:$8 sps:$4 sm:$0xff]  }
   0x4   :  { %782 = vmatprep.mubr.bf16.mxu0 %v1556_v6  ;;  %982 = vmatprep.mubr.bf16.mxu1 %v1559_v8  ;;  %v1544_v9 = vld [vmem:[%s2610_s1 + $0x30] sm:$0xff]   ;;  %v1545_v10 = vld [vmem:[%s2610_s1 + $0x38] sm:$0xff]   ;;  %v1546_v11 = vld [vmem:[%s2610_s1 + $0x40] sm:$0xff]  }
   0x5   :  { %v1547_v12 = vld [vmem:[%s2610_s1 + $0x48] sm:$0xff]   ;;  %v1548_v13 = vld [vmem:[%s2610_s1 + $0x50] sm:$0xff]   ;;  %v1549_v14 = vld [vmem:[%s2610_s1 + $0x58] sm:$0xff]  }
   0x6   :  { %753 = vmatpush1.bf16.msra.mxu0 %v1539_v2  ;;  %1522 = vmatpush1.bf16.msra.mxu1 %v1539_v2  ;;  %v1550_v15 = vld [vmem:[%s2610_s1 + $0x60] sm:$0xff]   ;;  %v1551_v16 = vld [vmem:[%s2610_s1 + $0x68] sm:$0xff]   ;;  %v1552_v17 = vld [vmem:[%s2610_s1 + $0x70] sm:$0xff]  }
   0x7   :  { %754 = vmatprep.subr.bf16.mxu0 %v1704_v0  ;;  %1507 = vmatprep.subr.bf16.mxu1 %v1704_v0  ;;  %v1553_v18 = vld [vmem:[%s2610_s1 + $0x78] sm:$0xff]   ;;  %v1562_v22 = vld [vmem:[%s2611_s0 + $0x1a4] ss:$8 sps:$4 sm:$0xff]   ;;  %v1565_v24 = vld [vmem:[%s2611_s0 + $0x1a0] ss:$8 sps:$4 sm:$0xff]  }
   0x8   :  { %v1557_v20 = vld [vmem:[%s2611_s0 + $0x190] ss:$8 sps:$4 sm:$0xff]   ;;  %v1560_v21 = vld [vmem:[%s2611_s0 + $0x14] ss:$8 sps:$4 sm:$0xff]   ;;  %v1566_v25 = vld [vmem:[%s2611_s0 + $0x24] ss:$8 sps:$4 sm:$0xff]  }
   0x9   :  { %v1564_v23 = vld [vmem:[%s2611_s0 + $0x10] ss:$8 sps:$4 sm:$0xff]   ;;  %v1568_v26 = vld [vmem:[%s2611_s0 + $0x1b4] ss:$8 sps:$4 sm:$0xff]   ;;  %v1570_v27 = vld [vmem:[%s2611_s0 + $0x20] ss:$8 sps:$4 sm:$0xff]  }
   0xa   :  { %755 = vmatpush1.bf16.msra.mxu0 %v1540_v3  ;;  %1523 = vmatpush1.bf16.msra.mxu1 %v1540_v3  ;;  %v1571_v28 = vld [vmem:[%s2611_s0 + $0x1b0] ss:$8 sps:$4 sm:$0xff]   ;;  %v1572_v29 = vld [vmem:[%s2611_s0 + $0x34] ss:$8 sps:$4 sm:$0xff]   ;;  %v1574_v30 = vld [vmem:[%s2611_s0 + $0x1c4] ss:$8 sps:$4 sm:$0xff]  }
   0xb   :  { %756 = vmatprep.subr.bf16.mxu0 %v1704_v0  ;;  %1508 = vmatprep.subr.bf16.mxu1 %v1704_v0  ;;  %v1576_v31 = vld [vmem:[%s2611_s0 + $0x30] ss:$8 sps:$4 sm:$0xff]   ;;  %v1577_v32 = vld [vmem:[%s2611_s0 + $0x1c0] ss:$8 sps:$4 sm:$0xff]   ;;  %v1578_v33 = vld [vmem:[%s2611_s0 + $0x44] ss:$8 sps:$4 sm:$0xff]  }
   0xc   :  { %v1580_v34 = vld [vmem:[%s2611_s0 + $0x1d4] ss:$8 sps:$4 sm:$0xff]   ;;  %v1582_v35 = vld [vmem:[%s2611_s0 + $0x40] ss:$8 sps:$4 sm:$0xff]   ;;  %v1583_v36 = vld [vmem:[%s2611_s0 + $0x1d0] ss:$8 sps:$4 sm:$0xff]  }
   0xd   :  { %v1584_v37 = vld [vmem:[%s2611_s0 + $0x54] ss:$8 sps:$4 sm:$0xff]   ;;  %v1586_v38 = vld [vmem:[%s2611_s0 + $0x1e4] ss:$8 sps:$4 sm:$0xff]   ;;  %v1588_v39 = vld [vmem:[%s2611_s0 + $0x50] ss:$8 sps:$4 sm:$0xff]  }
   0xe   :  { %757 = vmatpush1.bf16.msra.mxu0 %v1541_v4  ;;  %1524 = vmatpush1.bf16.msra.mxu1 %v1541_v4  ;;  %v1589_v40 = vld [vmem:[%s2611_s0 + $0x1e0] ss:$8 sps:$4 sm:$0xff]   ;;  %v1590_v41 = vld [vmem:[%s2611_s0 + $0x64] ss:$8 sps:$4 sm:$0xff]   ;;  %v1592_v42 = vld [vmem:[%s2611_s0 + $0x1f4] ss:$8 sps:$4 sm:$0xff]  }
   0xf   :  { %758 = vmatprep.subr.bf16.mxu0 %v1704_v0  ;;  %1509 = vmatprep.subr.bf16.mxu1 %v1704_v0  ;;  %v1594_v43 = vld [vmem:[%s2611_s0 + $0x60] ss:$8 sps:$4 sm:$0xff]   ;;  %v1595_v44 = vld [vmem:[%s2611_s0 + $0x1f0] ss:$8 sps:$4 sm:$0xff]   ;;  %v1596_v45 = vld [vmem:[%s2611_s0 + $0x74] ss:$8 sps:$4 sm:$0xff]  }
  0x10   :  { %v1598_v46 = vld [vmem:[%s2611_s0 + $0x204] ss:$8 sps:$4 sm:$0xff]   ;;  %v1600_v47 = vld [vmem:[%s2611_s0 + $0x70] ss:$8 sps:$4 sm:$0xff]   ;;  %v1601_v48 = vld [vmem:[%s2611_s0 + $0x200] ss:$8 sps:$4 sm:$0xff]  }
  0x11   :  { %v1602_v49 = vld [vmem:[%s2611_s0 + $0x84] ss:$8 sps:$4 sm:$0xff]   ;;  %v1604_v50 = vld [vmem:[%s2611_s0 + $0x214] ss:$8 sps:$4 sm:$0xff]   ;;  %v1606_v51 = vld [vmem:[%s2611_s0 + $0x80] ss:$8 sps:$4 sm:$0xff]  }
  0x12   :  { %759 = vmatpush1.bf16.msra.mxu0 %v1542_v5  ;;  %1525 = vmatpush1.bf16.msra.mxu1 %v1542_v5  ;;  %v1607_v52 = vld [vmem:[%s2611_s0 + $0x210] ss:$8 sps:$4 sm:$0xff]   ;;  %v1608_v53 = vld [vmem:[%s2611_s0 + $0x94] ss:$8 sps:$4 sm:$0xff]   ;;  %v1610_v54 = vld [vmem:[%s2611_s0 + $0x224] ss:$8 sps:$4 sm:$0xff]  }
  0x13   :  { %760 = vmatprep.subr.bf16.mxu0 %v1704_v0  ;;  %1510 = vmatprep.subr.bf16.mxu1 %v1704_v0  ;;  %v1612_v55 = vld [vmem:[%s2611_s0 + $0x90] ss:$8 sps:$4 sm:$0xff]   ;;  %v1613_v56 = vld [vmem:[%s2611_s0 + $0x220] ss:$8 sps:$4 sm:$0xff]   ;;  %v1614_v57 = vld [vmem:[%s2611_s0 + $0xa4] ss:$8 sps:$4 sm:$0xff]  }
  0x14   :  { %v1616_v58 = vld [vmem:[%s2611_s0 + $0x234] ss:$8 sps:$4 sm:$0xff]   ;;  %v1618_v59 = vld [vmem:[%s2611_s0 + $0xa0] ss:$8 sps:$4 sm:$0xff]   ;;  %v1619_v60 = vld [vmem:[%s2611_s0 + $0x230] ss:$8 sps:$4 sm:$0xff]  }
  0x15   :  { %v1620_v61 = vld [vmem:[%s2611_s0 + $0xb4] ss:$8 sps:$4 sm:$0xff]   ;;  %v1622_v62 = vld [vmem:[%s2611_s0 + $0x244] ss:$8 sps:$4 sm:$0xff]   ;;  %v1624_v63 = vld [vmem:[%s2611_s0 + $0xb0] ss:$8 sps:$4 sm:$0xff]  }
  0x16   :  { %761 = vmatpush1.bf16.msra.mxu0 %v1543_v7  ;;  %1526 = vmatpush1.bf16.msra.mxu1 %v1543_v7  ;;  %v1626_v1 = vld [vmem:[%s2611_s0 + $0xc4] ss:$8 sps:$4 sm:$0xff]   ;;  %v1628_v2 = vld [vmem:[%s2611_s0 + $0x254] ss:$8 sps:$4 sm:$0xff]   ;;  %v1630_v3 = vld [vmem:[%s2611_s0 + $0xc0] ss:$8 sps:$4 sm:$0xff]  }
  0x17   :  { %762 = vmatprep.subr.bf16.mxu0 %v1704_v0  ;;  %1511 = vmatprep.subr.bf16.mxu1 %v1704_v0  ;;  %v1631_v4 = vld [vmem:[%s2611_s0 + $0x250] ss:$8 sps:$4 sm:$0xff]   ;;  %v1632_v5 = vld [vmem:[%s2611_s0 + $0xd4] ss:$8 sps:$4 sm:$0xff]   ;;  %v1634_v6 = vld [vmem:[%s2611_s0 + $0x264] ss:$8 sps:$4 sm:$0xff]  }
  0x18   :  { %v1636_v7 = vld [vmem:[%s2611_s0 + $0xd0] ss:$8 sps:$4 sm:$0xff]   ;;  %v1637_v8 = vld [vmem:[%s2611_s0 + $0x260] ss:$8 sps:$4 sm:$0xff]  }
  0x1a   :  { %763 = vmatpush1.bf16.msra.mxu0 %v1544_v9  ;;  %1527 = vmatpush1.bf16.msra.mxu1 %v1544_v9  ;;  %v1638_v9 = vld [vmem:[%s2611_s0 + $0xe4] ss:$8 sps:$4 sm:$0xff]  }
  0x1b   :  { %764 = vmatprep.subr.bf16.mxu0 %v1704_v0  ;;  %1512 = vmatprep.subr.bf16.mxu1 %v1704_v0 }
  0x1e   :  { %765 = vmatpush1.bf16.msra.mxu0 %v1545_v10  ;;  %1528 = vmatpush1.bf16.msra.mxu1 %v1545_v10  ;;  %v1640_v10 = vld [vmem:[%s2611_s0 + $0x274] ss:$8 sps:$4 sm:$0xff]  }
  0x1f   :  { %766 = vmatprep.subr.bf16.mxu0 %v1704_v0  ;;  %1513 = vmatprep.subr.bf16.mxu1 %v1704_v0 }
  0x22   :  { %767 = vmatpush1.bf16.msra.mxu0 %v1546_v11  ;;  %1529 = vmatpush1.bf16.msra.mxu1 %v1546_v11  ;;  %v1642_v11 = vld [vmem:[%s2611_s0 + $0xe0] ss:$8 sps:$4 sm:$0xff]  }
  0x23   :  { %768 = vmatprep.subr.bf16.mxu0 %v1704_v0  ;;  %1514 = vmatprep.subr.bf16.mxu1 %v1704_v0 }
  0x26   :  { %769 = vmatpush1.bf16.msra.mxu0 %v1547_v12  ;;  %1530 = vmatpush1.bf16.msra.mxu1 %v1547_v12  ;;  %v1643_v12 = vld [vmem:[%s2611_s0 + $0x270] ss:$8 sps:$4 sm:$0xff]  }
  0x27   :  { %770 = vmatprep.subr.bf16.mxu0 %v1704_v0  ;;  %1515 = vmatprep.subr.bf16.mxu1 %v1704_v0 }
  0x2a   :  { %771 = vmatpush1.bf16.msra.mxu0 %v1548_v13  ;;  %1531 = vmatpush1.bf16.msra.mxu1 %v1548_v13  ;;  %v1644_v13 = vld [vmem:[%s2611_s0 + $0xf4] ss:$8 sps:$4 sm:$0xff]  }
  0x2b   :  { %772 = vmatprep.subr.bf16.mxu0 %v1704_v0  ;;  %1516 = vmatprep.subr.bf16.mxu1 %v1704_v0 }
  0x2e   :  { %773 = vmatpush1.bf16.msra.mxu0 %v1549_v14  ;;  %1532 = vmatpush1.bf16.msra.mxu1 %v1549_v14  ;;  %v1646_v14 = vld [vmem:[%s2611_s0 + $0x284] ss:$8 sps:$4 sm:$0xff]  }
  0x2f   :  { %774 = vmatprep.subr.bf16.mxu0 %v1704_v0  ;;  %1517 = vmatprep.subr.bf16.mxu1 %v1704_v0 }
  0x32   :  { %775 = vmatpush1.bf16.msra.mxu0 %v1550_v15  ;;  %1533 = vmatpush1.bf16.msra.mxu1 %v1550_v15  ;;  %v1648_v15 = vld [vmem:[%s2611_s0 + $0xf0] ss:$8 sps:$4 sm:$0xff]  }
  0x33   :  { %776 = vmatprep.subr.bf16.mxu0 %v1704_v0  ;;  %1518 = vmatprep.subr.bf16.mxu1 %v1704_v0 }
  0x36   :  { %777 = vmatpush1.bf16.msra.mxu0 %v1551_v16  ;;  %1534 = vmatpush1.bf16.msra.mxu1 %v1551_v16  ;;  %v1649_v16 = vld [vmem:[%s2611_s0 + $0x280] ss:$8 sps:$4 sm:$0xff]  }
  0x37   :  { %778 = vmatprep.subr.bf16.mxu0 %v1704_v0  ;;  %1519 = vmatprep.subr.bf16.mxu1 %v1704_v0 }
  0x3a   :  { %779 = vmatpush1.bf16.msra.mxu0 %v1552_v17  ;;  %1535 = vmatpush1.bf16.msra.mxu1 %v1552_v17  ;;  %v1650_v17 = vld [vmem:[%s2611_s0 + $0x104] ss:$8 sps:$4 sm:$0xff]  }
  0x3b   :  { %780 = vmatprep.subr.bf16.mxu0 %v1704_v0  ;;  %1520 = vmatprep.subr.bf16.mxu1 %v1704_v0  ;;  %v1625_v0 = vld [vmem:[%s2611_s0 + $0x240] ss:$8 sps:$4 sm:$0xff]  }
  0x3e   :  { %781 = vmatpush1.bf16.msra.mxu0 %v1553_v18  ;;  %1536 = vmatpush1.bf16.msra.mxu1 %v1553_v18  ;;  %v1652_v18 = vld [vmem:[%s2611_s0 + $0x294] ss:$8 sps:$4 sm:$0xff]  }
  0x41   :  { %783 = vmatmul.mubr.bf16.vlgmr.msra.gmra.mrb[0].mxu0 %v1554_v19  ;;  %983 = vmatmul.mubr.bf16.vlgmr.msra.gmra.mrb[0].mxu1 %v1557_v20  ;;  %v1654_v19 = vld [vmem:[%s2611_s0 + $0x100] ss:$8 sps:$4 sm:$0xff]   ;;  %v1655_v20 = vld [vmem:[%s2611_s0 + $0x290] ss:$8 sps:$4 sm:$0xff]  }
  0x42   :  { %790 = vmatprep.mubr.bf16.mxu0 %v1560_v21  ;;  %990 = vmatprep.mubr.bf16.mxu1 %v1562_v22  ;;  %v1656_v21 = vld [vmem:[%s2611_s0 + $0x114] ss:$8 sps:$4 sm:$0xff]   ;;  %v1658_v22 = vld [vmem:[%s2611_s0 + $0x2a4] ss:$8 sps:$4 sm:$0xff]  }
  0x49   :  { %791 = vmatmul.mubr.bf16.gmra.mrb[4].mxu0 %v1564_v23  ;;  %991 = vmatmul.mubr.bf16.gmra.mrb[4].mxu1 %v1565_v24  ;;  %v1660_v23 = vld [vmem:[%s2611_s0 + $0x110] ss:$8 sps:$4 sm:$0xff]   ;;  %v1661_v24 = vld [vmem:[%s2611_s0 + $0x2a0] ss:$8 sps:$4 sm:$0xff]  }
  0x4a   :  { %798 = vmatprep.mubr.bf16.mxu0 %v1566_v25  ;;  %998 = vmatprep.mubr.bf16.mxu1 %v1568_v26  ;;  %v1662_v25 = vld [vmem:[%s2611_s0 + $0x124] ss:$8 sps:$4 sm:$0xff]   ;;  %v1664_v26 = vld [vmem:[%s2611_s0 + $0x2b4] ss:$8 sps:$4 sm:$0xff]  }
  0x51   :  { %799 = vmatmul.mubr.bf16.gmra.mrb[8].mxu0 %v1570_v27  ;;  %999 = vmatmul.mubr.bf16.gmra.mrb[8].mxu1 %v1571_v28  ;;  %v1666_v27 = vld [vmem:[%s2611_s0 + $0x120] ss:$8 sps:$4 sm:$0xff]   ;;  %v1667_v28 = vld [vmem:[%s2611_s0 + $0x2b0] ss:$8 sps:$4 sm:$0xff]  }
  0x52   :  { %806 = vmatprep.mubr.bf16.mxu0 %v1572_v29  ;;  %1006 = vmatprep.mubr.bf16.mxu1 %v1574_v30  ;;  %v1668_v29 = vld [vmem:[%s2611_s0 + $0x134] ss:$8 sps:$4 sm:$0xff]   ;;  %v1670_v30 = vld [vmem:[%s2611_s0 + $0x2c4] ss:$8 sps:$4 sm:$0xff]  }
  0x59   :  { %807 = vmatmul.mubr.bf16.gmra.mrb[12].mxu0 %v1576_v31  ;;  %1007 = vmatmul.mubr.bf16.gmra.mrb[12].mxu1 %v1577_v32  ;;  %v1672_v31 = vld [vmem:[%s2611_s0 + $0x130] ss:$8 sps:$4 sm:$0xff]   ;;  %v1673_v32 = vld [vmem:[%s2611_s0 + $0x2c0] ss:$8 sps:$4 sm:$0xff]  }
  0x5a   :  { %814 = vmatprep.mubr.bf16.mxu0 %v1578_v33  ;;  %1014 = vmatprep.mubr.bf16.mxu1 %v1580_v34  ;;  %v1674_v33 = vld [vmem:[%s2611_s0 + $0x144] ss:$8 sps:$4 sm:$0xff]   ;;  %v1676_v34 = vld [vmem:[%s2611_s0 + $0x2d4] ss:$8 sps:$4 sm:$0xff]  }
  0x61   :  { %815 = vmatmul.mubr.bf16.gmra.mrb[16].mxu0 %v1582_v35  ;;  %1015 = vmatmul.mubr.bf16.gmra.mrb[16].mxu1 %v1583_v36  ;;  %v1678_v35 = vld [vmem:[%s2611_s0 + $0x140] ss:$8 sps:$4 sm:$0xff]   ;;  %v1679_v36 = vld [vmem:[%s2611_s0 + $0x2d0] ss:$8 sps:$4 sm:$0xff]  }
  0x62   :  { %822 = vmatprep.mubr.bf16.mxu0 %v1584_v37  ;;  %1022 = vmatprep.mubr.bf16.mxu1 %v1586_v38  ;;  %v1680_v37 = vld [vmem:[%s2611_s0 + $0x154] ss:$8 sps:$4 sm:$0xff]   ;;  %v1682_v38 = vld [vmem:[%s2611_s0 + $0x2e4] ss:$8 sps:$4 sm:$0xff]  }
  0x69   :  { %823 = vmatmul.mubr.bf16.gmra.mrb[20].mxu0 %v1588_v39  ;;  %1023 = vmatmul.mubr.bf16.gmra.mrb[20].mxu1 %v1589_v40  ;;  %v1684_v39 = vld [vmem:[%s2611_s0 + $0x150] ss:$8 sps:$4 sm:$0xff]   ;;  %v1685_v40 = vld [vmem:[%s2611_s0 + $0x2e0] ss:$8 sps:$4 sm:$0xff]  }
  0x6a   :  { %830 = vmatprep.mubr.bf16.mxu0 %v1590_v41  ;;  %1030 = vmatprep.mubr.bf16.mxu1 %v1592_v42  ;;  %v1686_v41 = vld [vmem:[%s2611_s0 + $0x164] ss:$8 sps:$4 sm:$0xff]   ;;  %v1688_v42 = vld [vmem:[%s2611_s0 + $0x2f4] ss:$8 sps:$4 sm:$0xff]  }
  0x71   :  { %831 = vmatmul.mubr.bf16.gmra.mrb[24].mxu0 %v1594_v43  ;;  %1031 = vmatmul.mubr.bf16.gmra.mrb[24].mxu1 %v1595_v44  ;;  %v1690_v43 = vld [vmem:[%s2611_s0 + $0x160] ss:$8 sps:$4 sm:$0xff]   ;;  %v1691_v44 = vld [vmem:[%s2611_s0 + $0x2f0] ss:$8 sps:$4 sm:$0xff]  }
  0x72   :  { %838 = vmatprep.mubr.bf16.mxu0 %v1596_v45  ;;  %1038 = vmatprep.mubr.bf16.mxu1 %v1598_v46  ;;  %v1692_v45 = vld [vmem:[%s2611_s0 + $0x174] ss:$8 sps:$4 sm:$0xff]   ;;  %v1694_v46 = vld [vmem:[%s2611_s0 + $0x304] ss:$8 sps:$4 sm:$0xff]  }
  0x79   :  { %839 = vmatmul.mubr.bf16.gmra.mrb[28].mxu0 %v1600_v47  ;;  %1039 = vmatmul.mubr.bf16.gmra.mrb[28].mxu1 %v1601_v48  ;;  %v1696_v47 = vld [vmem:[%s2611_s0 + $0x170] ss:$8 sps:$4 sm:$0xff]   ;;  %v1697_v48 = vld [vmem:[%s2611_s0 + $0x300] ss:$8 sps:$4 sm:$0xff]  }
  0x7a   :  { %846 = vmatprep.mubr.bf16.mxu0 %v1602_v49  ;;  %1046 = vmatprep.mubr.bf16.mxu1 %v1604_v50  ;;  %v1698_v49 = vld [vmem:[%s2611_s0 + $0x184] ss:$8 sps:$4 sm:$0xff]   ;;  %v1700_v50 = vld [vmem:[%s2611_s0 + $0x314] ss:$8 sps:$4 sm:$0xff]  }
  0x81   :  { %847 = vmatmul.mubr.bf16.gmra.mrb[32].mxu0 %v1606_v51  ;;  %1047 = vmatmul.mubr.bf16.gmra.mrb[32].mxu1 %v1607_v52  ;;  %v1702_v51 = vld [vmem:[%s2611_s0 + $0x180] ss:$8 sps:$4 sm:$0xff]   ;;  %v1703_v52 = vld [vmem:[%s2611_s0 + $0x310] ss:$8 sps:$4 sm:$0xff]  }
  0x82   :  { %854 = vmatprep.mubr.bf16.mxu0 %v1608_v53  ;;  %1054 = vmatprep.mubr.bf16.mxu1 %v1610_v54  ;;  %v2108_v53 = vld [vmem:[%s2612_s2] ss:$0 sm:$0xff] }
  0x89   :  { %855 = vmatmul.mubr.bf16.gmra.mrb[36].mxu0 %v1612_v55  ;;  %1055 = vmatmul.mubr.bf16.gmra.mrb[36].mxu1 %v1613_v56 }
  0x8a   :  { %862 = vmatprep.mubr.bf16.mxu0 %v1614_v57  ;;  %1062 = vmatprep.mubr.bf16.mxu1 %v1616_v58 }
  0x91   :  { %863 = vmatmul.mubr.bf16.gmra.mrb[40].mxu0 %v1618_v59  ;;  %1063 = vmatmul.mubr.bf16.gmra.mrb[40].mxu1 %v1619_v60 }
  0x92   :  { %870 = vmatprep.mubr.bf16.mxu0 %v1620_v61  ;;  %1070 = vmatprep.mubr.bf16.mxu1 %v1622_v62 }
  0x99   :  { %871 = vmatmul.mubr.bf16.gmra.mrb[44].mxu0 %v1624_v63  ;;  %1071 = vmatmul.mubr.bf16.gmra.mrb[44].mxu1 %v1625_v0 }
  0x9a   :  { %878 = vmatprep.mubr.bf16.mxu0 %v1626_v1  ;;  %1078 = vmatprep.mubr.bf16.mxu1 %v1628_v2 }
  0xa1   :  { %879 = vmatmul.mubr.bf16.gmra.mrb[48].mxu0 %v1630_v3  ;;  %1079 = vmatmul.mubr.bf16.gmra.mrb[48].mxu1 %v1631_v4 }
  0xa2   :  { %886 = vmatprep.mubr.bf16.mxu0 %v1632_v5  ;;  %1086 = vmatprep.mubr.bf16.mxu1 %v1634_v6 }
  0xa9   :  { %887 = vmatmul.mubr.bf16.gmra.mrb[52].mxu0 %v1636_v7  ;;  %1087 = vmatmul.mubr.bf16.gmra.mrb[52].mxu1 %v1637_v8 }
  0xaa   :  { %894 = vmatprep.mubr.bf16.mxu0 %v1638_v9  ;;  %1094 = vmatprep.mubr.bf16.mxu1 %v1640_v10 }
  0xb1   :  { %895 = vmatmul.mubr.bf16.gmra.mrb[56].mxu0 %v1642_v11  ;;  %1095 = vmatmul.mubr.bf16.gmra.mrb[56].mxu1 %v1643_v12 }
  0xb2   :  { %902 = vmatprep.mubr.bf16.mxu0 %v1644_v13  ;;  %1102 = vmatprep.mubr.bf16.mxu1 %v1646_v14 }
  0xb9   :  { %903 = vmatmul.mubr.bf16.gmra.mrb[60].mxu0 %v1648_v15  ;;  %1103 = vmatmul.mubr.bf16.gmra.mrb[60].mxu1 %v1649_v16 }
  0xba   :  { %910 = vmatprep.mubr.bf16.mxu0 %v1650_v17  ;;  %1110 = vmatprep.mubr.bf16.mxu1 %v1652_v18 }
  0xc1   :  { %911 = vmatmul.mubr.bf16.gmra.mrb[64].mxu0 %v1654_v19  ;;  %1111 = vmatmul.mubr.bf16.gmra.mrb[64].mxu1 %v1655_v20 }
  0xc2   :  { %918 = vmatprep.mubr.bf16.mxu0 %v1656_v21  ;;  %1118 = vmatprep.mubr.bf16.mxu1 %v1658_v22 }
  0xc9   :  { %919 = vmatmul.mubr.bf16.gmra.mrb[68].mxu0 %v1660_v23  ;;  %1119 = vmatmul.mubr.bf16.gmra.mrb[68].mxu1 %v1661_v24 }
  0xca   :  { %926 = vmatprep.mubr.bf16.mxu0 %v1662_v25  ;;  %1126 = vmatprep.mubr.bf16.mxu1 %v1664_v26 }
  0xd1   :  { %927 = vmatmul.mubr.bf16.gmra.mrb[72].mxu0 %v1666_v27  ;;  %1127 = vmatmul.mubr.bf16.gmra.mrb[72].mxu1 %v1667_v28 }
  0xd2   :  { %934 = vmatprep.mubr.bf16.mxu0 %v1668_v29  ;;  %1134 = vmatprep.mubr.bf16.mxu1 %v1670_v30 }
  0xd9   :  { %935 = vmatmul.mubr.bf16.gmra.mrb[76].mxu0 %v1672_v31  ;;  %1135 = vmatmul.mubr.bf16.gmra.mrb[76].mxu1 %v1673_v32 }
  0xda   :  { %942 = vmatprep.mubr.bf16.mxu0 %v1674_v33  ;;  %1142 = vmatprep.mubr.bf16.mxu1 %v1676_v34 }
  0xe1   :  { %943 = vmatmul.mubr.bf16.gmra.mrb[80].mxu0 %v1678_v35  ;;  %1143 = vmatmul.mubr.bf16.gmra.mrb[80].mxu1 %v1679_v36 }
  0xe2   :  { %950 = vmatprep.mubr.bf16.mxu0 %v1680_v37  ;;  %1150 = vmatprep.mubr.bf16.mxu1 %v1682_v38 }
  0xe9   :  { %951 = vmatmul.mubr.bf16.gmra.mrb[84].mxu0 %v1684_v39  ;;  %1151 = vmatmul.mubr.bf16.gmra.mrb[84].mxu1 %v1685_v40 }
  0xea   :  { %958 = vmatprep.mubr.bf16.mxu0 %v1686_v41  ;;  %1158 = vmatprep.mubr.bf16.mxu1 %v1688_v42 }
  0xf1   :  { %959 = vmatmul.mubr.bf16.gmra.mrb[88].mxu0 %v1690_v43  ;;  %1159 = vmatmul.mubr.bf16.gmra.mrb[88].mxu1 %v1691_v44 }
  0xf2   :  { %966 = vmatprep.mubr.bf16.mxu0 %v1692_v45  ;;  %1166 = vmatprep.mubr.bf16.mxu1 %v1694_v46 }
  0xf9   :  { %967 = vmatmul.mubr.bf16.gmra.mrb[92].mxu0 %v1696_v47  ;;  %1167 = vmatmul.mubr.bf16.gmra.mrb[92].mxu1 %v1697_v48 }
  0xfa   :  { %974 = vmatprep.mubr.bf16.mxu0 %v1698_v49  ;;  %1174 = vmatprep.mubr.bf16.mxu1 %v1700_v50 }
 0x101   :  { %975 = vmatmul.mubr.bf16.gmra.mrb[96].mxu0 %v1702_v51  ;;  %1175 = vmatmul.mubr.bf16.gmra.mrb[96].mxu1 %v1703_v52 }
 0x114   :  { %v784_v54 = vpop.f32.mrb[0].mxu0  ;;  %v984_v55 = vpop.f32.mrb[0].mxu1 }
 0x115   :  { %v785_v56 = vadd.f32 %v2108_v53, %v784_v54  ;;  %v985_v57 = vadd.f32 %v2108_v53, %v984_v55  ;;  %v786_v58 = vpop.f32.mrb[1].mxu0  ;;  %v986_v59 = vpop.f32.mrb[1].mxu1 }
 0x116   :  { %v787_v60 = vpop.f32.mrb[2].mxu0  ;;  %v987_v61 = vpop.f32.mrb[2].mxu1 }
 0x117   :  { %v1183_v62 = vmax.f32 %v785_v56, 0.0  ;;  %v1233_v63 = vmax.f32 %v985_v57, 0.0  ;;  %v788_v0 = vadd.f32 %v2108_v53, %v787_v60  ;;  %v988_v1 = vadd.f32 %v2108_v53, %v987_v61  ;;  %v789_v2 = vpop.f32.mrb[3].mxu0  ;;  %v989_v3 = vpop.f32.mrb[3].mxu1 }
 0x119   :  { %1284 = vst.msk [vmem:[%s2613_s3] sm:$0xff] %vm1283_vm0, %v1183_v62  ;;  %1334 = vst.msk [vmem:[%s2613_s3 + $0x190] sm:$0xff] %vm1283_vm0, %v1233_v63  ;;  %v1184_v4 = vmax.f32 %v788_v0, 0.0  ;;  %v1234_v5 = vmax.f32 %v988_v1, 0.0 }
 0x11b   :  { %1285 = vst.msk [vmem:[%s2613_s3 + $0x8] sm:$0xff] %vm1283_vm0, %v1184_v4  ;;  %1335 = vst.msk [vmem:[%s2613_s3 + $0x198] sm:$0xff] %vm1283_vm0, %v1234_v5 }
 0x11c   :  { %v792_v6 = vpop.f32.mrb[4].mxu0  ;;  %v992_v7 = vpop.f32.mrb[4].mxu1 }
 0x11d   :  { %v793_v8 = vadd.f32 %v2108_v53, %v792_v6  ;;  %v993_v9 = vadd.f32 %v2108_v53, %v992_v7  ;;  %v794_v10 = vpop.f32.mrb[5].mxu0  ;;  %v994_v11 = vpop.f32.mrb[5].mxu1 }
 0x11e   :  { %v795_v12 = vpop.f32.mrb[6].mxu0  ;;  %v995_v13 = vpop.f32.mrb[6].mxu1 }
 0x11f   :  { %v1185_v14 = vmax.f32 %v793_v8, 0.0  ;;  %v1235_v15 = vmax.f32 %v993_v9, 0.0  ;;  %v796_v16 = vadd.f32 %v2108_v53, %v795_v12  ;;  %v996_v17 = vadd.f32 %v2108_v53, %v995_v13  ;;  %v797_v18 = vpop.f32.mrb[7].mxu0  ;;  %v997_v19 = vpop.f32.mrb[7].mxu1 }
 0x121   :  { %1286 = vst.msk [vmem:[%s2613_s3 + $0x10] sm:$0xff] %vm1283_vm0, %v1185_v14  ;;  %1336 = vst.msk [vmem:[%s2613_s3 + $0x1a0] sm:$0xff] %vm1283_vm0, %v1235_v15  ;;  %v1186_v20 = vmax.f32 %v796_v16, 0.0  ;;  %v1236_v21 = vmax.f32 %v996_v17, 0.0 }
 0x123   :  { %1287 = vst.msk [vmem:[%s2613_s3 + $0x18] sm:$0xff] %vm1283_vm0, %v1186_v20  ;;  %1337 = vst.msk [vmem:[%s2613_s3 + $0x1a8] sm:$0xff] %vm1283_vm0, %v1236_v21 }
 0x124   :  { %v800_v22 = vpop.f32.mrb[8].mxu0  ;;  %v1000_v23 = vpop.f32.mrb[8].mxu1 }
 0x125   :  { %v801_v24 = vadd.f32 %v2108_v53, %v800_v22  ;;  %v1001_v25 = vadd.f32 %v2108_v53, %v1000_v23  ;;  %v802_v26 = vpop.f32.mrb[9].mxu0  ;;  %v1002_v27 = vpop.f32.mrb[9].mxu1 }
 0x126   :  { %v803_v28 = vpop.f32.mrb[10].mxu0  ;;  %v1003_v29 = vpop.f32.mrb[10].mxu1 }
 0x127   :  { %v1187_v30 = vmax.f32 %v801_v24, 0.0  ;;  %v1237_v31 = vmax.f32 %v1001_v25, 0.0  ;;  %v804_v32 = vadd.f32 %v2108_v53, %v803_v28  ;;  %v1004_v33 = vadd.f32 %v2108_v53, %v1003_v29  ;;  %v805_v34 = vpop.f32.mrb[11].mxu0  ;;  %v1005_v35 = vpop.f32.mrb[11].mxu1 }
 0x129   :  { %1288 = vst.msk [vmem:[%s2613_s3 + $0x20] sm:$0xff] %vm1283_vm0, %v1187_v30  ;;  %1338 = vst.msk [vmem:[%s2613_s3 + $0x1b0] sm:$0xff] %vm1283_vm0, %v1237_v31  ;;  %v1188_v36 = vmax.f32 %v804_v32, 0.0  ;;  %v1238_v37 = vmax.f32 %v1004_v33, 0.0 }
 0x12b   :  { %1289 = vst.msk [vmem:[%s2613_s3 + $0x28] sm:$0xff] %vm1283_vm0, %v1188_v36  ;;  %1339 = vst.msk [vmem:[%s2613_s3 + $0x1b8] sm:$0xff] %vm1283_vm0, %v1238_v37 }
 0x12c   :  { %v808_v38 = vpop.f32.mrb[12].mxu0  ;;  %v1008_v39 = vpop.f32.mrb[12].mxu1 }
 0x12d   :  { %v809_v40 = vadd.f32 %v2108_v53, %v808_v38  ;;  %v1009_v41 = vadd.f32 %v2108_v53, %v1008_v39  ;;  %v810_v42 = vpop.f32.mrb[13].mxu0  ;;  %v1010_v43 = vpop.f32.mrb[13].mxu1 }
 0x12e   :  { %v811_v44 = vpop.f32.mrb[14].mxu0  ;;  %v1011_v45 = vpop.f32.mrb[14].mxu1 }
 0x12f   :  { %v1189_v46 = vmax.f32 %v809_v40, 0.0  ;;  %v1239_v47 = vmax.f32 %v1009_v41, 0.0  ;;  %v812_v48 = vadd.f32 %v2108_v53, %v811_v44  ;;  %v1012_v49 = vadd.f32 %v2108_v53, %v1011_v45  ;;  %v813_v50 = vpop.f32.mrb[15].mxu0  ;;  %v1013_v51 = vpop.f32.mrb[15].mxu1 }
 0x131   :  { %1290 = vst.msk [vmem:[%s2613_s3 + $0x30] sm:$0xff] %vm1283_vm0, %v1189_v46  ;;  %1340 = vst.msk [vmem:[%s2613_s3 + $0x1c0] sm:$0xff] %vm1283_vm0, %v1239_v47  ;;  %v1190_v52 = vmax.f32 %v812_v48, 0.0  ;;  %v1240_v54 = vmax.f32 %v1012_v49, 0.0 }
 0x133   :  { %1291 = vst.msk [vmem:[%s2613_s3 + $0x38] sm:$0xff] %vm1283_vm0, %v1190_v52  ;;  %1341 = vst.msk [vmem:[%s2613_s3 + $0x1c8] sm:$0xff] %vm1283_vm0, %v1240_v54 }
 0x134   :  { %v816_v55 = vpop.f32.mrb[16].mxu0  ;;  %v1016_v56 = vpop.f32.mrb[16].mxu1 }
 0x135   :  { %v817_v57 = vadd.f32 %v2108_v53, %v816_v55  ;;  %v1017_v58 = vadd.f32 %v2108_v53, %v1016_v56  ;;  %v818_v59 = vpop.f32.mrb[17].mxu0  ;;  %v1018_v60 = vpop.f32.mrb[17].mxu1 }
 0x136   :  { %v819_v61 = vpop.f32.mrb[18].mxu0  ;;  %v1019_v62 = vpop.f32.mrb[18].mxu1 }
 0x137   :  { %v1191_v63 = vmax.f32 %v817_v57, 0.0  ;;  %v1241_v0 = vmax.f32 %v1017_v58, 0.0  ;;  %v820_v1 = vadd.f32 %v2108_v53, %v819_v61  ;;  %v1020_v2 = vadd.f32 %v2108_v53, %v1019_v62  ;;  %v821_v3 = vpop.f32.mrb[19].mxu0  ;;  %v1021_v4 = vpop.f32.mrb[19].mxu1 }
 0x139   :  { %1292 = vst.msk [vmem:[%s2613_s3 + $0x40] sm:$0xff] %vm1283_vm0, %v1191_v63  ;;  %1342 = vst.msk [vmem:[%s2613_s3 + $0x1d0] sm:$0xff] %vm1283_vm0, %v1241_v0  ;;  %v1192_v5 = vmax.f32 %v820_v1, 0.0  ;;  %v1242_v6 = vmax.f32 %v1020_v2, 0.0 }
 0x13b   :  { %1293 = vst.msk [vmem:[%s2613_s3 + $0x48] sm:$0xff] %vm1283_vm0, %v1192_v5  ;;  %1343 = vst.msk [vmem:[%s2613_s3 + $0x1d8] sm:$0xff] %vm1283_vm0, %v1242_v6 }
 0x13c   :  { %v824_v7 = vpop.f32.mrb[20].mxu0  ;;  %v1024_v8 = vpop.f32.mrb[20].mxu1 }
 0x13d   :  { %v825_v9 = vadd.f32 %v2108_v53, %v824_v7  ;;  %v1025_v10 = vadd.f32 %v2108_v53, %v1024_v8  ;;  %v826_v11 = vpop.f32.mrb[21].mxu0  ;;  %v1026_v12 = vpop.f32.mrb[21].mxu1 }
 0x13e   :  { %v827_v13 = vpop.f32.mrb[22].mxu0  ;;  %v1027_v14 = vpop.f32.mrb[22].mxu1 }
 0x13f   :  { %v1193_v15 = vmax.f32 %v825_v9, 0.0  ;;  %v1243_v16 = vmax.f32 %v1025_v10, 0.0  ;;  %v828_v17 = vadd.f32 %v2108_v53, %v827_v13  ;;  %v1028_v18 = vadd.f32 %v2108_v53, %v1027_v14  ;;  %v829_v19 = vpop.f32.mrb[23].mxu0  ;;  %v1029_v20 = vpop.f32.mrb[23].mxu1 }
 0x141   :  { %1294 = vst.msk [vmem:[%s2613_s3 + $0x50] sm:$0xff] %vm1283_vm0, %v1193_v15  ;;  %1344 = vst.msk [vmem:[%s2613_s3 + $0x1e0] sm:$0xff] %vm1283_vm0, %v1243_v16  ;;  %v1194_v21 = vmax.f32 %v828_v17, 0.0  ;;  %v1244_v22 = vmax.f32 %v1028_v18, 0.0 }
 0x143   :  { %1295 = vst.msk [vmem:[%s2613_s3 + $0x58] sm:$0xff] %vm1283_vm0, %v1194_v21  ;;  %1345 = vst.msk [vmem:[%s2613_s3 + $0x1e8] sm:$0xff] %vm1283_vm0, %v1244_v22 }
 0x144   :  { %v832_v23 = vpop.f32.mrb[24].mxu0  ;;  %v1032_v24 = vpop.f32.mrb[24].mxu1 }
 0x145   :  { %v833_v25 = vadd.f32 %v2108_v53, %v832_v23  ;;  %v1033_v26 = vadd.f32 %v2108_v53, %v1032_v24  ;;  %v834_v27 = vpop.f32.mrb[25].mxu0  ;;  %v1034_v28 = vpop.f32.mrb[25].mxu1 }
 0x146   :  { %v835_v29 = vpop.f32.mrb[26].mxu0  ;;  %v1035_v30 = vpop.f32.mrb[26].mxu1 }
 0x147   :  { %v1195_v31 = vmax.f32 %v833_v25, 0.0  ;;  %v1245_v32 = vmax.f32 %v1033_v26, 0.0  ;;  %v836_v33 = vadd.f32 %v2108_v53, %v835_v29  ;;  %v1036_v34 = vadd.f32 %v2108_v53, %v1035_v30  ;;  %v837_v35 = vpop.f32.mrb[27].mxu0  ;;  %v1037_v36 = vpop.f32.mrb[27].mxu1 }
 0x149   :  { %1296 = vst.msk [vmem:[%s2613_s3 + $0x60] sm:$0xff] %vm1283_vm0, %v1195_v31  ;;  %1346 = vst.msk [vmem:[%s2613_s3 + $0x1f0] sm:$0xff] %vm1283_vm0, %v1245_v32  ;;  %v1196_v37 = vmax.f32 %v836_v33, 0.0  ;;  %v1246_v38 = vmax.f32 %v1036_v34, 0.0 }
 0x14b   :  { %1297 = vst.msk [vmem:[%s2613_s3 + $0x68] sm:$0xff] %vm1283_vm0, %v1196_v37  ;;  %1347 = vst.msk [vmem:[%s2613_s3 + $0x1f8] sm:$0xff] %vm1283_vm0, %v1246_v38 }
 0x14c   :  { %v840_v39 = vpop.f32.mrb[28].mxu0  ;;  %v1040_v40 = vpop.f32.mrb[28].mxu1 }
 0x14d   :  { %v841_v41 = vadd.f32 %v2108_v53, %v840_v39  ;;  %v1041_v42 = vadd.f32 %v2108_v53, %v1040_v40  ;;  %v842_v43 = vpop.f32.mrb[29].mxu0  ;;  %v1042_v44 = vpop.f32.mrb[29].mxu1 }
 0x14e   :  { %v843_v45 = vpop.f32.mrb[30].mxu0  ;;  %v1043_v46 = vpop.f32.mrb[30].mxu1 }
 0x14f   :  { %v1197_v47 = vmax.f32 %v841_v41, 0.0  ;;  %v1247_v48 = vmax.f32 %v1041_v42, 0.0  ;;  %v844_v49 = vadd.f32 %v2108_v53, %v843_v45  ;;  %v1044_v50 = vadd.f32 %v2108_v53, %v1043_v46  ;;  %v845_v51 = vpop.f32.mrb[31].mxu0  ;;  %v1045_v52 = vpop.f32.mrb[31].mxu1 }
 0x151   :  { %1298 = vst.msk [vmem:[%s2613_s3 + $0x70] sm:$0xff] %vm1283_vm0, %v1197_v47  ;;  %1348 = vst.msk [vmem:[%s2613_s3 + $0x200] sm:$0xff] %vm1283_vm0, %v1247_v48  ;;  %v1198_v54 = vmax.f32 %v844_v49, 0.0  ;;  %v1248_v55 = vmax.f32 %v1044_v50, 0.0 }
 0x153   :  { %1299 = vst.msk [vmem:[%s2613_s3 + $0x78] sm:$0xff] %vm1283_vm0, %v1198_v54  ;;  %1349 = vst.msk [vmem:[%s2613_s3 + $0x208] sm:$0xff] %vm1283_vm0, %v1248_v55 }
 0x154   :  { %v848_v56 = vpop.f32.mrb[32].mxu0  ;;  %v1048_v57 = vpop.f32.mrb[32].mxu1 }
 0x155   :  { %v849_v58 = vadd.f32 %v2108_v53, %v848_v56  ;;  %v1049_v59 = vadd.f32 %v2108_v53, %v1048_v57  ;;  %v850_v60 = vpop.f32.mrb[33].mxu0  ;;  %v1050_v61 = vpop.f32.mrb[33].mxu1 }
 0x156   :  { %v851_v62 = vpop.f32.mrb[34].mxu0  ;;  %v1051_v63 = vpop.f32.mrb[34].mxu1 }
 0x157   :  { %v1199_v0 = vmax.f32 %v849_v58, 0.0  ;;  %v1249_v1 = vmax.f32 %v1049_v59, 0.0  ;;  %v852_v2 = vadd.f32 %v2108_v53, %v851_v62  ;;  %v1052_v3 = vadd.f32 %v2108_v53, %v1051_v63  ;;  %v853_v4 = vpop.f32.mrb[35].mxu0  ;;  %v1053_v5 = vpop.f32.mrb[35].mxu1 }
 0x159   :  { %1300 = vst.msk [vmem:[%s2613_s3 + $0x80] sm:$0xff] %vm1283_vm0, %v1199_v0  ;;  %1350 = vst.msk [vmem:[%s2613_s3 + $0x210] sm:$0xff] %vm1283_vm0, %v1249_v1  ;;  %v1200_v6 = vmax.f32 %v852_v2, 0.0  ;;  %v1250_v7 = vmax.f32 %v1052_v3, 0.0 }
 0x15b   :  { %1301 = vst.msk [vmem:[%s2613_s3 + $0x88] sm:$0xff] %vm1283_vm0, %v1200_v6  ;;  %1351 = vst.msk [vmem:[%s2613_s3 + $0x218] sm:$0xff] %vm1283_vm0, %v1250_v7 }
 0x15c   :  { %v856_v8 = vpop.f32.mrb[36].mxu0  ;;  %v1056_v9 = vpop.f32.mrb[36].mxu1 }
 0x15d   :  { %v857_v10 = vadd.f32 %v2108_v53, %v856_v8  ;;  %v1057_v11 = vadd.f32 %v2108_v53, %v1056_v9  ;;  %v858_v12 = vpop.f32.mrb[37].mxu0  ;;  %v1058_v13 = vpop.f32.mrb[37].mxu1 }
 0x15e   :  { %v859_v14 = vpop.f32.mrb[38].mxu0  ;;  %v1059_v15 = vpop.f32.mrb[38].mxu1 }
 0x15f   :  { %v1201_v16 = vmax.f32 %v857_v10, 0.0  ;;  %v1251_v17 = vmax.f32 %v1057_v11, 0.0  ;;  %v860_v18 = vadd.f32 %v2108_v53, %v859_v14  ;;  %v1060_v19 = vadd.f32 %v2108_v53, %v1059_v15  ;;  %v861_v20 = vpop.f32.mrb[39].mxu0  ;;  %v1061_v21 = vpop.f32.mrb[39].mxu1 }
 0x161   :  { %1302 = vst.msk [vmem:[%s2613_s3 + $0x90] sm:$0xff] %vm1283_vm0, %v1201_v16  ;;  %1352 = vst.msk [vmem:[%s2613_s3 + $0x220] sm:$0xff] %vm1283_vm0, %v1251_v17  ;;  %v1202_v22 = vmax.f32 %v860_v18, 0.0  ;;  %v1252_v23 = vmax.f32 %v1060_v19, 0.0 }
 0x163   :  { %1303 = vst.msk [vmem:[%s2613_s3 + $0x98] sm:$0xff] %vm1283_vm0, %v1202_v22  ;;  %1353 = vst.msk [vmem:[%s2613_s3 + $0x228] sm:$0xff] %vm1283_vm0, %v1252_v23 }
 0x164   :  { %v864_v24 = vpop.f32.mrb[40].mxu0  ;;  %v1064_v25 = vpop.f32.mrb[40].mxu1 }
 0x165   :  { %v865_v26 = vadd.f32 %v2108_v53, %v864_v24  ;;  %v1065_v27 = vadd.f32 %v2108_v53, %v1064_v25  ;;  %v866_v28 = vpop.f32.mrb[41].mxu0  ;;  %v1066_v29 = vpop.f32.mrb[41].mxu1 }
 0x166   :  { %v867_v30 = vpop.f32.mrb[42].mxu0  ;;  %v1067_v31 = vpop.f32.mrb[42].mxu1 }
 0x167   :  { %v1203_v32 = vmax.f32 %v865_v26, 0.0  ;;  %v1253_v33 = vmax.f32 %v1065_v27, 0.0  ;;  %v868_v34 = vadd.f32 %v2108_v53, %v867_v30  ;;  %v1068_v35 = vadd.f32 %v2108_v53, %v1067_v31  ;;  %v869_v36 = vpop.f32.mrb[43].mxu0  ;;  %v1069_v37 = vpop.f32.mrb[43].mxu1 }
 0x169   :  { %1304 = vst.msk [vmem:[%s2613_s3 + $0xa0] sm:$0xff] %vm1283_vm0, %v1203_v32  ;;  %1354 = vst.msk [vmem:[%s2613_s3 + $0x230] sm:$0xff] %vm1283_vm0, %v1253_v33  ;;  %v1204_v38 = vmax.f32 %v868_v34, 0.0  ;;  %v1254_v39 = vmax.f32 %v1068_v35, 0.0 }
 0x16b   :  { %1305 = vst.msk [vmem:[%s2613_s3 + $0xa8] sm:$0xff] %vm1283_vm0, %v1204_v38  ;;  %1355 = vst.msk [vmem:[%s2613_s3 + $0x238] sm:$0xff] %vm1283_vm0, %v1254_v39 }
 0x16c   :  { %v872_v40 = vpop.f32.mrb[44].mxu0  ;;  %v1072_v41 = vpop.f32.mrb[44].mxu1 }
 0x16d   :  { %v873_v42 = vadd.f32 %v2108_v53, %v872_v40  ;;  %v1073_v43 = vadd.f32 %v2108_v53, %v1072_v41  ;;  %v874_v44 = vpop.f32.mrb[45].mxu0  ;;  %v1074_v45 = vpop.f32.mrb[45].mxu1 }
 0x16e   :  { %v875_v46 = vpop.f32.mrb[46].mxu0  ;;  %v1075_v47 = vpop.f32.mrb[46].mxu1 }
 0x16f   :  { %v1205_v48 = vmax.f32 %v873_v42, 0.0  ;;  %v1255_v49 = vmax.f32 %v1073_v43, 0.0  ;;  %v876_v50 = vadd.f32 %v2108_v53, %v875_v46  ;;  %v1076_v51 = vadd.f32 %v2108_v53, %v1075_v47  ;;  %v877_v52 = vpop.f32.mrb[47].mxu0  ;;  %v1077_v54 = vpop.f32.mrb[47].mxu1 }
 0x171   :  { %1306 = vst.msk [vmem:[%s2613_s3 + $0xb0] sm:$0xff] %vm1283_vm0, %v1205_v48  ;;  %1356 = vst.msk [vmem:[%s2613_s3 + $0x240] sm:$0xff] %vm1283_vm0, %v1255_v49  ;;  %v1206_v55 = vmax.f32 %v876_v50, 0.0  ;;  %v1256_v56 = vmax.f32 %v1076_v51, 0.0 }
 0x173   :  { %1307 = vst.msk [vmem:[%s2613_s3 + $0xb8] sm:$0xff] %vm1283_vm0, %v1206_v55  ;;  %1357 = vst.msk [vmem:[%s2613_s3 + $0x248] sm:$0xff] %vm1283_vm0, %v1256_v56 }
 0x174   :  { %v880_v57 = vpop.f32.mrb[48].mxu0  ;;  %v1080_v58 = vpop.f32.mrb[48].mxu1 }
 0x175   :  { %v881_v59 = vadd.f32 %v2108_v53, %v880_v57  ;;  %v1081_v60 = vadd.f32 %v2108_v53, %v1080_v58  ;;  %v882_v61 = vpop.f32.mrb[49].mxu0  ;;  %v1082_v62 = vpop.f32.mrb[49].mxu1 }
 0x176   :  { %v883_v63 = vpop.f32.mrb[50].mxu0  ;;  %v1083_v0 = vpop.f32.mrb[50].mxu1 }
 0x177   :  { %v1207_v1 = vmax.f32 %v881_v59, 0.0  ;;  %v1257_v2 = vmax.f32 %v1081_v60, 0.0  ;;  %v884_v3 = vadd.f32 %v2108_v53, %v883_v63  ;;  %v1084_v4 = vadd.f32 %v2108_v53, %v1083_v0  ;;  %v885_v5 = vpop.f32.mrb[51].mxu0  ;;  %v1085_v6 = vpop.f32.mrb[51].mxu1 }
 0x179   :  { %1308 = vst.msk [vmem:[%s2613_s3 + $0xc0] sm:$0xff] %vm1283_vm0, %v1207_v1  ;;  %1358 = vst.msk [vmem:[%s2613_s3 + $0x250] sm:$0xff] %vm1283_vm0, %v1257_v2  ;;  %v1208_v7 = vmax.f32 %v884_v3, 0.0  ;;  %v1258_v8 = vmax.f32 %v1084_v4, 0.0 }
 0x17b   :  { %1309 = vst.msk [vmem:[%s2613_s3 + $0xc8] sm:$0xff] %vm1283_vm0, %v1208_v7  ;;  %1359 = vst.msk [vmem:[%s2613_s3 + $0x258] sm:$0xff] %vm1283_vm0, %v1258_v8 }
 0x17c   :  { %v888_v9 = vpop.f32.mrb[52].mxu0  ;;  %v1088_v10 = vpop.f32.mrb[52].mxu1 }
 0x17d   :  { %v889_v11 = vadd.f32 %v2108_v53, %v888_v9  ;;  %v1089_v12 = vadd.f32 %v2108_v53, %v1088_v10  ;;  %v890_v13 = vpop.f32.mrb[53].mxu0  ;;  %v1090_v14 = vpop.f32.mrb[53].mxu1 }
 0x17e   :  { %v891_v15 = vpop.f32.mrb[54].mxu0  ;;  %v1091_v16 = vpop.f32.mrb[54].mxu1 }
 0x17f   :  { %v1209_v17 = vmax.f32 %v889_v11, 0.0  ;;  %v1259_v18 = vmax.f32 %v1089_v12, 0.0  ;;  %v892_v19 = vadd.f32 %v2108_v53, %v891_v15  ;;  %v1092_v20 = vadd.f32 %v2108_v53, %v1091_v16  ;;  %v893_v21 = vpop.f32.mrb[55].mxu0  ;;  %v1093_v22 = vpop.f32.mrb[55].mxu1 }
 0x181   :  { %1310 = vst.msk [vmem:[%s2613_s3 + $0xd0] sm:$0xff] %vm1283_vm0, %v1209_v17  ;;  %1360 = vst.msk [vmem:[%s2613_s3 + $0x260] sm:$0xff] %vm1283_vm0, %v1259_v18  ;;  %v1210_v23 = vmax.f32 %v892_v19, 0.0  ;;  %v1260_v24 = vmax.f32 %v1092_v20, 0.0 }
 0x183   :  { %1311 = vst.msk [vmem:[%s2613_s3 + $0xd8] sm:$0xff] %vm1283_vm0, %v1210_v23  ;;  %1361 = vst.msk [vmem:[%s2613_s3 + $0x268] sm:$0xff] %vm1283_vm0, %v1260_v24 }
 0x184   :  { %v896_v25 = vpop.f32.mrb[56].mxu0  ;;  %v1096_v26 = vpop.f32.mrb[56].mxu1 }
 0x185   :  { %v897_v27 = vadd.f32 %v2108_v53, %v896_v25  ;;  %v1097_v28 = vadd.f32 %v2108_v53, %v1096_v26  ;;  %v898_v29 = vpop.f32.mrb[57].mxu0  ;;  %v1098_v30 = vpop.f32.mrb[57].mxu1 }
 0x186   :  { %v899_v31 = vpop.f32.mrb[58].mxu0  ;;  %v1099_v32 = vpop.f32.mrb[58].mxu1 }
 0x187   :  { %v1211_v33 = vmax.f32 %v897_v27, 0.0  ;;  %v1261_v34 = vmax.f32 %v1097_v28, 0.0  ;;  %v900_v35 = vadd.f32 %v2108_v53, %v899_v31  ;;  %v1100_v36 = vadd.f32 %v2108_v53, %v1099_v32  ;;  %v901_v37 = vpop.f32.mrb[59].mxu0  ;;  %v1101_v38 = vpop.f32.mrb[59].mxu1 }
 0x189   :  { %1312 = vst.msk [vmem:[%s2613_s3 + $0xe0] sm:$0xff] %vm1283_vm0, %v1211_v33  ;;  %1362 = vst.msk [vmem:[%s2613_s3 + $0x270] sm:$0xff] %vm1283_vm0, %v1261_v34  ;;  %v1212_v39 = vmax.f32 %v900_v35, 0.0  ;;  %v1262_v40 = vmax.f32 %v1100_v36, 0.0 }
 0x18b   :  { %1313 = vst.msk [vmem:[%s2613_s3 + $0xe8] sm:$0xff] %vm1283_vm0, %v1212_v39  ;;  %1363 = vst.msk [vmem:[%s2613_s3 + $0x278] sm:$0xff] %vm1283_vm0, %v1262_v40 }
 0x18c   :  { %v904_v41 = vpop.f32.mrb[60].mxu0  ;;  %v1104_v42 = vpop.f32.mrb[60].mxu1 }
 0x18d   :  { %v905_v43 = vadd.f32 %v2108_v53, %v904_v41  ;;  %v1105_v44 = vadd.f32 %v2108_v53, %v1104_v42  ;;  %v906_v45 = vpop.f32.mrb[61].mxu0  ;;  %v1106_v46 = vpop.f32.mrb[61].mxu1 }
 0x18e   :  { %v907_v47 = vpop.f32.mrb[62].mxu0  ;;  %v1107_v48 = vpop.f32.mrb[62].mxu1 }
 0x18f   :  { %v1213_v49 = vmax.f32 %v905_v43, 0.0  ;;  %v1263_v50 = vmax.f32 %v1105_v44, 0.0  ;;  %v908_v51 = vadd.f32 %v2108_v53, %v907_v47  ;;  %v1108_v52 = vadd.f32 %v2108_v53, %v1107_v48  ;;  %v909_v54 = vpop.f32.mrb[63].mxu0  ;;  %v1109_v55 = vpop.f32.mrb[63].mxu1 }
 0x191   :  { %1314 = vst.msk [vmem:[%s2613_s3 + $0xf0] sm:$0xff] %vm1283_vm0, %v1213_v49  ;;  %1364 = vst.msk [vmem:[%s2613_s3 + $0x280] sm:$0xff] %vm1283_vm0, %v1263_v50  ;;  %v1214_v56 = vmax.f32 %v908_v51, 0.0  ;;  %v1264_v57 = vmax.f32 %v1108_v52, 0.0 }
 0x193   :  { %1315 = vst.msk [vmem:[%s2613_s3 + $0xf8] sm:$0xff] %vm1283_vm0, %v1214_v56  ;;  %1365 = vst.msk [vmem:[%s2613_s3 + $0x288] sm:$0xff] %vm1283_vm0, %v1264_v57 }
 0x194   :  { %v912_v58 = vpop.f32.mrb[64].mxu0  ;;  %v1112_v59 = vpop.f32.mrb[64].mxu1 }
 0x195   :  { %v913_v60 = vadd.f32 %v2108_v53, %v912_v58  ;;  %v1113_v61 = vadd.f32 %v2108_v53, %v1112_v59  ;;  %v914_v62 = vpop.f32.mrb[65].mxu0  ;;  %v1114_v63 = vpop.f32.mrb[65].mxu1 }
 0x196   :  { %v915_v0 = vpop.f32.mrb[66].mxu0  ;;  %v1115_v1 = vpop.f32.mrb[66].mxu1 }
 0x197   :  { %v1215_v2 = vmax.f32 %v913_v60, 0.0  ;;  %v1265_v3 = vmax.f32 %v1113_v61, 0.0  ;;  %v916_v4 = vadd.f32 %v2108_v53, %v915_v0  ;;  %v1116_v5 = vadd.f32 %v2108_v53, %v1115_v1  ;;  %v917_v6 = vpop.f32.mrb[67].mxu0  ;;  %v1117_v7 = vpop.f32.mrb[67].mxu1 }
 0x199   :  { %1316 = vst.msk [vmem:[%s2613_s3 + $0x100] sm:$0xff] %vm1283_vm0, %v1215_v2  ;;  %1366 = vst.msk [vmem:[%s2613_s3 + $0x290] sm:$0xff] %vm1283_vm0, %v1265_v3  ;;  %v1216_v8 = vmax.f32 %v916_v4, 0.0  ;;  %v1266_v9 = vmax.f32 %v1116_v5, 0.0 }
 0x19b   :  { %1317 = vst.msk [vmem:[%s2613_s3 + $0x108] sm:$0xff] %vm1283_vm0, %v1216_v8  ;;  %1367 = vst.msk [vmem:[%s2613_s3 + $0x298] sm:$0xff] %vm1283_vm0, %v1266_v9 }
 0x19c   :  { %v920_v10 = vpop.f32.mrb[68].mxu0  ;;  %v1120_v11 = vpop.f32.mrb[68].mxu1 }
 0x19d   :  { %v921_v12 = vadd.f32 %v2108_v53, %v920_v10  ;;  %v1121_v13 = vadd.f32 %v2108_v53, %v1120_v11  ;;  %v922_v14 = vpop.f32.mrb[69].mxu0  ;;  %v1122_v15 = vpop.f32.mrb[69].mxu1 }
 0x19e   :  { %v923_v16 = vpop.f32.mrb[70].mxu0  ;;  %v1123_v17 = vpop.f32.mrb[70].mxu1 }
 0x19f   :  { %v1217_v18 = vmax.f32 %v921_v12, 0.0  ;;  %v1267_v19 = vmax.f32 %v1121_v13, 0.0  ;;  %v924_v20 = vadd.f32 %v2108_v53, %v923_v16  ;;  %v1124_v21 = vadd.f32 %v2108_v53, %v1123_v17  ;;  %v925_v22 = vpop.f32.mrb[71].mxu0  ;;  %v1125_v23 = vpop.f32.mrb[71].mxu1 }
 0x1a1   :  { %1318 = vst.msk [vmem:[%s2613_s3 + $0x110] sm:$0xff] %vm1283_vm0, %v1217_v18  ;;  %1368 = vst.msk [vmem:[%s2613_s3 + $0x2a0] sm:$0xff] %vm1283_vm0, %v1267_v19  ;;  %v1218_v24 = vmax.f32 %v924_v20, 0.0  ;;  %v1268_v25 = vmax.f32 %v1124_v21, 0.0 }
 0x1a3   :  { %1319 = vst.msk [vmem:[%s2613_s3 + $0x118] sm:$0xff] %vm1283_vm0, %v1218_v24  ;;  %1369 = vst.msk [vmem:[%s2613_s3 + $0x2a8] sm:$0xff] %vm1283_vm0, %v1268_v25 }
 0x1a4   :  { %v928_v26 = vpop.f32.mrb[72].mxu0  ;;  %v1128_v27 = vpop.f32.mrb[72].mxu1 }
 0x1a5   :  { %v929_v28 = vadd.f32 %v2108_v53, %v928_v26  ;;  %v1129_v29 = vadd.f32 %v2108_v53, %v1128_v27  ;;  %v930_v30 = vpop.f32.mrb[73].mxu0  ;;  %v1130_v31 = vpop.f32.mrb[73].mxu1 }
 0x1a6   :  { %v931_v32 = vpop.f32.mrb[74].mxu0  ;;  %v1131_v33 = vpop.f32.mrb[74].mxu1 }
 0x1a7   :  { %v1219_v34 = vmax.f32 %v929_v28, 0.0  ;;  %v1269_v35 = vmax.f32 %v1129_v29, 0.0  ;;  %v932_v36 = vadd.f32 %v2108_v53, %v931_v32  ;;  %v1132_v37 = vadd.f32 %v2108_v53, %v1131_v33  ;;  %v933_v38 = vpop.f32.mrb[75].mxu0  ;;  %v1133_v39 = vpop.f32.mrb[75].mxu1 }
 0x1a9   :  { %1320 = vst.msk [vmem:[%s2613_s3 + $0x120] sm:$0xff] %vm1283_vm0, %v1219_v34  ;;  %1370 = vst.msk [vmem:[%s2613_s3 + $0x2b0] sm:$0xff] %vm1283_vm0, %v1269_v35  ;;  %v1220_v40 = vmax.f32 %v932_v36, 0.0  ;;  %v1270_v41 = vmax.f32 %v1132_v37, 0.0 }
 0x1ab   :  { %1321 = vst.msk [vmem:[%s2613_s3 + $0x128] sm:$0xff] %vm1283_vm0, %v1220_v40  ;;  %1371 = vst.msk [vmem:[%s2613_s3 + $0x2b8] sm:$0xff] %vm1283_vm0, %v1270_v41 }
 0x1ac   :  { %v936_v42 = vpop.f32.mrb[76].mxu0  ;;  %v1136_v43 = vpop.f32.mrb[76].mxu1 }
 0x1ad   :  { %v937_v44 = vadd.f32 %v2108_v53, %v936_v42  ;;  %v1137_v45 = vadd.f32 %v2108_v53, %v1136_v43  ;;  %v938_v46 = vpop.f32.mrb[77].mxu0  ;;  %v1138_v47 = vpop.f32.mrb[77].mxu1 }
 0x1ae   :  { %v939_v48 = vpop.f32.mrb[78].mxu0  ;;  %v1139_v49 = vpop.f32.mrb[78].mxu1 }
 0x1af   :  { %v1221_v50 = vmax.f32 %v937_v44, 0.0  ;;  %v1271_v51 = vmax.f32 %v1137_v45, 0.0  ;;  %v940_v52 = vadd.f32 %v2108_v53, %v939_v48  ;;  %v1140_v54 = vadd.f32 %v2108_v53, %v1139_v49  ;;  %v941_v55 = vpop.f32.mrb[79].mxu0  ;;  %v1141_v56 = vpop.f32.mrb[79].mxu1 }
 0x1b1   :  { %1322 = vst.msk [vmem:[%s2613_s3 + $0x130] sm:$0xff] %vm1283_vm0, %v1221_v50  ;;  %1372 = vst.msk [vmem:[%s2613_s3 + $0x2c0] sm:$0xff] %vm1283_vm0, %v1271_v51  ;;  %v1222_v57 = vmax.f32 %v940_v52, 0.0  ;;  %v1272_v58 = vmax.f32 %v1140_v54, 0.0 }
 0x1b3   :  { %1323 = vst.msk [vmem:[%s2613_s3 + $0x138] sm:$0xff] %vm1283_vm0, %v1222_v57  ;;  %1373 = vst.msk [vmem:[%s2613_s3 + $0x2c8] sm:$0xff] %vm1283_vm0, %v1272_v58 }
 0x1b4   :  { %v944_v59 = vpop.f32.mrb[80].mxu0  ;;  %v1144_v60 = vpop.f32.mrb[80].mxu1 }
 0x1b5   :  { %v945_v61 = vadd.f32 %v2108_v53, %v944_v59  ;;  %v1145_v62 = vadd.f32 %v2108_v53, %v1144_v60  ;;  %v946_v63 = vpop.f32.mrb[81].mxu0  ;;  %v1146_v0 = vpop.f32.mrb[81].mxu1 }
 0x1b6   :  { %v947_v1 = vpop.f32.mrb[82].mxu0  ;;  %v1147_v2 = vpop.f32.mrb[82].mxu1 }
 0x1b7   :  { %v1223_v3 = vmax.f32 %v945_v61, 0.0  ;;  %v1273_v4 = vmax.f32 %v1145_v62, 0.0  ;;  %v948_v5 = vadd.f32 %v2108_v53, %v947_v1  ;;  %v1148_v6 = vadd.f32 %v2108_v53, %v1147_v2  ;;  %v949_v7 = vpop.f32.mrb[83].mxu0  ;;  %v1149_v8 = vpop.f32.mrb[83].mxu1 }
 0x1b9   :  { %1324 = vst.msk [vmem:[%s2613_s3 + $0x140] sm:$0xff] %vm1283_vm0, %v1223_v3  ;;  %1374 = vst.msk [vmem:[%s2613_s3 + $0x2d0] sm:$0xff] %vm1283_vm0, %v1273_v4  ;;  %v1224_v9 = vmax.f32 %v948_v5, 0.0  ;;  %v1274_v10 = vmax.f32 %v1148_v6, 0.0 }
 0x1bb   :  { %1325 = vst.msk [vmem:[%s2613_s3 + $0x148] sm:$0xff] %vm1283_vm0, %v1224_v9  ;;  %1375 = vst.msk [vmem:[%s2613_s3 + $0x2d8] sm:$0xff] %vm1283_vm0, %v1274_v10 }
 0x1bc   :  { %v952_v11 = vpop.f32.mrb[84].mxu0  ;;  %v1152_v12 = vpop.f32.mrb[84].mxu1 }
 0x1bd   :  { %v953_v13 = vadd.f32 %v2108_v53, %v952_v11  ;;  %v1153_v14 = vadd.f32 %v2108_v53, %v1152_v12  ;;  %v954_v15 = vpop.f32.mrb[85].mxu0  ;;  %v1154_v16 = vpop.f32.mrb[85].mxu1 }
 0x1be   :  { %v955_v17 = vpop.f32.mrb[86].mxu0  ;;  %v1155_v18 = vpop.f32.mrb[86].mxu1 }
 0x1bf   :  { %v1225_v19 = vmax.f32 %v953_v13, 0.0  ;;  %v1275_v20 = vmax.f32 %v1153_v14, 0.0  ;;  %v956_v21 = vadd.f32 %v2108_v53, %v955_v17  ;;  %v1156_v22 = vadd.f32 %v2108_v53, %v1155_v18  ;;  %v957_v23 = vpop.f32.mrb[87].mxu0  ;;  %v1157_v24 = vpop.f32.mrb[87].mxu1 }
 0x1c1   :  { %1326 = vst.msk [vmem:[%s2613_s3 + $0x150] sm:$0xff] %vm1283_vm0, %v1225_v19  ;;  %1376 = vst.msk [vmem:[%s2613_s3 + $0x2e0] sm:$0xff] %vm1283_vm0, %v1275_v20  ;;  %v1226_v25 = vmax.f32 %v956_v21, 0.0  ;;  %v1276_v26 = vmax.f32 %v1156_v22, 0.0 }
 0x1c3   :  { %1327 = vst.msk [vmem:[%s2613_s3 + $0x158] sm:$0xff] %vm1283_vm0, %v1226_v25  ;;  %1377 = vst.msk [vmem:[%s2613_s3 + $0x2e8] sm:$0xff] %vm1283_vm0, %v1276_v26 }
 0x1c4   :  { %v960_v27 = vpop.f32.mrb[88].mxu0  ;;  %v1160_v28 = vpop.f32.mrb[88].mxu1 }
 0x1c5   :  { %v961_v29 = vadd.f32 %v2108_v53, %v960_v27  ;;  %v1161_v30 = vadd.f32 %v2108_v53, %v1160_v28  ;;  %v962_v31 = vpop.f32.mrb[89].mxu0  ;;  %v1162_v32 = vpop.f32.mrb[89].mxu1 }
 0x1c6   :  { %v963_v33 = vpop.f32.mrb[90].mxu0  ;;  %v1163_v34 = vpop.f32.mrb[90].mxu1 }
 0x1c7   :  { %v1227_v35 = vmax.f32 %v961_v29, 0.0  ;;  %v1277_v36 = vmax.f32 %v1161_v30, 0.0  ;;  %v964_v37 = vadd.f32 %v2108_v53, %v963_v33  ;;  %v1164_v38 = vadd.f32 %v2108_v53, %v1163_v34  ;;  %v965_v39 = vpop.f32.mrb[91].mxu0  ;;  %v1165_v40 = vpop.f32.mrb[91].mxu1 }
 0x1c9   :  { %1328 = vst.msk [vmem:[%s2613_s3 + $0x160] sm:$0xff] %vm1283_vm0, %v1227_v35  ;;  %1378 = vst.msk [vmem:[%s2613_s3 + $0x2f0] sm:$0xff] %vm1283_vm0, %v1277_v36  ;;  %v1228_v41 = vmax.f32 %v964_v37, 0.0  ;;  %v1278_v42 = vmax.f32 %v1164_v38, 0.0 }
 0x1cb   :  { %1329 = vst.msk [vmem:[%s2613_s3 + $0x168] sm:$0xff] %vm1283_vm0, %v1228_v41  ;;  %1379 = vst.msk [vmem:[%s2613_s3 + $0x2f8] sm:$0xff] %vm1283_vm0, %v1278_v42 }
 0x1cc   :  { %v968_v43 = vpop.f32.mrb[92].mxu0  ;;  %v1168_v44 = vpop.f32.mrb[92].mxu1 }
 0x1cd   :  { %v969_v45 = vadd.f32 %v2108_v53, %v968_v43  ;;  %v1169_v46 = vadd.f32 %v2108_v53, %v1168_v44  ;;  %v970_v47 = vpop.f32.mrb[93].mxu0  ;;  %v1170_v48 = vpop.f32.mrb[93].mxu1 }
 0x1ce   :  { %v971_v49 = vpop.f32.mrb[94].mxu0  ;;  %v1171_v50 = vpop.f32.mrb[94].mxu1 }
 0x1cf   :  { %v1229_v51 = vmax.f32 %v969_v45, 0.0  ;;  %v1279_v52 = vmax.f32 %v1169_v46, 0.0  ;;  %v972_v54 = vadd.f32 %v2108_v53, %v971_v49  ;;  %v1172_v55 = vadd.f32 %v2108_v53, %v1171_v50  ;;  %v973_v56 = vpop.f32.mrb[95].mxu0  ;;  %v1173_v57 = vpop.f32.mrb[95].mxu1 }
 0x1d1   :  { %1330 = vst.msk [vmem:[%s2613_s3 + $0x170] sm:$0xff] %vm1283_vm0, %v1229_v51  ;;  %1380 = vst.msk [vmem:[%s2613_s3 + $0x300] sm:$0xff] %vm1283_vm0, %v1279_v52  ;;  %v1230_v58 = vmax.f32 %v972_v54, 0.0  ;;  %v1280_v59 = vmax.f32 %v1172_v55, 0.0 }
 0x1d3   :  { %1331 = vst.msk [vmem:[%s2613_s3 + $0x178] sm:$0xff] %vm1283_vm0, %v1230_v58  ;;  %1381 = vst.msk [vmem:[%s2613_s3 + $0x308] sm:$0xff] %vm1283_vm0, %v1280_v59 }
 0x1d4   :  { %v976_v60 = vpop.f32.mrb[96].mxu0  ;;  %v1176_v61 = vpop.f32.mrb[96].mxu1 }
 0x1d5   :  { %v977_v62 = vadd.f32 %v2108_v53, %v976_v60  ;;  %v1177_v63 = vadd.f32 %v2108_v53, %v1176_v61  ;;  %v978_v0 = vpop.f32.mrb[97].mxu0  ;;  %v1178_v1 = vpop.f32.mrb[97].mxu1 }
 0x1d6   :  { %v979_v2 = vpop.f32.mrb[98].mxu0  ;;  %v1179_v3 = vpop.f32.mrb[98].mxu1 }
 0x1d7   :  { %v1231_v4 = vmax.f32 %v977_v62, 0.0  ;;  %v1281_v5 = vmax.f32 %v1177_v63, 0.0  ;;  %v980_v6 = vadd.f32 %v2108_v53, %v979_v2  ;;  %v1180_v7 = vadd.f32 %v2108_v53, %v1179_v3  ;;  %v981_v8 = vpop.f32.mrb[99].mxu0  ;;  %v1181_v9 = vpop.f32.mrb[99].mxu1 }
 0x1d9   :  { %1332 = vst.msk [vmem:[%s2613_s3 + $0x180] sm:$0xff] %vm1283_vm0, %v1231_v4  ;;  %1382 = vst.msk [vmem:[%s2613_s3 + $0x310] sm:$0xff] %vm1283_vm0, %v1281_v5  ;;  %v1232_v10 = vmax.f32 %v980_v6, 0.0  ;;  %v1282_v11 = vmax.f32 %v1180_v7, 0.0 }
 0x1db   :  { %1333 = vst.msk [vmem:[%s2613_s3 + $0x188] sm:$0xff] %vm1283_vm0, %v1232_v10  ;;  %1383 = vst.msk [vmem:[%s2613_s3 + $0x318] sm:$0xff] %vm1283_vm0, %v1282_v11 }

// kernel: forward_impl.4
= control target key start
LH: loop header
LB: loop body
LE: loop exit
PB: predicated region body
PF: predicated region fallthrough
CT: control target
= control target key end

     0   :  { %vm795_vm0 = vcmask 523264   ;;  %s1510_s1 = inlined_call_operand.vmem [shape: bf16[512,64], index: 1, kind: input, shape index: {}]   ;;  %s1511_s0 = inlined_call_operand.vmem [shape: bf16[168,512], index: 0, kind: input, shape index: {}]   ;;  %s1512_s2 = inlined_call_operand.vmem [shape: f32[1,64], index: 2, kind: input, shape index: {}]   ;;  %s1513_s3 = inlined_call_operand.vmem [shape: f32[168,64], index: 3, kind: output, shape index: {}]  }
   0x1   :  { %v1062_v0 = vld [vmem:[%s1510_s1 + $0x40] sm:$0xff]   ;;  %v1066_v4 = vld [vmem:[%s1510_s1 + $0x48] sm:$0xff]   ;;  %v1070_v8 = vld [vmem:[%s1510_s1 + $0x50] sm:$0xff]  }
   0x2   :  { %v1063_v1 = vld [vmem:[%s1510_s1 + $0xc0] sm:$0xff]   ;;  %898 = vmatprep.subr.bf16.mxu0 %v1062_v0  ;;  %v1067_v5 = vld [vmem:[%s1510_s1 + $0xc8] sm:$0xff]   ;;  %v1071_v9 = vld [vmem:[%s1510_s1 + $0xd0] sm:$0xff]  }
   0x3   :  { %v1064_v2 = vld [vmem:[%s1510_s1] sm:$0xff]   ;;  %980 = vmatprep.subr.bf16.mxu1 %v1063_v1  ;;  %v1068_v6 = vld [vmem:[%s1510_s1 + $0x8] sm:$0xff]   ;;  %v1072_v10 = vld [vmem:[%s1510_s1 + $0x10] sm:$0xff]  }
   0x4   :  { %v1065_v3 = vld [vmem:[%s1510_s1 + $0x80] sm:$0xff]   ;;  %899 = vmatpush3.bf16.msra.mxu0 %v1064_v2  ;;  %v1069_v7 = vld [vmem:[%s1510_s1 + $0x88] sm:$0xff]   ;;  %v1073_v11 = vld [vmem:[%s1510_s1 + $0x90] sm:$0xff]  }
   0x5   :  { %981 = vmatpush3.bf16.msra.mxu1 %v1065_v3  ;;  %900 = vmatprep.subr.bf16.mxu0 %v1066_v4  ;;  %v1074_v12 = vld [vmem:[%s1510_s1 + $0x58] sm:$0xff]   ;;  %v1078_v16 = vld [vmem:[%s1510_s1 + $0x60] sm:$0xff]   ;;  %v1082_v20 = vld [vmem:[%s1510_s1 + $0x68] sm:$0xff]  }
   0x6   :  { %982 = vmatprep.subr.bf16.mxu1 %v1067_v5  ;;  %v1075_v13 = vld [vmem:[%s1510_s1 + $0xd8] sm:$0xff]   ;;  %v1079_v17 = vld [vmem:[%s1510_s1 + $0xe0] sm:$0xff]   ;;  %v1083_v21 = vld [vmem:[%s1510_s1 + $0xe8] sm:$0xff]  }
   0x7   :  { %v1076_v14 = vld [vmem:[%s1510_s1 + $0x18] sm:$0xff]   ;;  %v1080_v18 = vld [vmem:[%s1510_s1 + $0x20] sm:$0xff]   ;;  %v1084_v22 = vld [vmem:[%s1510_s1 + $0x28] sm:$0xff]  }
   0x8   :  { %901 = vmatpush3.bf16.msra.mxu0 %v1068_v6  ;;  %v1077_v15 = vld [vmem:[%s1510_s1 + $0x98] sm:$0xff]   ;;  %v1081_v19 = vld [vmem:[%s1510_s1 + $0xa0] sm:$0xff]   ;;  %v1085_v23 = vld [vmem:[%s1510_s1 + $0xa8] sm:$0xff]  }
   0x9   :  { %983 = vmatpush3.bf16.msra.mxu1 %v1069_v7  ;;  %902 = vmatprep.subr.bf16.mxu0 %v1070_v8  ;;  %v1086_v24 = vld [vmem:[%s1510_s1 + $0x70] sm:$0xff]   ;;  %v1090_v28 = vld [vmem:[%s1510_s1 + $0x78] sm:$0xff]   ;;  %v55_v6 = vld [vmem:[%s1511_s0 + $0x140] sm:$0xff] }
   0xa   :  { %984 = vmatprep.subr.bf16.mxu1 %v1071_v9  ;;  %v1087_v25 = vld [vmem:[%s1510_s1 + $0xf0] sm:$0xff]   ;;  %v1091_v29 = vld [vmem:[%s1510_s1 + $0xf8] sm:$0xff]   ;;  %v56_v7 = vld [vmem:[%s1511_s0 + $0x148] sm:$0xff] }
   0xb   :  { %v1088_v26 = vld [vmem:[%s1510_s1 + $0x30] sm:$0xff]   ;;  %v1092_v30 = vld [vmem:[%s1510_s1 + $0x38] sm:$0xff]  }
   0xc   :  { %903 = vmatpush3.bf16.msra.mxu0 %v1072_v10  ;;  %v1089_v27 = vld [vmem:[%s1510_s1 + $0xb0] sm:$0xff]   ;;  %v1093_v31 = vld [vmem:[%s1510_s1 + $0xb8] sm:$0xff]   ;;  %v863_v10 = vcombine.high %v55_v6, %v55_v6 }
   0xd   :  { %985 = vmatpush3.bf16.msra.mxu1 %v1073_v11  ;;  %904 = vmatprep.subr.bf16.mxu0 %v1074_v12  ;;  %v1094_v32 = vld [vmem:[%s1511_s0] ss:$16 sps:$4 sm:$0xff]   ;;  %v1096_v33 = vld [vmem:[%s1511_s0 + $0x4] ss:$16 sps:$4 sm:$0xff]   ;;  %v1097_v34 = vld [vmem:[%s1511_s0 + $0x8] ss:$16 sps:$4 sm:$0xff]   ;;  %v865_v11 = vcombine.high %v56_v7, %v56_v7  ;;  %v862_v12 = vcombine.low %v55_v6, %v55_v6 }
   0xe   :  { %986 = vmatprep.subr.bf16.mxu1 %v1075_v13  ;;  %v1099_v35 = vld [vmem:[%s1511_s0 + $0xc] ss:$16 sps:$4 sm:$0xff]   ;;  %566 = vmatprep.mubr.bf16.mxu0 %v1096_v33  ;;  %v1100_v36 = vld [vmem:[%s1511_s0 + $0x24] ss:$16 sps:$4 sm:$0xff]   ;;  %v1104_v38 = vld [vmem:[%s1511_s0 + $0x20] ss:$16 sps:$4 sm:$0xff]   ;;  %v864_v13 = vcombine.low %v56_v7, %v56_v7 }
   0xf   :  { %686 = vmatprep.mubr.bf16.mxu1 %v1099_v35  ;;  %v1102_v37 = vld [vmem:[%s1511_s0 + $0x2c] ss:$16 sps:$4 sm:$0xff]   ;;  %v1105_v39 = vld [vmem:[%s1511_s0 + $0x28] ss:$16 sps:$4 sm:$0xff]   ;;  %v1106_v40 = vld [vmem:[%s1511_s0 + $0x44] ss:$16 sps:$4 sm:$0xff]  }
  0x10   :  { %905 = vmatpush3.bf16.msra.mxu0 %v1076_v14  ;;  %v1108_v41 = vld [vmem:[%s1511_s0 + $0x4c] ss:$16 sps:$4 sm:$0xff]   ;;  %v1110_v42 = vld [vmem:[%s1511_s0 + $0x40] ss:$16 sps:$4 sm:$0xff]   ;;  %v1111_v43 = vld [vmem:[%s1511_s0 + $0x48] ss:$16 sps:$4 sm:$0xff]  }
  0x11   :  { %987 = vmatpush3.bf16.msra.mxu1 %v1077_v15  ;;  %906 = vmatprep.subr.bf16.mxu0 %v1078_v16  ;;  %v1112_v44 = vld [vmem:[%s1511_s0 + $0x64] ss:$16 sps:$4 sm:$0xff]   ;;  %v1114_v45 = vld [vmem:[%s1511_s0 + $0x6c] ss:$16 sps:$4 sm:$0xff]   ;;  %v1116_v46 = vld [vmem:[%s1511_s0 + $0x60] ss:$16 sps:$4 sm:$0xff]  }
  0x12   :  { %988 = vmatprep.subr.bf16.mxu1 %v1079_v17  ;;  %v1117_v47 = vld [vmem:[%s1511_s0 + $0x68] ss:$16 sps:$4 sm:$0xff]   ;;  %v1118_v48 = vld [vmem:[%s1511_s0 + $0x84] ss:$16 sps:$4 sm:$0xff]   ;;  %v1120_v49 = vld [vmem:[%s1511_s0 + $0x8c] ss:$16 sps:$4 sm:$0xff]  }
  0x13   :  { %v1122_v50 = vld [vmem:[%s1511_s0 + $0x80] ss:$16 sps:$4 sm:$0xff]   ;;  %v1123_v51 = vld [vmem:[%s1511_s0 + $0x88] ss:$16 sps:$4 sm:$0xff]   ;;  %v1124_v52 = vld [vmem:[%s1511_s0 + $0xa4] ss:$16 sps:$4 sm:$0xff]  }
  0x14   :  { %907 = vmatpush3.bf16.msra.mxu0 %v1080_v18  ;;  %v1126_v53 = vld [vmem:[%s1511_s0 + $0xac] ss:$16 sps:$4 sm:$0xff]   ;;  %v1128_v54 = vld [vmem:[%s1511_s0 + $0xa0] ss:$16 sps:$4 sm:$0xff]   ;;  %v1129_v55 = vld [vmem:[%s1511_s0 + $0xa8] ss:$16 sps:$4 sm:$0xff]  }
  0x15   :  { %989 = vmatpush3.bf16.msra.mxu1 %v1081_v19  ;;  %908 = vmatprep.subr.bf16.mxu0 %v1082_v20  ;;  %v1130_v56 = vld [vmem:[%s1511_s0 + $0xc4] ss:$16 sps:$4 sm:$0xff]   ;;  %v1132_v57 = vld [vmem:[%s1511_s0 + $0xcc] ss:$16 sps:$4 sm:$0xff]   ;;  %v1134_v58 = vld [vmem:[%s1511_s0 + $0xc0] ss:$16 sps:$4 sm:$0xff]  }
  0x16   :  { %990 = vmatprep.subr.bf16.mxu1 %v1083_v21  ;;  %v1135_v59 = vld [vmem:[%s1511_s0 + $0xc8] ss:$16 sps:$4 sm:$0xff]   ;;  %v1136_v60 = vld [vmem:[%s1511_s0 + $0xe4] ss:$16 sps:$4 sm:$0xff]   ;;  %v1138_v61 = vld [vmem:[%s1511_s0 + $0xec] ss:$16 sps:$4 sm:$0xff]  }
  0x17   :  { %v1140_v62 = vld [vmem:[%s1511_s0 + $0xe0] ss:$16 sps:$4 sm:$0xff]   ;;  %v1141_v63 = vld [vmem:[%s1511_s0 + $0xe8] ss:$16 sps:$4 sm:$0xff]   ;;  %v1142_v0 = vld [vmem:[%s1511_s0 + $0x104] ss:$16 sps:$4 sm:$0xff]  }
  0x18   :  { %909 = vmatpush3.bf16.msra.mxu0 %v1084_v22  ;;  %v1144_v1 = vld [vmem:[%s1511_s0 + $0x10c] ss:$16 sps:$4 sm:$0xff]   ;;  %v1146_v2 = vld [vmem:[%s1511_s0 + $0x100] ss:$16 sps:$4 sm:$0xff]   ;;  %v1147_v3 = vld [vmem:[%s1511_s0 + $0x108] ss:$16 sps:$4 sm:$0xff]  }
  0x19   :  { %991 = vmatpush3.bf16.msra.mxu1 %v1085_v23  ;;  %910 = vmatprep.subr.bf16.mxu0 %v1086_v24  ;;  %v1148_v4 = vld [vmem:[%s1511_s0 + $0x124] ss:$16 sps:$4 sm:$0xff]   ;;  %v1150_v5 = vld [vmem:[%s1511_s0 + $0x12c] ss:$16 sps:$4 sm:$0xff]   ;;  %v1152_v8 = vld [vmem:[%s1511_s0 + $0x120] ss:$16 sps:$4 sm:$0xff]  }
  0x1a   :  { %992 = vmatprep.subr.bf16.mxu1 %v1087_v25  ;;  %v1153_v9 = vld [vmem:[%s1511_s0 + $0x128] ss:$16 sps:$4 sm:$0xff]   ;;  %v1403_v16 = vld [vmem:[%s1512_s2] ss:$0 sm:$0xff] }
  0x1c   :  { %911 = vmatpush3.bf16.msra.mxu0 %v1088_v26 }
  0x1d   :  { %993 = vmatpush3.bf16.msra.mxu1 %v1089_v27  ;;  %912 = vmatprep.subr.bf16.mxu0 %v1090_v28 }
  0x1e   :  { %994 = vmatprep.subr.bf16.mxu1 %v1091_v29 }
  0x20   :  { %913 = vmatpush3.bf16.msra.mxu0 %v1092_v30 }
  0x21   :  { %995 = vmatpush3.bf16.msra.mxu1 %v1093_v31 }
  0x23   :  { %567 = vmatmul.mubr.bf16.vlgmr.msra.gmra.mrb[0].mxu0 %v1094_v32 }
  0x24   :  { %687 = vmatmul.mubr.bf16.vlgmr.msra.gmra.mrb[0].mxu1 %v1097_v34  ;;  %574 = vmatprep.mubr.bf16.mxu0 %v1100_v36 }
  0x25   :  { %694 = vmatprep.mubr.bf16.mxu1 %v1102_v37 }
  0x2b   :  { %575 = vmatmul.mubr.bf16.gmra.mrb[4].mxu0 %v1104_v38 }
  0x2c   :  { %695 = vmatmul.mubr.bf16.gmra.mrb[4].mxu1 %v1105_v39  ;;  %582 = vmatprep.mubr.bf16.mxu0 %v1106_v40 }
  0x2d   :  { %702 = vmatprep.mubr.bf16.mxu1 %v1108_v41 }
  0x33   :  { %583 = vmatmul.mubr.bf16.gmra.mrb[8].mxu0 %v1110_v42 }
  0x34   :  { %703 = vmatmul.mubr.bf16.gmra.mrb[8].mxu1 %v1111_v43  ;;  %590 = vmatprep.mubr.bf16.mxu0 %v1112_v44 }
  0x35   :  { %710 = vmatprep.mubr.bf16.mxu1 %v1114_v45 }
  0x3b   :  { %591 = vmatmul.mubr.bf16.gmra.mrb[12].mxu0 %v1116_v46 }
  0x3c   :  { %711 = vmatmul.mubr.bf16.gmra.mrb[12].mxu1 %v1117_v47  ;;  %598 = vmatprep.mubr.bf16.mxu0 %v1118_v48 }
  0x3d   :  { %718 = vmatprep.mubr.bf16.mxu1 %v1120_v49 }
  0x43   :  { %599 = vmatmul.mubr.bf16.gmra.mrb[16].mxu0 %v1122_v50 }
  0x44   :  { %719 = vmatmul.mubr.bf16.gmra.mrb[16].mxu1 %v1123_v51  ;;  %606 = vmatprep.mubr.bf16.mxu0 %v1124_v52 }
  0x45   :  { %726 = vmatprep.mubr.bf16.mxu1 %v1126_v53 }
  0x4b   :  { %607 = vmatmul.mubr.bf16.gmra.mrb[20].mxu0 %v1128_v54 }
  0x4c   :  { %727 = vmatmul.mubr.bf16.gmra.mrb[20].mxu1 %v1129_v55  ;;  %614 = vmatprep.mubr.bf16.mxu0 %v1130_v56 }
  0x4d   :  { %734 = vmatprep.mubr.bf16.mxu1 %v1132_v57 }
  0x53   :  { %615 = vmatmul.mubr.bf16.gmra.mrb[24].mxu0 %v1134_v58 }
  0x54   :  { %735 = vmatmul.mubr.bf16.gmra.mrb[24].mxu1 %v1135_v59  ;;  %622 = vmatprep.mubr.bf16.mxu0 %v1136_v60 }
  0x55   :  { %742 = vmatprep.mubr.bf16.mxu1 %v1138_v61 }
  0x5b   :  { %623 = vmatmul.mubr.bf16.gmra.mrb[28].mxu0 %v1140_v62 }
  0x5c   :  { %743 = vmatmul.mubr.bf16.gmra.mrb[28].mxu1 %v1141_v63  ;;  %630 = vmatprep.mubr.bf16.mxu0 %v1142_v0 }
  0x5d   :  { %750 = vmatprep.mubr.bf16.mxu1 %v1144_v1 }
  0x63   :  { %631 = vmatmul.mubr.bf16.gmra.mrb[32].mxu0 %v1146_v2 }
  0x64   :  { %751 = vmatmul.mubr.bf16.gmra.mrb[32].mxu1 %v1147_v3  ;;  %638 = vmatprep.mubr.bf16.mxu0 %v1148_v4 }
  0x65   :  { %758 = vmatprep.mubr.bf16.mxu1 %v1150_v5 }
  0x6b   :  { %639 = vmatmul.mubr.bf16.gmra.mrb[36].mxu0 %v1152_v8 }
  0x6c   :  { %759 = vmatmul.mubr.bf16.gmra.mrb[36].mxu1 %v1153_v9  ;;  %646 = vmatprep.mubr.bf16.mxu0 %v863_v10 }
  0x6d   :  { %766 = vmatprep.mubr.bf16.mxu1 %v865_v11 }
  0x73   :  { %647 = vmatmul.mubr.bf16.gmra.mrb[40].mxu0 %v862_v12 }
  0x74   :  { %767 = vmatmul.mubr.bf16.gmra.mrb[40].mxu1 %v864_v13 }
  0xf6   :  { %v914_v14 = vpop.f32.mrb[0].mxu0 }
  0xf7   :  { %v996_v15 = vpop.f32.mrb[0].mxu1  ;;  %v915_v17 = vpop.f32.mrb[1].mxu0 }
  0xf8   :  { %v916_v18 = vadd.f32 %v915_v17, %v914_v14  ;;  %v997_v19 = vpop.f32.mrb[1].mxu1  ;;  %v917_v20 = vpop.f32.mrb[2].mxu0 }
  0xf9   :  { %v998_v21 = vadd.f32 %v997_v19, %v996_v15  ;;  %v999_v22 = vpop.f32.mrb[2].mxu1  ;;  %v918_v23 = vpop.f32.mrb[3].mxu0 }
  0xfa   :  { %v569_v24 = vadd.f32 %v916_v18, %v1403_v16  ;;  %v919_v25 = vadd.f32 %v918_v23, %v917_v20  ;;  %v1000_v26 = vpop.f32.mrb[3].mxu1 }
  0xfb   :  { %v1001_v27 = vadd.f32 %v1000_v26, %v999_v22 }
  0xfc   :  { %v689_v28 = vadd.f32 %v998_v21, %v569_v24  ;;  %v572_v29 = vadd.f32 %v919_v25, %v1403_v16 }
  0xfe   :  { %v774_v30 = vmax.f32 %v689_v28, 0.0  ;;  %v692_v31 = vadd.f32 %v1001_v27, %v572_v29  ;;  %v920_v32 = vpop.f32.mrb[4].mxu0 }
  0xff   :  { %v1002_v33 = vpop.f32.mrb[4].mxu1  ;;  %v921_v34 = vpop.f32.mrb[5].mxu0 }
 0x100   :  { %796 = vst.msk [vmem:[%s1513_s3] sm:$0xff] %vm795_vm0, %v774_v30  ;;  %v775_v35 = vmax.f32 %v692_v31, 0.0  ;;  %v922_v36 = vadd.f32 %v921_v34, %v920_v32  ;;  %v1003_v37 = vpop.f32.mrb[5].mxu1  ;;  %v923_v38 = vpop.f32.mrb[6].mxu0 }
 0x101   :  { %v1004_v39 = vadd.f32 %v1003_v37, %v1002_v33  ;;  %v1005_v40 = vpop.f32.mrb[6].mxu1  ;;  %v924_v41 = vpop.f32.mrb[7].mxu0 }
 0x102   :  { %797 = vst.msk [vmem:[%s1513_s3 + $0x8] sm:$0xff] %vm795_vm0, %v775_v35  ;;  %v577_v42 = vadd.f32 %v922_v36, %v1403_v16  ;;  %v925_v43 = vadd.f32 %v924_v41, %v923_v38  ;;  %v1006_v44 = vpop.f32.mrb[7].mxu1 }
 0x103   :  { %v1007_v45 = vadd.f32 %v1006_v44, %v1005_v40 }
 0x104   :  { %v697_v46 = vadd.f32 %v1004_v39, %v577_v42  ;;  %v580_v47 = vadd.f32 %v925_v43, %v1403_v16 }
 0x106   :  { %v776_v48 = vmax.f32 %v697_v46, 0.0  ;;  %v700_v49 = vadd.f32 %v1007_v45, %v580_v47  ;;  %v926_v50 = vpop.f32.mrb[8].mxu0 }
 0x107   :  { %v1008_v51 = vpop.f32.mrb[8].mxu1  ;;  %v927_v52 = vpop.f32.mrb[9].mxu0 }
 0x108   :  { %798 = vst.msk [vmem:[%s1513_s3 + $0x10] sm:$0xff] %vm795_vm0, %v776_v48  ;;  %v777_v53 = vmax.f32 %v700_v49, 0.0  ;;  %v928_v54 = vadd.f32 %v927_v52, %v926_v50  ;;  %v1009_v55 = vpop.f32.mrb[9].mxu1  ;;  %v929_v56 = vpop.f32.mrb[10].mxu0 }
 0x109   :  { %v1010_v57 = vadd.f32 %v1009_v55, %v1008_v51  ;;  %v1011_v58 = vpop.f32.mrb[10].mxu1  ;;  %v930_v59 = vpop.f32.mrb[11].mxu0 }
 0x10a   :  { %799 = vst.msk [vmem:[%s1513_s3 + $0x18] sm:$0xff] %vm795_vm0, %v777_v53  ;;  %v585_v60 = vadd.f32 %v928_v54, %v1403_v16  ;;  %v931_v61 = vadd.f32 %v930_v59, %v929_v56  ;;  %v1012_v62 = vpop.f32.mrb[11].mxu1 }
 0x10b   :  { %v1013_v63 = vadd.f32 %v1012_v62, %v1011_v58 }
 0x10c   :  { %v705_v0 = vadd.f32 %v1010_v57, %v585_v60  ;;  %v588_v1 = vadd.f32 %v931_v61, %v1403_v16 }
 0x10e   :  { %v778_v2 = vmax.f32 %v705_v0, 0.0  ;;  %v708_v3 = vadd.f32 %v1013_v63, %v588_v1  ;;  %v932_v4 = vpop.f32.mrb[12].mxu0 }
 0x10f   :  { %v1014_v5 = vpop.f32.mrb[12].mxu1  ;;  %v933_v6 = vpop.f32.mrb[13].mxu0 }
 0x110   :  { %800 = vst.msk [vmem:[%s1513_s3 + $0x20] sm:$0xff] %vm795_vm0, %v778_v2  ;;  %v779_v7 = vmax.f32 %v708_v3, 0.0  ;;  %v934_v8 = vadd.f32 %v933_v6, %v932_v4  ;;  %v1015_v9 = vpop.f32.mrb[13].mxu1  ;;  %v935_v10 = vpop.f32.mrb[14].mxu0 }
 0x111   :  { %v1016_v11 = vadd.f32 %v1015_v9, %v1014_v5  ;;  %v1017_v12 = vpop.f32.mrb[14].mxu1  ;;  %v936_v13 = vpop.f32.mrb[15].mxu0 }
 0x112   :  { %801 = vst.msk [vmem:[%s1513_s3 + $0x28] sm:$0xff] %vm795_vm0, %v779_v7  ;;  %v593_v14 = vadd.f32 %v934_v8, %v1403_v16  ;;  %v937_v15 = vadd.f32 %v936_v13, %v935_v10  ;;  %v1018_v17 = vpop.f32.mrb[15].mxu1 }
 0x113   :  { %v1019_v18 = vadd.f32 %v1018_v17, %v1017_v12 }
 0x114   :  { %v713_v19 = vadd.f32 %v1016_v11, %v593_v14  ;;  %v596_v20 = vadd.f32 %v937_v15, %v1403_v16 }
 0x116   :  { %v780_v21 = vmax.f32 %v713_v19, 0.0  ;;  %v716_v22 = vadd.f32 %v1019_v18, %v596_v20  ;;  %v938_v23 = vpop.f32.mrb[16].mxu0 }
 0x117   :  { %v1020_v24 = vpop.f32.mrb[16].mxu1  ;;  %v939_v25 = vpop.f32.mrb[17].mxu0 }
 0x118   :  { %802 = vst.msk [vmem:[%s1513_s3 + $0x30] sm:$0xff] %vm795_vm0, %v780_v21  ;;  %v781_v26 = vmax.f32 %v716_v22, 0.0  ;;  %v940_v27 = vadd.f32 %v939_v25, %v938_v23  ;;  %v1021_v28 = vpop.f32.mrb[17].mxu1  ;;  %v941_v29 = vpop.f32.mrb[18].mxu0 }
 0x119   :  { %v1022_v30 = vadd.f32 %v1021_v28, %v1020_v24  ;;  %v1023_v31 = vpop.f32.mrb[18].mxu1  ;;  %v942_v32 = vpop.f32.mrb[19].mxu0 }
 0x11a   :  { %803 = vst.msk [vmem:[%s1513_s3 + $0x38] sm:$0xff] %vm795_vm0, %v781_v26  ;;  %v601_v33 = vadd.f32 %v940_v27, %v1403_v16  ;;  %v943_v34 = vadd.f32 %v942_v32, %v941_v29  ;;  %v1024_v35 = vpop.f32.mrb[19].mxu1 }
 0x11b   :  { %v1025_v36 = vadd.f32 %v1024_v35, %v1023_v31 }
 0x11c   :  { %v721_v37 = vadd.f32 %v1022_v30, %v601_v33  ;;  %v604_v38 = vadd.f32 %v943_v34, %v1403_v16 }
 0x11e   :  { %v782_v39 = vmax.f32 %v721_v37, 0.0  ;;  %v724_v40 = vadd.f32 %v1025_v36, %v604_v38  ;;  %v944_v41 = vpop.f32.mrb[20].mxu0 }
 0x11f   :  { %v1026_v42 = vpop.f32.mrb[20].mxu1  ;;  %v945_v43 = vpop.f32.mrb[21].mxu0 }
 0x120   :  { %804 = vst.msk [vmem:[%s1513_s3 + $0x40] sm:$0xff] %vm795_vm0, %v782_v39  ;;  %v783_v44 = vmax.f32 %v724_v40, 0.0  ;;  %v946_v45 = vadd.f32 %v945_v43, %v944_v41  ;;  %v1027_v46 = vpop.f32.mrb[21].mxu1  ;;  %v947_v47 = vpop.f32.mrb[22].mxu0 }
 0x121   :  { %v1028_v48 = vadd.f32 %v1027_v46, %v1026_v42  ;;  %v1029_v49 = vpop.f32.mrb[22].mxu1  ;;  %v948_v50 = vpop.f32.mrb[23].mxu0 }
 0x122   :  { %805 = vst.msk [vmem:[%s1513_s3 + $0x48] sm:$0xff] %vm795_vm0, %v783_v44  ;;  %v609_v51 = vadd.f32 %v946_v45, %v1403_v16  ;;  %v949_v52 = vadd.f32 %v948_v50, %v947_v47  ;;  %v1030_v53 = vpop.f32.mrb[23].mxu1 }
 0x123   :  { %v1031_v54 = vadd.f32 %v1030_v53, %v1029_v49 }
 0x124   :  { %v729_v55 = vadd.f32 %v1028_v48, %v609_v51  ;;  %v612_v56 = vadd.f32 %v949_v52, %v1403_v16 }
 0x126   :  { %v784_v57 = vmax.f32 %v729_v55, 0.0  ;;  %v732_v58 = vadd.f32 %v1031_v54, %v612_v56  ;;  %v950_v59 = vpop.f32.mrb[24].mxu0 }
 0x127   :  { %v1032_v60 = vpop.f32.mrb[24].mxu1  ;;  %v951_v61 = vpop.f32.mrb[25].mxu0 }
 0x128   :  { %806 = vst.msk [vmem:[%s1513_s3 + $0x50] sm:$0xff] %vm795_vm0, %v784_v57  ;;  %v785_v62 = vmax.f32 %v732_v58, 0.0  ;;  %v952_v63 = vadd.f32 %v951_v61, %v950_v59  ;;  %v1033_v0 = vpop.f32.mrb[25].mxu1  ;;  %v953_v1 = vpop.f32.mrb[26].mxu0 }
 0x129   :  { %v1034_v2 = vadd.f32 %v1033_v0, %v1032_v60  ;;  %v1035_v3 = vpop.f32.mrb[26].mxu1  ;;  %v954_v4 = vpop.f32.mrb[27].mxu0 }
 0x12a   :  { %807 = vst.msk [vmem:[%s1513_s3 + $0x58] sm:$0xff] %vm795_vm0, %v785_v62  ;;  %v617_v5 = vadd.f32 %v952_v63, %v1403_v16  ;;  %v955_v6 = vadd.f32 %v954_v4, %v953_v1  ;;  %v1036_v7 = vpop.f32.mrb[27].mxu1 }
 0x12b   :  { %v1037_v8 = vadd.f32 %v1036_v7, %v1035_v3 }
 0x12c   :  { %v737_v9 = vadd.f32 %v1034_v2, %v617_v5  ;;  %v620_v10 = vadd.f32 %v955_v6, %v1403_v16 }
 0x12e   :  { %v786_v11 = vmax.f32 %v737_v9, 0.0  ;;  %v740_v12 = vadd.f32 %v1037_v8, %v620_v10  ;;  %v956_v13 = vpop.f32.mrb[28].mxu0 }
 0x12f   :  { %v1038_v14 = vpop.f32.mrb[28].mxu1  ;;  %v957_v15 = vpop.f32.mrb[29].mxu0 }
 0x130   :  { %808 = vst.msk [vmem:[%s1513_s3 + $0x60] sm:$0xff] %vm795_vm0, %v786_v11  ;;  %v787_v17 = vmax.f32 %v740_v12, 0.0  ;;  %v958_v18 = vadd.f32 %v957_v15, %v956_v13  ;;  %v1039_v19 = vpop.f32.mrb[29].mxu1  ;;  %v959_v20 = vpop.f32.mrb[30].mxu0 }
 0x131   :  { %v1040_v21 = vadd.f32 %v1039_v19, %v1038_v14  ;;  %v1041_v22 = vpop.f32.mrb[30].mxu1  ;;  %v960_v23 = vpop.f32.mrb[31].mxu0 }
 0x132   :  { %809 = vst.msk [vmem:[%s1513_s3 + $0x68] sm:$0xff] %vm795_vm0, %v787_v17  ;;  %v625_v24 = vadd.f32 %v958_v18, %v1403_v16  ;;  %v961_v25 = vadd.f32 %v960_v23, %v959_v20  ;;  %v1042_v26 = vpop.f32.mrb[31].mxu1 }
 0x133   :  { %v1043_v27 = vadd.f32 %v1042_v26, %v1041_v22 }
 0x134   :  { %v745_v28 = vadd.f32 %v1040_v21, %v625_v24  ;;  %v628_v29 = vadd.f32 %v961_v25, %v1403_v16 }
 0x136   :  { %v788_v30 = vmax.f32 %v745_v28, 0.0  ;;  %v748_v31 = vadd.f32 %v1043_v27, %v628_v29  ;;  %v962_v32 = vpop.f32.mrb[32].mxu0 }
 0x137   :  { %v1044_v33 = vpop.f32.mrb[32].mxu1  ;;  %v963_v34 = vpop.f32.mrb[33].mxu0 }
 0x138   :  { %810 = vst.msk [vmem:[%s1513_s3 + $0x70] sm:$0xff] %vm795_vm0, %v788_v30  ;;  %v789_v35 = vmax.f32 %v748_v31, 0.0  ;;  %v964_v36 = vadd.f32 %v963_v34, %v962_v32  ;;  %v1045_v37 = vpop.f32.mrb[33].mxu1  ;;  %v965_v38 = vpop.f32.mrb[34].mxu0 }
 0x139   :  { %v1046_v39 = vadd.f32 %v1045_v37, %v1044_v33  ;;  %v1047_v40 = vpop.f32.mrb[34].mxu1  ;;  %v966_v41 = vpop.f32.mrb[35].mxu0 }
 0x13a   :  { %811 = vst.msk [vmem:[%s1513_s3 + $0x78] sm:$0xff] %vm795_vm0, %v789_v35  ;;  %v633_v42 = vadd.f32 %v964_v36, %v1403_v16  ;;  %v967_v43 = vadd.f32 %v966_v41, %v965_v38  ;;  %v1048_v44 = vpop.f32.mrb[35].mxu1 }
 0x13b   :  { %v1049_v45 = vadd.f32 %v1048_v44, %v1047_v40 }
 0x13c   :  { %v753_v46 = vadd.f32 %v1046_v39, %v633_v42  ;;  %v636_v47 = vadd.f32 %v967_v43, %v1403_v16 }
 0x13e   :  { %v790_v48 = vmax.f32 %v753_v46, 0.0  ;;  %v756_v49 = vadd.f32 %v1049_v45, %v636_v47  ;;  %v968_v50 = vpop.f32.mrb[36].mxu0 }
 0x13f   :  { %v1050_v51 = vpop.f32.mrb[36].mxu1  ;;  %v969_v52 = vpop.f32.mrb[37].mxu0 }
 0x140   :  { %812 = vst.msk [vmem:[%s1513_s3 + $0x80] sm:$0xff] %vm795_vm0, %v790_v48  ;;  %v791_v53 = vmax.f32 %v756_v49, 0.0  ;;  %v970_v54 = vadd.f32 %v969_v52, %v968_v50  ;;  %v1051_v55 = vpop.f32.mrb[37].mxu1  ;;  %v971_v56 = vpop.f32.mrb[38].mxu0 }
 0x141   :  { %v1052_v57 = vadd.f32 %v1051_v55, %v1050_v51  ;;  %v1053_v58 = vpop.f32.mrb[38].mxu1  ;;  %v972_v59 = vpop.f32.mrb[39].mxu0 }
 0x142   :  { %813 = vst.msk [vmem:[%s1513_s3 + $0x88] sm:$0xff] %vm795_vm0, %v791_v53  ;;  %v641_v60 = vadd.f32 %v970_v54, %v1403_v16  ;;  %v973_v61 = vadd.f32 %v972_v59, %v971_v56  ;;  %v1054_v62 = vpop.f32.mrb[39].mxu1 }
 0x143   :  { %v1055_v63 = vadd.f32 %v1054_v62, %v1053_v58 }
 0x144   :  { %v761_v0 = vadd.f32 %v1052_v57, %v641_v60  ;;  %v644_v1 = vadd.f32 %v973_v61, %v1403_v16 }
 0x146   :  { %v792_v2 = vmax.f32 %v761_v0, 0.0  ;;  %v764_v3 = vadd.f32 %v1055_v63, %v644_v1  ;;  %v974_v4 = vpop.f32.mrb[40].mxu0 }
 0x147   :  { %v1056_v5 = vpop.f32.mrb[40].mxu1  ;;  %v975_v6 = vpop.f32.mrb[41].mxu0 }
 0x148   :  { %814 = vst.msk [vmem:[%s1513_s3 + $0x90] sm:$0xff] %vm795_vm0, %v792_v2  ;;  %v793_v7 = vmax.f32 %v764_v3, 0.0  ;;  %v976_v8 = vadd.f32 %v975_v6, %v974_v4  ;;  %v1057_v9 = vpop.f32.mrb[41].mxu1  ;;  %v977_v10 = vpop.f32.mrb[42].mxu0 }
 0x149   :  { %v1058_v11 = vadd.f32 %v1057_v9, %v1056_v5  ;;  %v1059_v12 = vpop.f32.mrb[42].mxu1  ;;  %v978_v13 = vpop.f32.mrb[43].mxu0 }
 0x14a   :  { %815 = vst.msk [vmem:[%s1513_s3 + $0x98] sm:$0xff] %vm795_vm0, %v793_v7  ;;  %v649_v14 = vadd.f32 %v976_v8, %v1403_v16  ;;  %v1060_v15 = vpop.f32.mrb[43].mxu1 }
 0x14c   :  { %v769_v17 = vadd.f32 %v1058_v11, %v649_v14 }
 0x14e   :  { %v794_v18 = vmax.f32 %v769_v17, 0.0 }
 0x150   :  { %816 = vst.msk [vmem:[%s1513_s3 + $0xa0] sm:$0xff] %vm795_vm0, %v794_v18 }

// kernel: forward_impl.5
= control target key start
LH: loop header
LB: loop body
LE: loop exit
PB: predicated region body
PF: predicated region fallthrough
CT: control target
= control target key end

     0   :  { %s10811_s0 = inlined_call_operand.vmem [shape: bf16[98,576], index: 0, kind: input, shape index: {}]   ;;  %s10812_s1 = inlined_call_operand.vmem [shape: f32[2,8], index: 1, kind: input, shape index: {}]   ;;  %s10813_s2 = inlined_call_operand.vmem [shape: f32[98,32], index: 2, kind: input, shape index: {}]   ;;  %s10814_s3 = inlined_call_operand.vmem [shape: f32[98,32], index: 3, kind: input, shape index: {}]   ;;  %s10815_s4 = inlined_call_operand.vmem [shape: f32[98,9], index: 4, kind: input, shape index: {}]   ;;  %s10816_s5 = inlined_call_operand.vmem [shape: bf16[576,64], index: 5, kind: input, shape index: {}]   ;;  %s10817_s6 = inlined_call_operand.vmem [shape: f32[1,64], index: 6, kind: input, shape index: {}]   ;;  %s10818_s7 = inlined_call_operand.vmem [shape: bf16[1152,128], index: 7, kind: input, shape index: {}]   ;;  %s10819_s8 = inlined_call_operand.vmem [shape: f32[1,128], index: 8, kind: input, shape index: {}]   ;;  %s10820_s9 = inlined_call_operand.vmem [shape: bf16[1568,256], index: 9, kind: input, shape index: {}]   ;;  %s10821_s10 = inlined_call_operand.vmem [shape: f32[1,256], index: 10, kind: input, shape index: {}]   ;;  %s10822_s11 = inlined_call_operand.vmem [shape: bf16[256,8], index: 11, kind: input, shape index: {}]   ;;  %s10823_s12 = inlined_call_operand.vmem [shape: f32[1,8], index: 12, kind: input, shape index: {}]   ;;  %s10824_s13 = inlined_call_operand.hbm [shape: f32[2,6], index: 13, kind: output, shape index: {0}]   ;;  %s10825_s14 = inlined_call_operand.vmem [shape: f32[2,1], index: 14, kind: output, shape index: {1}]   ;;  %s10826_s15 = inlined_call_operand.vmem [shape: f32[98,32], index: 15, kind: output, shape index: {2}]   ;;  %s10827_s16 = inlined_call_operand.vmem [shape: f32[98,32], index: 16, kind: output, shape index: {3}]  }
   0x1   :  { %10855 = sst [smem:[#allocation53_spill]] %s10811_s0 }
   0x2   :  { %v7549_v0 = vld [vmem:[%s10815_s4 + $0x10] sm:$0xff]  ;;  %v10832_v1 = vlaneseq  ;;  %v7444_v2 = vmov 1   ;;  %v6834_v3 = vld [vmem:[%s10816_s5 + $0x40] sm:$0xff]   ;;  %v7562_v5 = vld [vmem:[%s10815_s4 + $0x8] sm:$0xff]  ;;  %v10831_v7 = vmov 0   ;;  %v10833_v15 = vmov 0.0  }
   0x3   :  { %6673 = vset.pattern.permute.xlu1 %v7444_v2  ;;  %v6835_v4 = vld [vmem:[%s10816_s5] sm:$0xff]   ;;  %6674 = vset.pattern.permute.xlu0 %v10831_v7  ;;  %v6836_v8 = vld [vmem:[%s10816_s5 + $0x48] sm:$0xff]   ;;  %v6838_v12 = vld [vmem:[%s10816_s5 + $0x50] sm:$0xff]   ;;  %vm7447_vm0 = vmmov 0   ;;  %s7448_s27 = smov 64   ;;  %s7449_s19 = smov 72  }
   0x4   :  { %1240 = vperm.xlu1 %6673, %v7549_v0   ;;  %v7565_v6 = vshrl.u32 %v10832_v1, 7  ;;  %6156 = vmatprep.subr.bf16.mxu1 %v6834_v3  ;;  %v6837_v9 = vld [vmem:[%s10816_s5 + $0x8] sm:$0xff]   ;;  %v7577_v10 = vld [vmem:[%s10812_s1] sm:$0x3]  ;;  %v6839_v14 = vld [vmem:[%s10816_s5 + $0x10] sm:$0xff]   ;;  %s10857_s30 = sld [smem:[#allocation53_spill]] }
   0x5   :  { %6157 = vmatpush3.bf16.msra.mxu1 %v6835_v4  ;;  %6552 = vmatprep.subr.bf16.mxu0 %v10833_v15  ;;  %v6840_v16 = vld [vmem:[%s10816_s5 + $0x58] sm:$0xff]   ;;  %v886_v17 = vld [vmem:[%s10813_s2] sm:$0xff]  ;;  %v6844_v23 = vld [vmem:[%s10816_s5 + $0x68] sm:$0xff]   ;;  %vm861_vm1 = vcmask 1040384   ;;  %vm551_vm2 = vcmask 523264  }
   0x6   :  { %10856 = vst [vmem:[#allocation5_spill] sm:$0xff] %v7565_v6  ;;  %v10830_v11 = vsub.s32 0, %v7565_v6  ;;  %6158 = vmatprep.subr.bf16.mxu1 %v6836_v8  ;;  %6560 = vmatprep.mubr.msk.bf16.mxu0 %vm7447_vm0, %v10833_v15  ;;  %v7607_v18 = vld [vmem:[%s10815_s4] sm:$0xff]  ;;  %v6841_v19 = vld [vmem:[%s10816_s5 + $0x18] sm:$0xff]   ;;  %v6845_v24 = vld [vmem:[%s10816_s5 + $0x28] sm:$0xff]   ;;  %v10829_v48 = vsub.s32 1, %v7565_v6 }
   0x7   :  { %v6842_v20 = vld [vmem:[%s10816_s5 + $0x60] sm:$0xff]   ;;  %1157 = vperm.xlu0 %6674, %v7607_v18   ;;  %v7621_v21 = vld [vmem:[%s10815_s4 + $0x18] sm:$0xff]  ;;  %v6846_v26 = vld [vmem:[%s10816_s5 + $0x70] sm:$0xff]  }
   0x8   :  { %6676 = vset.pattern.permute.xlu1 %v10831_v7  ;;  %v7588_v13 = vrot.slane %v7577_v10, %v10830_v11  ;;  %v6843_v22 = vld [vmem:[%s10816_s5 + $0x20] sm:$0xff]   ;;  %v887_v27 = vld [vmem:[%s10813_s2 + $0x8] sm:$0xff]  ;;  %v6847_v28 = vld [vmem:[%s10816_s5 + $0x30] sm:$0xff]   ;;  %v858_v55 = vrot.slane %v7577_v10, %v10829_v48 }
   0x9   :  { %1162 = vperm.xlu1 %6676, %v7562_v5   ;;  %6159 = vmatpush3.bf16.msra.mxu1 %v6837_v9  ;;  %v6848_v29 = vld [vmem:[%s10816_s5 + $0x78] sm:$0xff]   ;;  %v7660_v31 = vld [vmem:[%s10815_s4 + $0x20] sm:$0xff]  ;;  %v7676_v35 = vld [vmem:[%s10815_s4 + $0x30] sm:$0xff] }
   0xa   :  { %6160 = vmatprep.subr.bf16.mxu1 %v6838_v12  ;;  %v6852_v25 = vld [vmem:[%s10857_s30 + $0x4] ss:$20 sps:$4 sm:$0xff]   ;;  %v6850_v34 = vld [vmem:[%s10857_s30] ss:$20 sps:$4 sm:$0xff]   ;;  %v6857_v39 = vld [vmem:[%s10816_s5 + $0xc8] sm:$0xff]   ;;  %v862_v61 = vsel %vm861_vm1, %v7588_v13, %v858_v55 }
   0xb   :  { %6675 = vset.pattern.permute.xlu0 %v7444_v2  ;;  %605 = vmatprep.mubr.bf16.mxu1 %v6852_v25  ;;  %v889_v30 = vld [vmem:[%s10813_s2 + $0x18] sm:$0xff]  ;;  %v6853_v33 = vld [vmem:[%s10816_s5 + $0xc0] sm:$0xff]   ;;  %v888_v36 = vld [vmem:[%s10813_s2 + $0x10] sm:$0xff] }
   0xc   :  { %1234 = vperm.xlu0 %6675, %v7607_v18   ;;  %v6849_v32 = vld [vmem:[%s10816_s5 + $0x38] sm:$0xff]   ;;  %v6854_v37 = vld [vmem:[%s10816_s5 + $0x80] sm:$0xff]   ;;  %v6859_v40 = vld [vmem:[%s10816_s5 + $0x88] sm:$0xff]  }
   0xd   :  { %864 = vrot.lane.b32.xlu1 %v7588_v13, %s7448_s27  ;;  %6161 = vmatpush3.bf16.msra.mxu1 %v6839_v14  ;;  %v6855_v38 = vld [vmem:[%s10857_s30 + $0x2c] ss:$20 sps:$4 sm:$0xff]   ;;  %v6860_v42 = vld [vmem:[%s10816_s5 + $0xd0] sm:$0xff]   ;;  %v6858_v43 = vld [vmem:[%s10857_s30 + $0x28] ss:$20 sps:$4 sm:$0xff]  }
   0xe   :  { %6677 = vset.pattern.permute.xlu1 %v7444_v2  ;;  %6162 = vmatprep.subr.bf16.mxu1 %v6840_v16  ;;  %v7700_v41 = vld [vmem:[%s10815_s4 + $0x28] sm:$0xff]  ;;  %v6863_v46 = vld [vmem:[%s10816_s5 + $0x90] sm:$0xff]   ;;  %v6865_v47 = vld [vmem:[%s10816_s5 + $0xd8] sm:$0xff]  }
   0xf   :  { %v891_v44 = vld [vmem:[%s10813_s2 + $0x28] sm:$0xff]  ;;  %v890_v49 = vld [vmem:[%s10813_s2 + $0x20] sm:$0xff]  ;;  %v7736_v51 = vld [vmem:[%s10815_s4 + $0x38] sm:$0xff] }
  0x10   :  { %1237 = vperm.xlu0 %6675, %v7562_v5   ;;  %v6861_v45 = vld [vmem:[%s10857_s30 + $0x54] ss:$20 sps:$4 sm:$0xff]   ;;  %v7731_v50 = vld [vmem:[%s10815_s4 + $0x40] sm:$0xff]  ;;  %v6866_v52 = vld [vmem:[%s10816_s5 + $0x98] sm:$0xff]  }
  0x11   :  { %1086 = vrot.lane.b32.xlu1 %v886_v17, %s7449_s19  ;;  %6163 = vmatpush3.bf16.msra.mxu1 %v6841_v19  ;;  %v6864_v53 = vld [vmem:[%s10857_s30 + $0x50] ss:$20 sps:$4 sm:$0xff]   ;;  %v893_v56 = vld [vmem:[%s10813_s2 + $0x38] sm:$0xff]  ;;  %v6875_v60 = vld [vmem:[%s10816_s5 + $0xe8] sm:$0xff]  }
  0x12   :  { %6164 = vmatprep.subr.bf16.mxu1 %v6842_v20  ;;  %v6870_v54 = vld [vmem:[%s10816_s5 + $0xe0] sm:$0xff]   ;;  %v6867_v58 = vld [vmem:[%s10857_s30 + $0x7c] ss:$20 sps:$4 sm:$0xff]   ;;  %v6885_v63 = vld [vmem:[%s10816_s5 + $0x108] sm:$0xff]  }
  0x13   :  { %v6882_v57 = vld [vmem:[%s10816_s5 + $0x100] sm:$0xff]   ;;  %v7775_v62 = vld [vmem:[%s10815_s4 + $0x50] sm:$0xff]  ;;  %v6876_v3 = vld [vmem:[%s10816_s5 + $0xa8] sm:$0xff]  }
  0x14   :  { %1088 = vrot.lane.b32.xlu0 %v887_v27, %s7449_s19  ;;  %v6871_v59 = vld [vmem:[%s10816_s5 + $0xa0] sm:$0xff]   ;;  %6553 = vmatpush3.bf16.msra.mxu0 %v6882_v57  ;;  %v6880_v4 = vld [vmem:[%s10816_s5 + $0xf0] sm:$0xff]   ;;  %v6869_v8 = vld [vmem:[%s10857_s30 + $0x78] ss:$20 sps:$4 sm:$0xff]  }
  0x15   :  { %1243 = vperm.xlu1 %6677, %v7621_v21   ;;  %6165 = vmatpush3.bf16.msra.mxu1 %v6843_v22  ;;  %v894_v9 = vld [vmem:[%s10813_s2 + $0x40] sm:$0xff]  ;;  %v6888_v10 = vld [vmem:[%s10816_s5 + $0x110] sm:$0xff]   ;;  %v6886_v14 = vld [vmem:[%s10816_s5 + $0xf8] sm:$0xff]  }
  0x16   :  { %6166 = vmatprep.subr.bf16.mxu1 %v6844_v23  ;;  %6554 = vmatprep.subr.bf16.mxu0 %v10833_v15  ;;  %v6872_v12 = vld [vmem:[%s10857_s30 + $0xa4] ss:$20 sps:$4 sm:$0xff]   ;;  %v6881_v13 = vld [vmem:[%s10816_s5 + $0xb0] sm:$0xff]   ;;  %v6877_v23 = vld [vmem:[%s10857_s30 + $0xcc] ss:$20 sps:$4 sm:$0xff]  }
  0x17   :  { %v7814_v16 = vld [vmem:[%s10815_s4 + $0x58] sm:$0xff]  ;;  %v892_v20 = vld [vmem:[%s10813_s2 + $0x30] sm:$0xff]  ;;  %v7842_v25 = vld [vmem:[%s10815_s4 + $0x48] sm:$0xff] }
  0x18   :  { %1246 = vperm.xlu0 %6675, %v7660_v31   ;;  %6555 = vmatpush3.bf16.msra.mxu0 %v6885_v63  ;;  %v6892_v17 = vld [vmem:[%s10816_s5 + $0x118] sm:$0xff]   ;;  %v6874_v22 = vld [vmem:[%s10857_s30 + $0xa0] ss:$20 sps:$4 sm:$0xff]   ;;  %v6912_v57 = vld [vmem:[%s10857_s30 + $0xd0] ss:$20 sps:$4 sm:$0xff]  }
  0x19   :  { %6678 = vset.pattern.permute.xlu1 %v10831_v7  ;;  %6167 = vmatpush3.bf16.msra.mxu1 %v6845_v24  ;;  %v6887_v19 = vld [vmem:[%s10816_s5 + $0xb8] sm:$0xff]   ;;  %v6893_v24 = vld [vmem:[%s10857_s30 + $0x10] ss:$20 sps:$4 sm:$0xff]  }
  0x1a   :  { %1167 = vperm.xlu1 %6678, %v7549_v0   ;;  %6168 = vmatprep.subr.bf16.mxu1 %v6846_v26  ;;  %v86_v26 = vld [vmem:[%s10857_s30 + $0xf0] sm:$0x11]  ;;  %v6879_v27 = vld [vmem:[%s10857_s30 + $0xc8] ss:$20 sps:$4 sm:$0xff]  }
  0x1b   :  { %6556 = vmatprep.subr.bf16.mxu0 %v10833_v15 }
  0x1c   :  { %1090 = vrot.lane.b32.xlu0 %v888_v36, %s7449_s19  ;;  %6557 = vmatpush3.bf16.msra.mxu0 %v6888_v10  ;;  %v6901_v36 = vld [vmem:[%s10857_s30 + $0x60] ss:$20 sps:$4 sm:$0xff]  }
  0x1d   :  { %6169 = vmatpush3.bf16.msra.mxu1 %v6847_v28  ;;  %6558 = vmatprep.subr.bf16.mxu0 %v10833_v15  ;;  %v6897_v28 = vld [vmem:[%s10857_s30 + $0x38] ss:$20 sps:$4 sm:$0xff]  }
  0x1e   :  { %1172 = vperm.xlu1 %6678, %v7621_v21   ;;  %6170 = vmatprep.subr.bf16.mxu1 %v6848_v29  ;;  %v5809_v29 = vcombine.high %v86_v26, %v86_v26 }
  0x20   :  { %1249 = vperm.xlu0 %6675, %v7700_v41   ;;  %6559 = vmatpush3.bf16.msra.mxu0 %v6892_v17  ;;  %v6922_v17 = vld [vmem:[%s10818_s7 + $0x10] sm:$0xff]  }
  0x21   :  { %6171 = vmatpush3.bf16.msra.mxu1 %v6849_v32  ;;  %v895_v32 = vld [vmem:[%s10813_s2 + $0x48] sm:$0xff] }
  0x22   :  { %1092 = vrot.lane.b32.xlu1 %v889_v30, %s7449_s19  ;;  %6214 = vmatprep.subr.bf16.mxu1 %v6853_v33  ;;  %v897_v30 = vld [vmem:[%s10813_s2 + $0x58] sm:$0xff]  ;;  %v6891_v33 = vld [vmem:[%s10857_s30 + $0xc] ss:$20 sps:$4 sm:$0xff]  }
  0x23   :  { %6679 = vset.pattern.permute.xlu1 %v7444_v2  ;;  %6561 = vmatmul.mubr.msk.bf16.vlgmr.msra.gmra.mrb[0].mxu0 %vm551_vm2, %v6893_v24 }
  0x24   :  { %606 = vmatmul.mubr.bf16.vlgmr.msra.gmra.mrb[0].mxu1 %v6850_v34  ;;  %1096 = vrot.lane.b32.xlu0 %v891_v44, %s7449_s19  ;;  %v5808_v34 = vcombine.low %v86_v26, %v86_v26  ;;  %v6896_v44 = vld [vmem:[%s10857_s30 + $0x30] ss:$20 sps:$4 sm:$0xff]   ;;  %v6923_v26 = vld [vmem:[%s10818_s7 + $0x58] sm:$0xff]  }
  0x25   :  { %6215 = vmatpush3.bf16.msra.mxu1 %v6854_v37  ;;  %613 = vmatprep.mubr.bf16.mxu1 %v6855_v38  ;;  %v7450_v37 = vmov 3   ;;  %v7884_v38 = vld [vmem:[%s10815_s4 + $0x60] sm:$0x3] }
  0x26   :  { %1252 = vperm.xlu1 %6679, %v7676_v35   ;;  %6216 = vmatprep.subr.bf16.mxu1 %v6857_v39  ;;  %v6889_v39 = vld [vmem:[%s10857_s30 + $0x8] ss:$20 sps:$4 sm:$0xff]  }
  0x27   :  { %6564 = vmatprep.mubr.msk.bf16.mxu0 %vm7447_vm0, %v10833_v15 }
  0x28   :  { %1258 = vperm.xlu0 %6675, %v7731_v50  }
  0x29   :  { %6217 = vmatpush3.bf16.msra.mxu1 %v6859_v40  ;;  %v6894_v40 = vld [vmem:[%s10857_s30 + $0x34] ss:$20 sps:$4 sm:$0xff]  }
  0x2a   :  { %6680 = vset.pattern.permute.xlu1 %v10831_v7  ;;  %6218 = vmatprep.subr.bf16.mxu1 %v6860_v42  ;;  %v7451_v42 = vmov 2  }
  0x2b   :  { %1182 = vperm.xlu1 %6680, %v7700_v41   ;;  %6565 = vmatmul.mubr.msk.bf16.gmra.mrb[4].mxu0 %vm551_vm2, %v6897_v28  ;;  %v8081_v28 = vld [vmem:[%s10815_s4 + $0x50] sm:$0xff] }
  0x2c   :  { %614 = vmatmul.mubr.bf16.gmra.mrb[4].mxu1 %v6858_v43  ;;  %1100 = vrot.lane.b32.xlu0 %v893_v56, %s7449_s19  ;;  %v896_v43 = vld [vmem:[%s10813_s2 + $0x50] sm:$0xff]  ;;  %v87_v56 = vld [vmem:[%s10857_s30 + $0xf8] sm:$0x11] }
  0x2d   :  { %621 = vmatprep.mubr.bf16.mxu1 %v6861_v45  ;;  %6219 = vmatpush3.bf16.msra.mxu1 %v6863_v46  ;;  %v6909_v45 = vld [vmem:[%s10857_s30 + $0xb0] ss:$20 sps:$4 sm:$0xff]   ;;  %v6900_v46 = vld [vmem:[%s10857_s30 + $0x58] ss:$20 sps:$4 sm:$0xff]   ;;  %v5810_v63 = vcombine.low %v87_v56, %v87_v56 }
  0x2e   :  { %6220 = vmatprep.subr.bf16.mxu1 %v6865_v47  ;;  %6568 = vmatprep.mubr.msk.bf16.mxu0 %vm7447_vm0, %v10833_v15  ;;  %v6902_v47 = vld [vmem:[%s10857_s30 + $0x84] ss:$20 sps:$4 sm:$0xff]  }
  0x2f   :  { %1094 = vrot.lane.b32.xlu1 %v890_v49, %s7449_s19  ;;  %v6913_v49 = vld [vmem:[%s10857_s30 + $0xd8] ss:$20 sps:$4 sm:$0xff]  }
  0x30   :  { %6681 = vset.pattern.permute.xlu1 %v7444_v2  ;;  %1264 = vperm.xlu0 %6675, %v7775_v62  }
  0x31   :  { %6221 = vmatpush3.bf16.msra.mxu1 %v6866_v52  ;;  %v6904_v52 = vld [vmem:[%s10857_s30 + $0x80] ss:$20 sps:$4 sm:$0xff]  }
  0x32   :  { %6222 = vmatprep.subr.bf16.mxu1 %v6870_v54  ;;  %v7963_v54 = vld [vmem:[%s10815_s4 + $0x10] sm:$0xff] }
  0x33   :  { %1255 = vperm.xlu1 %6681, %v7736_v51   ;;  %6569 = vmatmul.mubr.msk.bf16.gmra.mrb[8].mxu0 %vm551_vm2, %v6901_v36  ;;  %v8108_v36 = vld [vmem:[%s10815_s4 + $0x58] sm:$0xff] }
  0x34   :  { %622 = vmatmul.mubr.bf16.gmra.mrb[8].mxu1 %v6864_v53  ;;  %1102 = vrot.lane.b32.xlu0 %v894_v9, %s7449_s19  ;;  %v6906_v53 = vld [vmem:[%s10857_s30 + $0xac] ss:$20 sps:$4 sm:$0xff]   ;;  %v10839_v9 = vmov 7  }
  0x35   :  { %629 = vmatprep.mubr.bf16.mxu1 %v6867_v58  ;;  %6223 = vmatpush3.bf16.msra.mxu1 %v6871_v59  ;;  %v10841_v58 = vmov 4   ;;  %v5811_v59 = vcombine.high %v87_v56, %v87_v56 }
  0x36   :  { %6224 = vmatprep.subr.bf16.mxu1 %v6875_v60  ;;  %6572 = vmatprep.mubr.msk.bf16.mxu0 %vm7447_vm0, %v10833_v15 }
  0x37   :  { %866 = vrot.lane.b32.xlu1 %v862_v61, %s7448_s27  ;;  %v7453_v61 = vmov 5  }
  0x38   :  { %6682 = vset.pattern.permute.xlu1 %v10831_v7  ;;  %1267 = vperm.xlu0 %6675, %v7814_v16  }
  0x39   :  { %6225 = vmatpush3.bf16.msra.mxu1 %v6876_v3 }
  0x3a   :  { %6226 = vmatprep.subr.bf16.mxu1 %v6880_v4  ;;  %v6917_v4 = vld [vmem:[%s10818_s7 + $0x40] sm:$0xff]  }
  0x3b   :  { %868 = vrot.lane.b32.xlu1 %v858_v55, %s7448_s27  ;;  %v6908_v55 = vld [vmem:[%s10857_s30 + $0xa8] ss:$20 sps:$4 sm:$0xff]  }
  0x3c   :  { %630 = vmatmul.mubr.bf16.gmra.mrb[12].mxu1 %v6869_v8  ;;  %6685 = vset.pattern.permute.xlu0 %v10831_v7 }
  0x3d   :  { %637 = vmatprep.mubr.bf16.mxu1 %v6872_v12  ;;  %6227 = vmatpush3.bf16.msra.mxu1 %v6881_v13  ;;  %v6919_v12 = vld [vmem:[%s10818_s7 + $0x48] sm:$0xff]  }
  0x3e   :  { %6228 = vmatprep.subr.bf16.mxu1 %v6886_v14  ;;  %1177 = vperm.xlu0 %6685, %v7660_v31   ;;  %v6920_v13 = vld [vmem:[%s10818_s7 + $0x8] sm:$0xff]  }
  0x3f   :  { %1192 = vperm.xlu1 %6682, %v7736_v51   ;;  %v8042_v14 = vld [vmem:[%s10815_s4 + $0x28] sm:$0xff] }
  0x41   :  { %6229 = vmatpush3.bf16.msra.mxu1 %v6887_v19 }
  0x42   :  { %1187 = vperm.xlu0 %6685, %v7676_v35   ;;  %6283 = vmatprep.subr.bf16.mxu1 %v6917_v4 }
  0x43   :  { %1098 = vrot.lane.b32.xlu1 %v892_v20, %s7449_s19  ;;  %v8059_v20 = vld [vmem:[%s10815_s4 + $0x30] sm:$0xff] }
  0x44   :  { %6683 = vset.pattern.permute.xlu1 %v7444_v2  ;;  %638 = vmatmul.mubr.bf16.gmra.mrb[16].mxu1 %v6874_v22 }
  0x45   :  { %645 = vmatprep.mubr.bf16.mxu1 %v6877_v23 }
  0x46   :  { %1207 = vperm.xlu0 %6685, %v7775_v62  }
  0x47   :  { %1261 = vperm.xlu1 %6683, %v7842_v25  }
  0x4a   :  { %1108 = vrot.lane.b32.xlu0 %v897_v30, %s7449_s19  ;;  %v6926_v30 = vld [vmem:[%s10818_s7 + $0x20] sm:$0xff]  }
  0x4b   :  { %6684 = vset.pattern.permute.xlu1 %v10831_v7  ;;  %6688 = vset.pattern.permute.xlu0 %v7450_v37 }
  0x4c   :  { %1197 = vperm.xlu1 %6684, %v7731_v50   ;;  %646 = vmatmul.mubr.bf16.gmra.mrb[20].mxu1 %v6879_v27  ;;  %v6924_v27 = vld [vmem:[%s10818_s7 + $0x18] sm:$0xff]  }
  0x4d   :  { %653 = vmatprep.mubr.bf16.mxu1 %v5809_v29 }
  0x4e   :  { %1414 = vperm.xlu0 %6688, %v7607_v18  }
  0x50   :  { %1202 = vperm.xlu1 %6684, %v7842_v25  }
  0x52   :  { %6690 = vset.pattern.permute.xlu0 %v7451_v42 }
  0x53   :  { %1324 = vperm.xlu0 %6690, %v7607_v18   ;;  %v6898_v18 = vld [vmem:[%s10857_s30 + $0x5c] ss:$20 sps:$4 sm:$0xff]  }
  0x54   :  { %1104 = vrot.lane.b32.xlu1 %v895_v32, %s7449_s19  ;;  %654 = vmatmul.mubr.bf16.gmra.mrb[24].mxu1 %v5808_v34 }
  0x55   :  { %6686 = vset.pattern.permute.xlu1 %v7444_v2  ;;  %693 = vmatprep.mubr.bf16.mxu1 %v6891_v33  ;;  %v6905_v2 = vld [vmem:[%s10857_s30 + $0x88] ss:$20 sps:$4 sm:$0xff]   ;;  %v898_v33 = vld [vmem:[%s10813_s2 + $0x60] sm:$0x3] }
  0x56   :  { %6573 = vmatmul.mubr.msk.bf16.gmra.mrb[12].mxu0 %vm551_vm2, %v6905_v2 }
  0x57   :  { %1336 = vperm.xlu0 %6690, %v7660_v31   ;;  %6576 = vmatprep.mubr.msk.bf16.mxu0 %vm7447_vm0, %v10833_v15 }
  0x58   :  { %1270 = vperm.xlu1 %6686, %v7884_v38  }
  0x5b   :  { %1339 = vperm.xlu0 %6690, %v7700_v41  }
  0x5c   :  { %6687 = vset.pattern.permute.xlu1 %v10831_v7  ;;  %694 = vmatmul.mubr.bf16.vlgmr.msra.gmra.mrb[28].mxu1 %v6889_v39  ;;  %v6927_v39 = vld [vmem:[%s10818_s7 + $0x68] sm:$0xff]  }
  0x5d   :  { %1212 = vperm.xlu1 %6687, %v7814_v16   ;;  %701 = vmatprep.mubr.bf16.mxu1 %v6894_v40  ;;  %v8123_v40 = vld [vmem:[%s10815_s4 + $0x18] sm:$0xff] }
  0x5e   :  { %6577 = vmatmul.mubr.msk.bf16.gmra.mrb[16].mxu0 %vm551_vm2, %v6909_v45  ;;  %v6929_v45 = vld [vmem:[%s10818_s7 + $0x70] sm:$0xff]  }
  0x5f   :  { %6695 = vset.pattern.permute.xlu0 %v7450_v37  ;;  %6580 = vmatprep.mubr.msk.bf16.mxu0 %vm7447_vm0, %v10833_v15 }
  0x60   :  { %1423 = vperm.xlu0 %6695, %v7621_v21  }
  0x61   :  { %1106 = vrot.lane.b32.xlu1 %v896_v43, %s7449_s19 }
  0x64   :  { %702 = vmatmul.mubr.bf16.gmra.mrb[32].mxu1 %v6896_v44  ;;  %1435 = vperm.xlu0 %6695, %v7736_v51   ;;  %v6928_v44 = vld [vmem:[%s10818_s7 + $0x28] sm:$0xff]  }
  0x65   :  { %1217 = vperm.xlu1 %6687, %v7884_v38   ;;  %709 = vmatprep.mubr.bf16.mxu1 %v6898_v18 }
  0x66   :  { %6581 = vmatmul.mubr.msk.bf16.gmra.mrb[20].mxu0 %vm551_vm2, %v6913_v49  ;;  %v6930_v49 = vld [vmem:[%s10818_s7 + $0x30] sm:$0xff]  }
  0x67   :  { %6584 = vmatprep.mubr.msk.bf16.mxu0 %vm7447_vm0, %v10833_v15 }
  0x68   :  { %1447 = vperm.xlu0 %6695, %v7814_v16  }
  0x69   :  { %6689 = vset.pattern.permute.xlu1 %v7450_v37 }
  0x6a   :  { %1417 = vperm.xlu1 %6689, %v7562_v5  }
  0x6c   :  { %710 = vmatmul.mubr.bf16.gmra.mrb[36].mxu1 %v6900_v46  ;;  %6701 = vset.pattern.permute.xlu0 %v7451_v42  ;;  %v10835_v46 = vmov 8  }
  0x6d   :  { %717 = vmatprep.mubr.bf16.mxu1 %v6902_v47  ;;  %1348 = vperm.xlu0 %6701, %v7731_v50  }
  0x6e   :  { %1420 = vperm.xlu1 %6689, %v7549_v0   ;;  %v6916_v0 = vld [vmem:[%s10857_s30 + $0x100] ss:$0 sps:$4 sm:$0x11]  }
  0x6f   :  { %6585 = vmatmul.mubr.msk.bf16.gmra.mrb[24].mxu0 %vm551_vm2, %v6916_v0 }
  0x71   :  { %1351 = vperm.xlu0 %6701, %v7842_v25  }
  0x72   :  { %6691 = vset.pattern.permute.xlu1 %v7451_v42 }
  0x73   :  { %1327 = vperm.xlu1 %6691, %v7562_v5   ;;  %v6910_v5 = vld [vmem:[%s10857_s30 + $0xd4] ss:$20 sps:$4 sm:$0xff]  }
  0x74   :  { %718 = vmatmul.mubr.bf16.gmra.mrb[40].mxu1 %v6904_v52  ;;  %v6931_v52 = vld [vmem:[%s10818_s7 + $0x78] sm:$0xff]  }
  0x75   :  { %725 = vmatprep.mubr.bf16.mxu1 %v6906_v53  ;;  %1360 = vperm.xlu0 %6701, %v7884_v38  }
  0x77   :  { %1330 = vperm.xlu1 %6691, %v7963_v54  }
  0x79   :  { %6706 = vset.pattern.permute.xlu0 %v10841_v58 }
  0x7b   :  { %6692 = vset.pattern.permute.xlu1 %v7450_v37 }
  0x7c   :  { %1426 = vperm.xlu1 %6692, %v7660_v31   ;;  %726 = vmatmul.mubr.bf16.gmra.mrb[44].mxu1 %v6908_v55  ;;  %v7989_v31 = vld [vmem:[%s10815_s4 + $0x8] sm:$0xff]  ;;  %v6932_v55 = vld [vmem:[%s10818_s7 + $0x38] sm:$0xff]  }
  0x7d   :  { %733 = vmatprep.mubr.bf16.mxu1 %v6910_v5  ;;  %1511 = vperm.xlu0 %6706, %v7989_v31  }
  0x80   :  { %6693 = vset.pattern.permute.xlu1 %v7451_v42 }
  0x81   :  { %1333 = vperm.xlu1 %6693, %v7621_v21   ;;  %6707 = vset.pattern.permute.xlu0 %v7453_v61 }
  0x82   :  { %1575 = vperm.xlu0 %6707, %v7989_v31  }
  0x83   :  { %v7992_v60 = vpop.permute.xlu1 %1240 }
  0x84   :  { %734 = vmatmul.mubr.bf16.gmra.mrb[48].mxu1 %v6912_v57 }
  0x85   :  { %6694 = vset.pattern.permute.xlu1 %v7450_v37  ;;  %741 = vmatprep.mubr.bf16.mxu1 %v5811_v59 }
  0x86   :  { %1429 = vperm.xlu1 %6694, %v7700_v41   ;;  %1587 = vperm.xlu0 %6707, %v7700_v41   ;;  %v6918_v41 = vld [vmem:[%s10818_s7] sm:$0xff]   ;;  %v8054_v19 = vpop.permute.xlu0 %1157 }
  0x87   :  { %6284 = vmatpush3.bf16.msra.mxu1 %v6918_v41 }
  0x88   :  { %v7998_v21 = vpop.permute.xlu1 %1162  ;;  %6285 = vmatprep.subr.bf16.mxu1 %v6919_v12 }
  0x8a   :  { %1432 = vperm.xlu1 %6694, %v7676_v35   ;;  %1599 = vperm.xlu0 %6707, %v7842_v25  }
  0x8b   :  { %6286 = vmatpush3.bf16.msra.mxu1 %v6920_v13  ;;  %v8065_v23 = vpop.permute.xlu0 %1234 }
  0x8c   :  { %v8002_v3 = vpop.permute.xlu1 %864  ;;  %742 = vmatmul.mubr.bf16.gmra.mrb[52].mxu1 %v5810_v63 }
  0x8e   :  { %6696 = vset.pattern.permute.xlu1 %v7451_v42  ;;  %6718 = vset.pattern.permute.xlu0 %v10839_v9 }
  0x8f   :  { %1342 = vperm.xlu1 %6696, %v7676_v35   ;;  %v8021_v35 = vld [vmem:[%s10815_s4] sm:$0xff]  ;;  %v8086_v29 = vpop.permute.xlu0 %1237 }
  0x90   :  { %v8010_v8 = vpop.permute.xlu1 %1086  ;;  %1753 = vperm.xlu0 %6718, %v8021_v35  }
  0x93   :  { %6697 = vset.pattern.permute.xlu1 %v7450_v37  ;;  %v8103_v34 = vpop.permute.xlu0 %1088 }
  0x94   :  { %1438 = vperm.xlu1 %6697, %v7731_v50   ;;  %v8024_v10 = vpop.permute.xlu1 %1243  ;;  %6719 = vset.pattern.permute.xlu0 %v10841_v58 }
  0x95   :  { %1515 = vperm.xlu0 %6719, %v7963_v54  }
  0x98   :  { %6698 = vset.pattern.permute.xlu1 %v7451_v42 }
  0x99   :  { %1345 = vperm.xlu1 %6698, %v7736_v51   ;;  %v8036_v50 = vpop.permute.xlu1 %1167  ;;  %1527 = vperm.xlu0 %6719, %v8042_v14   ;;  %v6921_v51 = vld [vmem:[%s10818_s7 + $0x50] sm:$0xff]  }
  0x9a   :  { %6287 = vmatprep.subr.bf16.mxu1 %v6921_v51 }
  0x9b   :  { %6288 = vmatpush3.bf16.msra.mxu1 %v6922_v17 }
  0x9c   :  { %6289 = vmatprep.subr.bf16.mxu1 %v6923_v26 }
  0x9d   :  { %6699 = vset.pattern.permute.xlu1 %v7450_v37  ;;  %v8045_v16 = vpop.permute.xlu1 %1172  ;;  %1531 = vperm.xlu0 %6719, %v8059_v20  }
  0x9e   :  { %1441 = vperm.xlu1 %6699, %v7842_v25  }
  0x9f   :  { %6290 = vmatpush3.bf16.msra.mxu1 %v6924_v27 }
  0xa1   :  { %v8062_v22 = vpop.permute.xlu1 %1092  ;;  %1543 = vperm.xlu0 %6719, %v7842_v25  }
  0xa2   :  { %1444 = vperm.xlu1 %6699, %v7775_v62  }
  0xa5   :  { %v8068_v24 = vpop.permute.xlu1 %1252  ;;  %1547 = vperm.xlu0 %6719, %v8081_v28  }
  0xa6   :  { %6700 = vset.pattern.permute.xlu1 %v7451_v42 }
  0xa7   :  { %1354 = vperm.xlu1 %6700, %v7775_v62   ;;  %v6925_v62 = vld [vmem:[%s10818_s7 + $0x60] sm:$0xff]  }
  0xa8   :  { %6291 = vmatprep.subr.bf16.mxu1 %v6925_v62 }
  0xa9   :  { %1555 = vperm.xlu0 %6719, %v7884_v38   ;;  %6292 = vmatpush3.bf16.msra.mxu1 %v6926_v30 }
  0xaa   :  { %v8084_v25 = vpop.permute.xlu1 %1182  ;;  %6293 = vmatprep.subr.bf16.mxu1 %v6927_v39 }
  0xab   :  { %6702 = vset.pattern.permute.xlu1 %v7450_v37  ;;  %v10837_v37 = vmov 6  }
  0xac   :  { %1450 = vperm.xlu1 %6702, %v7884_v38  }
  0xad   :  { %6722 = vset.pattern.permute.xlu0 %v10837_v37  ;;  %6294 = vmatpush3.bf16.msra.mxu1 %v6928_v44 }
  0xae   :  { %v8097_v32 = vpop.permute.xlu1 %1094  ;;  %1662 = vperm.xlu0 %6722, %v8021_v35   ;;  %6295 = vmatprep.subr.bf16.mxu1 %v6929_v45 }
  0xb0   :  { %6703 = vset.pattern.permute.xlu1 %v7451_v42  ;;  %v8128_v42 = vpop.permute.xlu0 %1246 }
  0xb1   :  { %1357 = vperm.xlu1 %6703, %v8108_v36   ;;  %6296 = vmatpush3.bf16.msra.mxu1 %v6930_v49 }
  0xb2   :  { %v8113_v38 = vpop.permute.xlu1 %1255  ;;  %1671 = vperm.xlu0 %6722, %v8123_v40   ;;  %6297 = vmatprep.subr.bf16.mxu1 %v6931_v52 }
  0xb4   :  { %v8137_v18 = vpop.permute.xlu0 %1090 }
  0xb5   :  { %1110 = vrot.lane.b32.xlu1 %v898_v33, %s7449_s19  ;;  %6298 = vmatpush3.bf16.msra.mxu1 %v6932_v55 }
  0xb6   :  { %6704 = vset.pattern.permute.xlu1 %v7453_v61  ;;  %v8126_v2 = vpop.permute.xlu1 %866  ;;  %1677 = vperm.xlu0 %6722, %v8042_v14  }
  0xb8   :  { %v8157_v0 = vpop.permute.xlu0 %1249 }
  0xb9   :  { %1572 = vperm.xlu1 %6704, %v8021_v35  }
  0xba   :  { %v8132_v43 = vpop.permute.xlu1 %868  ;;  %6727 = vset.pattern.permute.xlu0 %v10835_v46 }
  0xbb   :  { %1849 = vperm.xlu0 %6727, %v7989_v31  }
  0xbc   :  { %v8168_v56 = vpop.permute.xlu0 %1096 }
  0xbd   :  { %1578 = vperm.xlu1 %6704, %v7963_v54  }
  0xbe   :  { %v8144_v47 = vpop.permute.xlu1 %1192 }
  0xbf   :  { %10858 = vst [vmem:[#allocation6_spill] sm:$0xff] %v8144_v47  ;;  %1857 = vperm.xlu0 %6727, %v8123_v40  }
  0xc1   :  { %6705 = vset.pattern.permute.xlu1 %v10841_v58 }
  0xc2   :  { %1507 = vperm.xlu1 %6705, %v8021_v35   ;;  %v8155_v53 = vpop.permute.xlu1 %1098 }
  0xc3   :  { %1865 = vperm.xlu0 %6727, %v8042_v14  }
  0xc6   :  { %6708 = vset.pattern.permute.xlu1 %v7453_v61  ;;  %v8164_v5 = vpop.permute.xlu1 %1261 }
  0xc7   :  { %10859 = vst [vmem:[#allocation7_spill] sm:$0xff] %v8164_v5  ;;  %1581 = vperm.xlu1 %6708, %v8123_v40  }
  0xc8   :  { %22 = vsyncpa [#allocation3], 0  ;;  %v8173_v57 = vld [vmem:[%s10815_s4 + $0x20] sm:$0xff]  ;;  %6733 = vset.pattern.permute.xlu0 %v10837_v37  ;;  %v8182_v63 = vld [vmem:[%s10815_s4 + $0x38] sm:$0xff]  ;;  %v8188_v41 = vpop.permute.xlu0 %1258  ;;  %vm1125_vm3 = vcmask 588800   ;;  %vm1139_vm4 = vcmask 850944  }
  0xc9   :  { %1683 = vperm.xlu0 %6733, %v8182_v63   ;;  %v6933_v4 = vld [vmem:[%s10818_s7 + $0xc0] sm:$0xff]   ;;  %v8197_v13 = vld [vmem:[%s10815_s4 + $0x48] sm:$0xff]  ;;  %vm1452_vm5 = vcmask 1046528   ;;  %vm1153_vm6 = vcmask 1041408   ;;  %vm1700_vm7 = vcmask 1045504   ;;  %vm3591_vm9 = vcmask 261120  }
  0xca   :  { %6341 = vmatprep.subr.bf16.mxu1 %v6933_v4  ;;  %v8224_v30 = vld [vmem:[%s10815_s4 + $0x60] sm:$0x3]  ;;  %vm3938_vm10 = vcmask 785408   ;;  %vm3604_vm11 = vcmask 254976   ;;  %vm5743_vm12 = vcmask 41984   ;;  %s7460_s21 = smov 122  }
  0xcb   :  { %1584 = vperm.xlu1 %6708, %v8173_v57   ;;  %v8177_v59 = vpop.permute.xlu1 %1197  ;;  %10867 = vst [vmem:[#allocation15_spill] sm:$0xff] %v8224_v30  ;;  %v8234_v44 = vld [vmem:[%s10815_s4 + $0x40] sm:$0xff] }
  0xcc   :  { %10860 = vst [vmem:[#allocation8_spill] sm:$0xff] %v8177_v59  ;;  %v8204_v17 = vpop.permute.xlu0 %1100  ;;  %v10888_v59 = vmov 6  }
  0xcd   :  { %1689 = vperm.xlu0 %6733, %v8197_v13   ;;  %10863 = vst [vmem:[#allocation11_spill] sm:$0xff] %v8204_v17 }
  0xcf   :  { %6709 = vset.pattern.permute.xlu1 %v10841_v58  ;;  %v8191_v12 = vpop.permute.xlu1 %1202 }
  0xd0   :  { %10861 = vst [vmem:[#allocation9_spill] sm:$0xff] %v8191_v12  ;;  %1519 = vperm.xlu1 %6709, %v8123_v40   ;;  %v8214_v27 = vpop.permute.xlu0 %1264 }
  0xd1   :  { %6737 = vset.pattern.permute.xlu0 %v10835_v46  ;;  %10865 = vst [vmem:[#allocation13_spill] sm:$0xff] %v8214_v27 }
  0xd2   :  { %1873 = vperm.xlu0 %6737, %v8182_v63  }
  0xd3   :  { %v8200_v51 = vpop.permute.xlu1 %1104 }
  0xd4   :  { %10862 = vst [vmem:[#allocation10_spill] sm:$0xff] %v8200_v51  ;;  %6710 = vset.pattern.permute.xlu1 %v7453_v61  ;;  %v8229_v39 = vpop.permute.xlu0 %1102 }
  0xd5   :  { %1590 = vperm.xlu1 %6710, %v8059_v20   ;;  %10869 = vst [vmem:[#allocation17_spill] sm:$0xff] %v8229_v39 }
  0xd6   :  { %6738 = vset.pattern.permute.xlu0 %v10839_v9 }
  0xd7   :  { %v8208_v26 = vpop.permute.xlu1 %1270  ;;  %1786 = vperm.xlu0 %6738, %v8108_v36  }
  0xd8   :  { %10864 = vst [vmem:[#allocation12_spill] sm:$0xff] %v8208_v26  ;;  %v8241_v49 = vpop.permute.xlu0 %1267 }
  0xd9   :  { %6711 = vset.pattern.permute.xlu1 %v10841_v58  ;;  %10871 = vst [vmem:[#allocation19_spill] sm:$0xff] %v8241_v49 }
  0xda   :  { %1523 = vperm.xlu1 %6711, %v8173_v57  }
  0xdb   :  { %6741 = vset.pattern.permute.xlu0 %v10837_v37 }
  0xdc   :  { %v8216_v62 = vpop.permute.xlu1 %1212  ;;  %1698 = vperm.xlu0 %6741, %v8224_v30   ;;  %v8248_v55 = vpop.permute.xlu0 %1177 }
  0xdd   :  { %10866 = vst [vmem:[#allocation14_spill] sm:$0xff] %v8216_v62  ;;  %10873 = vst [vmem:[#allocation21_spill] sm:$0xff] %v8248_v55 }
  0xde   :  { %6712 = vset.pattern.permute.xlu1 %v7453_v61 }
  0xdf   :  { %1593 = vperm.xlu1 %6712, %v8182_v63  }
  0xe0   :  { %v8227_v33 = vpop.permute.xlu1 %1106  ;;  %6743 = vset.pattern.permute.xlu0 %v10835_v46  ;;  %v8257_v11 = vpop.permute.xlu0 %1187 }
  0xe1   :  { %10868 = vst [vmem:[#allocation16_spill] sm:$0xff] %v8227_v33  ;;  %1893 = vperm.xlu0 %6743, %v8224_v30   ;;  %10876 = vst [vmem:[#allocation24_spill] sm:$0xff] %v8257_v11  ;;  %v6963_v33 = vld [vmem:[%s10818_s7 + $0x1a0] sm:$0xff]   ;;  %v10899_v11 = vmov 8  }
  0xe3   :  { %1596 = vperm.xlu1 %6712, %v8234_v44  }
  0xe4   :  { %v8238_v45 = vpop.permute.xlu1 %1217  ;;  %v8263_v15 = vpop.permute.xlu0 %1207 }
  0xe5   :  { %10870 = vst [vmem:[#allocation18_spill] sm:$0xff] %v8238_v45  ;;  %10878 = vst [vmem:[#allocation26_spill] sm:$0xff] %v8263_v15 }
  0xe7   :  { %6713 = vset.pattern.permute.xlu1 %v10841_v58 }
  0xe8   :  { %1535 = vperm.xlu1 %6713, %v8182_v63  }
  0xe9   :  { %v8245_v52 = vpop.permute.xlu1 %1417 }
  0xea   :  { %10872 = vst [vmem:[#allocation20_spill] sm:$0xff] %v8245_v52  ;;  %v6955_v52 = vld [vmem:[%s10818_s7 + $0x1d0] sm:$0xff]  }
  0xec   :  { %6714 = vset.pattern.permute.xlu1 %v7453_v61 }
  0xed   :  { %1602 = vperm.xlu1 %6714, %v8081_v28   ;;  %v8251_v4 = vpop.permute.xlu1 %1420 }
  0xee   :  { %10874 = vst [vmem:[#allocation22_spill] sm:$0xff] %v8251_v4 }
  0xf1   :  { %6715 = vset.pattern.permute.xlu1 %v10841_v58 }
  0xf2   :  { %1539 = vperm.xlu1 %6715, %v8234_v44   ;;  %v8255_v48 = vpop.permute.xlu1 %1327 }
  0xf3   :  { %10875 = vst [vmem:[#allocation23_spill] sm:$0xff] %v8255_v48  ;;  %v8272_v48 = vpop.permute.xlu0 %1108 }
  0xf4   :  { %10880 = vst [vmem:[#allocation28_spill] sm:$0xff] %v8272_v48 }
  0xf6   :  { %6716 = vset.pattern.permute.xlu1 %v7453_v61  ;;  %v8260_v7 = vpop.permute.xlu1 %1330  ;;  %v10881_v61 = vmov 4  }
  0xf7   :  { %10877 = vst [vmem:[#allocation25_spill] sm:$0xff] %v8260_v7  ;;  %1605 = vperm.xlu1 %6716, %v8108_v36   ;;  %v6172_v1 = vpop.f32.mrb[0].mxu1 }
  0xf8   :  { %v6173_v46 = vpop.f32.mrb[1].mxu1 }
  0xf9   :  { %v8265_v37 = vadd.f32 %v6173_v46, %v6172_v1  ;;  %v6175_v9 = vpop.f32.mrb[2].mxu1  ;;  %v6949_v1 = vld [vmem:[%s10818_s7 + $0x1c0] sm:$0xff]  }
  0xfa   :  { %v6176_v58 = vpop.f32.mrb[3].mxu1  ;;  %v6950_v46 = vld [vmem:[%s10818_s7 + $0x180] sm:$0xff]   ;;  %6457 = vmatprep.subr.bf16.mxu0 %v6949_v1 }
  0xfb   :  { %1608 = vperm.xlu1 %6716, %v8224_v30   ;;  %v8268_v6 = vpop.permute.xlu1 %1426  ;;  %v8270_v45 = vadd.f32 %v6176_v58, %v6175_v9  ;;  %6458 = vmatpush3.bf16.msra.mxu0 %v6950_v46  ;;  %v6954_v30 = vld [vmem:[%s10818_s7 + $0x188] sm:$0xff]  }
  0xfc   :  { %10879 = vst [vmem:[#allocation27_spill] sm:$0xff] %v8268_v6 }
  0xff   :  { %6717 = vset.pattern.permute.xlu1 %v10881_v61  ;;  %v6178_v7 = vpop.f32.mrb[4].mxu1 }
 0x100   :  { %1551 = vperm.xlu1 %6717, %v8108_v36   ;;  %v8276_v62 = vpop.permute.xlu1 %1333  ;;  %v6179_v6 = vpop.f32.mrb[5].mxu1  ;;  %v10883_v36 = vmov 7  }
 0x101   :  { %10882 = vst [vmem:[#allocation29_spill] sm:$0xff] %v8276_v62  ;;  %v8284_v58 = vadd.f32 %v6179_v6, %v6178_v7  ;;  %v6181_v9 = vpop.f32.mrb[6].mxu1  ;;  %v6953_v62 = vld [vmem:[%s10818_s7 + $0x1c8] sm:$0xff]   ;;  %v8298_v7 = vpop.permute.xlu0 %1414 }
 0x102   :  { %v6182_v15 = vpop.f32.mrb[7].mxu1  ;;  %10885 = vst [vmem:[#allocation31_spill] sm:$0xff] %v8298_v7  ;;  %6459 = vmatprep.subr.bf16.mxu0 %v6953_v62 }
 0x103   :  { %v8286_v61 = vadd.f32 %v6182_v15, %v6181_v9  ;;  %6460 = vmatpush3.bf16.msra.mxu0 %v6954_v30 }
 0x104   :  { %6720 = vset.pattern.permute.xlu1 %v10883_v36  ;;  %6461 = vmatprep.subr.bf16.mxu0 %v6955_v52 }
 0x105   :  { %1756 = vperm.xlu1 %6720, %v7989_v31   ;;  %v8296_v6 = vpop.permute.xlu1 %1429  ;;  %v8311_v62 = vpop.permute.xlu0 %1324 }
 0x106   :  { %10884 = vst [vmem:[#allocation30_spill] sm:$0xff] %v8296_v6  ;;  %v6956_v6 = vld [vmem:[%s10818_s7 + $0x190] sm:$0xff]   ;;  %10887 = vst [vmem:[#allocation33_spill] sm:$0xff] %v8311_v62 }
 0x107   :  { %v6184_v15 = vpop.f32.mrb[8].mxu1  ;;  %6462 = vmatpush3.bf16.msra.mxu0 %v6956_v6 }
 0x108   :  { %v6185_v1 = vpop.f32.mrb[9].mxu1 }
 0x109   :  { %1759 = vperm.xlu1 %6720, %v7963_v54   ;;  %v8301_v46 = vpop.permute.xlu1 %1432  ;;  %v8303_v9 = vadd.f32 %v6185_v1, %v6184_v15  ;;  %v6187_v4 = vpop.f32.mrb[10].mxu1  ;;  %v6959_v1 = vld [vmem:[%s10818_s7 + $0x1d8] sm:$0xff]  }
 0x10a   :  { %10886 = vst [vmem:[#allocation32_spill] sm:$0xff] %v8301_v46  ;;  %v6188_v7 = vpop.f32.mrb[11].mxu1  ;;  %v6960_v46 = vld [vmem:[%s10818_s7 + $0x198] sm:$0xff]   ;;  %6463 = vmatprep.subr.bf16.mxu0 %v6959_v1  ;;  %v8328_v6 = vpop.permute.xlu0 %1336 }
 0x10b   :  { %v8313_v30 = vadd.f32 %v6188_v7, %v6187_v4  ;;  %v6961_v4 = vld [vmem:[%s10818_s7 + $0x1e0] sm:$0xff]   ;;  %6464 = vmatpush3.bf16.msra.mxu0 %v6960_v46  ;;  %10890 = vst [vmem:[#allocation35_spill] sm:$0xff] %v8328_v6  ;;  %v6965_v46 = vld [vmem:[%s10818_s7 + $0x1e8] sm:$0xff]  }
 0x10c   :  { %6465 = vmatprep.subr.bf16.mxu0 %v6961_v4 }
 0x10d   :  { %6721 = vset.pattern.permute.xlu1 %v10888_v59 }
 0x10e   :  { %1665 = vperm.xlu1 %6721, %v7989_v31   ;;  %v8317_v15 = vpop.permute.xlu1 %1342  ;;  %v8347_v4 = vpop.permute.xlu0 %1339 }
 0x10f   :  { %10889 = vst [vmem:[#allocation34_spill] sm:$0xff] %v8317_v15  ;;  %v6190_v52 = vpop.f32.mrb[12].mxu1  ;;  %6466 = vmatpush3.bf16.msra.mxu0 %v6963_v33  ;;  %10893 = vst [vmem:[#allocation38_spill] sm:$0xff] %v8347_v4 }
 0x110   :  { %v6191_v7 = vpop.f32.mrb[13].mxu1  ;;  %6467 = vmatprep.subr.bf16.mxu0 %v6965_v46 }
 0x111   :  { %v8330_v31 = vadd.f32 %v6191_v7, %v6190_v52  ;;  %v6193_v15 = vpop.f32.mrb[14].mxu1  ;;  %v6968_v52 = vld [vmem:[%s10818_s7 + $0x1f0] sm:$0xff]  }
 0x112   :  { %1668 = vperm.xlu1 %6721, %v7963_v54   ;;  %v6194_v62 = vpop.f32.mrb[15].mxu1 }
 0x113   :  { %v8333_v12 = vpop.permute.xlu1 %1438  ;;  %v8335_v48 = vadd.f32 %v6194_v62, %v6193_v15  ;;  %v6966_v15 = vld [vmem:[%s10818_s7 + $0x1a8] sm:$0xff]  }
 0x114   :  { %10891 = vst [vmem:[#allocation36_spill] sm:$0xff] %v8333_v12  ;;  %6468 = vmatpush3.bf16.msra.mxu0 %v6966_v15  ;;  %v6972_v15 = vld [vmem:[%s10818_s7 + $0x1b8] sm:$0xff]  }
 0x115   :  { %6469 = vmatprep.subr.bf16.mxu0 %v6968_v52 }
 0x116   :  { %6723 = vset.pattern.permute.xlu1 %v10883_v36 }
 0x117   :  { %1762 = vperm.xlu1 %6723, %v8123_v40   ;;  %v6196_v54 = vpop.f32.mrb[16].mxu1  ;;  %v8357_v40 = vpop.f32.mrb[0].mxu0 }
 0x118   :  { %v8345_v1 = vpop.permute.xlu1 %1345  ;;  %v6197_v62 = vpop.f32.mrb[17].mxu1 }
 0x119   :  { %10892 = vst [vmem:[#allocation37_spill] sm:$0xff] %v8345_v1  ;;  %v8355_v7 = vadd.f32 %v6197_v62, %v6196_v54  ;;  %v6199_v12 = vpop.f32.mrb[18].mxu1  ;;  %v6562_v46 = vpop.f32.mrb[1].mxu0  ;;  %v6970_v1 = vld [vmem:[%s10818_s7 + $0x1b0] sm:$0xff]   ;;  %v6971_v54 = vld [vmem:[%s10818_s7 + $0x1f8] sm:$0xff]  }
 0x11a   :  { %v6200_v33 = vpop.f32.mrb[19].mxu1  ;;  %v8365_v6 = vpop.f32.mrb[2].mxu0  ;;  %6470 = vmatpush3.bf16.msra.mxu0 %v6970_v1 }
 0x11b   :  { %1765 = vperm.xlu1 %6723, %v8173_v57   ;;  %v8363_v4 = vadd.f32 %v6200_v33, %v6199_v12  ;;  %v6563_v26 = vpop.f32.mrb[3].mxu0  ;;  %v8376_v46 = vpop.permute.xlu0 %1423  ;;  %6471 = vmatprep.subr.bf16.mxu0 %v6971_v54 }
 0x11c   :  { %10895 = vst [vmem:[#allocation40_spill] sm:$0xff] %v8376_v46  ;;  %v8383_v47 = vpop.f32.mrb[4].mxu0 }
 0x11d   :  { %v8370_v62 = vpop.permute.xlu1 %1441  ;;  %v6566_v51 = vpop.f32.mrb[5].mxu0 }
 0x11e   :  { %10894 = vst [vmem:[#allocation39_spill] sm:$0xff] %v8370_v62  ;;  %6472 = vmatpush3.bf16.msra.mxu0 %v6972_v15  ;;  %v8389_v46 = vpop.f32.mrb[6].mxu0  ;;  %v8400_v51 = vld [vmem:[%s10817_s6] ss:$0 sm:$0xff]  ;;  %s7459_s6 = smov [#allocation2]  }
 0x11f   :  { %6724 = vset.pattern.permute.xlu1 %v10888_v59  ;;  %v6202_v12 = vpop.f32.mrb[20].mxu1  ;;  %v8391_v54 = vpop.permute.xlu0 %1435  ;;  %s5757_s20 = sshll.u32 %s7459_s6, 4  ;;  %s5758_s20 = int_to_ptr.vmem [resolvable:$true] %s5757_s20 }
 0x120   :  { %1674 = vperm.xlu1 %6724, %v8173_v57   ;;  %v6203_v52 = vpop.f32.mrb[21].mxu1  ;;  %10900 = vst [vmem:[#allocation44_spill] sm:$0xff] %v8391_v54  ;;  %s7420_s22 = scalar_lea.vmem %s5758_s20, 32  ;;  %p7425_p1 = scmp.lt.s32.totalorder %s5758_s20, %s5758_s20 }
 0x121   :  { %v8379_v33 = vpop.permute.xlu1 %1444  ;;  %v8381_v49 = vadd.f32 %v6203_v52, %v6202_v12  ;;  %v6205_v62 = vpop.f32.mrb[22].mxu1  ;;  %p7421_p0 = scmp.ne.s32.totalorder %s5758_s20, %s7420_s22  ;;  %p7426_p2 = scmp.lt.s32.totalorder %s7420_s22, %s7420_s22 }
 0x122   :  { %10896 = vst [vmem:[#allocation41_spill] sm:$0xff] %v8379_v33  ;;  %v6206_v26 = vpop.f32.mrb[23].mxu1  ;;  %v6567_v12 = vpop.f32.mrb[7].mxu0 }
 0x123   :  { %10897 = vst [vmem:[#allocation42_spill] sm:$0xff] %v8381_v49  ;;  %v8385_v1 = vadd.f32 %v6206_v26, %v6205_v62  ;;  %v8404_v26 = vpop.permute.xlu0 %1447  ;;  %p7427_p3 = por %p7426_p2, %p7425_p1 }
 0x124   :  { %6725 = vset.pattern.permute.xlu1 %v10899_v11  ;;  %10903 = vst [vmem:[#allocation47_spill] sm:$0xff] %v8404_v26 }
 0x125   :  { %10898 = vst [vmem:[#allocation43_spill] sm:$0xff] %v8385_v1  ;;  %1845 = vperm.xlu1 %6725, %v8021_v35   ;;  %p7428_p4 = pnand %p7427_p3, %p7421_p0 }
 0x126   :  { %v8393_v39 = vpop.permute.xlu1 %1354 }
 0x127   :  { %10901 = vst [vmem:[#allocation45_spill] sm:$0xff] %v8393_v39  ;;  %v6208_v52 = vpop.f32.mrb[24].mxu1  ;;  %v8409_v39 = vpop.f32.mrb[8].mxu0 }
 0x128   :  { %v6209_v33 = vpop.f32.mrb[25].mxu1  ;;  %v6570_v54 = vpop.f32.mrb[9].mxu0 }
 0x129   :  { %6726 = vset.pattern.permute.xlu1 %v10883_v36  ;;  %v6210_v49 = vadd.f32 %v6209_v33, %v6208_v52  ;;  %v6211_v62 = vpop.f32.mrb[26].mxu1 }
 0x12a   :  { %1768 = vperm.xlu1 %6726, %v8042_v14   ;;  %v6212_v35 = vpop.f32.mrb[27].mxu1  ;;  %v8412_v14 = vpop.f32.mrb[10].mxu0 }
 0x12b   :  { %v8402_v15 = vpop.permute.xlu1 %1450  ;;  %v8407_v12 = vadd.f32 %v6210_v49, %v8400_v51  ;;  %v6571_v33 = vpop.f32.mrb[11].mxu0  ;;  %v608_v35 = vadd.f32 %v8265_v37, %v8400_v51 }
 0x12c   :  { %10902 = vst [vmem:[#allocation46_spill] sm:$0xff] %v8402_v15  ;;  %v8418_v15 = vpop.permute.xlu0 %1348  ;;  %v611_v33 = vadd.f32 %v8270_v45, %v8400_v51  ;;  %v7416_v45 = vld [vmem:[%s10815_s4 + $0x10] sm:$0xff] }
 0x12d   :  { %10904 = vst [vmem:[#allocation48_spill] sm:$0xff] %v8407_v12  ;;  %10906 = vst [vmem:[#allocation50_spill] sm:$0xff] %v8418_v15  ;;  %v8422_v12 = vpop.f32.mrb[12].mxu0 }
 0x12e   :  { %1771 = vperm.xlu1 %6726, %v8059_v20   ;;  %v6574_v55 = vpop.f32.mrb[13].mxu0 }
 0x12f   :  { %v6230_v52 = vpop.f32.mrb[28].mxu1  ;;  %v8428_v37 = vpop.f32.mrb[14].mxu0  ;;  %v1272_v55 = vrot.slane %v8065_v23, 7  ;;  %v619_v23 = vadd.f32 %v8286_v61, %v8400_v51 }
 0x130   :  { %v8414_v62 = vpop.permute.xlu1 %1357  ;;  %v6231_v1 = vpop.f32.mrb[29].mxu1 }
 0x131   :  { %10905 = vst [vmem:[#allocation49_spill] sm:$0xff] %v8414_v62  ;;  %v6232_v26 = vadd.f32 %v6231_v1, %v6230_v52  ;;  %v6233_v49 = vpop.f32.mrb[30].mxu1  ;;  %v6575_v15 = vpop.f32.mrb[15].mxu0  ;;  %v1310_v61 = vmul.f32 0.0, %v1272_v55 }
 0x132   :  { %6728 = vset.pattern.permute.xlu1 %v10888_v59  ;;  %v6234_v54 = vpop.f32.mrb[31].mxu1  ;;  %v8441_v15 = vpop.permute.xlu0 %1351 }
 0x133   :  { %1680 = vperm.xlu1 %6728, %v8059_v20   ;;  %v6235_v27 = vadd.f32 %v6234_v54, %v6233_v49  ;;  %v696_v62 = vadd.f32 %v6232_v26, %v608_v35 }
 0x134   :  { %v8426_v5 = vpop.permute.xlu1 %1110 }
 0x135   :  { %v784_v1 = vadd.f32 %v8357_v40, %v696_v62  ;;  %v699_v52 = vadd.f32 %v6235_v27, %v611_v33  ;;  %v616_v27 = vadd.f32 %v8284_v58, %v8400_v51  ;;  %v1275_v33 = vrot.slane %v7992_v60, 7  ;;  %v8451_v58 = vpop.f32.mrb[16].mxu0 }
 0x137   :  { %6729 = vset.pattern.permute.xlu1 %v10899_v11  ;;  %v837_v20 = vmax.f32 %v784_v1, 0.0  ;;  %v787_v17 = vadd.f32 %v8365_v6, %v699_v52  ;;  %v6236_v26 = vpop.f32.mrb[32].mxu1  ;;  %v1273_v1 = vrot.slane %v8086_v29, 7  ;;  %v6578_v29 = vpop.f32.mrb[17].mxu0 }
 0x138   :  { %1853 = vperm.xlu1 %6729, %v7416_v45   ;;  %v8436_v35 = vpop.permute.xlu1 %1572  ;;  %v6237_v40 = vpop.f32.mrb[33].mxu1 }
 0x139   :  { %10907 = vst [vmem:[#allocation51_spill] sm:$0xff] %v8436_v35  ;;  %v873_v6 = vsel %vm551_vm2, %v837_v20, %v8002_v3  ;;  %v838_v62 = vmax.f32 %v787_v17, 0.0  ;;  %v6238_v49 = vadd.f32 %v6237_v40, %v6236_v26  ;;  %v6239_v54 = vpop.f32.mrb[34].mxu1  ;;  %v1274_v40 = vsel %vm861_vm1, %v1272_v55, %v1273_v1 }
 0x13a   :  { %v1126_v52 = vsel %vm1125_vm3, %v873_v6, %v8010_v8  ;;  %v6240_v45 = vpop.f32.mrb[35].mxu1  ;;  %v8465_v6 = vpop.f32.mrb[18].mxu0 }
 0x13b   :  { %v8454_v35 = vsel %vm1139_vm4, %v1126_v52, 0.0  ;;  %v874_v17 = vsel %vm551_vm2, %v838_v62, %v8002_v3  ;;  %v6241_v20 = vadd.f32 %v6240_v45, %v6239_v54  ;;  %v704_v26 = vadd.f32 %v6238_v49, %v616_v27  ;;  %v6579_v54 = vpop.f32.mrb[19].mxu0 }
 0x13c   :  { %6730 = vset.pattern.permute.xlu1 %v10883_v36  ;;  %v8459_v60 = vpop.permute.xlu1 %1578  ;;  %v1127_v8 = vsel %vm1125_vm3, %v874_v17, %v8103_v34  ;;  %v1311_v49 = vmul.f32 %v1274_v40, %v8454_v35  ;;  %v1276_v45 = vsel %vm861_vm1, %v1273_v1, %v1275_v33  ;;  %v1277_v17 = vrot.slane %v8024_v10, 7 }
 0x13d   :  { %10908 = vst [vmem:[#allocation52_spill] sm:$0xff] %v8459_v60  ;;  %1774 = vperm.xlu1 %6730, %v8182_v63   ;;  %v8468_v52 = vsel %vm1139_vm4, %v1127_v8, 0.0  ;;  %v792_v27 = vadd.f32 %v8383_v47, %v704_v26  ;;  %v707_v62 = vadd.f32 %v6241_v20, %v619_v23  ;;  %v1922_v63 = vrot.slane %v1310_v61, 1  ;;  %v8482_v20 = vpop.permute.xlu0 %1360 }
 0x13e   :  { %v8475_v34 = vmul.f32 %v1276_v45, %v8468_v52  ;;  %v1279_v8 = vrot.slane %v8128_v42, 7  ;;  %v624_v10 = vadd.f32 %v8303_v9, %v8400_v51  ;;  %v627_v42 = vadd.f32 %v8313_v30, %v8400_v51  ;;  %v8493_v45 = vpop.f32.mrb[20].mxu0 }
 0x13f   :  { %v839_v29 = vmax.f32 %v792_v27, 0.0  ;;  %v795_v55 = vadd.f32 %v8389_v46, %v707_v62  ;;  %v6242_v60 = vpop.f32.mrb[36].mxu1  ;;  %v1923_v27 = vrot.slane %v1311_v49, 1  ;;  %v1221_v9 = vmul.f32 %v7998_v21, %v8454_v35 }
 0x140   :  { %v6243_v23 = vpop.f32.mrb[37].mxu1  ;;  %v1220_v30 = vmul.f32 0.0, %v8054_v19 }
 0x141   :  { %1777 = vperm.xlu1 %6730, %v8234_v44   ;;  %v8480_v47 = vpop.permute.xlu1 %1507  ;;  %v875_v46 = vsel %vm551_vm2, %v839_v29, %v8002_v3  ;;  %v840_v1 = vmax.f32 %v795_v55, 0.0  ;;  %v6244_v26 = vadd.f32 %v6243_v23, %v6242_v60  ;;  %v6245_v40 = vpop.f32.mrb[38].mxu1  ;;  %v1924_v19 = vsel %vm1452_vm5, %v1922_v63, %v1923_v27 }
 0x142   :  { %v1128_v61 = vsel %vm1125_vm3, %v875_v46, %v8137_v18  ;;  %v6246_v62 = vpop.f32.mrb[39].mxu1  ;;  %v6582_v55 = vpop.f32.mrb[21].mxu0  ;;  %v1278_v18 = vsel %vm861_vm1, %v1275_v33, %v1277_v17  ;;  %v10909_v33 = vrot.slane %v8475_v34, 1 }
 0x143   :  { %v8496_v29 = vsel %vm1139_vm4, %v1128_v61, 0.0  ;;  %v876_v60 = vsel %vm551_vm2, %v840_v1, %v8002_v3  ;;  %v6247_v49 = vadd.f32 %v6246_v62, %v6245_v40  ;;  %v712_v46 = vadd.f32 %v6244_v26, %v624_v10  ;;  %v8507_v61 = vpop.f32.mrb[22].mxu0  ;;  %v6934_v62 = vld [vmem:[%s10818_s7 + $0x80] sm:$0xff]  }
 0x144   :  { %v1129_v23 = vsel %vm1125_vm3, %v876_v60, %v8062_v22  ;;  %v1926_v40 = vsel %vm1452_vm5, %v1923_v27, %v10909_v33  ;;  %v1280_v22 = vsel %vm861_vm1, %v1277_v17, %v1279_v8  ;;  %v6583_v60 = vpop.f32.mrb[23].mxu0  ;;  %v2221_v55 = vpack.c.bf16 %v1221_v9, %v1220_v30  ;;  %v6935_v17 = vld [vmem:[%s10818_s7 + $0xc8] sm:$0xff]   ;;  %v8533_v27 = vpop.permute.xlu0 %1511 }
 0x145   :  { %6731 = vset.pattern.permute.xlu1 %v10888_v59  ;;  %v8510_v54 = vsel %vm1139_vm4, %v1129_v23, 0.0  ;;  %v715_v1 = vadd.f32 %v6247_v49, %v627_v42  ;;  %v800_v26 = vadd.f32 %v8409_v39, %v712_v46  ;;  %v2222_v10 = vpack.c.bf16 %v1926_v40, %v1924_v19 }
 0x146   :  { %1686 = vperm.xlu1 %6731, %v8234_v44   ;;  %v8513_v21 = vpop.permute.xlu1 %1581  ;;  %v1313_v42 = vmul.f32 %v1278_v18, %v8496_v29  ;;  %v8527_v23 = vmul.f32 %v1280_v22, %v8510_v54  ;;  %v1281_v39 = vrot.slane %v8157_v0, 7  ;;  %v1283_v18 = vrot.slane %v8068_v24, 7 }
 0x147   :  { %v803_v49 = vadd.f32 %v8412_v14, %v715_v1  ;;  %v6248_v63 = vpop.f32.mrb[40].mxu1  ;;  %v841_v46 = vmax.f32 %v800_v26, 0.0  ;;  %2754 = vmatprep.mubr.bf16.mxu1 %v2222_v10  ;;  %v6936_v26 = vld [vmem:[%s10818_s7 + $0x88] sm:$0xff]   ;;  %v632_v10 = vadd.f32 %v8330_v31, %v8400_v51 }
 0x148   :  { %v6249_v19 = vpop.f32.mrb[41].mxu1  ;;  %2755 = vmatmul.mubr.bf16.vlgmr.msra.gmra.mrb[56].mxu1 %v2221_v55  ;;  %v1282_v1 = vsel %vm861_vm1, %v1279_v8, %v1281_v39  ;;  %v1927_v22 = vrot.slane %v1313_v42, 1  ;;  %v1929_v24 = vrot.slane %v8527_v23, 1  ;;  %v8556_v42 = vpop.f32.mrb[24].mxu0  ;;  %v635_v55 = vadd.f32 %v8335_v48, %v8400_v51  ;;  %v6942_v23 = vld [vmem:[%s10818_s7 + $0xa0] sm:$0xff]  }
 0x149   :  { %v842_v33 = vmax.f32 %v803_v49, 0.0  ;;  %v6250_v14 = vadd.f32 %v6249_v19, %v6248_v63  ;;  %v6251_v30 = vpop.f32.mrb[42].mxu1  ;;  %v877_v0 = vsel %vm551_vm2, %v841_v46, %v8002_v3  ;;  %6342 = vmatpush3.bf16.msra.mxu1 %v6934_v62  ;;  %v1285_v49 = vrot.slane %v8113_v38, 7 }
 0x14a   :  { %6732 = vset.pattern.permute.xlu1 %v10899_v11  ;;  %v8537_v9 = vpop.permute.xlu1 %1584  ;;  %v6252_v40 = vpop.f32.mrb[43].mxu1  ;;  %v1130_v8 = vsel %vm1125_vm3, %v877_v0, %v8097_v32  ;;  %6343 = vmatprep.subr.bf16.mxu1 %v6935_v17  ;;  %v1223_v32 = vmul.f32 %v8045_v16, %v8496_v29  ;;  %v1222_v38 = vmul.f32 %v8036_v50, %v8468_v52  ;;  %v1287_v50 = vrot.slane %v8188_v41, 7 }
 0x14b   :  { %1861 = vperm.xlu1 %6732, %v8173_v57   ;;  %v878_v60 = vsel %vm551_vm2, %v842_v33, %v8002_v3  ;;  %v6253_v62 = vadd.f32 %v6252_v40, %v6251_v30  ;;  %v6937_v57 = vld [vmem:[%s10818_s7 + $0xd0] sm:$0xff]   ;;  %v6586_v3 = vpop.f32.mrb[25].mxu0  ;;  %v8566_v63 = vsel %vm1139_vm4, %v1130_v8, 0.0  ;;  %v720_v46 = vadd.f32 %v6250_v14, %v632_v10  ;;  %v8573_v33 = vpop.permute.xlu0 %1575 }
 0x14c   :  { %v1131_v31 = vsel %vm1125_vm3, %v878_v60, %v8168_v56  ;;  %v834_v19 = vpop.f32.mrb[26].mxu0  ;;  %v10910_v56 = vrot.slane %v8475_v34, 1  ;;  %v1930_v16 = vsel %vm1452_vm5, %v1927_v22, %v1929_v24  ;;  %v1284_v14 = vsel %vm861_vm1, %v1281_v39, %v1283_v18 }
 0x14d   :  { %v8569_v17 = vsel %vm1139_vm4, %v1131_v31, 0.0  ;;  %v723_v48 = vadd.f32 %v6253_v62, %v635_v55  ;;  %6344 = vmatpush3.bf16.msra.mxu1 %v6936_v26  ;;  %v808_v40 = vadd.f32 %v8422_v12, %v720_v46  ;;  %v6587_v8 = vpop.f32.mrb[27].mxu0  ;;  %v2230_v62 = vpack.c.bf16 %v1223_v32, %v1222_v38  ;;  %v6939_v12 = vld [vmem:[%s10818_s7 + $0xd8] sm:$0xff]  }
 0x14e   :  { %v1928_v30 = vsel %vm1452_vm5, %v10910_v56, %v1927_v22  ;;  %6345 = vmatprep.subr.bf16.mxu1 %v6937_v57  ;;  %v6938_v22 = vld [vmem:[%s10818_s7 + $0x90] sm:$0xff]   ;;  %v1315_v39 = vmul.f32 %v1282_v1, %v8566_v63  ;;  %v8594_v55 = vmul.f32 %v1284_v14, %v8569_v17  ;;  %v1286_v57 = vsel %vm861_vm1, %v1283_v18, %v1285_v49 }
 0x14f   :  { %6734 = vset.pattern.permute.xlu1 %v10883_v36  ;;  %v8582_v0 = vpop.permute.xlu1 %1519  ;;  %v2231_v10 = vpack.c.bf16 %v1930_v16, %v1928_v30  ;;  %v6254_v34 = vpop.f32.mrb[44].mxu1  ;;  %v811_v60 = vadd.f32 %v8428_v37, %v723_v48  ;;  %v640_v31 = vadd.f32 %v8355_v7, %v8400_v51  ;;  %v843_v3 = vmax.f32 %v808_v40, 0.0 }
 0x150   :  { %1780 = vperm.xlu1 %6734, %v8197_v13   ;;  %v6255_v26 = vpop.f32.mrb[45].mxu1  ;;  %v643_v32 = vadd.f32 %v8363_v4, %v8400_v51  ;;  %v1931_v19 = vrot.slane %v1315_v39, 1  ;;  %v1933_v48 = vrot.slane %v8594_v55, 1  ;;  %v6940_v4 = vld [vmem:[%s10818_s7 + $0x98] sm:$0xff]   ;;  %v1288_v16 = vsel %vm861_vm1, %v1285_v49, %v1287_v50  ;;  %v8616_v14 = vpop.permute.xlu0 %1587 }
 0x151   :  { %2762 = vmatprep.mubr.bf16.mxu1 %v2231_v10  ;;  %v6256_v46 = vadd.f32 %v6255_v26, %v6254_v34  ;;  %v6257_v37 = vpop.f32.mrb[46].mxu1  ;;  %v844_v1 = vmax.f32 %v811_v60, 0.0  ;;  %v879_v56 = vsel %vm551_vm2, %v843_v3, %v8126_v2  ;;  %6346 = vmatpush3.bf16.msra.mxu1 %v6938_v22  ;;  %v10911_v34 = vld [vmem:[#allocation11_spill] sm:$0xff]  ;;  %v10912_v26 = vld [vmem:[#allocation21_spill] sm:$0xff] }
 0x152   :  { %2763 = vmatmul.mubr.bf16.gmra.mrb[60].mxu1 %v2230_v62  ;;  %v6258_v38 = vpop.f32.mrb[47].mxu1  ;;  %v1132_v2 = vsel %vm1125_vm3, %v879_v56, %v8155_v53  ;;  %6347 = vmatprep.subr.bf16.mxu1 %v6939_v12  ;;  %v6941_v53 = vld [vmem:[%s10818_s7 + $0xe0] sm:$0xff]   ;;  %v1934_v62 = vsel %vm1452_vm5, %v1931_v19, %v1933_v48  ;;  %v1224_v39 = vmul.f32 %v10912_v26, %v8510_v54 }
 0x153   :  { %v6259_v18 = vadd.f32 %v6258_v38, %v6257_v37  ;;  %v728_v30 = vadd.f32 %v6256_v46, %v640_v31  ;;  %v880_v40 = vsel %vm551_vm2, %v844_v1, %v8132_v43  ;;  %v8625_v10 = vsel %vm1139_vm4, %v1132_v2, 0.0  ;;  %v8654_v38 = vld [vmem:[%s10815_s4 + $0x50] sm:$0xff] }
 0x154   :  { %1783 = vperm.xlu1 %6734, %v8081_v28   ;;  %v8608_v7 = vpop.permute.xlu1 %1590  ;;  %v1225_v28 = vmul.f32 %v8084_v25, %v8566_v63  ;;  %v1133_v22 = vsel %vm1125_vm3, %v880_v40, %v10911_v34  ;;  %v1932_v25 = vsel %vm1452_vm5, %v1929_v24, %v1931_v19  ;;  %v10914_v24 = vld [vmem:[#allocation13_spill] sm:$0xff]  ;;  %v1317_v56 = vmul.f32 %v1286_v57, %v8625_v10 }
 0x155   :  { %v816_v49 = vadd.f32 %v8451_v58, %v728_v30  ;;  %v731_v8 = vadd.f32 %v6259_v18, %v643_v32  ;;  %v8634_v60 = vsel %vm1139_vm4, %v1133_v22, 0.0  ;;  %v10913_v58 = vld [vmem:[#allocation7_spill] sm:$0xff]  ;;  %v2240_v46 = vpack.c.bf16 %v1934_v62, %v1932_v25  ;;  %6348 = vmatpush3.bf16.msra.mxu1 %v6940_v4  ;;  %v10915_v30 = vld [vmem:[#allocation42_spill] sm:$0xff]  ;;  %v8670_v22 = vpop.permute.xlu0 %1599  ;;  %v10916_v57 = vld [vmem:[#allocation17_spill] sm:$0xff] }
 0x156   :  { %v1289_v12 = vrot.slane %v10913_v58, 7  ;;  %v1291_v32 = vrot.slane %v10914_v24, 7  ;;  %v2239_v1 = vpack.c.bf16 %v1225_v28, %v1224_v39  ;;  %v8661_v18 = vmul.f32 %v1288_v16, %v8634_v60  ;;  %6349 = vmatprep.subr.bf16.mxu1 %v6941_v53  ;;  %v6943_v34 = vld [vmem:[%s10818_s7 + $0xe8] sm:$0xff]   ;;  %v10917_v53 = vld [vmem:[#allocation43_spill] sm:$0xff] }
 0x157   :  { %v845_v31 = vmax.f32 %v816_v49, 0.0  ;;  %v819_v3 = vadd.f32 %v8465_v6, %v731_v8  ;;  %v6260_v37 = vpop.f32.mrb[48].mxu1  ;;  %v648_v4 = vadd.f32 %v10915_v30, %v8400_v51  ;;  %2770 = vmatprep.mubr.bf16.mxu1 %v2240_v46  ;;  %v1935_v25 = vrot.slane %v1317_v56, 1 }
 0x158   :  { %6735 = vset.pattern.permute.xlu1 %v10888_v59  ;;  %v6261_v19 = vpop.f32.mrb[49].mxu1  ;;  %v1937_v62 = vrot.slane %v8661_v18, 1  ;;  %v1290_v26 = vsel %vm861_vm1, %v1287_v50, %v1289_v12  ;;  %v651_v39 = vadd.f32 %v10917_v53, %v8400_v51  ;;  %v1292_v46 = vsel %vm861_vm1, %v1289_v12, %v1291_v32  ;;  %v10918_v50 = vld [vmem:[#allocation10_spill] sm:$0xff] }
 0x159   :  { %1692 = vperm.xlu1 %6735, %v8654_v38   ;;  %v8657_v6 = vpop.permute.xlu1 %1523  ;;  %v881_v2 = vsel %vm551_vm2, %v845_v31, %v8132_v43  ;;  %v846_v40 = vmax.f32 %v819_v3, 0.0  ;;  %v6263_v28 = vpop.f32.mrb[50].mxu1  ;;  %v6262_v49 = vadd.f32 %v6261_v19, %v6260_v37  ;;  %6350 = vmatpush3.bf16.msra.mxu1 %v6942_v23  ;;  %v6944_v3 = vld [vmem:[%s10818_s7 + $0xa8] sm:$0xff]   ;;  %v6945_v23 = vld [vmem:[%s10818_s7 + $0xf0] sm:$0xff]   ;;  %v1936_v30 = vsel %vm1452_vm5, %v1933_v48, %v1935_v25 }
 0x15a   :  { %v1134_v16 = vsel %vm1125_vm3, %v881_v2, %v10916_v57  ;;  %2771 = vmatmul.mubr.bf16.gmra.mrb[64].mxu1 %v2239_v1  ;;  %v6264_v8 = vpop.f32.mrb[51].mxu1  ;;  %v7418_v12 = vld [vmem:[%s10815_s4 + $0x30] sm:$0xff]  ;;  %6351 = vmatprep.subr.bf16.mxu1 %v6943_v34  ;;  %v8724_v34 = vpop.permute.xlu0 %1753 }
 0x15b   :  { %v882_v58 = vsel %vm551_vm2, %v846_v40, %v8132_v43  ;;  %v6265_v31 = vadd.f32 %v6264_v8, %v6263_v28  ;;  %v8689_v41 = vsel %vm1139_vm4, %v1134_v16, 0.0  ;;  %v736_v51 = vadd.f32 %v6262_v49, %v648_v4  ;;  %v10919_v28 = vld [vmem:[#allocation24_spill] sm:$0xff]  ;;  %v10920_v16 = vld [vmem:[#allocation6_spill] sm:$0xff] }
 0x15c   :  { %v1135_v37 = vsel %vm1125_vm3, %v882_v58, %v10918_v50  ;;  %v1938_v4 = vsel %vm1452_vm5, %v1935_v25, %v1937_v62  ;;  %v1226_v57 = vmul.f32 %v10919_v28, %v8569_v17  ;;  %v1227_v49 = vmul.f32 %v10920_v16, %v8625_v10  ;;  %v10921_v50 = vld [vmem:[#allocation19_spill] sm:$0xff]  ;;  %v10924_v28 = vld [vmem:[#allocation48_spill] sm:$0xff] }
 0x15d   :  { %6736 = vset.pattern.permute.xlu1 %v10899_v11  ;;  %v8698_v1 = vsel %vm1139_vm4, %v1135_v37, 0.0  ;;  %v739_v19 = vadd.f32 %v6265_v31, %v651_v39  ;;  %v824_v2 = vadd.f32 %v8493_v45, %v736_v51  ;;  %v2249_v40 = vpack.c.bf16 %v1938_v4, %v1936_v30  ;;  %6352 = vmatpush3.bf16.msra.mxu1 %v6944_v3  ;;  %v6946_v45 = vld [vmem:[%s10818_s7 + $0xb0] sm:$0xff]   ;;  %v10922_v30 = vld [vmem:[#allocation12_spill] sm:$0xff] }
 0x15e   :  { %1869 = vperm.xlu1 %6736, %v7418_v12   ;;  %v8703_v56 = vpop.permute.xlu1 %1593  ;;  %v1319_v55 = vmul.f32 %v1290_v26, %v8689_v41  ;;  %v8719_v48 = vmul.f32 %v1292_v46, %v8698_v1  ;;  %v2248_v39 = vpack.c.bf16 %v1227_v49, %v1226_v57  ;;  %6353 = vmatprep.subr.bf16.mxu1 %v6945_v23  ;;  %v1293_v37 = vrot.slane %v10921_v50, 7  ;;  %v6948_v16 = vld [vmem:[%s10818_s7 + $0xb8] sm:$0xff]  }
 0x15f   :  { %v827_v8 = vadd.f32 %v8507_v61, %v739_v19  ;;  %v6266_v53 = vpop.f32.mrb[52].mxu1  ;;  %v847_v25 = vmax.f32 %v824_v2, 0.0  ;;  %2778 = vmatprep.mubr.bf16.mxu1 %v2249_v40  ;;  %v6947_v61 = vld [vmem:[%s10818_s7 + $0xf8] sm:$0xff]   ;;  %v1295_v4 = vrot.slane %v10922_v30, 7 }
 0x160   :  { %v6267_v58 = vpop.f32.mrb[53].mxu1  ;;  %v1939_v19 = vrot.slane %v1319_v55, 1  ;;  %v1941_v23 = vrot.slane %v8719_v48, 1  ;;  %v10923_v2 = vld [vmem:[#allocation16_spill] sm:$0xff]  ;;  %v10926_v55 = vld [vmem:[#allocation9_spill] sm:$0xff] }
 0x161   :  { %v848_v26 = vmax.f32 %v827_v8, 0.0  ;;  %v6268_v31 = vadd.f32 %v6267_v58, %v6266_v53  ;;  %v6269_v46 = vpop.f32.mrb[54].mxu1  ;;  %v883_v51 = vsel %vm551_vm2, %v847_v25, %v8132_v43  ;;  %6354 = vmatpush3.bf16.msra.mxu1 %v6946_v45  ;;  %v10925_v8 = vld [vmem:[#allocation28_spill] sm:$0xff]  ;;  %v1229_v48 = vmul.f32 %v10926_v55, %v8689_v41 }
 0x162   :  { %1877 = vperm.xlu1 %6736, %v8234_v44   ;;  %v8730_v3 = vpop.permute.xlu1 %1596  ;;  %2779 = vmatmul.mubr.bf16.gmra.mrb[68].mxu1 %v2248_v39  ;;  %v6270_v12 = vpop.f32.mrb[55].mxu1  ;;  %v1136_v40 = vsel %vm1125_vm3, %v883_v51, %v10923_v2  ;;  %v6951_v25 = vld [vmem:[%s10818_s7 + $0x140] sm:$0xff]   ;;  %v1294_v45 = vsel %vm861_vm1, %v1291_v32, %v1293_v37  ;;  %v1296_v50 = vsel %vm861_vm1, %v1293_v37, %v1295_v4  ;;  %v10930_v2 = vld [vmem:[#allocation22_spill] sm:$0xff]  ;;  %v10931_v4 = vld [vmem:[#allocation15_spill] sm:$0xff] }
 0x163   :  { %v884_v44 = vsel %vm551_vm2, %v848_v26, %v8132_v43  ;;  %v744_v57 = vadd.f32 %v6268_v31, %v10924_v28  ;;  %v8746_v49 = vsel %vm1139_vm4, %v1136_v40, 0.0  ;;  %6355 = vmatprep.subr.bf16.mxu1 %v6947_v61  ;;  %v1940_v26 = vsel %vm1452_vm5, %v1937_v62, %v1939_v19  ;;  %v10928_v46 = vld [vmem:[#allocation8_spill] sm:$0xff]  ;;  %v8773_v51 = vpop.permute.xlu0 %1515 }
 0x164   :  { %v1137_v53 = vsel %vm1125_vm3, %v884_v44, %v10925_v8  ;;  %v1942_v61 = vsel %vm1452_vm5, %v1939_v19, %v1941_v23  ;;  %v1228_v24 = vmul.f32 %v10928_v46, %v8634_v60  ;;  %v1321_v32 = vmul.f32 %v1294_v45, %v8746_v49  ;;  %v10929_v19 = vld [vmem:[#allocation20_spill] sm:$0xff] }
 0x165   :  { %v8759_v39 = vsel %vm1139_vm4, %v1137_v53, 0.0  ;;  %v832_v58 = vadd.f32 %v8556_v42, %v744_v57  ;;  %v2258_v12 = vpack.c.bf16 %v1942_v61, %v1940_v26  ;;  %6356 = vmatpush3.bf16.msra.mxu1 %v6948_v16  ;;  %v1454_v30 = vrot.slane %v10929_v19, 1  ;;  %v10932_v57 = vld [vmem:[#allocation31_spill] sm:$0xff] }
 0x166   :  { %1881 = vperm.xlu1 %6736, %v8197_v13   ;;  %v2257_v13 = vpack.c.bf16 %v1229_v48, %v1228_v24  ;;  %v1322_v18 = vmul.f32 %v1296_v50, %v8759_v39  ;;  %v1943_v62 = vrot.slane %v1321_v32, 1  ;;  %6399 = vmatprep.subr.bf16.mxu1 %v6951_v25  ;;  %v1456_v40 = vrot.slane %v10930_v2, 1  ;;  %v7419_v24 = vld [vmem:[%s10815_s4 + $0x58] sm:$0xff] }
 0x167   :  { %v8767_v31 = vpop.permute.xlu1 %1535  ;;  %v849_v42 = vmax.f32 %v832_v58, 0.0  ;;  %2786 = vmatprep.mubr.bf16.mxu1 %v2258_v12  ;;  %v1453_v16 = vrot.slane %v10932_v57, 1  ;;  %v8795_v25 = vpop.permute.xlu0 %1527  ;;  %v10934_v58 = vld [vmem:[#allocation26_spill] sm:$0xff]  ;;  %v10935_v32 = vld [vmem:[#allocation23_spill] sm:$0xff] }
 0x168   :  { %10927 = vst [vmem:[#allocation11_spill] sm:$0xff] %v8767_v31  ;;  %v1945_v28 = vrot.slane %v1322_v18, 1  ;;  %v1944_v55 = vsel %vm1452_vm5, %v1941_v23, %v1943_v62  ;;  %v1230_v26 = vmul.f32 %v10934_v58, %v8698_v1  ;;  %v1363_v50 = vrot.slane %v10935_v32, 6  ;;  %v10944_v32 = vld [vmem:[#allocation35_spill] sm:$0xff] }
 0x169   :  { %v885_v44 = vsel %vm551_vm2, %v849_v42, %v8132_v43  ;;  %v1492_v46 = vmul.f32 0.0, %v1453_v16  ;;  %v1455_v23 = vsel %vm1452_vm5, %v1453_v16, %v1454_v30  ;;  %v10936_v42 = vld [vmem:[#allocation25_spill] sm:$0xff] }
 0x16a   :  { %6739 = vset.pattern.permute.xlu1 %v10883_v36  ;;  %v1138_v37 = vsel %vm1125_vm3, %v885_v44, %v8426_v5  ;;  %2787 = vmatmul.mubr.bf16.gmra.mrb[72].mxu1 %v2257_v13  ;;  %v1946_v43 = vsel %vm1452_vm5, %v1943_v62, %v1945_v28  ;;  %v10933_v36 = vld [vmem:[#allocation14_spill] sm:$0xff]  ;;  %v1457_v5 = vsel %vm1452_vm5, %v1454_v30, %v1456_v40  ;;  %v1365_v12 = vrot.slane %v10936_v42, 6  ;;  %v10938_v62 = vld [vmem:[#allocation27_spill] sm:$0xff]  ;;  %v10939_v30 = vld [vmem:[#allocation33_spill] sm:$0xff] }
 0x16b   :  { %1789 = vperm.xlu1 %6739, %v10931_v4   ;;  %v8786_v8 = vsel %vm1139_vm4, %v1138_v37, 0.0  ;;  %v1231_v48 = vmul.f32 %v10933_v36, %v8746_v49  ;;  %v2267_v45 = vpack.c.bf16 %v1946_v43, %v1944_v55  ;;  %v8801_v61 = vmul.f32 %v1457_v5, %v8468_v52  ;;  %v10940_v4 = vld [vmem:[#allocation40_spill] sm:$0xff]  ;;  %v8816_v16 = vpop.permute.xlu0 %1531  ;;  %v10942_v36 = vld [vmem:[#allocation18_spill] sm:$0xff] }
 0x16c   :  { %v8788_v53 = vpop.permute.xlu1 %1602  ;;  %v1493_v18 = vmul.f32 %v1455_v23, %v8454_v35  ;;  %v1460_v19 = vrot.slane %v10938_v62, 1  ;;  %v2276_v2 = vpack.c.bf16 %v1945_v28, %v1945_v28  ;;  %v1362_v44 = vrot.slane %v10939_v30, 6  ;;  %10941 = vst [vmem:[#allocation7_spill] sm:$0xff] %v8816_v16  ;;  %v10957_v16 = vld [vmem:[#allocation50_spill] sm:$0xff] }
 0x16d   :  { %2794 = vmatprep.mubr.bf16.mxu1 %v2267_v45  ;;  %v2028_v37 = vrot.slane %v8801_v61, 7  ;;  %v1458_v57 = vrot.slane %v10940_v4, 1  ;;  %v2025_v55 = vrot.slane %v1492_v46, 7  ;;  %v1366_v43 = vsel %vm1153_vm6, %v1363_v50, %v1365_v12 }
 0x16e   :  { %v1232_v28 = vmul.f32 %v10942_v36, %v8759_v39  ;;  %v8827_v58 = vmul.f32 %v1366_v43, %v8468_v52  ;;  %v1400_v46 = vmul.f32 0.0, %v1362_v44  ;;  %v1369_v42 = vrot.slane %v10944_v32, 6 }
 0x16f   :  { %6740 = vset.pattern.permute.xlu1 %v10888_v59  ;;  %v2266_v59 = vpack.c.bf16 %v1231_v48, %v1230_v26  ;;  %v2026_v48 = vrot.slane %v1493_v18, 7  ;;  %v1461_v5 = vsel %vm1452_vm5, %v1458_v57, %v1460_v19  ;;  %v1364_v26 = vsel %vm1153_vm6, %v1362_v44, %v1363_v50  ;;  %v8840_v30 = vpop.permute.xlu0 %1543 }
 0x170   :  { %1695 = vperm.xlu1 %6740, %v7419_v24   ;;  %v8832_v61 = vmul.f32 %v1461_v5, %v8510_v54  ;;  %v1401_v23 = vmul.f32 %v1364_v26, %v8454_v35  ;;  %10946 = vst [vmem:[#allocation42_spill] sm:$0xff] %v8840_v30  ;;  %v10851_v44 = vrot.slane %v8827_v58, 2  ;;  %v10949_v5 = vld [vmem:[#allocation30_spill] sm:$0xff] }
 0x171   :  { %v8809_v13 = vpop.permute.xlu1 %1539  ;;  %v2027_v18 = vsel %vm861_vm1, %v2025_v55, %v2026_v48  ;;  %v1462_v55 = vrot.slane %v10949_v5, 1  ;;  %v10953_v5 = vld [vmem:[#allocation44_spill] sm:$0xff] }
 0x172   :  { %10937 = vst [vmem:[#allocation21_spill] sm:$0xff] %v8809_v13  ;;  %2795 = vmatmul.mubr.bf16.gmra.mrb[76].mxu1 %v2266_v59  ;;  %v2275_v59 = vpack.c.bf16 %v1232_v28, %v1232_v28  ;;  %v10852_v36 = vrot.slane %v8832_v61, 7  ;;  %v1973_v28 = vrot.slane %v1400_v46, 2 }
 0x173   :  { %2802 = vmatprep.mubr.bf16.mxu1 %v2276_v2  ;;  %v10945_v2 = vld [vmem:[#allocation32_spill] sm:$0xff]  ;;  %v8869_v30 = vpop.permute.xlu0 %1547 }
 0x174   :  { %6742 = vset.pattern.permute.xlu1 %v10899_v11  ;;  %v2029_v11 = vsel %vm861_vm1, %v2026_v48, %v2028_v37  ;;  %v1464_v50 = vrot.slane %v10945_v2, 1  ;;  %v10951_v2 = vld [vmem:[#allocation34_spill] sm:$0xff]  ;;  %10954 = vst [vmem:[#allocation10_spill] sm:$0xff] %v8869_v30 }
 0x175   :  { %1885 = vperm.xlu1 %6742, %v8654_v38   ;;  %v1459_v38 = vsel %vm1452_vm5, %v1456_v40, %v1458_v57  ;;  %v2224_v4 = vpack.c.bf16 %v2029_v11, %v2027_v18  ;;  %v10948_v40 = vld [vmem:[#allocation29_spill] sm:$0xff] }
 0x176   :  { %v8824_v45 = vpop.permute.xlu1 %1605  ;;  %v1495_v62 = vmul.f32 %v1459_v38, %v8496_v29  ;;  %v1367_v57 = vrot.slane %v10948_v40, 6  ;;  %v10950_v38 = vld [vmem:[#allocation38_spill] sm:$0xff]  ;;  %v1465_v32 = vsel %vm1452_vm5, %v1462_v55, %v1464_v50 }
 0x177   :  { %10943 = vst [vmem:[#allocation13_spill] sm:$0xff] %v8824_v45  ;;  %v1371_v11 = vrot.slane %v10950_v38, 6  ;;  %v8865_v40 = vmul.f32 %v1465_v32, %v8569_v17  ;;  %v1466_v38 = vrot.slane %v10953_v5, 1  ;;  %v6957_v32 = vld [vmem:[%s10818_s7 + $0x148] sm:$0xff]  }
 0x178   :  { %v1370_v48 = vsel %vm1153_vm6, %v1367_v57, %v1369_v42  ;;  %v2030_v26 = vrot.slane %v1495_v62, 7  ;;  %v1368_v46 = vsel %vm1153_vm6, %v1365_v12, %v1367_v57  ;;  %v6952_v12 = vld [vmem:[%s10818_s7 + $0x100] sm:$0xff]  }
 0x179   :  { %1889 = vperm.xlu1 %6742, %v7419_v24   ;;  %v1974_v24 = vrot.slane %v1401_v23, 2  ;;  %v1403_v57 = vmul.f32 %v1368_v46, %v8496_v29 }
 0x17a   :  { %v8842_v43 = vpop.permute.xlu1 %1608  ;;  %2803 = vmatmul.mubr.bf16.gmra.mrb[80].mxu1 %v2275_v59  ;;  %v8855_v59 = vmul.f32 %v1370_v48, %v8510_v54  ;;  %v2033_v62 = vsel %vm861_vm1, %v2030_v26, %v10852_v36  ;;  %v2031_v36 = vsel %vm861_vm1, %v2028_v37, %v2030_v26  ;;  %v10959_v26 = vld [vmem:[#allocation39_spill] sm:$0xff]  ;;  %v8904_v37 = vpop.permute.xlu0 %1555 }
 0x17b   :  { %10947 = vst [vmem:[#allocation17_spill] sm:$0xff] %v8842_v43  ;;  %2842 = vmatprep.mubr.bf16.mxu1 %v2224_v4  ;;  %v1977_v18 = vsel %vm1700_vm7, %v1974_v24, %v10851_v44  ;;  %v1373_v4 = vrot.slane %v10951_v2, 6  ;;  %v1463_v44 = vsel %vm1452_vm5, %v1460_v19, %v1462_v55  ;;  %v1975_v48 = vsel %vm1700_vm7, %v1973_v28, %v1974_v24  ;;  %v10955_v55 = vld [vmem:[#allocation36_spill] sm:$0xff] }
 0x17c   :  { %v2223_v2 = vpack.c.bf16 %v1977_v18, %v1975_v48  ;;  %v1497_v5 = vmul.f32 %v1463_v44, %v8566_v63  ;;  %v1372_v19 = vsel %vm1153_vm6, %v1369_v42, %v1371_v11  ;;  %v1468_v30 = vrot.slane %v10955_v55, 1  ;;  %10960 = vst [vmem:[#allocation24_spill] sm:$0xff] %v8904_v37 }
 0x17d   :  { %v2233_v28 = vpack.c.bf16 %v2033_v62, %v2031_v36  ;;  %v10853_v24 = vrot.slane %v8855_v59, 2  ;;  %v1374_v18 = vsel %vm1153_vm6, %v1371_v11, %v1373_v4  ;;  %v1467_v44 = vsel %vm1452_vm5, %v1464_v50, %v1466_v38  ;;  %v6958_v36 = vld [vmem:[%s10818_s7 + $0x108] sm:$0xff]   ;;  %v6962_v50 = vld [vmem:[%s10818_s7 + $0x150] sm:$0xff]  }
 0x17e   :  { %v1978_v48 = vrot.slane %v1403_v57, 2  ;;  %v8894_v62 = vmul.f32 %v1374_v18, %v8569_v17  ;;  %v1791_v11 = vrot.slane %v8724_v34, 1  ;;  %v2034_v55 = vrot.slane %v1497_v5, 7 }
 0x17f   :  { %v8859_v23 = vpop.permute.xlu1 %1551  ;;  %v1469_v57 = vsel %vm1452_vm5, %v1466_v38, %v1468_v30  ;;  %v1470_v46 = vrot.slane %v10959_v26, 1  ;;  %v10963_v26 = vrot.slane %v8827_v58, 2  ;;  %v10965_v43 = vrot.slane %v10957_v16, 6 }
 0x180   :  { %10952 = vst [vmem:[#allocation43_spill] sm:$0xff] %v8859_v23  ;;  %v10956_v23 = vld [vmem:[#allocation47_spill] sm:$0xff]  ;;  %v1981_v34 = vsel %vm1700_vm7, %v1978_v48, %v10853_v24  ;;  %v8915_v38 = vmul.f32 %v1469_v57, %v8634_v60 }
 0x181   :  { %v1979_v37 = vsel %vm1700_vm7, %v10963_v26, %v1978_v48  ;;  %v6964_v24 = vld [vmem:[%s10818_s7 + $0x110] sm:$0xff]  }
 0x182   :  { %2843 = vmatmul.mubr.bf16.vlgmr.msra.gmra.mrb[84].mxu1 %v2223_v2  ;;  %v2232_v45 = vpack.c.bf16 %v1981_v34, %v1979_v37  ;;  %v1830_v37 = vmul.f32 %v1791_v11, %v8454_v35  ;;  %v1471_v34 = vsel %vm1452_vm5, %v1468_v30, %v1470_v46  ;;  %v10967_v30 = vrot.slane %v8894_v62, 2 }
 0x183   :  { %2850 = vmatprep.mubr.bf16.mxu1 %v2233_v28  ;;  %6400 = vmatpush3.bf16.msra.mxu1 %v6952_v12  ;;  %v1405_v12 = vmul.f32 %v1372_v19, %v8566_v63  ;;  %v10958_v28 = vld [vmem:[#allocation37_spill] sm:$0xff] }
 0x184   :  { %v1757_v42 = vpop.permute.xlu1 %1756  ;;  %6401 = vmatprep.subr.bf16.mxu1 %v6957_v32  ;;  %v1375_v13 = vrot.slane %v10958_v28, 6  ;;  %v10961_v32 = vld [vmem:[#allocation41_spill] sm:$0xff] }
 0x185   :  { %v1792_v2 = vrot.slane %v1757_v42, 1  ;;  %v10962_v42 = vrot.slane %v8865_v40, 7  ;;  %v1982_v48 = vrot.slane %v1405_v12, 2  ;;  %v1663_v12 = vpop.permute.xlu0 %1662 }
 0x186   :  { %v1376_v26 = vsel %vm1153_vm6, %v1373_v4, %v1375_v13  ;;  %v1378_v5 = vsel %vm1153_vm6, %v1375_v13, %v10965_v43 }
 0x187   :  { %v1793_v18 = vsel %vm1452_vm5, %v1791_v11, %v1792_v2  ;;  %v2037_v19 = vsel %vm861_vm1, %v2034_v55, %v10962_v42  ;;  %6402 = vmatpush3.bf16.msra.mxu1 %v6958_v36  ;;  %v1499_v42 = vmul.f32 %v1467_v44, %v8625_v10  ;;  %v6967_v36 = vld [vmem:[%s10818_s7 + $0x158] sm:$0xff]   ;;  %v1985_v43 = vsel %vm1700_vm7, %v1982_v48, %v10967_v30 }
 0x188   :  { %v1831_v28 = vmul.f32 %v1793_v18, %v8468_v52  ;;  %v8921_v31 = vpop.permute.xlu1 %1759  ;;  %v10964_v18 = vrot.slane %v8832_v61, 7  ;;  %6403 = vmatprep.subr.bf16.mxu1 %v6962_v50  ;;  %v10966_v61 = vrot.slane %v10961_v32, 1  ;;  %v2181_v30 = vrot.slane %v1830_v37, 7 }
 0x189   :  { %v10854_v57 = vrot.slane %v8921_v31, 1  ;;  %v2038_v11 = vrot.slane %v1499_v42, 7  ;;  %v6973_v42 = vld [vmem:[%s10818_s7 + $0x160] sm:$0xff]  }
 0x18a   :  { %v2035_v58 = vsel %vm861_vm1, %v10964_v18, %v2034_v55  ;;  %v1473_v55 = vsel %vm1452_vm5, %v1470_v46, %v10966_v61  ;;  %2851 = vmatmul.mubr.bf16.gmra.mrb[88].mxu1 %v2232_v45  ;;  %v2182_v18 = vrot.slane %v1831_v28, 7  ;;  %v6969_v45 = vld [vmem:[%s10818_s7 + $0x118] sm:$0xff]   ;;  %v10968_v46 = vld [vmem:[#allocation45_spill] sm:$0xff]  ;;  %v10969_v28 = vrot.slane %v8855_v59, 2 }
 0x18b   :  { %v2242_v44 = vpack.c.bf16 %v2037_v19, %v2035_v58  ;;  %v1795_v50 = vsel %vm1452_vm5, %v1792_v2, %v10854_v57  ;;  %6404 = vmatpush3.bf16.msra.mxu1 %v6964_v24  ;;  %v1701_v19 = vrot.slane %v1663_v12, 2  ;;  %v8962_v24 = vmul.f32 %v1378_v5, %v8634_v60  ;;  %v10970_v12 = vld [vmem:[#allocation46_spill] sm:$0xff] }
 0x18c   :  { %v8949_v13 = vmul.f32 %v1795_v50, %v8496_v29  ;;  %v1983_v61 = vsel %vm1700_vm7, %v10969_v28, %v1982_v48  ;;  %6405 = vmatprep.subr.bf16.mxu1 %v6967_v36  ;;  %v1407_v57 = vmul.f32 %v1376_v26, %v8625_v10  ;;  %v10971_v59 = vrot.slane %v8915_v38, 7 }
 0x18d   :  { %2858 = vmatprep.mubr.bf16.mxu1 %v2242_v44  ;;  %v1666_v58 = vpop.permute.xlu1 %1665  ;;  %v2241_v4 = vpack.c.bf16 %v1985_v43, %v1983_v61  ;;  %v8974_v5 = vmul.f32 %v1473_v55, %v8698_v1  ;;  %v10972_v28 = vrot.slane %v8865_v40, 7  ;;  %v2183_v37 = vsel %vm861_vm1, %v2181_v30, %v2182_v18  ;;  %v6974_v43 = vld [vmem:[%s10818_s7 + $0x120] sm:$0xff]  }
 0x18e   :  { %v1702_v50 = vrot.slane %v1666_v58, 2  ;;  %v2041_v48 = vsel %vm861_vm1, %v2038_v11, %v10971_v59  ;;  %v10973_v26 = vrot.slane %v8949_v13, 7  ;;  %v1501_v40 = vmul.f32 %v1471_v34, %v8689_v41 }
 0x18f   :  { %v2039_v44 = vsel %vm861_vm1, %v10972_v28, %v2038_v11  ;;  %6406 = vmatpush3.bf16.msra.mxu1 %v6969_v45  ;;  %v6975_v11 = vld [vmem:[%s10818_s7 + $0x168] sm:$0xff]   ;;  %v1986_v28 = vrot.slane %v1407_v57, 2  ;;  %v10977_v34 = vrot.slane %v10961_v32, 1  ;;  %v2044_v2 = vrot.slane %v8974_v5, 7 }
 0x190   :  { %v1703_v36 = vsel %vm1700_vm7, %v1701_v19, %v1702_v50  ;;  %v2185_v58 = vsel %vm861_vm1, %v2182_v18, %v10973_v26  ;;  %6407 = vmatprep.subr.bf16.mxu1 %v6973_v42  ;;  %v1739_v18 = vmul.f32 %v1701_v19, %v8454_v35  ;;  %v2251_v45 = vpack.c.bf16 %v2041_v48, %v2039_v44 }
 0x191   :  { %v1740_v55 = vmul.f32 %v1703_v36, %v8468_v52  ;;  %v1669_v61 = vpop.permute.xlu1 %1668  ;;  %v2228_v59 = vpack.c.bf16 %v2185_v58, %v2183_v37  ;;  %v10974_v26 = vrot.slane %v8441_v15, 6  ;;  %v10975_v36 = vrot.slane %v10957_v16, 6 }
 0x192   :  { %v1704_v30 = vrot.slane %v1669_v61, 2  ;;  %v10976_v58 = vrot.slane %v10956_v23, 1  ;;  %2859 = vmatmul.mubr.bf16.gmra.mrb[92].mxu1 %v2241_v4  ;;  %v1385_v19 = vrot.slane %v8482_v20, 6  ;;  %v10978_v57 = vrot.slane %v10968_v46, 6  ;;  %v6976_v20 = vld [vmem:[%s10818_s7 + $0x128] sm:$0xff]   ;;  %v6977_v23 = vld [vmem:[%s10818_s7 + $0x170] sm:$0xff]  }
 0x193   :  { %v1380_v37 = vsel %vm1153_vm6, %v10975_v36, %v10974_v26  ;;  %3018 = vmatprep.mubr.bf16.mxu0 %v2228_v59  ;;  %v10979_v44 = vmov %v10974_v26  ;;  %v10980_v48 = vrot.slane %v10970_v12, 1  ;;  %2866 = vmatprep.mubr.bf16.mxu1 %v2251_v45  ;;  %v2130_v59 = vrot.slane %v1740_v55, 6 }
 0x194   :  { %v1475_v42 = vsel %vm1452_vm5, %v10977_v34, %v10976_v58  ;;  %v1382_v16 = vsel %vm1153_vm6, %v10979_v44, %v10978_v57  ;;  %v10981_v61 = vmov %v10976_v58  ;;  %v1705_v4 = vsel %vm1700_vm7, %v1702_v50, %v1704_v30  ;;  %6408 = vmatpush3.bf16.msra.mxu1 %v6974_v43  ;;  %v10983_v50 = vld [vmem:[#allocation49_spill] sm:$0xff] }
 0x195   :  { %v1477_v32 = vsel %vm1452_vm5, %v10981_v61, %v10980_v48  ;;  %v9021_v26 = vmul.f32 %v1705_v4, %v8496_v29  ;;  %v10982_v15 = vrot.slane %v8962_v24, 2  ;;  %v2042_v58 = vrot.slane %v1501_v40, 7  ;;  %6409 = vmatprep.subr.bf16.mxu1 %v6975_v11  ;;  %v1672_v48 = vpop.permute.xlu0 %1671 }
 0x196   :  { %v1383_v43 = vrot.slane %v10983_v50, 6  ;;  %v2129_v45 = vrot.slane %v1739_v18, 6  ;;  %v1763_v34 = vpop.permute.xlu1 %1762  ;;  %v10984_v57 = vrot.slane %v8894_v62, 2  ;;  %v9034_v44 = vmul.f32 %v1382_v16, %v8698_v1 }
 0x197   :  { %v1989_v36 = vsel %vm1700_vm7, %v1986_v28, %v10982_v15  ;;  %v2132_v61 = vrot.slane %v9021_v26, 6  ;;  %v1796_v40 = vrot.slane %v1763_v34, 1  ;;  %v2045_v11 = vsel %vm861_vm1, %v2042_v58, %v2044_v2 }
 0x198   :  { %v1987_v55 = vsel %vm1700_vm7, %v10984_v57, %v1986_v28  ;;  %v9041_v4 = vmul.f32 %v1477_v32, %v8759_v39  ;;  %v1706_v18 = vrot.slane %v1672_v48, 2  ;;  %v1409_v62 = vmul.f32 %v1380_v37, %v8689_v41  ;;  %6410 = vmatpush3.bf16.msra.mxu1 %v6976_v20  ;;  %v6978_v37 = vld [vmem:[%s10818_s7 + $0x130] sm:$0xff]  }
 0x199   :  { %v2250_v15 = vpack.c.bf16 %v1989_v36, %v1987_v55  ;;  %v1503_v28 = vmul.f32 %v1475_v42, %v8746_v49  ;;  %v2131_v16 = vsel %vm1153_vm6, %v2129_v45, %v2130_v59  ;;  %v2133_v50 = vsel %vm1153_vm6, %v2130_v59, %v2132_v61  ;;  %6411 = vmatprep.subr.bf16.mxu1 %v6977_v23 }
 0x19a   :  { %v10985_v34 = vrot.slane %v8921_v31, 1  ;;  %v10986_v32 = vrot.slane %v8915_v38, 7  ;;  %v9059_v36 = vpop.permute.xlu1 %1765  ;;  %v2227_v45 = vpack.c.bf16 %v2133_v50, %v2131_v16  ;;  %v1992_v59 = vrot.slane %v9034_v44, 2  ;;  %v6979_v31 = vld [vmem:[%s10818_s7 + $0x178] sm:$0xff]  }
 0x19b   :  { %2867 = vmatmul.mubr.bf16.gmra.mrb[96].mxu1 %v2250_v15  ;;  %v1798_v38 = vrot.slane %v9059_v36, 1  ;;  %v1386_v23 = vsel %vm1153_vm6, %v1383_v43, %v1385_v19  ;;  %v9070_v55 = vsel %vm1153_vm6, %v8786_v8, 0.0  ;;  %v1990_v44 = vrot.slane %v1409_v62, 2  ;;  %v6980_v8 = vld [vmem:[%s10818_s7 + $0x138] sm:$0xff]  }
 0x19c   :  { %v1797_v57 = vsel %vm1452_vm5, %v10985_v34, %v1796_v40  ;;  %v2043_v48 = vsel %vm861_vm1, %v10986_v32, %v2042_v58  ;;  %v2048_v58 = vrot.slane %v9041_v4, 7  ;;  %3019 = vmatmul.mubr.bf16.vlgmr.msra.gmra.mrb[28].mxu0 %v2227_v45  ;;  %v1611_v16 = vrot.slane %v8573_v33, 7  ;;  %6412 = vmatpush3.bf16.msra.mxu1 %v6978_v37 }
 0x19d   :  { %v1833_v42 = vmul.f32 %v1797_v57, %v8510_v54  ;;  %v2260_v20 = vpack.c.bf16 %v2045_v11, %v2043_v48  ;;  %v1707_v11 = vsel %vm1700_vm7, %v1704_v30, %v1706_v18  ;;  %v1799_v15 = vsel %vm1452_vm5, %v1796_v40, %v1798_v38  ;;  %6413 = vmatprep.subr.bf16.mxu1 %v6979_v31  ;;  %v10988_v40 = vld [vmem:[#allocation52_spill] sm:$0xff] }
 0x19e   :  { %v2046_v50 = vrot.slane %v1503_v28, 7  ;;  %v1412_v4 = vmul.f32 %v1386_v23, %v8759_v39  ;;  %v10987_v19 = vrot.slane %v10968_v46, 6  ;;  %v9085_v62 = vmul.f32 %v1799_v15, %v8566_v63  ;;  %v10991_v23 = vld [vmem:[#allocation51_spill] sm:$0xff] }
 0x19f   :  { %2874 = vmatprep.mubr.bf16.mxu1 %v2260_v20  ;;  %v2186_v34 = vrot.slane %v1833_v42, 7  ;;  %v1993_v33 = vsel %vm1700_vm7, %v1990_v44, %v1992_v59  ;;  %v1613_v28 = vrot.slane %v10988_v40, 7  ;;  %v1742_v57 = vmul.f32 %v1707_v11, %v8510_v54  ;;  %v1675_v32 = vpop.permute.xlu1 %1674 }
 0x1a0   :  { %v1384_v30 = vsel %vm1153_vm6, %v10987_v19, %v1383_v43  ;;  %v2049_v48 = vsel %vm861_vm1, %v2046_v50, %v2048_v58  ;;  %v10989_v37 = vrot.slane %v10970_v12, 1  ;;  %v2188_v43 = vrot.slane %v9085_v62, 7  ;;  %6414 = vmatpush3.bf16.msra.mxu1 %v6980_v8 }
 0x1a1   :  { %v1708_v42 = vrot.slane %v1675_v32, 2  ;;  %v10990_v20 = vrot.slane %v8962_v24, 2  ;;  %v1411_v31 = vmul.f32 %v1384_v30, %v8746_v49  ;;  %v1610_v15 = vrot.slane %v10991_v23, 7 }
 0x1a2   :  { %v1505_v46 = vmul.f32 %v10989_v37, %v9070_v55  ;;  %v2047_v11 = vsel %vm861_vm1, %v2044_v2, %v2046_v50  ;;  %v9103_v40 = vrot.slane %v1412_v4, 2  ;;  %v10992_v32 = vrot.slane %v8949_v13, 7 }
 0x1a3   :  { %v1991_v45 = vsel %vm1700_vm7, %v10990_v20, %v1990_v44  ;;  %v1709_v12 = vsel %vm1700_vm7, %v1706_v18, %v1708_v42  ;;  %v2269_v37 = vpack.c.bf16 %v2049_v48, %v2047_v11  ;;  %v2189_v44 = vsel %vm861_vm1, %v2186_v34, %v2188_v43  ;;  %v1678_v20 = vpop.permute.xlu0 %1677 }
 0x1a4   :  { %v2259_v19 = vpack.c.bf16 %v1993_v33, %v1991_v45  ;;  %v2187_v24 = vsel %vm861_vm1, %v10992_v32, %v2186_v34  ;;  %v10993_v30 = vmov 0.0   ;;  %v2134_v33 = vrot.slane %v1742_v57, 6  ;;  %v9117_v4 = vpop.permute.xlu1 %1845 }
 0x1a5   :  { %6588 = vmatprep.subr.bf16.mxu1 %v10993_v30  ;;  %v9114_v5 = vmul.f32 %v1709_v12, %v8566_v63  ;;  %v2237_v2 = vpack.c.bf16 %v2189_v44, %v2187_v24  ;;  %v2050_v50 = vrot.slane %v1505_v46, 7  ;;  %v1614_v18 = vsel %vm861_vm1, %v1611_v16, %v1613_v28 }
 0x1a6   :  { %2875 = vmatmul.mubr.bf16.gmra.mrb[100].mxu1 %v2259_v19  ;;  %v1994_v13 = vrot.slane %v1411_v31, 2  ;;  %v1612_v34 = vsel %vm861_vm1, %v1610_v15, %v1611_v16  ;;  %v9124_v48 = vmul.f32 %v1614_v18, %v8496_v29  ;;  %v2135_v45 = vsel %vm1153_vm6, %v2132_v61, %v2134_v33 }
 0x1a7   :  { %2882 = vmatprep.mubr.bf16.mxu1 %v2269_v37  ;;  %v2136_v8 = vrot.slane %v9114_v5, 6  ;;  %3026 = vmatprep.mubr.bf16.mxu0 %v2237_v2  ;;  %v2051_v46 = vsel %vm861_vm1, %v2048_v58, %v2050_v50  ;;  %v1617_v23 = vrot.slane %v8537_v9, 7  ;;  %v1649_v11 = vmul.f32 %v1612_v34, %v8468_v52 }
 0x1a8   :  { %v1997_v57 = vsel %vm1700_vm7, %v1994_v13, %v9103_v40  ;;  %v1995_v16 = vsel %vm1700_vm7, %v1992_v59, %v1994_v13  ;;  %v1615_v12 = vrot.slane %v8513_v21, 7  ;;  %v2278_v58 = vpack.c.bf16 %v2051_v46, %v2051_v46  ;;  %v9143_v21 = vpop.permute.xlu0 %1849 }
 0x1a9   :  { %v2137_v31 = vsel %vm1153_vm6, %v2134_v33, %v2136_v8  ;;  %v2268_v37 = vpack.c.bf16 %v1997_v57, %v1995_v16  ;;  %v1769_v32 = vpop.permute.xlu1 %1768  ;;  %v1648_v26 = vmul.f32 %v1610_v15, %v8454_v35  ;;  %v2081_v61 = vrot.slane %v9124_v48, 1 }
 0x1aa   :  { %v2236_v19 = vpack.c.bf16 %v2137_v31, %v2135_v45  ;;  %v1800_v24 = vrot.slane %v1769_v32, 1  ;;  %v1710_v44 = vrot.slane %v1678_v20, 2  ;;  %v1618_v9 = vsel %vm861_vm1, %v1615_v12, %v1617_v23 }
 0x1ab   :  { %v2079_v33 = vrot.slane %v1649_v11, 1  ;;  %v1616_v2 = vsel %vm861_vm1, %v1613_v28, %v1615_v12  ;;  %v2078_v13 = vrot.slane %v1648_v26, 1  ;;  %v9151_v34 = vmul.f32 %v1618_v9, %v8566_v63 }
 0x1ac   :  { %3027 = vmatmul.mubr.bf16.gmra.mrb[32].mxu0 %v2236_v19  ;;  %v1801_v59 = vsel %vm1452_vm5, %v1798_v38, %v1800_v24  ;;  %v1711_v57 = vsel %vm1700_vm7, %v1708_v42, %v1710_v44  ;;  %v1651_v38 = vmul.f32 %v1616_v2, %v8510_v54  ;;  %v1621_v48 = vrot.slane %v8608_v7, 7  ;;  %v9160_v20 = vpop.permute.xlu0 %1857 }
 0x1ad   :  { %v1835_v50 = vmul.f32 %v1801_v59, %v8569_v17  ;;  %v9147_v18 = vpop.permute.xlu1 %1771  ;;  %v2082_v36 = vsel %vm1452_vm5, %v2079_v33, %v2081_v61  ;;  %v2277_v31 = vpack.c.bf16 %v9103_v40, %v9103_v40  ;;  %v2080_v42 = vsel %vm1452_vm5, %v2078_v13, %v2079_v33 }
 0x1ae   :  { %2883 = vmatmul.mubr.bf16.gmra.mrb[104].mxu1 %v2268_v37  ;;  %v1802_v15 = vrot.slane %v9147_v18, 1  ;;  %v1619_v16 = vrot.slane %v8616_v14, 7  ;;  %v1744_v19 = vmul.f32 %v1711_v57, %v8569_v17  ;;  %v2226_v7 = vpack.c.bf16 %v2082_v36, %v2080_v42 }
 0x1af   :  { %2890 = vmatprep.mubr.bf16.mxu1 %v2278_v58  ;;  %v2190_v46 = vrot.slane %v1835_v50, 7  ;;  %v2085_v12 = vrot.slane %v9151_v34, 1  ;;  %v1558_v58 = vmul.f32 %v8480_v47, %v8454_v35  ;;  %v1559_v47 = vmul.f32 %v8533_v27, %v8468_v52  ;;  %v6981_v34 = vld [vmem:[%s10818_s7 + $0x200] sm:$0xff]  }
 0x1b0   :  { %v1803_v28 = vsel %vm1452_vm5, %v1800_v24, %v1802_v15  ;;  %v1622_v40 = vsel %vm861_vm1, %v1619_v16, %v1621_v48  ;;  %v2083_v24 = vrot.slane %v1651_v38, 1  ;;  %v1620_v59 = vsel %vm861_vm1, %v1617_v23, %v1619_v16  ;;  %v9191_v50 = vpop.permute.xlu0 %1865 }
 0x1b1   :  { %v9163_v45 = vmul.f32 %v1803_v28, %v8625_v10  ;;  %v2191_v26 = vsel %vm861_vm1, %v2188_v43, %v2190_v46  ;;  %v2138_v33 = vrot.slane %v1744_v19, 6  ;;  %v9194_v62 = vmul.f32 %v1622_v40, %v8625_v10 }
 0x1b2   :  { %v9170_v11 = vpop.permute.xlu1 %1680  ;;  %v1625_v13 = vrot.slane %v8730_v3, 7  ;;  %v2225_v57 = vpack.c.bf16 %v1559_v47, %v1558_v58  ;;  %v1653_v27 = vmul.f32 %v1620_v59, %v8569_v17  ;;  %v2084_v36 = vsel %vm1452_vm5, %v2081_v61, %v2083_v24 }
 0x1b3   :  { %v2192_v37 = vrot.slane %v9163_v45, 7  ;;  %v1712_v32 = vrot.slane %v9170_v11, 2  ;;  %v1623_v38 = vrot.slane %v8703_v56, 7  ;;  %v6982_v56 = vld [vmem:[%s10818_s7 + $0x208] sm:$0xff]   ;;  %v1560_v40 = vmul.f32 %v8773_v51, %v8496_v29  ;;  %v6983_v51 = vld [vmem:[%s10818_s7 + $0x210] sm:$0xff]  }
 0x1b4   :  { %v2087_v5 = vrot.slane %v1653_v27, 1  ;;  %v1684_v19 = vpop.permute.xlu0 %1683  ;;  %v1562_v47 = vmul.f32 %v8657_v6, %v8566_v63  ;;  %v6984_v6 = vld [vmem:[%s10818_s7 + $0x218] sm:$0xff]  }
 0x1b5   :  { %v1713_v14 = vsel %vm1700_vm7, %v1710_v44, %v1712_v32  ;;  %v2193_v9 = vsel %vm861_vm1, %v2190_v46, %v2192_v37  ;;  %v2086_v44 = vsel %vm1452_vm5, %v2083_v24, %v2085_v12  ;;  %v2139_v46 = vsel %vm1153_vm6, %v2136_v8, %v2138_v33 }
 0x1b6   :  { %2891 = vmatmul.mubr.bf16.gmra.mrb[108].mxu1 %v2277_v31  ;;  %v9187_v2 = vmul.f32 %v1713_v14, %v8625_v10  ;;  %v2246_v35 = vpack.c.bf16 %v2193_v9, %v2191_v26  ;;  %v2235_v28 = vpack.c.bf16 %v2086_v44, %v2084_v36  ;;  %v2089_v31 = vrot.slane %v9194_v62, 1  ;;  %v6986_v62 = vld [vmem:[%s10818_s7 + $0x228] sm:$0xff]  }
 0x1b7   :  { %2930 = vmatprep.mubr.bf16.mxu1 %v2226_v7  ;;  %v9196_v43 = vpop.permute.xlu1 %1853  ;;  %v1626_v16 = vsel %vm861_vm1, %v1623_v38, %v1625_v13  ;;  %v1561_v8 = vmul.f32 %v8582_v0, %v8510_v54  ;;  %v1714_v11 = vrot.slane %v1684_v19, 2  ;;  %v1624_v58 = vsel %vm861_vm1, %v1621_v48, %v1623_v38 }
 0x1b8   :  { %v2140_v23 = vrot.slane %v9187_v2, 6  ;;  %3034 = vmatprep.mubr.bf16.mxu0 %v2246_v35  ;;  %v9225_v24 = vmul.f32 %v1626_v16, %v8689_v41  ;;  %v2090_v0 = vsel %vm1452_vm5, %v2087_v5, %v2089_v31  ;;  %v1627_v26 = vrot.slane %v8670_v22, 7  ;;  %v1690_v2 = vpop.permute.xlu0 %1689 }
 0x1b9   :  { %v1629_v9 = vrot.slane %v8788_v53, 7  ;;  %v2234_v18 = vpack.c.bf16 %v1561_v8, %v1560_v40  ;;  %v2088_v35 = vsel %vm1452_vm5, %v2085_v12, %v2087_v5  ;;  %v1715_v22 = vsel %vm1700_vm7, %v1712_v32, %v1714_v11 }
 0x1ba   :  { %v2141_v3 = vsel %vm1153_vm6, %v2138_v33, %v2140_v23  ;;  %v2244_v53 = vpack.c.bf16 %v2090_v0, %v2088_v35  ;;  %v2093_v44 = vrot.slane %v9225_v24, 1  ;;  %v1563_v32 = vmul.f32 %v8795_v25, %v8569_v17  ;;  %v10996_v35 = vld [vmem:[#allocation11_spill] sm:$0xff] }
 0x1bb   :  { %v2245_v42 = vpack.c.bf16 %v2141_v3, %v2139_v46  ;;  %v1630_v27 = vsel %vm861_vm1, %v1627_v26, %v1629_v9  ;;  %v6988_v24 = vld [vmem:[%s10818_s7 + $0x238] sm:$0xff]  }
 0x1bc   :  { %v1775_v61 = vpop.permute.xlu1 %1774 }
 0x1bd   :  { %v1804_v7 = vrot.slane %v1775_v61, 1  ;;  %3035 = vmatmul.mubr.bf16.gmra.mrb[36].mxu0 %v2245_v42  ;;  %v2243_v42 = vpack.c.bf16 %v1563_v32, %v1562_v47  ;;  %v9270_v61 = vmul.f32 %v1630_v27, %v8746_v49  ;;  %v10997_v27 = vld [vmem:[#allocation7_spill] sm:$0xff] }
 0x1be   :  { %2931 = vmatmul.mubr.bf16.vlgmr.msra.gmra.mrb[112].mxu1 %v2225_v57  ;;  %v1628_v57 = vsel %vm861_vm1, %v1625_v13, %v1627_v26 }
 0x1bf   :  { %2938 = vmatprep.mubr.bf16.mxu1 %v2235_v28  ;;  %6589 = vmatpush3.bf16.msra.mxu1 %v6981_v34  ;;  %v1805_v14 = vsel %vm1452_vm5, %v1802_v15, %v1804_v7  ;;  %v1655_v15 = vmul.f32 %v1624_v58, %v8634_v60  ;;  %v1746_v28 = vmul.f32 %v1715_v22, %v8634_v60  ;;  %v6985_v58 = vld [vmem:[%s10818_s7 + $0x220] sm:$0xff]  }
 0x1c0   :  { %6590 = vmatprep.subr.bf16.mxu1 %v10993_v30  ;;  %v1837_v48 = vmul.f32 %v1805_v14, %v8634_v60  ;;  %v9236_v59 = vpop.permute.xlu1 %1777  ;;  %v1657_v16 = vmul.f32 %v1628_v57, %v8698_v1  ;;  %v1565_v22 = vmul.f32 %v10996_v35, %v8634_v60 }
 0x1c1   :  { %v1806_v33 = vrot.slane %v9236_v59, 1  ;;  %v2091_v38 = vrot.slane %v1655_v15, 1  ;;  %v2142_v40 = vrot.slane %v1746_v28, 6 }
 0x1c2   :  { %v2194_v12 = vrot.slane %v1837_v48, 7 }
 0x1c3   :  { %6591 = vmatpush3.bf16.msra.mxu1 %v6982_v56  ;;  %v1807_v34 = vsel %vm1452_vm5, %v1804_v7, %v1806_v33  ;;  %v2094_v25 = vsel %vm1452_vm5, %v2091_v38, %v2093_v44  ;;  %v10994_v56 = vld [vmem:[#allocation17_spill] sm:$0xff] }
 0x1c4   :  { %6592 = vmatprep.subr.bf16.mxu1 %v10993_v30  ;;  %v9255_v36 = vmul.f32 %v1807_v34, %v8689_v41  ;;  %v1633_v5 = vrot.slane %v10994_v56, 7  ;;  %v2195_v19 = vsel %vm861_vm1, %v2192_v37, %v2194_v12  ;;  %v10995_v37 = vld [vmem:[#allocation13_spill] sm:$0xff] }
 0x1c5   :  { %v9263_v46 = vpop.permute.xlu1 %1686  ;;  %v1631_v0 = vrot.slane %v10995_v37, 7 }
 0x1c6   :  { %2939 = vmatmul.mubr.bf16.gmra.mrb[116].mxu1 %v2234_v18  ;;  %v2196_v13 = vrot.slane %v9255_v36, 7  ;;  %v1716_v3 = vrot.slane %v9263_v46, 2  ;;  %v1718_v46 = vrot.slane %v1690_v2, 2 }
 0x1c7   :  { %2946 = vmatprep.mubr.bf16.mxu1 %v2244_v53  ;;  %6593 = vmatpush3.bf16.msra.mxu1 %v6983_v51  ;;  %v2097_v51 = vrot.slane %v9270_v61, 1  ;;  %v1634_v15 = vsel %vm861_vm1, %v1631_v0, %v1633_v5  ;;  %v2143_v53 = vsel %vm1153_vm6, %v2140_v23, %v2142_v40  ;;  %v1632_v34 = vsel %vm861_vm1, %v1629_v9, %v1631_v0  ;;  %v6987_v23 = vld [vmem:[%s10818_s7 + $0x230] sm:$0xff]   ;;  %s7458_s7 = smov 96  }
 0x1c8   :  { %6594 = vmatprep.subr.bf16.mxu1 %v10993_v30  ;;  %v1717_v8 = vsel %vm1700_vm7, %v1714_v11, %v1716_v3  ;;  %v2197_v7 = vsel %vm861_vm1, %v2194_v12, %v2196_v13  ;;  %v2092_v11 = vsel %vm1452_vm5, %v2089_v31, %v2091_v38  ;;  %v2095_v31 = vrot.slane %v1657_v16, 1 }
 0x1c9   :  { %v9287_v14 = vmul.f32 %v1717_v8, %v8689_v41  ;;  %v2255_v45 = vpack.c.bf16 %v2197_v7, %v2195_v19  ;;  %v2253_v26 = vpack.c.bf16 %v2094_v25, %v2092_v11  ;;  %v1564_v12 = vmul.f32 %v10997_v27, %v8625_v10 }
 0x1ca   :  { %v9294_v48 = vpop.permute.xlu1 %1861  ;;  %v2098_v38 = vsel %vm1452_vm5, %v2095_v31, %v2097_v51  ;;  %v1659_v9 = vmul.f32 %v1632_v34, %v8759_v39  ;;  %v2096_v16 = vsel %vm1452_vm5, %v2093_v44, %v2095_v31  ;;  %v10998_v44 = vld [vmem:[#allocation21_spill] sm:$0xff]  ;;  %v1719_v59 = vsel %vm1700_vm7, %v1716_v3, %v1718_v46 }
 0x1cb   :  { %6595 = vmatpush3.bf16.msra.mxu1 %v6984_v6  ;;  %v2144_v18 = vrot.slane %v9287_v14, 6  ;;  %3042 = vmatprep.mubr.bf16.mxu0 %v2255_v45  ;;  %v1660_v6 = vmul.f32 %v1634_v15, %v9070_v55  ;;  %v2262_v25 = vpack.c.bf16 %v2098_v38, %v2096_v16  ;;  %v1566_v7 = vmul.f32 %v10998_v44, %v8689_v41 }
 0x1cc   :  { %6596 = vmatprep.subr.bf16.mxu1 %v10993_v30 }
 0x1cd   :  { %v2145_v47 = vsel %vm1153_vm6, %v2142_v40, %v2144_v18  ;;  %v2101_v56 = vrot.slane %v1660_v6, 1  ;;  %v10999_v40 = vld [vmem:[#allocation42_spill] sm:$0xff] }
 0x1ce   :  { %2947 = vmatmul.mubr.bf16.gmra.mrb[120].mxu1 %v2243_v42  ;;  %v2254_v57 = vpack.c.bf16 %v2145_v47, %v2143_v53  ;;  %v2252_v42 = vpack.c.bf16 %v1565_v22, %v1564_v12  ;;  %v1567_v11 = vmul.f32 %v10999_v40, %v8698_v1  ;;  %v9342_v53 = vpop.permute.xlu0 %1873 }
 0x1cf   :  { %2954 = vmatprep.mubr.bf16.mxu1 %v2253_v26  ;;  %6597 = vmatpush3.bf16.msra.mxu1 %v6985_v58  ;;  %v1781_v32 = vpop.permute.xlu1 %1780  ;;  %v2099_v58 = vrot.slane %v1659_v9, 1  ;;  %v1748_v26 = vmul.f32 %v1719_v59, %v8698_v1 }
 0x1d0   :  { %6598 = vmatprep.subr.bf16.mxu1 %v10993_v30  ;;  %v1808_v28 = vrot.slane %v1781_v32, 1  ;;  %3043 = vmatmul.mubr.bf16.gmra.mrb[40].mxu0 %v2254_v57  ;;  %v11000_v32 = vld [vmem:[#allocation43_spill] sm:$0xff] }
 0x1d1   :  { %v2102_v0 = vsel %vm1452_vm5, %v2099_v58, %v2101_v56  ;;  %v2100_v3 = vsel %vm1452_vm5, %v2097_v51, %v2099_v58  ;;  %v2146_v27 = vrot.slane %v1748_v26, 6  ;;  %v1569_v51 = vmul.f32 %v11000_v32, %v8759_v39 }
 0x1d2   :  { %v1809_v61 = vsel %vm1452_vm5, %v1806_v33, %v1808_v28  ;;  %v2271_v22 = vpack.c.bf16 %v2102_v0, %v2100_v3  ;;  %v1787_v36 = vpop.permute.xlu0 %1786 }
 0x1d3   :  { %6599 = vmatpush3.bf16.msra.mxu1 %v6986_v62  ;;  %v1839_v5 = vmul.f32 %v1809_v61, %v8698_v1  ;;  %v1784_v8 = vpop.permute.xlu1 %1783  ;;  %v2261_v62 = vpack.c.bf16 %v1567_v11, %v1566_v7  ;;  %v1812_v61 = vrot.slane %v1787_v36, 1  ;;  %v1903_v36 = vmul.f32 %v9342_v53, %v8689_v41 }
 0x1d4   :  { %6600 = vmatprep.subr.bf16.mxu1 %v10993_v30  ;;  %v1810_v19 = vrot.slane %v1784_v8, 1  ;;  %v11002_v8 = vld [vmem:[#allocation24_spill] sm:$0xff] }
 0x1d5   :  { %v2198_v45 = vrot.slane %v1839_v5, 7 }
 0x1d6   :  { %2955 = vmatmul.mubr.bf16.gmra.mrb[124].mxu1 %v2252_v42  ;;  %v1811_v33 = vsel %vm1452_vm5, %v1808_v28, %v1810_v19  ;;  %v11001_v28 = vld [vmem:[#allocation10_spill] sm:$0xff]  ;;  %v1813_v44 = vsel %vm1452_vm5, %v1810_v19, %v1812_v61  ;;  %v1699_v59 = vpop.permute.xlu0 %1698 }
 0x1d7   :  { %2962 = vmatprep.mubr.bf16.mxu1 %v2262_v25  ;;  %6601 = vmatpush3.bf16.msra.mxu1 %v6987_v23  ;;  %v1840_v37 = vmul.f32 %v1811_v33, %v8746_v49  ;;  %v2199_v34 = vsel %vm861_vm1, %v2196_v13, %v2198_v45  ;;  %v1568_v23 = vmul.f32 %v11001_v28, %v8746_v49  ;;  %v1724_v19 = vrot.slane %v1699_v59, 2 }
 0x1d8   :  { %6602 = vmatprep.subr.bf16.mxu1 %v10993_v30  ;;  %v1693_v15 = vpop.permute.xlu1 %1692  ;;  %v2147_v13 = vsel %vm1153_vm6, %v2144_v18, %v2146_v27  ;;  %v2280_v25 = vpack.c.bf16 %v2101_v56, %v2101_v56  ;;  %v1841_v14 = vmul.f32 %v1813_v44, %v8759_v39  ;;  %v1896_v56 = vmul.f32 %v9117_v4, %v8468_v52 }
 0x1d9   :  { %v2200_v31 = vrot.slane %v1840_v37, 7  ;;  %v1720_v35 = vrot.slane %v1693_v15, 2  ;;  %v2270_v42 = vpack.c.bf16 %v1569_v51, %v1568_v23  ;;  %v1897_v37 = vmul.f32 %v9143_v21, %v8496_v29 }
 0x1da   :  { %v2202_v33 = vrot.slane %v1841_v14, 7  ;;  %v1898_v29 = vmul.f32 %v9196_v43, %v8510_v54  ;;  %v1900_v54 = vmul.f32 %v9294_v48, %v8569_v17  ;;  %v1901_v43 = vmul.f32 %v9191_v50, %v8625_v10  ;;  %v1894_v53 = vpop.permute.xlu0 %1893 }
 0x1db   :  { %6603 = vmatpush3.bf16.msra.mxu1 %v6988_v24  ;;  %v1721_v47 = vsel %vm1700_vm7, %v1718_v46, %v1720_v35  ;;  %v2201_v57 = vsel %vm861_vm1, %v2198_v45, %v2200_v31  ;;  %v1570_v24 = vmul.f32 %v11002_v8, %v9070_v55 }
 0x1dc   :  { %v1749_v12 = vmul.f32 %v1721_v47, %v8746_v49  ;;  %v2264_v6 = vpack.c.bf16 %v2201_v57, %v2199_v34  ;;  %v2203_v3 = vsel %vm861_vm1, %v2200_v31, %v2202_v33 }
 0x1dd   :  { %v9352_v38 = vpop.permute.xlu1 %1869  ;;  %v2279_v18 = vpack.c.bf16 %v1570_v24, %v1570_v24 }
 0x1de   :  { %2963 = vmatmul.mubr.bf16.gmra.mrb[128].mxu1 %v2261_v62  ;;  %v2148_v2 = vrot.slane %v1749_v12, 6  ;;  %3050 = vmatprep.mubr.bf16.mxu0 %v2264_v6  ;;  %v2229_v62 = vpack.c.bf16 %v1897_v37, %v1896_v56  ;;  %v1899_v12 = vmul.f32 %v9160_v20, %v8566_v63  ;;  %v2247_v20 = vpack.c.bf16 %v1901_v43, %v1900_v54 }
 0x1df   :  { %2970 = vmatprep.mubr.bf16.mxu1 %v2271_v22 }
 0x1e0   :  { %v2149_v46 = vsel %vm1153_vm6, %v2146_v27, %v2148_v2  ;;  %v2238_v28 = vpack.c.bf16 %v1899_v12, %v1898_v29 }
 0x1e1   :  { %v9360_v9 = vpop.permute.xlu1 %1877  ;;  %v2263_v16 = vpack.c.bf16 %v2149_v46, %v2147_v13 }
 0x1e2   :  { %v1904_v10 = vmul.f32 %v9360_v9, %v8698_v1  ;;  %v9415_v1 = vld [vmem:[%s10819_s8] ss:$0 sm:$0xff]  ;;  %s7457_s8 = smov 32  }
 0x1e3   :  { %3051 = vmatmul.mubr.bf16.gmra.mrb[44].mxu0 %v2263_v16 }
 0x1e5   :  { %v1882_v5 = vpop.permute.xlu1 %1881 }
 0x1e6   :  { %2971 = vmatmul.mubr.bf16.gmra.mrb[132].mxu1 %v2270_v42  ;;  %v1905_v17 = vmul.f32 %v1882_v5, %v8746_v49  ;;  %v1908_v42 = vmul.f32 0.0, %v1894_v53 }
 0x1e7   :  { %2978 = vmatprep.mubr.bf16.mxu1 %v2280_v25 }
 0x1e8   :  { %v2265_v50 = vpack.c.bf16 %v1905_v17, %v1904_v10  ;;  %v2283_v16 = vpack.c.bf16 %v1908_v42, %v1908_v42 }
 0x1ea   :  { %v1790_v7 = vpop.permute.xlu1 %1789 }
 0x1eb   :  { %v1814_v58 = vrot.slane %v1790_v7, 1 }
 0x1ed   :  { %v1815_v40 = vsel %vm1452_vm5, %v1812_v61, %v1814_v58  ;;  %v1843_v45 = vmul.f32 0.0, %v1814_v58 }
 0x1ee   :  { %2979 = vmatmul.mubr.bf16.gmra.mrb[136].mxu1 %v2279_v18  ;;  %v1842_v11 = vmul.f32 %v1815_v40, %v9070_v55 }
 0x1ef   :  { %6604 = vmatprep.mubr.msk.bf16.mxu1 %vm7447_vm0, %v10993_v30  ;;  %v1696_v0 = vpop.permute.xlu1 %1695  ;;  %v2206_v22 = vrot.slane %v1843_v45, 7 }
 0x1f0   :  { %v2204_v26 = vrot.slane %v1842_v11, 7  ;;  %v1722_v15 = vrot.slane %v1696_v0, 2 }
 0x1f2   :  { %v1723_v47 = vsel %vm1700_vm7, %v1720_v35, %v1722_v15  ;;  %v1725_v52 = vsel %vm1700_vm7, %v1722_v15, %v1724_v19  ;;  %v2205_v4 = vsel %vm861_vm1, %v2202_v33, %v2204_v26  ;;  %v2207_v35 = vsel %vm861_vm1, %v2204_v26, %v2206_v22 }
 0x1f3   :  { %v1750_v34 = vmul.f32 %v1723_v47, %v8759_v39  ;;  %v1751_v57 = vmul.f32 %v1725_v52, %v9070_v55  ;;  %v2273_v27 = vpack.c.bf16 %v2205_v4, %v2203_v3  ;;  %v2282_v23 = vpack.c.bf16 %v2207_v35, %v2207_v35 }
 0x1f4   :  { %v1886_v46 = vpop.permute.xlu1 %1885 }
 0x1f5   :  { %v2150_v21 = vrot.slane %v1750_v34, 6  ;;  %v2152_v31 = vrot.slane %v1751_v57, 6  ;;  %3058 = vmatprep.mubr.bf16.mxu0 %v2273_v27  ;;  %v1906_v41 = vmul.f32 %v1886_v46, %v8759_v39 }
 0x1f6   :  { %6605 = vmatmul.mubr.bf16.vlgmr.msra.gmra.mrb[140].mxu1 %v2229_v62 }
 0x1f7   :  { %6608 = vmatprep.mubr.msk.bf16.mxu1 %vm7447_vm0, %v10993_v30  ;;  %v2151_v6 = vsel %vm1153_vm6, %v2148_v2, %v2150_v21  ;;  %v2153_v32 = vsel %vm1153_vm6, %v2150_v21, %v2152_v31  ;;  %v2281_v63 = vpack.c.bf16 %v2152_v31, %v2152_v31  ;;  %v1902_v2 = vmul.f32 %v9352_v38, %v8634_v60 }
 0x1f8   :  { %v2272_v51 = vpack.c.bf16 %v2153_v32, %v2151_v6  ;;  %v1890_v48 = vpop.permute.xlu1 %1889 }
 0x1f9   :  { %v2256_v13 = vpack.c.bf16 %v1903_v36, %v1902_v2  ;;  %v1907_v60 = vmul.f32 %v1890_v48, %v9070_v55 }
 0x1fa   :  { %3059 = vmatmul.mubr.bf16.gmra.mrb[48].mxu0 %v2272_v51 }
 0x1fb   :  { %3066 = vmatprep.mubr.bf16.mxu0 %v2282_v23  ;;  %v2274_v38 = vpack.c.bf16 %v1907_v60, %v1906_v41 }
 0x1fe   :  { %6609 = vmatmul.mubr.bf16.gmra.mrb[144].mxu1 %v2238_v28 }
 0x1ff   :  { %6612 = vmatprep.mubr.msk.bf16.mxu1 %vm7447_vm0, %v10993_v30 }
 0x202   :  { %3067 = vmatmul.mubr.bf16.gmra.mrb[52].mxu0 %v2281_v63 }
 0x206   :  { %6613 = vmatmul.mubr.bf16.gmra.mrb[148].mxu1 %v2247_v20 }
 0x207   :  { %6616 = vmatprep.mubr.msk.bf16.mxu1 %vm7447_vm0, %v10993_v30 }
 0x20e   :  { %6617 = vmatmul.mubr.bf16.gmra.mrb[152].mxu1 %v2256_v13 }
 0x20f   :  { %6620 = vmatprep.mubr.msk.bf16.mxu1 %vm7447_vm0, %v10993_v30 }
 0x216   :  { %6621 = vmatmul.mubr.bf16.gmra.mrb[156].mxu1 %v2265_v50 }
 0x217   :  { %6624 = vmatprep.mubr.msk.bf16.mxu1 %vm7447_vm0, %v10993_v30 }
 0x21b   :  { %v6299_v49 = vpop.f32.mrb[56].mxu1 }
 0x21c   :  { %v6300_v9 = vpop.f32.mrb[57].mxu1 }
 0x21d   :  { %v6301_v61 = vadd.f32 %v6300_v9, %v6299_v49  ;;  %v6302_v25 = vpop.f32.mrb[58].mxu1 }
 0x21e   :  { %6625 = vmatmul.mubr.bf16.gmra.mrb[160].mxu1 %v2274_v38  ;;  %v6303_v55 = vpop.f32.mrb[59].mxu1 }
 0x21f   :  { %6628 = vmatprep.mubr.msk.bf16.mxu1 %vm7447_vm0, %v10993_v30  ;;  %v2757_v39 = vadd.f32 %v6301_v61, %v9415_v1  ;;  %v6304_v5 = vadd.f32 %v6303_v55, %v6302_v25 }
 0x221   :  { %v2760_v48 = vadd.f32 %v6304_v5, %v9415_v1 }
 0x225   :  { %v6305_v8 = vpop.f32.mrb[60].mxu1 }
 0x226   :  { %6629 = vmatmul.mubr.bf16.gmra.mrb[164].mxu1 %v2283_v16  ;;  %v6306_v24 = vpop.f32.mrb[61].mxu1 }
 0x227   :  { %v6307_v44 = vadd.f32 %v6306_v24, %v6305_v8  ;;  %v6308_v14 = vpop.f32.mrb[62].mxu1 }
 0x228   :  { %v6309_v30 = vpop.f32.mrb[63].mxu1 }
 0x229   :  { %v2765_v18 = vadd.f32 %v6307_v44, %v9415_v1  ;;  %v6310_v7 = vadd.f32 %v6309_v30, %v6308_v14 }
 0x22b   :  { %v2768_v58 = vadd.f32 %v6310_v7, %v9415_v1 }
 0x22d   :  { %v6311_v59 = vpop.f32.mrb[64].mxu1 }
 0x22e   :  { %v6312_v56 = vpop.f32.mrb[65].mxu1 }
 0x22f   :  { %v6313_v33 = vadd.f32 %v6312_v56, %v6311_v59  ;;  %v6314_v40 = vpop.f32.mrb[66].mxu1 }
 0x230   :  { %v6315_v11 = vpop.f32.mrb[67].mxu1 }
 0x231   :  { %v2773_v45 = vadd.f32 %v6313_v33, %v9415_v1  ;;  %v6316_v19 = vadd.f32 %v6315_v11, %v6314_v40 }
 0x233   :  { %v2776_v37 = vadd.f32 %v6316_v19, %v9415_v1 }
 0x235   :  { %v6317_v0 = vpop.f32.mrb[68].mxu1 }
 0x236   :  { %v6318_v26 = vpop.f32.mrb[69].mxu1 }
 0x237   :  { %v6319_v15 = vadd.f32 %v6318_v26, %v6317_v0  ;;  %v6320_v62 = vpop.f32.mrb[70].mxu1 }
 0x238   :  { %v6321_v3 = vpop.f32.mrb[71].mxu1 }
 0x239   :  { %v2781_v22 = vadd.f32 %v6319_v15, %v9415_v1  ;;  %v6322_v47 = vadd.f32 %v6321_v3, %v6320_v62 }
 0x23b   :  { %v2784_v26 = vadd.f32 %v6322_v47, %v9415_v1 }
 0x23d   :  { %v6323_v52 = vpop.f32.mrb[72].mxu1 }
 0x23e   :  { %v6324_v4 = vpop.f32.mrb[73].mxu1 }
 0x23f   :  { %v6325_v34 = vadd.f32 %v6324_v4, %v6323_v52  ;;  %v6326_v57 = vpop.f32.mrb[74].mxu1 }
 0x240   :  { %v6327_v27 = vpop.f32.mrb[75].mxu1 }
 0x241   :  { %v6328_v29 = vadd.f32 %v6327_v27, %v6326_v57  ;;  %v2789_v57 = vadd.f32 %v6325_v34, %v9415_v1 }
 0x243   :  { %v9424_v21 = vadd.f32 %v6328_v29, %v9415_v1 }
 0x245   :  { %v6329_v31 = vpop.f32.mrb[76].mxu1 }
 0x246   :  { %v6330_v35 = vpop.f32.mrb[77].mxu1 }
 0x247   :  { %v6331_v12 = vadd.f32 %v6330_v35, %v6329_v31  ;;  %v6332_v6 = vpop.f32.mrb[78].mxu1 }
 0x248   :  { %v6333_v32 = vpop.f32.mrb[79].mxu1 }
 0x249   :  { %v9427_v51 = vadd.f32 %v6331_v12, %v9415_v1  ;;  %v6334_v28 = vadd.f32 %v6333_v32, %v6332_v6 }
 0x24b   :  { %v9430_v23 = vadd.f32 %v6334_v28, %v9415_v1 }
 0x24d   :  { %v6335_v54 = vpop.f32.mrb[80].mxu1 }
 0x24e   :  { %v6336_v43 = vpop.f32.mrb[81].mxu1 }
 0x24f   :  { %v6337_v63 = vadd.f32 %v6336_v43, %v6335_v54  ;;  %v6338_v20 = vpop.f32.mrb[82].mxu1 }
 0x250   :  { %v6339_v2 = vpop.f32.mrb[83].mxu1 }
 0x251   :  { %v9433_v36 = vadd.f32 %v6337_v63, %v9415_v1 }
 0x255   :  { %v6357_v13 = vpop.f32.mrb[84].mxu1 }
 0x256   :  { %v6358_v46 = vpop.f32.mrb[85].mxu1 }
 0x257   :  { %v6359_v17 = vadd.f32 %v6358_v46, %v6357_v13  ;;  %v6360_v10 = vpop.f32.mrb[86].mxu1 }
 0x258   :  { %v6361_v50 = vpop.f32.mrb[87].mxu1 }
 0x259   :  { %v9436_v60 = vadd.f32 %v6359_v17, %v2757_v39  ;;  %v6362_v41 = vadd.f32 %v6361_v50, %v6360_v10 }
 0x25b   :  { %v9438_v53 = vadd.f32 %v6362_v41, %v2760_v48 }
 0x25d   :  { %v6363_v38 = vpop.f32.mrb[88].mxu1 }
 0x25e   :  { %v6364_v42 = vpop.f32.mrb[89].mxu1 }
 0x25f   :  { %v6365_v49 = vadd.f32 %v6364_v42, %v6363_v38  ;;  %v6366_v9 = vpop.f32.mrb[90].mxu1 }
 0x260   :  { %v6367_v16 = vpop.f32.mrb[91].mxu1 }
 0x261   :  { %v9440_v61 = vadd.f32 %v6365_v49, %v2765_v18  ;;  %v6368_v25 = vadd.f32 %v6367_v16, %v6366_v9 }
 0x263   :  { %v9442_v55 = vadd.f32 %v6368_v25, %v2768_v58 }
 0x265   :  { %v6369_v8 = vpop.f32.mrb[92].mxu1 }
 0x266   :  { %v6370_v24 = vpop.f32.mrb[93].mxu1 }
 0x267   :  { %v6371_v44 = vadd.f32 %v6370_v24, %v6369_v8  ;;  %v6372_v14 = vpop.f32.mrb[94].mxu1 }
 0x268   :  { %v6373_v5 = vpop.f32.mrb[95].mxu1 }
 0x269   :  { %v9444_v39 = vadd.f32 %v6371_v44, %v2773_v45  ;;  %v6374_v30 = vadd.f32 %v6373_v5, %v6372_v14 }
 0x26b   :  { %v9446_v7 = vadd.f32 %v6374_v30, %v2776_v37 }
 0x26e   :  { %v6375_v59 = vpop.f32.mrb[96].mxu1 }
 0x26f   :  { %v6376_v56 = vpop.f32.mrb[97].mxu1  ;;  %v6473_v33 = vpop.f32.mrb[28].mxu0 }
 0x270   :  { %v6377_v40 = vadd.f32 %v6376_v56, %v6375_v59  ;;  %v6378_v11 = vpop.f32.mrb[98].mxu1  ;;  %v6474_v18 = vpop.f32.mrb[29].mxu0 }
 0x271   :  { %v6379_v19 = vpop.f32.mrb[99].mxu1  ;;  %v6475_v0 = vadd.f32 %v6474_v18, %v6473_v33  ;;  %v6476_v58 = vpop.f32.mrb[30].mxu0 }
 0x272   :  { %v9449_v15 = vadd.f32 %v6377_v40, %v2781_v22  ;;  %v6380_v62 = vadd.f32 %v6379_v19, %v6378_v11  ;;  %v6477_v3 = vpop.f32.mrb[31].mxu0 }
 0x273   :  { %v6478_v45 = vadd.f32 %v6477_v3, %v6476_v58 }
 0x274   :  { %v9451_v52 = vadd.f32 %v6380_v62, %v2784_v26 }
 0x279   :  { %v6381_v37 = vpop.f32.mrb[100].mxu1 }
 0x27a   :  { %v6382_v4 = vpop.f32.mrb[101].mxu1 }
 0x27b   :  { %v6383_v27 = vadd.f32 %v6382_v4, %v6381_v37  ;;  %v6384_v29 = vpop.f32.mrb[102].mxu1 }
 0x27c   :  { %v6385_v31 = vpop.f32.mrb[103].mxu1 }
 0x27d   :  { %v9454_v35 = vadd.f32 %v6383_v27, %v2789_v57  ;;  %v6386_v12 = vadd.f32 %v6385_v31, %v6384_v29 }
 0x27f   :  { %v9457_v6 = vadd.f32 %v6386_v12, %v9424_v21  ;;  %v6479_v22 = vpop.f32.mrb[32].mxu0 }
 0x280   :  { %v6480_v32 = vpop.f32.mrb[33].mxu0 }
 0x281   :  { %v6387_v47 = vpop.f32.mrb[104].mxu1  ;;  %v6481_v54 = vadd.f32 %v6480_v32, %v6479_v22  ;;  %v6482_v43 = vpop.f32.mrb[34].mxu0 }
 0x282   :  { %v6388_v28 = vpop.f32.mrb[105].mxu1  ;;  %v6483_v2 = vpop.f32.mrb[35].mxu0 }
 0x283   :  { %v6389_v63 = vadd.f32 %v6388_v28, %v6387_v47  ;;  %v6390_v20 = vpop.f32.mrb[106].mxu1  ;;  %v6484_v1 = vadd.f32 %v6483_v2, %v6482_v43 }
 0x284   :  { %v6391_v13 = vpop.f32.mrb[107].mxu1 }
 0x285   :  { %v9460_v34 = vadd.f32 %v6389_v63, %v9427_v51  ;;  %v6392_v46 = vadd.f32 %v6391_v13, %v6390_v20 }
 0x287   :  { %v9463_v17 = vadd.f32 %v6392_v46, %v9430_v23 }
 0x289   :  { %v6393_v21 = vpop.f32.mrb[108].mxu1 }
 0x28a   :  { %v6394_v10 = vpop.f32.mrb[109].mxu1 }
 0x28b   :  { %v6395_v50 = vadd.f32 %v6394_v10, %v6393_v21  ;;  %v6396_v48 = vpop.f32.mrb[110].mxu1 }
 0x28c   :  { %v6397_v41 = vpop.f32.mrb[111].mxu1 }
 0x28d   :  { %v9466_v38 = vadd.f32 %v6395_v50, %v9433_v36 }
 0x290   :  { %v6485_v25 = vpop.f32.mrb[36].mxu0 }
 0x291   :  { %v6415_v42 = vpop.f32.mrb[112].mxu1  ;;  %v6486_v51 = vpop.f32.mrb[37].mxu0 }
 0x292   :  { %v6416_v49 = vpop.f32.mrb[113].mxu1  ;;  %v6487_v23 = vadd.f32 %v6486_v51, %v6485_v25  ;;  %v6488_v14 = vpop.f32.mrb[38].mxu0 }
 0x293   :  { %v6417_v9 = vadd.f32 %v6416_v49, %v6415_v42  ;;  %v6418_v16 = vpop.f32.mrb[114].mxu1  ;;  %v6489_v5 = vpop.f32.mrb[39].mxu0 }
 0x294   :  { %v6419_v8 = vpop.f32.mrb[115].mxu1  ;;  %v6490_v59 = vadd.f32 %v6489_v5, %v6488_v14 }
 0x295   :  { %v2933_v24 = vadd.f32 %v6417_v9, %v9436_v60  ;;  %v6420_v44 = vadd.f32 %v6419_v8, %v6418_v16 }
 0x297   :  { %v2936_v30 = vadd.f32 %v6420_v44, %v9438_v53  ;;  %v9470_v56 = vadd.f32 %v6475_v0, %v2933_v24 }
 0x299   :  { %v6421_v36 = vpop.f32.mrb[116].mxu1  ;;  %v9472_v33 = vadd.f32 %v6478_v45, %v2936_v30 }
 0x29a   :  { %v6422_v40 = vpop.f32.mrb[117].mxu1 }
 0x29b   :  { %v6423_v11 = vadd.f32 %v6422_v40, %v6421_v36  ;;  %v6424_v18 = vpop.f32.mrb[118].mxu1 }
 0x29c   :  { %v6425_v19 = vpop.f32.mrb[119].mxu1 }
 0x29d   :  { %v2941_v58 = vadd.f32 %v6423_v11, %v9440_v61  ;;  %v6426_v26 = vadd.f32 %v6425_v19, %v6424_v18 }
 0x29f   :  { %v2944_v60 = vadd.f32 %v6426_v26, %v9442_v55  ;;  %v9476_v62 = vadd.f32 %v6481_v54, %v2941_v58 }
 0x2a1   :  { %v6427_v3 = vpop.f32.mrb[120].mxu1  ;;  %v9478_v37 = vadd.f32 %v6484_v1, %v2944_v60 }
 0x2a2   :  { %v6428_v53 = vpop.f32.mrb[121].mxu1 }
 0x2a3   :  { %v6429_v0 = vadd.f32 %v6428_v53, %v6427_v3  ;;  %v6430_v4 = vpop.f32.mrb[122].mxu1  ;;  %v6491_v29 = vpop.f32.mrb[40].mxu0 }
 0x2a4   :  { %v6431_v57 = vpop.f32.mrb[123].mxu1  ;;  %v6492_v12 = vpop.f32.mrb[41].mxu0 }
 0x2a5   :  { %v2949_v45 = vadd.f32 %v6429_v0, %v9444_v39  ;;  %v6432_v27 = vadd.f32 %v6431_v57, %v6430_v4  ;;  %v6493_v22 = vadd.f32 %v6492_v12, %v6491_v29  ;;  %v6494_v55 = vpop.f32.mrb[42].mxu0 }
 0x2a6   :  { %v6495_v32 = vpop.f32.mrb[43].mxu0 }
 0x2a7   :  { %v2952_v31 = vadd.f32 %v6432_v27, %v9446_v7  ;;  %v9482_v61 = vadd.f32 %v6487_v23, %v2949_v45  ;;  %v6496_v43 = vadd.f32 %v6495_v32, %v6494_v55 }
 0x2a9   :  { %v6433_v47 = vpop.f32.mrb[124].mxu1  ;;  %v9484_v28 = vadd.f32 %v6490_v59, %v2952_v31 }
 0x2aa   :  { %v6434_v54 = vpop.f32.mrb[125].mxu1 }
 0x2ab   :  { %v6435_v63 = vadd.f32 %v6434_v54, %v6433_v47  ;;  %v6436_v20 = vpop.f32.mrb[126].mxu1 }
 0x2ac   :  { %v6437_v2 = vpop.f32.mrb[127].mxu1 }
 0x2ad   :  { %v2957_v39 = vadd.f32 %v6435_v63, %v9449_v15  ;;  %v6438_v13 = vadd.f32 %v6437_v2, %v6436_v20 }
 0x2af   :  { %v2960_v1 = vadd.f32 %v6438_v13, %v9451_v52  ;;  %v9488_v7 = vadd.f32 %v6493_v22, %v2957_v39 }
 0x2b1   :  { %v6439_v46 = vpop.f32.mrb[128].mxu1  ;;  %v9490_v21 = vadd.f32 %v6496_v43, %v2960_v1 }
 0x2b2   :  { %v6440_v10 = vpop.f32.mrb[129].mxu1 }
 0x2b3   :  { %v6441_v50 = vadd.f32 %v6440_v10, %v6439_v46  ;;  %v6442_v48 = vpop.f32.mrb[130].mxu1 }
 0x2b4   :  { %v6443_v41 = vpop.f32.mrb[131].mxu1 }
 0x2b5   :  { %v2965_v42 = vadd.f32 %v6441_v50, %v9454_v35  ;;  %v6444_v49 = vadd.f32 %v6443_v41, %v6442_v48 }
 0x2b6   :  { %v6497_v25 = vpop.f32.mrb[44].mxu0 }
 0x2b7   :  { %v2968_v9 = vadd.f32 %v6444_v49, %v9457_v6  ;;  %v6498_v8 = vpop.f32.mrb[45].mxu0 }
 0x2b8   :  { %v6499_v24 = vadd.f32 %v6498_v8, %v6497_v25  ;;  %v6500_v44 = vpop.f32.mrb[46].mxu0 }
 0x2b9   :  { %v6445_v16 = vpop.f32.mrb[132].mxu1  ;;  %v6501_v14 = vpop.f32.mrb[47].mxu0 }
 0x2ba   :  { %v6446_v15 = vpop.f32.mrb[133].mxu1  ;;  %v6502_v59 = vadd.f32 %v6501_v14, %v6500_v44  ;;  %v9495_v36 = vadd.f32 %v6499_v24, %v2965_v42 }
 0x2bb   :  { %v6447_v51 = vadd.f32 %v6446_v15, %v6445_v16  ;;  %v6448_v52 = vpop.f32.mrb[134].mxu1 }
 0x2bc   :  { %v6449_v23 = vpop.f32.mrb[135].mxu1  ;;  %v9498_v40 = vadd.f32 %v6502_v59, %v2968_v9 }
 0x2bd   :  { %v2973_v5 = vadd.f32 %v6447_v51, %v9460_v34  ;;  %v6450_v30 = vadd.f32 %v6449_v23, %v6448_v52  ;;  %v11003_v51 = vlaneseq }
 0x2bf   :  { %v2976_v35 = vadd.f32 %v6450_v30, %v9463_v17  ;;  %v9514_v52 = vand.u32 127, %v11003_v51 }
 0x2c1   :  { %v6451_v6 = vpop.f32.mrb[136].mxu1  ;;  %vm927_vm8 = vcmp.lt.s32.totalorder %v9514_v52, 96  ;;  %v901_v52 = vld [vmem:[%s10814_s3 + $0x10] sm:$0xff] }
 0x2c2   :  { %v6452_v11 = vpop.f32.mrb[137].mxu1 }
 0x2c3   :  { %v6453_v18 = vadd.f32 %v6452_v11, %v6451_v6  ;;  %v6454_v19 = vpop.f32.mrb[138].mxu1 }
 0x2c4   :  { %v6455_v58 = vpop.f32.mrb[139].mxu1 }
 0x2c5   :  { %v2981_v26 = vadd.f32 %v6453_v18, %v9466_v38 }
 0x2c9   :  { %v3108_v60 = vpop.f32.mrb[140].mxu1 }
 0x2ca   :  { %v3109_v3 = vadd.f32 %v3108_v60, %v9470_v56  ;;  %v6606_v53 = vpop.f32.mrb[141].mxu1 }
 0x2cb   :  { %v3111_v34 = vpop.f32.mrb[142].mxu1 }
 0x2cc   :  { %v5929_v0 = vmul.f32 -1.442695, %v3109_v3  ;;  %v3112_v4 = vadd.f32 %v3111_v34, %v9472_v33  ;;  %v6607_v57 = vpop.f32.mrb[143].mxu1 }
 0x2cd   :  { %v6503_v45 = vpop.f32.mrb[48].mxu0 }
 0x2ce   :  { %7299 = vpow2.f32 %v5929_v0  ;;  %v5930_v17 = vmul.f32 -1.442695, %v3112_v4  ;;  %v6504_v29 = vpop.f32.mrb[49].mxu0 }
 0x2cf   :  { %v6505_v22 = vadd.f32 %v6504_v29, %v6503_v45  ;;  %v6506_v38 = vpop.f32.mrb[50].mxu0 }
 0x2d0   :  { %7301 = vpow2.f32 %v5930_v17  ;;  %v6507_v47 = vpop.f32.mrb[51].mxu0 }
 0x2d1   :  { %v3116_v27 = vpop.f32.mrb[144].mxu1  ;;  %v6508_v43 = vadd.f32 %v6507_v47, %v6506_v38  ;;  %v9505_v33 = vadd.f32 %v6505_v22, %v2973_v5 }
 0x2d2   :  { %v3117_v31 = vadd.f32 %v3116_v27, %v9476_v62  ;;  %v6610_v12 = vpop.f32.mrb[145].mxu1 }
 0x2d3   :  { %v3119_v55 = vpop.f32.mrb[146].mxu1  ;;  %v9507_v20 = vadd.f32 %v6508_v43, %v2976_v35 }
 0x2d4   :  { %v5931_v56 = vmul.f32 -1.442695, %v3117_v31  ;;  %v3120_v32 = vadd.f32 %v3119_v55, %v9478_v37  ;;  %v6611_v54 = vpop.f32.mrb[147].mxu1 }
 0x2d5   :  { %v6509_v39 = vpop.f32.mrb[52].mxu0 }
 0x2d6   :  { %7303 = vpow2.f32 %v5931_v56  ;;  %v5932_v63 = vmul.f32 -1.442695, %v3120_v32  ;;  %v6510_v1 = vpop.f32.mrb[53].mxu0 }
 0x2d7   :  { %v6511_v37 = vadd.f32 %v6510_v1, %v6509_v39  ;;  %v6512_v48 = vpop.f32.mrb[54].mxu0 }
 0x2d8   :  { %v7300_v2 = vpop.eup %7299  ;;  %7305 = vpow2.f32 %v5932_v63  ;;  %v6513_v49 = vpop.f32.mrb[55].mxu0 }
 0x2d9   :  { %v3201_v62 = vadd.f32 1.0, %v7300_v2  ;;  %v3124_v13 = vpop.f32.mrb[148].mxu1  ;;  %7307 = vtanh.f32 %v3109_v3  ;;  %v9511_v15 = vadd.f32 %v6511_v37, %v2981_v26 }
 0x2da   :  { %v7302_v46 = vpop.eup %7301  ;;  %v3125_v10 = vadd.f32 %v3124_v13, %v9482_v61  ;;  %v6614_v50 = vpop.f32.mrb[149].mxu1 }
 0x2db   :  { %7309 = vrcp.f32 %v3201_v62  ;;  %v3202_v41 = vadd.f32 1.0, %v7302_v46  ;;  %v3127_v42 = vpop.f32.mrb[150].mxu1 }
 0x2dc   :  { %7311 = vtanh.f32 %v3112_v4  ;;  %v5933_v9 = vmul.f32 -1.442695, %v3125_v10  ;;  %v3128_v16 = vadd.f32 %v3127_v42, %v9484_v28  ;;  %v6615_v25 = vpop.f32.mrb[151].mxu1 }
 0x2dd   :  { %7313 = vrcp.f32 %v3202_v41 }
 0x2de   :  { %7315 = vpow2.f32 %v5933_v9  ;;  %v5934_v8 = vmul.f32 -1.442695, %v3128_v16 }
 0x2e0   :  { %v7304_v61 = vpop.eup %7303  ;;  %7317 = vpow2.f32 %v5934_v8 }
 0x2e1   :  { %v3203_v24 = vadd.f32 1.0, %v7304_v61  ;;  %v3132_v44 = vpop.f32.mrb[152].mxu1  ;;  %7319 = vtanh.f32 %v3117_v31 }
 0x2e2   :  { %v7306_v23 = vpop.eup %7305  ;;  %v3133_v14 = vadd.f32 %v3132_v44, %v9488_v7  ;;  %v6618_v5 = vpop.f32.mrb[153].mxu1 }
 0x2e3   :  { %7321 = vrcp.f32 %v3203_v24  ;;  %v3204_v28 = vadd.f32 1.0, %v7306_v23  ;;  %v3135_v30 = vpop.f32.mrb[154].mxu1  ;;  %v7308_v59 = vpop.eup %7307 }
 0x2e4   :  { %7323 = vtanh.f32 %v3120_v32  ;;  %v5935_v35 = vmul.f32 -1.442695, %v3133_v14  ;;  %v3136_v6 = vadd.f32 %v3135_v30, %v9490_v21  ;;  %v6619_v11 = vpop.f32.mrb[155].mxu1 }
 0x2e5   :  { %v7310_v18 = vpop.eup %7309  ;;  %7325 = vrcp.f32 %v3204_v28 }
 0x2e6   :  { %v7312_v19 = vpop.eup %7311  ;;  %7327 = vpow2.f32 %v5935_v35  ;;  %v5936_v58 = vmul.f32 -1.442695, %v3136_v6  ;;  %v9521_v7 = vsel %vm927_vm8, %v7310_v18, %v7308_v59 }
 0x2e7   :  { %v7314_v26 = vpop.eup %7313 }
 0x2e8   :  { %v7316_v60 = vpop.eup %7315  ;;  %7329 = vpow2.f32 %v5936_v58  ;;  %v9525_v3 = vsel %vm927_vm8, %v7314_v26, %v7312_v19 }
 0x2e9   :  { %v3205_v53 = vadd.f32 1.0, %v7316_v60  ;;  %v3140_v34 = vpop.f32.mrb[156].mxu1  ;;  %3346 = vrot.lane.b32.xlu1 %v9525_v3, %s7457_s8  ;;  %7331 = vtanh.f32 %v3125_v10  ;;  %v907_v60 = vld [vmem:[%s10814_s3 + $0x40] sm:$0xff] }
 0x2ea   :  { %v7318_v21 = vpop.eup %7317  ;;  %v3141_v0 = vadd.f32 %v3140_v34, %v9495_v36  ;;  %v6622_v4 = vpop.f32.mrb[157].mxu1 }
 0x2eb   :  { %7333 = vrcp.f32 %v3205_v53  ;;  %v3206_v57 = vadd.f32 1.0, %v7318_v21  ;;  %v3143_v17 = vpop.f32.mrb[158].mxu1  ;;  %v7320_v45 = vpop.eup %7319  ;;  %v906_v21 = vld [vmem:[%s10814_s3 + $0x38] sm:$0xff] }
 0x2ec   :  { %7335 = vtanh.f32 %v3128_v16  ;;  %v5937_v27 = vmul.f32 -1.442695, %v3141_v0  ;;  %v3144_v29 = vadd.f32 %v3143_v17, %v9498_v40  ;;  %v6623_v31 = vpop.f32.mrb[159].mxu1 }
 0x2ed   :  { %v7322_v12 = vpop.eup %7321  ;;  %7337 = vrcp.f32 %v3206_v57 }
 0x2ee   :  { %v7324_v22 = vpop.eup %7323  ;;  %7339 = vpow2.f32 %v5937_v27  ;;  %v5938_v38 = vmul.f32 -1.442695, %v3144_v29  ;;  %v9533_v55 = vsel %vm927_vm8, %v7322_v12, %v7320_v45 }
 0x2ef   :  { %v7326_v36 = vpop.eup %7325 }
 0x2f0   :  { %v7328_v47 = vpop.eup %7327  ;;  %7341 = vpow2.f32 %v5938_v38  ;;  %v9537_v56 = vsel %vm927_vm8, %v7326_v36, %v7324_v22 }
 0x2f1   :  { %v3207_v32 = vadd.f32 1.0, %v7328_v47  ;;  %v3148_v54 = vpop.f32.mrb[160].mxu1  ;;  %7343 = vtanh.f32 %v3133_v14 }
 0x2f2   :  { %v7330_v40 = vpop.eup %7329  ;;  %v3149_v43 = vadd.f32 %v3148_v54, %v9505_v33  ;;  %v6626_v63 = vpop.f32.mrb[161].mxu1 }
 0x2f3   :  { %7345 = vrcp.f32 %v3207_v32  ;;  %v3208_v2 = vadd.f32 1.0, %v7330_v40  ;;  %v3151_v39 = vpop.f32.mrb[162].mxu1  ;;  %v7332_v62 = vpop.eup %7331  ;;  %v908_v63 = vld [vmem:[%s10814_s3 + $0x48] sm:$0xff] }
 0x2f4   :  { %7347 = vtanh.f32 %v3136_v6  ;;  %v5939_v13 = vmul.f32 -1.442695, %v3149_v43  ;;  %v3152_v1 = vadd.f32 %v3151_v39, %v9507_v20  ;;  %v6627_v46 = vpop.f32.mrb[163].mxu1  ;;  %v900_v6 = vld [vmem:[%s10814_s3 + $0x8] sm:$0xff] }
 0x2f5   :  { %v7334_v10 = vpop.eup %7333  ;;  %7349 = vrcp.f32 %v3208_v2 }
 0x2f6   :  { %v7336_v50 = vpop.eup %7335  ;;  %7351 = vpow2.f32 %v5939_v13  ;;  %v5940_v37 = vmul.f32 -1.442695, %v3152_v1  ;;  %v9543_v48 = vsel %vm927_vm8, %v7334_v10, %v7332_v62 }
 0x2f7   :  { %v7338_v33 = vpop.eup %7337 }
 0x2f8   :  { %v7340_v41 = vpop.eup %7339  ;;  %7353 = vpow2.f32 %v5940_v37  ;;  %v9547_v42 = vsel %vm927_vm8, %v7338_v33, %v7336_v50 }
 0x2f9   :  { %v3209_v49 = vadd.f32 1.0, %v7340_v41  ;;  %v3156_v9 = vpop.f32.mrb[164].mxu1  ;;  %7355 = vtanh.f32 %v3141_v0 }
 0x2fa   :  { %v7342_v20 = vpop.eup %7341  ;;  %v3157_v16 = vadd.f32 %v3156_v9, %v9511_v15  ;;  %v6630_v25 = vpop.f32.mrb[165].mxu1 }
 0x2fb   :  { %7357 = vrcp.f32 %v3209_v49  ;;  %v3210_v8 = vadd.f32 1.0, %v7342_v20  ;;  %v3159_v51 = vpop.f32.mrb[166].mxu1  ;;  %v7344_v61 = vpop.eup %7343 }
 0x2fc   :  { %7359 = vtanh.f32 %v3144_v29  ;;  %v5941_v24 = vmul.f32 -1.442695, %v3157_v16  ;;  %v6631_v44 = vpop.f32.mrb[167].mxu1 }
 0x2fd   :  { %v7346_v23 = vpop.eup %7345  ;;  %7361 = vrcp.f32 %v3210_v8  ;;  %v902_v44 = vld [vmem:[%s10814_s3 + $0x18] sm:$0xff] }
 0x2fe   :  { %v7348_v14 = vpop.eup %7347  ;;  %7363 = vpow2.f32 %v5941_v24  ;;  %v9552_v5 = vsel %vm927_vm8, %v7346_v23, %v7344_v61  ;;  %v909_v24 = vld [vmem:[%s10814_s3 + $0x50] sm:$0xff]  ;;  %v6989_v23 = vld [vmem:[%s10820_s9 + $0x100] ss:$8 sps:$4 sm:$0xff]  }
 0x2ff   :  { %v7350_v28 = vpop.eup %7349  ;;  %7365 = vtanh.f32 %v3149_v43 }
 0x300   :  { %v7352_v30 = vpop.eup %7351  ;;  %v9556_v15 = vsel %vm927_vm8, %v7350_v28, %v7348_v14  ;;  %v6991_v14 = vld [vmem:[%s10820_s9 + $0x104] ss:$8 sps:$4 sm:$0xff]   ;;  %v6994_v28 = vld [vmem:[%s10820_s9 + $0x114] ss:$8 sps:$4 sm:$0xff]  }
 0x301   :  { %v3211_v59 = vadd.f32 1.0, %v7352_v30  ;;  %3358 = vrot.lane.b32.xlu1 %v9556_v15, %s7457_s8  ;;  %5318 = vmatprep.subr.bf16.mxu0 %v6991_v14  ;;  %v6992_v30 = vld [vmem:[%s10820_s9 + $0x110] ss:$8 sps:$4 sm:$0xff]  }
 0x302   :  { %v7354_v35 = vpop.eup %7353  ;;  %5319 = vmatpush1.bf16.msra.mxu0 %v6989_v23 }
 0x303   :  { %7367 = vrcp.f32 %v3211_v59  ;;  %v3212_v11 = vadd.f32 1.0, %v7354_v35  ;;  %v7356_v18 = vpop.eup %7355  ;;  %5320 = vmatprep.subr.bf16.mxu0 %v6994_v28  ;;  %v6997_v59 = vld [vmem:[%s10820_s9 + $0x124] ss:$8 sps:$4 sm:$0xff]   ;;  %v6995_v35 = vld [vmem:[%s10820_s9 + $0x120] ss:$8 sps:$4 sm:$0xff]  }
 0x304   :  { %7369 = vtanh.f32 %v3152_v1 }
 0x305   :  { %v7358_v19 = vpop.eup %7357  ;;  %7371 = vrcp.f32 %v3212_v11  ;;  %3281 = vrot.lane.b32.xlu1 %v900_v6, %s7457_s8  ;;  %v7000_v6 = vld [vmem:[%s10820_s9 + $0x134] ss:$8 sps:$4 sm:$0xff]   ;;  %v6998_v11 = vld [vmem:[%s10820_s9 + $0x130] ss:$8 sps:$4 sm:$0xff]  }
 0x306   :  { %v7360_v58 = vpop.eup %7359  ;;  %v9566_v26 = vsel %vm927_vm8, %v7358_v19, %v7356_v18  ;;  %7373 = vtanh.f32 %v3157_v16  ;;  %5321 = vmatpush1.bf16.msra.mxu0 %v6992_v30  ;;  %v7003_v18 = vld [vmem:[%s10820_s9 + $0x144] ss:$8 sps:$4 sm:$0xff]   ;;  %v7001_v19 = vld [vmem:[%s10820_s9 + $0x140] ss:$8 sps:$4 sm:$0xff]  }
 0x307   :  { %v7362_v53 = vpop.eup %7361  ;;  %3360 = vrot.lane.b32.xlu0 %v9566_v26, %s7457_s8  ;;  %5322 = vmatprep.subr.bf16.mxu0 %v6997_v59 }
 0x308   :  { %v7364_v34 = vpop.eup %7363  ;;  %v9578_v0 = vsel %vm927_vm8, %v7362_v53, %v7360_v58  ;;  %v7006_v58 = vld [vmem:[%s10820_s9 + $0x154] ss:$8 sps:$4 sm:$0xff]   ;;  %v7009_v53 = vld [vmem:[%s10820_s9 + $0x164] ss:$8 sps:$4 sm:$0xff]  }
 0x309   :  { %v3213_v4 = vadd.f32 1.0, %v7364_v34  ;;  %3295 = vrot.lane.b32.xlu1 %v907_v60, %s7457_s8  ;;  %v7366_v57 = vpop.eup %7365  ;;  %v7004_v60 = vld [vmem:[%s10820_s9 + $0x150] ss:$8 sps:$4 sm:$0xff]   ;;  %v7007_v34 = vld [vmem:[%s10820_s9 + $0x160] ss:$8 sps:$4 sm:$0xff]  }
 0x30a   :  { %5323 = vmatpush1.bf16.msra.mxu0 %v6995_v35 }
 0x30b   :  { %7375 = vrcp.f32 %v3213_v4  ;;  %3293 = vrot.lane.b32.xlu0 %v906_v21, %s7457_s8  ;;  %5324 = vmatprep.subr.bf16.mxu0 %v7000_v6  ;;  %v7012_v21 = vld [vmem:[%s10820_s9 + $0x174] ss:$8 sps:$4 sm:$0xff]   ;;  %v7010_v4 = vld [vmem:[%s10820_s9 + $0x170] ss:$8 sps:$4 sm:$0xff]  }
 0x30c   :  { %v7036_v6 = vld [vmem:[%s10820_s9 + $0x1f4] ss:$8 sps:$4 sm:$0xff]  }
 0x30d   :  { %v7368_v17 = vpop.eup %7367 }
 0x30e   :  { %v7370_v45 = vpop.eup %7369  ;;  %v9584_v27 = vsel %vm927_vm8, %v7368_v17, %v7366_v57  ;;  %5325 = vmatpush1.bf16.msra.mxu0 %v6998_v11  ;;  %v7015_v57 = vld [vmem:[%s10820_s9 + $0x184] ss:$8 sps:$4 sm:$0xff]   ;;  %v7013_v17 = vld [vmem:[%s10820_s9 + $0x180] ss:$8 sps:$4 sm:$0xff]  }
 0x30f   :  { %v7372_v29 = vpop.eup %7371  ;;  %5326 = vmatprep.subr.bf16.mxu0 %v7003_v18 }
 0x310   :  { %v9588_v31 = vsel %vm927_vm8, %v7372_v29, %v7370_v45  ;;  %v7374_v12 = vpop.eup %7373  ;;  %v7018_v45 = vld [vmem:[%s10820_s9 + $0x194] ss:$8 sps:$4 sm:$0xff]   ;;  %v7016_v29 = vld [vmem:[%s10820_s9 + $0x190] ss:$8 sps:$4 sm:$0xff]  }
 0x312   :  { %5327 = vmatpush1.bf16.msra.mxu0 %v7001_v19 }
 0x313   :  { %5328 = vmatprep.subr.bf16.mxu0 %v7006_v58 }
 0x315   :  { %v7376_v22 = vpop.eup %7375 }
 0x316   :  { %v9592_v38 = vsel %vm927_vm8, %v7376_v22, %v7374_v12  ;;  %5329 = vmatpush1.bf16.msra.mxu0 %v7004_v60  ;;  %v7019_v22 = vld [vmem:[%s10820_s9 + $0x1a0] ss:$8 sps:$4 sm:$0xff]  }
 0x317   :  { %5330 = vmatprep.subr.bf16.mxu0 %v7009_v53 }
 0x31a   :  { %5331 = vmatpush1.bf16.msra.mxu0 %v7007_v34 }
 0x31b   :  { %5332 = vmatprep.subr.bf16.mxu0 %v7012_v21 }
 0x31e   :  { %5333 = vmatpush1.bf16.msra.mxu0 %v7010_v4 }
 0x31f   :  { %5334 = vmatprep.subr.bf16.mxu0 %v7015_v57 }
 0x322   :  { %5335 = vmatpush1.bf16.msra.mxu0 %v7013_v17 }
 0x323   :  { %5336 = vmatprep.subr.bf16.mxu0 %v7018_v45 }
 0x326   :  { %5337 = vmatpush1.bf16.msra.mxu0 %v7016_v29 }
 0x35b   :  { %v3347_v36 = vpop.permute.xlu1 %3346 }
 0x35c   :  { %v3384_v47 = vmul.f32 %v3347_v36, %v9525_v3  ;;  %v7021_v36 = vld [vmem:[%s10820_s9 + $0x1a4] ss:$8 sps:$4 sm:$0xff]  }
 0x35d   :  { %5338 = vmatprep.subr.bf16.mxu0 %v7021_v36  ;;  %v7039_v36 = vld [vmem:[%s10820_s9 + $0x204] ss:$8 sps:$4 sm:$0xff]  }
 0x35e   :  { %3411 = vrot.lane.b32.xlu0 %v3384_v47, %s7457_s8  ;;  %v7024_v47 = vld [vmem:[%s10820_s9 + $0x1b4] ss:$8 sps:$4 sm:$0xff]   ;;  %5339 = vmatpush1.bf16.msra.mxu0 %v7019_v22  ;;  %v903_v22 = vld [vmem:[%s10814_s3 + $0x20] sm:$0xff] }
 0x35f   :  { %5340 = vmatprep.subr.bf16.mxu0 %v7024_v47 }
 0x373   :  { %v3359_v32 = vpop.permute.xlu1 %3358 }
 0x374   :  { %v3390_v54 = vmul.f32 %v3359_v32, %v9556_v15 }
 0x376   :  { %3423 = vrot.lane.b32.xlu1 %v3390_v54, %s7457_s8  ;;  %v7022_v54 = vld [vmem:[%s10820_s9 + $0x1b0] ss:$8 sps:$4 sm:$0xff]  }
 0x377   :  { %v3282_v2 = vpop.permute.xlu1 %3281  ;;  %5341 = vmatpush1.bf16.msra.mxu0 %v7022_v54 }
 0x378   :  { %v3319_v1 = vmul.f32 %v3282_v2, %v9525_v3  ;;  %v7025_v2 = vld [vmem:[%s10820_s9 + $0x1c0] ss:$8 sps:$4 sm:$0xff]  }
 0x379   :  { %v3361_v40 = vpop.permute.xlu0 %3360 }
 0x37a   :  { %v3391_v43 = vmul.f32 %v3361_v40, %v9566_v26  ;;  %3348 = vrot.lane.b32.xlu1 %v9533_v55, %s7457_s8 }
 0x37b   :  { %v3296_v62 = vpop.permute.xlu1 %3295 }
 0x37c   :  { %3425 = vrot.lane.b32.xlu0 %v3391_v43, %s7457_s8  ;;  %v3326_v33 = vmul.f32 %v3296_v62, %v9566_v26 }
 0x37d   :  { %v3294_v39 = vpop.permute.xlu0 %3293 }
 0x37e   :  { %3283 = vrot.lane.b32.xlu1 %v901_v52, %s7457_s8  ;;  %v3325_v50 = vmul.f32 %v3294_v39, %v9556_v15 }
 0x380   :  { %3362 = vrot.lane.b32.xlu0 %v9578_v0, %s7457_s8 }
 0x384   :  { %3297 = vrot.lane.b32.xlu0 %v908_v63, %s7457_s8  ;;  %v7027_v63 = vld [vmem:[%s10820_s9 + $0x1c4] ss:$8 sps:$4 sm:$0xff]  }
 0x385   :  { %5342 = vmatprep.subr.bf16.mxu0 %v7027_v63 }
 0x386   :  { %5343 = vmatpush1.bf16.msra.mxu0 %v7025_v2 }
 0x3d0   :  { %v3412_v13 = vpop.permute.xlu0 %3411 }
 0x3d1   :  { %v9613_v46 = vadd.f32 %v3412_v13, %v3319_v1  ;;  %v7030_v1 = vld [vmem:[%s10820_s9 + $0x1d4] ss:$8 sps:$4 sm:$0xff]  }
 0x3d2   :  { %5344 = vmatprep.subr.bf16.mxu0 %v7030_v1 }
 0x3d3   :  { %7377 = vtanh.f32 %v9613_v46 }
 0x3dd   :  { %v7378_v8 = vpop.eup %7377 }
 0x3e8   :  { %v3424_v10 = vpop.permute.xlu1 %3423 }
 0x3e9   :  { %v9619_v49 = vadd.f32 %v3424_v10, %v3325_v50  ;;  %v7028_v10 = vld [vmem:[%s10820_s9 + $0x1d0] ss:$8 sps:$4 sm:$0xff]  }
 0x3ea   :  { %5345 = vmatpush1.bf16.msra.mxu0 %v7028_v10 }
 0x3ec   :  { %v3349_v37 = vpop.permute.xlu1 %3348 }
 0x3ed   :  { %v3385_v41 = vmul.f32 %v3349_v37, %v9533_v55 }
 0x3ee   :  { %v3426_v9 = vpop.permute.xlu0 %3425 }
 0x3ef   :  { %v9621_v20 = vadd.f32 %v3426_v9, %v3326_v33  ;;  %3413 = vrot.lane.b32.xlu1 %v3385_v41, %s7457_s8 }
 0x3f0   :  { %v3284_v12 = vpop.permute.xlu1 %3283 }
 0x3f1   :  { %7379 = vtanh.f32 %v9621_v20  ;;  %v3320_v32 = vmul.f32 %v3284_v12, %v9533_v55  ;;  %v910_v12 = vld [vmem:[%s10814_s3 + $0x58] sm:$0xff] }
 0x3f2   :  { %7381 = vtanh.f32 %v9619_v49  ;;  %v3363_v16 = vpop.permute.xlu0 %3362 }
 0x3f3   :  { %v3392_v25 = vmul.f32 %v3363_v16, %v9578_v0  ;;  %3350 = vrot.lane.b32.xlu1 %v9537_v56, %s7457_s8  ;;  %v7031_v16 = vld [vmem:[%s10820_s9 + $0x1e0] ss:$8 sps:$4 sm:$0xff]  }
 0x3f5   :  { %3427 = vrot.lane.b32.xlu0 %v3392_v25, %s7457_s8 }
 0x3f6   :  { %v3298_v52 = vpop.permute.xlu0 %3297 }
 0x3f7   :  { %3489 = vrot.lane.b32.xlu1 %v7378_v8, %s7457_s8  ;;  %v3327_v37 = vmul.f32 %v3298_v52, %v9578_v0  ;;  %v7033_v8 = vld [vmem:[%s10820_s9 + $0x1e4] ss:$8 sps:$4 sm:$0xff]  }
 0x3f8   :  { %5346 = vmatprep.subr.bf16.mxu0 %v7033_v8 }
 0x3f9   :  { %3364 = vrot.lane.b32.xlu0 %v9584_v27, %s7457_s8  ;;  %5347 = vmatpush1.bf16.msra.mxu0 %v7031_v16 }
 0x3fa   :  { %5348 = vmatprep.subr.bf16.mxu0 %v7036_v6 }
 0x3fb   :  { %v7380_v51 = vpop.eup %7379 }
 0x3fc   :  { %v7382_v61 = vpop.eup %7381  ;;  %3503 = vrot.lane.b32.xlu1 %v7380_v51, %s7457_s8 }
 0x3fd   :  { %3501 = vrot.lane.b32.xlu0 %v7382_v61, %s7457_s8 }
 0x400   :  { %3299 = vrot.lane.b32.xlu1 %v909_v24, %s7457_s8 }
 0x401   :  { %3285 = vrot.lane.b32.xlu0 %v902_v44, %s7457_s8 }
 0x461   :  { %v3414_v40 = vpop.permute.xlu1 %3413 }
 0x462   :  { %v9716_v43 = vadd.f32 %v3414_v40, %v3320_v32 }
 0x464   :  { %7383 = vtanh.f32 %v9716_v43 }
 0x465   :  { %v3351_v39 = vpop.permute.xlu1 %3350 }
 0x466   :  { %v3386_v62 = vmul.f32 %v3351_v39, %v9537_v56 }
 0x467   :  { %v3428_v13 = vpop.permute.xlu0 %3427 }
 0x468   :  { %3415 = vrot.lane.b32.xlu0 %v3386_v62, %s7457_s8  ;;  %v9734_v41 = vadd.f32 %v3428_v13, %v3327_v37 }
 0x469   :  { %v3490_v50 = vpop.permute.xlu1 %3489 }
 0x46a   :  { %v9743_v25 = vmul.f32 %v3490_v50, %v9525_v3  ;;  %7385 = vtanh.f32 %v9734_v41 }
 0x46b   :  { %v3365_v33 = vpop.permute.xlu0 %3364 }
 0x46c   :  { %v3393_v9 = vmul.f32 %v3365_v33, %v9584_v27  ;;  %3352 = vrot.lane.b32.xlu0 %v9543_v48, %s7457_s8  ;;  %v3708_v3 = vrot.slane %v9743_v25, 1  ;;  %v3728_v14 = vrot.slane %v9743_v25, 5  ;;  %v3723_v28 = vrot.slane %v9743_v25, 4 }
 0x46d   :  { %v3718_v11 = vrot.slane %v9743_v25, 3  ;;  %v3738_v19 = vrot.slane %v9743_v25, 7 }
 0x46e   :  { %v7384_v51 = vpop.eup %7383  ;;  %3429 = vrot.lane.b32.xlu1 %v3393_v9, %s7457_s8  ;;  %v3504_v61 = vpop.permute.xlu1 %3503 }
 0x46f   :  { %v9750_v24 = vmul.f32 %v3504_v61, %v9566_v26  ;;  %v3502_v44 = vpop.permute.xlu0 %3501  ;;  %v7034_v26 = vld [vmem:[%s10820_s9 + $0x1f0] ss:$8 sps:$4 sm:$0xff]  }
 0x470   :  { %v9754_v23 = vmul.f32 %v3502_v44, %v9556_v15  ;;  %3491 = vrot.lane.b32.xlu0 %v7384_v51, %s7457_s8  ;;  %5349 = vmatpush1.bf16.msra.mxu0 %v7034_v26 }
 0x471   :  { %v3740_v35 = vrot.slane %v9750_v24, 7  ;;  %5359 = vmatprep.subr.bf16.mxu0 %v7039_v36  ;;  %v3761_v16 = vrot.slane %v9750_v24, 4  ;;  %v3766_v61 = vrot.slane %v9750_v24, 5 }
 0x472   :  { %3366 = vrot.lane.b32.xlu1 %v9588_v31, %s7457_s8  ;;  %v3710_v30 = vrot.slane %v9754_v23, 1  ;;  %v3730_v15 = vrot.slane %v9754_v23, 5  ;;  %v3725_v59 = vrot.slane %v9754_v23, 4  ;;  %v3720_v18 = vrot.slane %v9754_v23, 3  ;;  %v3300_v52 = vpop.permute.xlu1 %3299 }
 0x473   :  { %v3707_v53 = vsel %vm861_vm1, %v9743_v25, %v9754_v23  ;;  %v3742_v17 = vsel %vm861_vm1, %v3738_v19, %v3740_v35  ;;  %v3286_v47 = vpop.permute.xlu0 %3285  ;;  %v3328_v39 = vmul.f32 %v3300_v52, %v9584_v27 }
 0x474   :  { %v3712_v58 = vsel %vm861_vm1, %v3708_v3, %v3710_v30  ;;  %v3732_v60 = vsel %vm861_vm1, %v3728_v14, %v3730_v15  ;;  %v3727_v34 = vsel %vm861_vm1, %v3723_v28, %v3725_v59  ;;  %v3722_v57 = vsel %vm861_vm1, %v3718_v11, %v3720_v18  ;;  %v7386_v29 = vpop.eup %7385 }
 0x475   :  { %v6749_v21 = vpack.i.bf16 %v3712_v58, %v3732_v60  ;;  %v6744_v4 = vpack.i.bf16 %v3707_v53, %v3727_v34  ;;  %v6754_v45 = vpack.i.bf16 %v3722_v57, %v3742_v17  ;;  %v3321_v32 = vmul.f32 %v3286_v47, %v9537_v56 }
 0x476   :  { %v3715_v3 = vrot.slane %v9754_v23, 2  ;;  %v3735_v59 = vrot.slane %v9754_v23, 6  ;;  %v3713_v58 = vrot.slane %v9743_v25, 2  ;;  %v3733_v60 = vrot.slane %v9743_v25, 6 }
 0x477   :  { %6750 = vrot.lane.b32.xlu1 %v6749_v21, %s7458_s7  ;;  %6745 = vrot.lane.b32.xlu0 %v6744_v4, %s7448_s27 }
 0x478   :  { %v3717_v4 = vsel %vm861_vm1, %v3713_v58, %v3715_v3  ;;  %v7048_v3 = vld [vmem:[%s10820_s9 + $0x234] ss:$8 sps:$4 sm:$0xff]  }
 0x479   :  { %v7066_v58 = vld [vmem:[%s10820_s9 + $0x294] ss:$8 sps:$4 sm:$0xff]  }
 0x47b   :  { %3505 = vrot.lane.b32.xlu0 %v7386_v29, %s7457_s8  ;;  %6755 = vrot.lane.b32.xlu1 %v6754_v45, %s7457_s8  ;;  %v3737_v45 = vsel %vm861_vm1, %v3733_v60, %v3735_v59  ;;  %v7057_v59 = vld [vmem:[%s10820_s9 + $0x264] ss:$8 sps:$4 sm:$0xff]   ;;  %v7064_v60 = vld [vmem:[%s10820_s9 + $0x290] ss:$8 sps:$4 sm:$0xff]  }
 0x47f   :  { %3301 = vrot.lane.b32.xlu0 %v910_v12, %s7457_s8  ;;  %3287 = vrot.lane.b32.xlu1 %v903_v22, %s7457_s8 }
 0x4da   :  { %v3416_v54 = vpop.permute.xlu0 %3415 }
 0x4db   :  { %v9799_v40 = vadd.f32 %v3416_v54, %v3321_v32  ;;  %v3756_v54 = vrot.slane %v9750_v24, 3 }
 0x4dd   :  { %7387 = vtanh.f32 %v9799_v40 }
 0x4de   :  { %v3353_v63 = vpop.permute.xlu0 %3352 }
 0x4df   :  { %v3387_v2 = vmul.f32 %v3353_v63, %v9543_v48 }
 0x4e0   :  { %v3430_v62 = vpop.permute.xlu1 %3429 }
 0x4e1   :  { %3417 = vrot.lane.b32.xlu1 %v3387_v2, %s7457_s8  ;;  %v9805_v13 = vadd.f32 %v3430_v62, %v3328_v39 }
 0x4e2   :  { %v3492_v1 = vpop.permute.xlu0 %3491 }
 0x4e3   :  { %v9808_v10 = vmul.f32 %v3492_v1, %v9533_v55  ;;  %7389 = vtanh.f32 %v9805_v13  ;;  %v3746_v55 = vrot.slane %v9750_v24, 1 }
 0x4e4   :  { %v3367_v50 = vpop.permute.xlu1 %3366 }
 0x4e5   :  { %v3394_v37 = vmul.f32 %v3367_v50, %v9588_v31  ;;  %3354 = vrot.lane.b32.xlu1 %v9547_v42, %s7457_s8  ;;  %v3759_v33 = vrot.slane %v9808_v10, 4  ;;  %v3744_v9 = vrot.slane %v9808_v10, 1  ;;  %v3764_v8 = vrot.slane %v9808_v10, 5 }
 0x4e6   :  { %v3743_v26 = vsel %vm861_vm1, %v9808_v10, %v9750_v24  ;;  %v3754_v36 = vrot.slane %v9808_v10, 3 }
 0x4e7   :  { %v7388_v51 = vpop.eup %7387  ;;  %3431 = vrot.lane.b32.xlu0 %v3394_v37, %s7457_s8  ;;  %v3763_v44 = vsel %vm861_vm1, %v3759_v33, %v3761_v16  ;;  %v3748_v30 = vsel %vm861_vm1, %v3744_v9, %v3746_v55  ;;  %v3768_v15 = vsel %vm861_vm1, %v3764_v8, %v3766_v61  ;;  %v7037_v33 = vld [vmem:[%s10820_s9 + $0x200] ss:$8 sps:$4 sm:$0xff]   ;;  %v7042_v16 = vld [vmem:[%s10820_s9 + $0x214] ss:$8 sps:$4 sm:$0xff]   ;;  %v7045_v55 = vld [vmem:[%s10820_s9 + $0x224] ss:$8 sps:$4 sm:$0xff]  }
 0x4e8   :  { %v6759_v19 = vpack.i.bf16 %v3743_v26, %v3763_v44  ;;  %v6764_v17 = vpack.i.bf16 %v3748_v30, %v3768_v15  ;;  %v3758_v50 = vsel %vm861_vm1, %v3754_v36, %v3756_v54  ;;  %v911_v8 = vld [vmem:[%s10814_s3 + $0x60] sm:$0x3]  ;;  %v904_v61 = vld [vmem:[%s10814_s3 + $0x28] sm:$0xff]  ;;  %v7054_v30 = vld [vmem:[%s10820_s9 + $0x254] ss:$8 sps:$4 sm:$0xff]  }
 0x4e9   :  { %v6746_v14 = vpop.permute.xlu0 %6745  ;;  %3493 = vrot.lane.b32.xlu1 %v7388_v51, %s7457_s8  ;;  %v6751_v28 = vpop.permute.xlu1 %6750  ;;  %v7040_v51 = vld [vmem:[%s10820_s9 + $0x210] ss:$8 sps:$4 sm:$0xff]   ;;  %v7043_v44 = vld [vmem:[%s10820_s9 + $0x220] ss:$8 sps:$4 sm:$0xff]   ;;  %v7087_v54 = vld [vmem:[%s10820_s9 + $0x304] ss:$8 sps:$4 sm:$0xff]  }
 0x4ea   :  { %v6748_v35 = vunpack.i.h.bf16 %v6746_v14  ;;  %v6747_v6 = vunpack.i.l.bf16 %v6746_v14  ;;  %v6753_v11 = vunpack.i.h.bf16 %v6751_v28  ;;  %v6752_v18 = vunpack.i.l.bf16 %v6751_v28  ;;  %v7046_v14 = vld [vmem:[%s10820_s9 + $0x230] ss:$8 sps:$4 sm:$0xff]   ;;  %v7051_v28 = vld [vmem:[%s10820_s9 + $0x244] ss:$8 sps:$4 sm:$0xff]   ;;  %v7049_v26 = vld [vmem:[%s10820_s9 + $0x240] ss:$8 sps:$4 sm:$0xff]  }
 0x4eb   :  { %3368 = vrot.lane.b32.xlu0 %v9592_v38, %s7457_s8  ;;  %v7052_v15 = vld [vmem:[%s10820_s9 + $0x250] ss:$8 sps:$4 sm:$0xff]   ;;  %v7079_v36 = vld [vmem:[%s10820_s9 + $0x2e0] ss:$8 sps:$4 sm:$0xff]  }
 0x4ec   :  { %v3943_v53 = vsel %vm3591_vm9, %v6748_v35, %v6753_v11  ;;  %v3946_v34 = vsel %vm3591_vm9, %v6747_v6, %v6752_v18  ;;  %v7055_v35 = vld [vmem:[%s10820_s9 + $0x260] ss:$8 sps:$4 sm:$0xff]   ;;  %v7060_v6 = vld [vmem:[%s10820_s9 + $0x274] ss:$8 sps:$4 sm:$0xff]   ;;  %v7058_v11 = vld [vmem:[%s10820_s9 + $0x270] ss:$8 sps:$4 sm:$0xff]  }
 0x4ed   :  { %v3506_v21 = vpop.permute.xlu0 %3505  ;;  %6760 = vrot.lane.b32.xlu1 %v6759_v19, %s7448_s27  ;;  %v6756_v57 = vpop.permute.xlu1 %6755  ;;  %v3944_v47 = vsel %vm551_vm2, %v3943_v53, %v3717_v4  ;;  %v3947_v32 = vsel %vm551_vm2, %v3946_v34, %v3737_v45  ;;  %v7063_v18 = vld [vmem:[%s10820_s9 + $0x284] ss:$8 sps:$4 sm:$0xff]   ;;  %v7061_v19 = vld [vmem:[%s10820_s9 + $0x280] ss:$8 sps:$4 sm:$0xff]   ;;  %v7070_v4 = vld [vmem:[%s10820_s9 + $0x2b0] ss:$8 sps:$4 sm:$0xff]  }
 0x4ee   :  { %v9840_v29 = vmul.f32 %v3506_v21, %v9578_v0  ;;  %v6758_v12 = vunpack.i.h.bf16 %v6756_v57  ;;  %v6757_v22 = vunpack.i.l.bf16 %v6756_v57  ;;  %v7390_v52 = vpop.eup %7389  ;;  %v3774_v0 = vrot.slane %v9808_v10, 7  ;;  %v7069_v53 = vld [vmem:[%s10820_s9 + $0x2a4] ss:$8 sps:$4 sm:$0xff]   ;;  %v7067_v34 = vld [vmem:[%s10820_s9 + $0x2a0] ss:$8 sps:$4 sm:$0xff]  }
 0x4ef   :  { %6765 = vrot.lane.b32.xlu0 %v6764_v17, %s7458_s7  ;;  %v7072_v21 = vld [vmem:[%s10820_s9 + $0x2b4] ss:$8 sps:$4 sm:$0xff]   ;;  %v7075_v57 = vld [vmem:[%s10820_s9 + $0x2c4] ss:$8 sps:$4 sm:$0xff]   ;;  %v7073_v17 = vld [vmem:[%s10820_s9 + $0x2c0] ss:$8 sps:$4 sm:$0xff]  }
 0x4f0   :  { %v3945_v63 = vsel %vm3938_vm10, %v3944_v47, %v6758_v12  ;;  %v3948_v2 = vsel %vm3938_vm10, %v3947_v32, %v6757_v22  ;;  %v3776_v39 = vrot.slane %v9840_v29, 7  ;;  %v7078_v45 = vld [vmem:[%s10820_s9 + $0x2d4] ss:$8 sps:$4 sm:$0xff]   ;;  %v7076_v12 = vld [vmem:[%s10820_s9 + $0x2d0] ss:$8 sps:$4 sm:$0xff]  }
 0x4f1   :  { %v4075_v62 = vpack.c.bf16 %v3945_v63, %v3945_v63  ;;  %3507 = vrot.lane.b32.xlu1 %v7390_v52, %s7457_s8  ;;  %v4076_v1 = vpack.c.bf16 %v3948_v2, %v3948_v2  ;;  %v7081_v22 = vld [vmem:[%s10820_s9 + $0x2e4] ss:$8 sps:$4 sm:$0xff]   ;;  %v7084_v47 = vld [vmem:[%s10820_s9 + $0x2f4] ss:$8 sps:$4 sm:$0xff]   ;;  %v7082_v32 = vld [vmem:[%s10820_s9 + $0x2f0] ss:$8 sps:$4 sm:$0xff]   ;;  %v3288_v52 = vpop.permute.xlu1 %3287 }
 0x4f2   :  { %v3778_v37 = vsel %vm861_vm1, %v3774_v0, %v3776_v39  ;;  %v3322_v63 = vmul.f32 %v3288_v52, %v9543_v48  ;;  %v3302_v39 = vpop.permute.xlu0 %3301 }
 0x4f3   :  { %5350 = vmatprep.mubr.bf16.mxu0 %v4076_v1  ;;  %v6769_v9 = vpack.i.bf16 %v3758_v50, %v3778_v37 }
 0x4f4   :  { %5351 = vmatmul.mubr.bf16.vlgmr.msra.gmra.mrb[56].mxu0 %v4075_v62 }
 0x4f5   :  { %3356 = vrot.lane.b32.xlu1 %v9552_v5, %s7457_s8  ;;  %6770 = vrot.lane.b32.xlu0 %v6769_v9, %s7457_s8 }
 0x4f6   :  { %5360 = vmatpush1.bf16.msra.mxu0 %v7037_v33  ;;  %v899_v33 = vld [vmem:[%s10814_s3] sm:$0xff] }
 0x4f7   :  { %5361 = vmatprep.subr.bf16.mxu0 %v7042_v16 }
 0x4f9   :  { %3303 = vrot.lane.b32.xlu1 %v911_v8, %s7457_s8  ;;  %3344 = vrot.lane.b32.xlu0 %v9521_v7, %s7457_s8 }
 0x4fa   :  { %5362 = vmatpush1.bf16.msra.mxu0 %v7040_v51 }
 0x4fb   :  { %5363 = vmatprep.subr.bf16.mxu0 %v7045_v55 }
 0x4fd   :  { %3289 = vrot.lane.b32.xlu0 %v904_v61, %s7457_s8 }
 0x4fe   :  { %5364 = vmatpush1.bf16.msra.mxu0 %v7043_v44 }
 0x4ff   :  { %5365 = vmatprep.subr.bf16.mxu0 %v7048_v3 }
 0x502   :  { %5366 = vmatpush1.bf16.msra.mxu0 %v7046_v14  ;;  %v905_v14 = vld [vmem:[%s10814_s3 + $0x30] sm:$0xff] }
 0x503   :  { %5367 = vmatprep.subr.bf16.mxu0 %v7051_v28  ;;  %v3802_v28 = vrot.slane %v9840_v29, 5 }
 0x506   :  { %5368 = vmatpush1.bf16.msra.mxu0 %v7049_v26 }
 0x507   :  { %5369 = vmatprep.subr.bf16.mxu0 %v7054_v30 }
 0x50a   :  { %5370 = vmatpush1.bf16.msra.mxu0 %v7052_v15  ;;  %v3751_v15 = vrot.slane %v9750_v24, 2 }
 0x50b   :  { %5371 = vmatprep.subr.bf16.mxu0 %v7057_v59 }
 0x50e   :  { %5372 = vmatpush1.bf16.msra.mxu0 %v7055_v35  ;;  %v3749_v35 = vrot.slane %v9808_v10, 2 }
 0x50f   :  { %5373 = vmatprep.subr.bf16.mxu0 %v7060_v6 }
 0x512   :  { %5374 = vmatpush1.bf16.msra.mxu0 %v7058_v11 }
 0x513   :  { %5375 = vmatprep.subr.bf16.mxu0 %v7063_v18  ;;  %v3769_v18 = vrot.slane %v9808_v10, 6 }
 0x516   :  { %5376 = vmatpush1.bf16.msra.mxu0 %v7061_v19 }
 0x517   :  { %5377 = vmatprep.subr.bf16.mxu0 %v7066_v58 }
 0x51a   :  { %5378 = vmatpush1.bf16.msra.mxu0 %v7064_v60 }
 0x51b   :  { %5379 = vmatprep.subr.bf16.mxu0 %v7069_v53 }
 0x51e   :  { %5380 = vmatpush1.bf16.msra.mxu0 %v7067_v34  ;;  %v3329_v34 = vmul.f32 %v3302_v39, %v9588_v31 }
 0x51f   :  { %5381 = vmatprep.subr.bf16.mxu0 %v7072_v21  ;;  %v3792_v21 = vrot.slane %v9840_v29, 3 }
 0x522   :  { %5382 = vmatpush1.bf16.msra.mxu0 %v7070_v4 }
 0x523   :  { %5383 = vmatprep.subr.bf16.mxu0 %v7075_v57  ;;  %v3771_v57 = vrot.slane %v9750_v24, 6 }
 0x526   :  { %5384 = vmatpush1.bf16.msra.mxu0 %v7073_v17 }
 0x527   :  { %5385 = vmatprep.subr.bf16.mxu0 %v7078_v45 }
 0x52a   :  { %5386 = vmatpush1.bf16.msra.mxu0 %v7076_v12 }
 0x52b   :  { %5387 = vmatprep.subr.bf16.mxu0 %v7081_v22 }
 0x52e   :  { %5388 = vmatpush1.bf16.msra.mxu0 %v7079_v36  ;;  %v3753_v36 = vsel %vm861_vm1, %v3749_v35, %v3751_v15  ;;  %v7091_v35 = vld [vmem:[%s10820_s9 + $0x320] ss:$8 sps:$4 sm:$0xff]  }
 0x52f   :  { %5389 = vmatprep.subr.bf16.mxu0 %v7084_v47 }
 0x532   :  { %5390 = vmatpush1.bf16.msra.mxu0 %v7082_v32  ;;  %v3773_v32 = vsel %vm861_vm1, %v3769_v18, %v3771_v57  ;;  %v7094_v18 = vld [vmem:[%s10820_s9 + $0x330] ss:$8 sps:$4 sm:$0xff]   ;;  %v7108_v57 = vld [vmem:[%s10820_s9 + $0x374] ss:$8 sps:$4 sm:$0xff]  }
 0x533   :  { %5400 = vmatprep.subr.bf16.mxu0 %v7087_v54 }
 0x553   :  { %v3418_v2 = vpop.permute.xlu1 %3417 }
 0x554   :  { %v9964_v0 = vadd.f32 %v3418_v2, %v3322_v63 }
 0x556   :  { %7391 = vtanh.f32 %v9964_v0 }
 0x557   :  { %v3355_v62 = vpop.permute.xlu1 %3354 }
 0x558   :  { %v3388_v1 = vmul.f32 %v3355_v62, %v9547_v42 }
 0x559   :  { %v3432_v50 = vpop.permute.xlu0 %3431 }
 0x55a   :  { %3419 = vrot.lane.b32.xlu0 %v3388_v1, %s7457_s8  ;;  %v10003_v22 = vadd.f32 %v3432_v50, %v3329_v34  ;;  %v7100_v34 = vld [vmem:[%s10820_s9 + $0x350] ss:$8 sps:$4 sm:$0xff]  }
 0x55b   :  { %v3494_v37 = vpop.permute.xlu1 %3493 }
 0x55c   :  { %v9973_v9 = vmul.f32 %v3494_v37, %v9537_v56  ;;  %v3782_v56 = vrot.slane %v9840_v29, 1  ;;  %7393 = vtanh.f32 %v10003_v22 }
 0x55d   :  { %v3369_v16 = vpop.permute.xlu0 %3368 }
 0x55e   :  { %v3395_v8 = vmul.f32 %v3369_v16, %v9592_v38  ;;  %3279 = vrot.lane.b32.xlu0 %v899_v33, %s7457_s8  ;;  %v3780_v55 = vrot.slane %v9973_v9, 1  ;;  %v3800_v61 = vrot.slane %v9973_v9, 5  ;;  %v3790_v53 = vrot.slane %v9973_v9, 3 }
 0x55f   :  { %v6761_v51 = vpop.permute.xlu1 %6760  ;;  %v3810_v4 = vrot.slane %v9973_v9, 7  ;;  %v3795_v50 = vrot.slane %v9973_v9, 4 }
 0x560   :  { %v7392_v44 = vpop.eup %7391  ;;  %3433 = vrot.lane.b32.xlu1 %v3395_v8, %s7457_s8  ;;  %v3784_v6 = vsel %vm861_vm1, %v3780_v55, %v3782_v56  ;;  %v3804_v11 = vsel %vm861_vm1, %v3800_v61, %v3802_v28  ;;  %v6763_v19 = vunpack.i.h.bf16 %v6761_v51  ;;  %v6762_v58 = vunpack.i.l.bf16 %v6761_v51 }
 0x561   :  { %v6766_v3 = vpop.permute.xlu0 %6765  ;;  %v6779_v12 = vpack.i.bf16 %v3784_v6, %v3804_v11  ;;  %v3794_v63 = vsel %vm861_vm1, %v3790_v53, %v3792_v21  ;;  %v3797_v61 = vrot.slane %v9840_v29, 4  ;;  %v7096_v6 = vld [vmem:[%s10820_s9 + $0x334] ss:$8 sps:$4 sm:$0xff]   ;;  %v7105_v21 = vld [vmem:[%s10820_s9 + $0x364] ss:$8 sps:$4 sm:$0xff]  }
 0x562   :  { %v6768_v26 = vunpack.i.h.bf16 %v6766_v3  ;;  %v6767_v30 = vunpack.i.l.bf16 %v6766_v3  ;;  %3495 = vrot.lane.b32.xlu0 %v7392_v44, %s7457_s8  ;;  %v7085_v44 = vld [vmem:[%s10820_s9 + $0x300] ss:$8 sps:$4 sm:$0xff]   ;;  %v7102_v53 = vld [vmem:[%s10820_s9 + $0x354] ss:$8 sps:$4 sm:$0xff]  }
 0x563   :  { %v3508_v59 = vpop.permute.xlu1 %3507  ;;  %v3799_v56 = vsel %vm861_vm1, %v3795_v50, %v3797_v61  ;;  %v7127_v50 = vld [vmem:[%s10820_s9 + $0x3e0] ss:$8 sps:$4 sm:$0xff]  }
 0x564   :  { %v9992_v60 = vmul.f32 %v3508_v59, %v9584_v27  ;;  %3291 = vrot.lane.b32.xlu1 %v905_v14, %s7457_s8  ;;  %v3997_v17 = vsel %vm3591_vm9, %v6763_v19, %v6768_v26  ;;  %v4000_v45 = vsel %vm3591_vm9, %v6762_v58, %v6767_v30  ;;  %v7090_v14 = vld [vmem:[%s10820_s9 + $0x314] ss:$8 sps:$4 sm:$0xff]   ;;  %v3779_v26 = vsel %vm861_vm1, %v9973_v9, %v9840_v29  ;;  %v7088_v30 = vld [vmem:[%s10820_s9 + $0x310] ss:$8 sps:$4 sm:$0xff]   ;;  %v7093_v59 = vld [vmem:[%s10820_s9 + $0x324] ss:$8 sps:$4 sm:$0xff]  }
 0x565   :  { %v3998_v39 = vsel %vm551_vm2, %v3997_v17, %v3753_v36  ;;  %v4001_v1 = vsel %vm551_vm2, %v4000_v45, %v3773_v32  ;;  %v6774_v15 = vpack.i.bf16 %v3779_v26, %v3799_v56  ;;  %v7099_v19 = vld [vmem:[%s10820_s9 + $0x344] ss:$8 sps:$4 sm:$0xff]   ;;  %v7097_v58 = vld [vmem:[%s10820_s9 + $0x340] ss:$8 sps:$4 sm:$0xff]   ;;  %v7106_v17 = vld [vmem:[%s10820_s9 + $0x370] ss:$8 sps:$4 sm:$0xff]  }
 0x566   :  { %v3812_v27 = vrot.slane %v9992_v60, 7  ;;  %v7394_v11 = vpop.eup %7393  ;;  %v7111_v45 = vld [vmem:[%s10820_s9 + $0x384] ss:$8 sps:$4 sm:$0xff]   ;;  %v7112_v36 = vld [vmem:[%s10820_s9 + $0x390] ss:$8 sps:$4 sm:$0xff]  }
 0x567   :  { %v6771_v47 = vpop.permute.xlu0 %6770  ;;  %v3357_v8 = vpop.permute.xlu1 %3356  ;;  %v7115_v32 = vld [vmem:[%s10820_s9 + $0x3a0] ss:$8 sps:$4 sm:$0xff]  }
 0x568   :  { %v6773_v54 = vunpack.i.h.bf16 %v6771_v47  ;;  %v6772_v52 = vunpack.i.l.bf16 %v6771_v47  ;;  %6780 = vrot.lane.b32.xlu1 %v6779_v12, %s7458_s7  ;;  %v3814_v2 = vsel %vm861_vm1, %v3810_v4, %v3812_v27  ;;  %v3389_v28 = vmul.f32 %v3357_v8, %v9552_v5  ;;  %v7103_v4 = vld [vmem:[%s10820_s9 + $0x360] ss:$8 sps:$4 sm:$0xff]   ;;  %v7114_v27 = vld [vmem:[%s10820_s9 + $0x394] ss:$8 sps:$4 sm:$0xff]   ;;  %v7117_v47 = vld [vmem:[%s10820_s9 + $0x3a4] ss:$8 sps:$4 sm:$0xff]  }
 0x569   :  { %v6784_v62 = vpack.i.bf16 %v3794_v63, %v3814_v2  ;;  %v7109_v12 = vld [vmem:[%s10820_s9 + $0x380] ss:$8 sps:$4 sm:$0xff]   ;;  %v7123_v63 = vld [vmem:[%s10820_s9 + $0x3c4] ss:$8 sps:$4 sm:$0xff]  }
 0x56a   :  { %v3999_v37 = vsel %vm3938_vm10, %v3998_v39, %v6773_v54  ;;  %v4002_v33 = vsel %vm3938_vm10, %v4001_v1, %v6772_v52  ;;  %v7120_v54 = vld [vmem:[%s10820_s9 + $0x3b4] ss:$8 sps:$4 sm:$0xff]   ;;  %v7118_v52 = vld [vmem:[%s10820_s9 + $0x3b0] ss:$8 sps:$4 sm:$0xff]   ;;  %v7121_v2 = vld [vmem:[%s10820_s9 + $0x3c0] ss:$8 sps:$4 sm:$0xff]  }
 0x56b   :  { %v4077_v16 = vpack.c.bf16 %v3999_v37, %v3999_v37  ;;  %v3345_v51 = vpop.permute.xlu0 %3344  ;;  %v4078_v55 = vpack.c.bf16 %v4002_v33, %v4002_v33  ;;  %v7126_v39 = vld [vmem:[%s10820_s9 + $0x3d4] ss:$8 sps:$4 sm:$0xff]   ;;  %v7129_v1 = vld [vmem:[%s10820_s9 + $0x3e4] ss:$8 sps:$4 sm:$0xff]   ;;  %v7130_v33 = vld [vmem:[%s10820_s9 + $0x3f0] ss:$8 sps:$4 sm:$0xff]  }
 0x56c   :  { %v3383_v3 = vmul.f32 %v3345_v51, %v9521_v7  ;;  %6785 = vrot.lane.b32.xlu1 %v6784_v62, %s7457_s8  ;;  %v7124_v62 = vld [vmem:[%s10820_s9 + $0x3d0] ss:$8 sps:$4 sm:$0xff]   ;;  %v7132_v37 = vld [vmem:[%s10820_s9 + $0x3f4] ss:$8 sps:$4 sm:$0xff]  }
 0x56d   :  { %5391 = vmatprep.mubr.bf16.mxu0 %v4078_v55 }
 0x56e   :  { %5392 = vmatmul.mubr.bf16.vlgmr.msra.gmra.mrb[56].mxu0 %v4077_v16  ;;  %3409 = vrot.lane.b32.xlu0 %v3383_v3, %s7457_s8  ;;  %v7135_v16 = vld [vmem:[%s10820_s9 + $0x404] ss:$8 sps:$4 sm:$0xff]  }
 0x56f   :  { %5401 = vmatpush1.bf16.msra.mxu0 %v7085_v44  ;;  %v3290_v8 = vpop.permute.xlu0 %3289  ;;  %v3304_v44 = vpop.permute.xlu1 %3303 }
 0x570   :  { %3421 = vrot.lane.b32.xlu1 %v3389_v28, %s7457_s8  ;;  %5402 = vmatprep.subr.bf16.mxu0 %v7090_v14  ;;  %v3323_v51 = vmul.f32 %v3290_v8, %v9547_v42  ;;  %v3330_v14 = vmul.f32 %v3304_v44, %v9592_v38 }
 0x572   :  { %6775 = vrot.lane.b32.xlu0 %v6774_v15, %s7448_s27 }
 0x573   :  { %5403 = vmatpush1.bf16.msra.mxu0 %v7088_v30 }
 0x574   :  { %5404 = vmatprep.subr.bf16.mxu0 %v7093_v59 }
 0x576   :  { %3509 = vrot.lane.b32.xlu0 %v7394_v11, %s7457_s8  ;;  %v3818_v11 = vrot.slane %v9992_v60, 1 }
 0x577   :  { %5405 = vmatpush1.bf16.msra.mxu0 %v7091_v35  ;;  %v3833_v35 = vrot.slane %v9992_v60, 4 }
 0x578   :  { %5406 = vmatprep.subr.bf16.mxu0 %v7096_v6 }
 0x57b   :  { %5407 = vmatpush1.bf16.msra.mxu0 %v7094_v18 }
 0x57c   :  { %5408 = vmatprep.subr.bf16.mxu0 %v7099_v19  ;;  %v3838_v19 = vrot.slane %v9992_v60, 5 }
 0x57f   :  { %5409 = vmatpush1.bf16.msra.mxu0 %v7097_v58 }
 0x580   :  { %5410 = vmatprep.subr.bf16.mxu0 %v7102_v53 }
 0x583   :  { %5411 = vmatpush1.bf16.msra.mxu0 %v7100_v34 }
 0x584   :  { %5412 = vmatprep.subr.bf16.mxu0 %v7105_v21 }
 0x587   :  { %5413 = vmatpush1.bf16.msra.mxu0 %v7103_v4 }
 0x588   :  { %5414 = vmatprep.subr.bf16.mxu0 %v7108_v57 }
 0x58b   :  { %5415 = vmatpush1.bf16.msra.mxu0 %v7106_v17 }
 0x58c   :  { %5416 = vmatprep.subr.bf16.mxu0 %v7111_v45 }
 0x58f   :  { %5417 = vmatpush1.bf16.msra.mxu0 %v7109_v12 }
 0x590   :  { %5418 = vmatprep.subr.bf16.mxu0 %v7114_v27 }
 0x593   :  { %5419 = vmatpush1.bf16.msra.mxu0 %v7112_v36 }
 0x594   :  { %5420 = vmatprep.subr.bf16.mxu0 %v7117_v47 }
 0x597   :  { %5421 = vmatpush1.bf16.msra.mxu0 %v7115_v32 }
 0x598   :  { %5422 = vmatprep.subr.bf16.mxu0 %v7120_v54  ;;  %v3785_v54 = vrot.slane %v9973_v9, 2 }
 0x59b   :  { %5423 = vmatpush1.bf16.msra.mxu0 %v7118_v52  ;;  %v3805_v52 = vrot.slane %v9973_v9, 6 }
 0x59c   :  { %5424 = vmatprep.subr.bf16.mxu0 %v7123_v63 }
 0x59f   :  { %5425 = vmatpush1.bf16.msra.mxu0 %v7121_v2 }
 0x5a0   :  { %5426 = vmatprep.subr.bf16.mxu0 %v7126_v39  ;;  %v3787_v39 = vrot.slane %v9840_v29, 2 }
 0x5a2   :  { %v3789_v8 = vsel %vm861_vm1, %v3785_v54, %v3787_v39  ;;  %v7142_v54 = vld [vmem:[%s10820_s9 + $0x430] ss:$8 sps:$4 sm:$0xff]  }
 0x5a3   :  { %5427 = vmatpush1.bf16.msra.mxu0 %v7124_v62  ;;  %v7148_v39 = vld [vmem:[%s10820_s9 + $0x450] ss:$8 sps:$4 sm:$0xff]  }
 0x5a4   :  { %5428 = vmatprep.subr.bf16.mxu0 %v7129_v1  ;;  %v3807_v1 = vrot.slane %v9840_v29, 6 }
 0x5a7   :  { %5429 = vmatpush1.bf16.msra.mxu0 %v7127_v50 }
 0x5a8   :  { %5430 = vmatprep.subr.bf16.mxu0 %v7132_v37 }
 0x5ab   :  { %5431 = vmatpush1.bf16.msra.mxu0 %v7130_v33 }
 0x5ac   :  { %5441 = vmatprep.subr.bf16.mxu0 %v7135_v16 }
 0x5cc   :  { %v3420_v55 = vpop.permute.xlu0 %3419 }
 0x5cd   :  { %v10125_v61 = vadd.f32 %v3420_v55, %v3323_v51  ;;  %v3809_v51 = vsel %vm861_vm1, %v3805_v52, %v3807_v1  ;;  %v7147_v52 = vld [vmem:[%s10820_s9 + $0x444] ss:$8 sps:$4 sm:$0xff]   ;;  %v7151_v1 = vld [vmem:[%s10820_s9 + $0x460] ss:$8 sps:$4 sm:$0xff]  }
 0x5cf   :  { %7395 = vtanh.f32 %v10125_v61 }
 0x5d0   :  { %v3280_v3 = vpop.permute.xlu0 %3279 }
 0x5d1   :  { %v3318_v27 = vmul.f32 %v3280_v3, %v9521_v7 }
 0x5d2   :  { %v3434_v56 = vpop.permute.xlu1 %3433 }
 0x5d3   :  { %v10129_v28 = vadd.f32 %v3434_v56, %v3330_v14 }
 0x5d4   :  { %v3496_v26 = vpop.permute.xlu0 %3495 }
 0x5d5   :  { %7397 = vtanh.f32 %v10129_v28  ;;  %v10133_v30 = vmul.f32 %v3496_v26, %v9543_v48 }
 0x5d6   :  { %v3292_v15 = vpop.permute.xlu1 %3291 }
 0x5d7   :  { %v3831_v59 = vrot.slane %v10133_v30, 4  ;;  %v3816_v6 = vrot.slane %v10133_v30, 1  ;;  %v3836_v18 = vrot.slane %v10133_v30, 5  ;;  %v3815_v53 = vsel %vm861_vm1, %v10133_v30, %v9992_v60 }
 0x5d8   :  { %v3324_v63 = vmul.f32 %v3292_v15, %v9552_v5 }
 0x5d9   :  { %v7396_v58 = vpop.eup %7395  ;;  %v3835_v48 = vsel %vm861_vm1, %v3831_v59, %v3833_v35  ;;  %v3820_v34 = vsel %vm861_vm1, %v3816_v6, %v3818_v11  ;;  %v3840_v57 = vsel %vm861_vm1, %v3836_v18, %v3838_v19  ;;  %v3826_v59 = vrot.slane %v10133_v30, 3 }
 0x5da   :  { %v6781_v21 = vpop.permute.xlu1 %6780  ;;  %3497 = vrot.lane.b32.xlu1 %v7396_v58, %s7457_s8  ;;  %v6789_v4 = vpack.i.bf16 %v3815_v53, %v3835_v48  ;;  %v6794_v17 = vpack.i.bf16 %v3820_v34, %v3840_v57  ;;  %v7133_v58 = vld [vmem:[%s10820_s9 + $0x400] ss:$8 sps:$4 sm:$0xff]   ;;  %v3828_v53 = vrot.slane %v9992_v60, 3  ;;  %v3846_v48 = vrot.slane %v10133_v30, 7 }
 0x5db   :  { %v6783_v2 = vunpack.i.h.bf16 %v6781_v21  ;;  %v6782_v50 = vunpack.i.l.bf16 %v6781_v21 }
 0x5dc   :  { %6790 = vrot.lane.b32.xlu0 %v6789_v4, %s7448_s27  ;;  %v3830_v4 = vsel %vm861_vm1, %v3826_v59, %v3828_v53  ;;  %v7174_v59 = vld [vmem:[%s10820_s9 + $0x4d4] ss:$8 sps:$4 sm:$0xff]   ;;  %v7199_v53 = vld [vmem:[%s10820_s9] ss:$8 sps:$4 sm:$0xff]  }
 0x5de   :  { %v6786_v45 = vpop.permute.xlu1 %6785  ;;  %6795 = vrot.lane.b32.xlu1 %v6794_v17, %s7458_s7 }
 0x5df   :  { %v7398_v12 = vpop.eup %7397  ;;  %v6788_v55 = vunpack.i.h.bf16 %v6786_v45  ;;  %v6787_v44 = vunpack.i.l.bf16 %v6786_v45  ;;  %v7136_v45 = vld [vmem:[%s10820_s9 + $0x410] ss:$8 sps:$4 sm:$0xff]  }
 0x5e0   :  { %3511 = vrot.lane.b32.xlu0 %v7398_v12, %s7457_s8  ;;  %v3410_v36 = vpop.permute.xlu0 %3409  ;;  %v7141_v12 = vld [vmem:[%s10820_s9 + $0x424] ss:$8 sps:$4 sm:$0xff]  }
 0x5e1   :  { %v10152_v47 = vadd.f32 %v3410_v36, %v3318_v27  ;;  %v7139_v27 = vld [vmem:[%s10820_s9 + $0x420] ss:$8 sps:$4 sm:$0xff]  }
 0x5e2   :  { %v3422_v32 = vpop.permute.xlu1 %3421 }
 0x5e3   :  { %7399 = vtanh.f32 %v10152_v47  ;;  %v10160_v37 = vadd.f32 %v3422_v32, %v3324_v63  ;;  %v7144_v32 = vld [vmem:[%s10820_s9 + $0x434] ss:$8 sps:$4 sm:$0xff]   ;;  %v7145_v63 = vld [vmem:[%s10820_s9 + $0x440] ss:$8 sps:$4 sm:$0xff]  }
 0x5e4   :  { %v6776_v62 = vpop.permute.xlu0 %6775 }
 0x5e5   :  { %v6778_v33 = vunpack.i.h.bf16 %v6776_v62  ;;  %v6777_v16 = vunpack.i.l.bf16 %v6776_v62  ;;  %7401 = vtanh.f32 %v10160_v37  ;;  %v7153_v62 = vld [vmem:[%s10820_s9 + $0x464] ss:$8 sps:$4 sm:$0xff]  }
 0x5e7   :  { %v4003_v3 = vsel %vm3591_vm9, %v6778_v33, %v6783_v2  ;;  %v4006_v14 = vsel %vm3591_vm9, %v6777_v16, %v6782_v50  ;;  %v7150_v2 = vld [vmem:[%s10820_s9 + $0x454] ss:$8 sps:$4 sm:$0xff]   ;;  %v7154_v33 = vld [vmem:[%s10820_s9 + $0x470] ss:$8 sps:$4 sm:$0xff]   ;;  %v7159_v16 = vld [vmem:[%s10820_s9 + $0x484] ss:$8 sps:$4 sm:$0xff]  }
 0x5e8   :  { %v4004_v56 = vsel %vm551_vm2, %v4003_v3, %v3789_v8  ;;  %v3510_v26 = vpop.permute.xlu0 %3509  ;;  %v4007_v15 = vsel %vm551_vm2, %v4006_v14, %v3809_v51  ;;  %v7156_v50 = vld [vmem:[%s10820_s9 + $0x474] ss:$8 sps:$4 sm:$0xff]   ;;  %v7157_v8 = vld [vmem:[%s10820_s9 + $0x480] ss:$8 sps:$4 sm:$0xff]  }
 0x5e9   :  { %v10171_v35 = vmul.f32 %v3510_v26, %v9588_v31  ;;  %v4008_v6 = vsel %vm3938_vm10, %v4007_v15, %v6787_v44  ;;  %v4005_v11 = vsel %vm3938_vm10, %v4004_v56, %v6788_v55  ;;  %v7138_v31 = vld [vmem:[%s10820_s9 + $0x414] ss:$8 sps:$4 sm:$0xff]   ;;  %v7160_v55 = vld [vmem:[%s10820_s9 + $0x490] ss:$8 sps:$4 sm:$0xff]   ;;  %v7165_v44 = vld [vmem:[%s10820_s9 + $0x4a4] ss:$8 sps:$4 sm:$0xff]  }
 0x5ea   :  { %v4080_v18 = vpack.c.bf16 %v4008_v6, %v4008_v6  ;;  %v4079_v19 = vpack.c.bf16 %v4005_v11, %v4005_v11  ;;  %v7162_v51 = vld [vmem:[%s10820_s9 + $0x494] ss:$8 sps:$4 sm:$0xff]   ;;  %v7163_v3 = vld [vmem:[%s10820_s9 + $0x4a0] ss:$8 sps:$4 sm:$0xff]   ;;  %v7166_v56 = vld [vmem:[%s10820_s9 + $0x4b0] ss:$8 sps:$4 sm:$0xff]  }
 0x5eb   :  { %v3848_v34 = vrot.slane %v10171_v35, 7  ;;  %v7168_v14 = vld [vmem:[%s10820_s9 + $0x4b4] ss:$8 sps:$4 sm:$0xff]   ;;  %v7171_v26 = vld [vmem:[%s10820_s9 + $0x4c4] ss:$8 sps:$4 sm:$0xff]  }
 0x5ec   :  { %5432 = vmatprep.mubr.bf16.mxu0 %v4080_v18  ;;  %v7169_v15 = vld [vmem:[%s10820_s9 + $0x4c0] ss:$8 sps:$4 sm:$0xff]   ;;  %v7172_v6 = vld [vmem:[%s10820_s9 + $0x4d0] ss:$8 sps:$4 sm:$0xff]   ;;  %v7177_v11 = vld [vmem:[%s10820_s9 + $0x4e4] ss:$8 sps:$4 sm:$0xff]  }
 0x5ed   :  { %v7400_v21 = vpop.eup %7399  ;;  %5433 = vmatmul.mubr.bf16.vlgmr.msra.gmra.mrb[56].mxu0 %v4079_v19  ;;  %v3850_v57 = vsel %vm861_vm1, %v3846_v48, %v3848_v34  ;;  %v7175_v18 = vld [vmem:[%s10820_s9 + $0x4e0] ss:$8 sps:$4 sm:$0xff]   ;;  %v7180_v19 = vld [vmem:[%s10820_s9 + $0x4f4] ss:$8 sps:$4 sm:$0xff]   ;;  %v7183_v48 = vld [vmem:[%s10820_s9 + $0x504] ss:$8 sps:$4 sm:$0xff]  }
 0x5ee   :  { %3487 = vrot.lane.b32.xlu0 %v7400_v21, %s7457_s8  ;;  %v6799_v17 = vpack.i.bf16 %v3830_v4, %v3850_v57  ;;  %5442 = vmatpush1.bf16.msra.mxu0 %v7133_v58  ;;  %v7178_v58 = vld [vmem:[%s10820_s9 + $0x4f0] ss:$8 sps:$4 sm:$0xff]   ;;  %v7201_v34 = vld [vmem:[%s10820_s9 + $0x4] ss:$8 sps:$4 sm:$0xff]   ;;  %v7211_v57 = vld [vmem:[%s10820_s9 + $0x20] ss:$8 sps:$4 sm:$0xff]  }
 0x5ef   :  { %5443 = vmatprep.subr.bf16.mxu0 %v7138_v31  ;;  %v7402_v36 = vpop.eup %7401  ;;  %v7207_v31 = vld [vmem:[%s10820_s9 + $0x14] ss:$8 sps:$4 sm:$0xff]   ;;  %5277 = vmatprep.subr.bf16.mxu1 %v7201_v34  ;;  %v7205_v21 = vld [vmem:[%s10820_s9 + $0x10] ss:$8 sps:$4 sm:$0xff]   ;;  %v7213_v4 = vld [vmem:[%s10820_s9 + $0x24] ss:$8 sps:$4 sm:$0xff]  }
 0x5f0   :  { %6800 = vrot.lane.b32.xlu1 %v6799_v17, %s7457_s8  ;;  %5278 = vmatpush1.bf16.msra.mxu1 %v7199_v53  ;;  %v7219_v17 = vld [vmem:[%s10820_s9 + $0x34] ss:$8 sps:$4 sm:$0xff]   ;;  %v3864_v34 = vrot.slane %v10171_v35, 3 }
 0x5f1   :  { %5279 = vmatprep.subr.bf16.mxu1 %v7207_v31 }
 0x5f2   :  { %5444 = vmatpush1.bf16.msra.mxu0 %v7136_v45  ;;  %v7217_v45 = vld [vmem:[%s10820_s9 + $0x30] ss:$8 sps:$4 sm:$0xff]  }
 0x5f3   :  { %5445 = vmatprep.subr.bf16.mxu0 %v7141_v12  ;;  %v7225_v12 = vld [vmem:[%s10820_s9 + $0x44] ss:$8 sps:$4 sm:$0xff]  }
 0x5f4   :  { %3499 = vrot.lane.b32.xlu1 %v7402_v36, %s7457_s8  ;;  %5280 = vmatpush1.bf16.msra.mxu1 %v7205_v21  ;;  %v7231_v36 = vld [vmem:[%s10820_s9 + $0x54] ss:$8 sps:$4 sm:$0xff]  }
 0x5f5   :  { %5281 = vmatprep.subr.bf16.mxu1 %v7213_v4  ;;  %v7264_v21 = vld [vmem:[%s10820_s9 + $0xb4] ss:$8 sps:$4 sm:$0xff]  }
 0x5f6   :  { %5446 = vmatpush1.bf16.msra.mxu0 %v7139_v27  ;;  %v7223_v27 = vld [vmem:[%s10820_s9 + $0x40] ss:$8 sps:$4 sm:$0xff]  }
 0x5f7   :  { %5447 = vmatprep.subr.bf16.mxu0 %v7144_v32  ;;  %v7229_v32 = vld [vmem:[%s10820_s9 + $0x50] ss:$8 sps:$4 sm:$0xff]  }
 0x5f8   :  { %5282 = vmatpush1.bf16.msra.mxu1 %v7211_v57 }
 0x5f9   :  { %5283 = vmatprep.subr.bf16.mxu1 %v7219_v17 }
 0x5fa   :  { %5448 = vmatpush1.bf16.msra.mxu0 %v7142_v54  ;;  %v7237_v54 = vld [vmem:[%s10820_s9 + $0x64] ss:$8 sps:$4 sm:$0xff]  }
 0x5fb   :  { %5449 = vmatprep.subr.bf16.mxu0 %v7147_v52  ;;  %v7235_v52 = vld [vmem:[%s10820_s9 + $0x60] ss:$8 sps:$4 sm:$0xff]  }
 0x5fc   :  { %5284 = vmatpush1.bf16.msra.mxu1 %v7217_v45  ;;  %v7262_v45 = vld [vmem:[%s10820_s9 + $0xb0] ss:$8 sps:$4 sm:$0xff]  }
 0x5fd   :  { %5285 = vmatprep.subr.bf16.mxu1 %v7225_v12 }
 0x5fe   :  { %5450 = vmatpush1.bf16.msra.mxu0 %v7145_v63  ;;  %v7241_v63 = vld [vmem:[%s10820_s9 + $0x70] ss:$8 sps:$4 sm:$0xff]  }
 0x5ff   :  { %5451 = vmatprep.subr.bf16.mxu0 %v7150_v2  ;;  %v7243_v2 = vld [vmem:[%s10820_s9 + $0x74] ss:$8 sps:$4 sm:$0xff]  }
 0x600   :  { %5286 = vmatpush1.bf16.msra.mxu1 %v7223_v27  ;;  %v7267_v27 = vld [vmem:[%s10820_s9 + $0xc4] ss:$8 sps:$4 sm:$0xff]  }
 0x601   :  { %5287 = vmatprep.subr.bf16.mxu1 %v7231_v36 }
 0x602   :  { %5452 = vmatpush1.bf16.msra.mxu0 %v7148_v39  ;;  %v7249_v39 = vld [vmem:[%s10820_s9 + $0x84] ss:$8 sps:$4 sm:$0xff]  }
 0x603   :  { %5453 = vmatprep.subr.bf16.mxu0 %v7153_v62 }
 0x604   :  { %5288 = vmatpush1.bf16.msra.mxu1 %v7229_v32 }
 0x605   :  { %5289 = vmatprep.subr.bf16.mxu1 %v7237_v54  ;;  %v7265_v54 = vld [vmem:[%s10820_s9 + $0xc0] ss:$8 sps:$4 sm:$0xff]  }
 0x606   :  { %5454 = vmatpush1.bf16.msra.mxu0 %v7151_v1 }
 0x607   :  { %5455 = vmatprep.subr.bf16.mxu0 %v7156_v50  ;;  %v7247_v50 = vld [vmem:[%s10820_s9 + $0x80] ss:$8 sps:$4 sm:$0xff]  }
 0x608   :  { %5290 = vmatpush1.bf16.msra.mxu1 %v7235_v52  ;;  %v3821_v52 = vrot.slane %v10133_v30, 2 }
 0x609   :  { %5291 = vmatprep.subr.bf16.mxu1 %v7243_v2 }
 0x60a   :  { %5456 = vmatpush1.bf16.msra.mxu0 %v7154_v33 }
 0x60b   :  { %5457 = vmatprep.subr.bf16.mxu0 %v7159_v16 }
 0x60c   :  { %5292 = vmatpush1.bf16.msra.mxu1 %v7241_v63  ;;  %v7270_v63 = vld [vmem:[%s10820_s9 + $0xd4] ss:$8 sps:$4 sm:$0xff]  }
 0x60d   :  { %5293 = vmatprep.subr.bf16.mxu1 %v7249_v39 }
 0x60e   :  { %5458 = vmatpush1.bf16.msra.mxu0 %v7157_v8  ;;  %v3869_v8 = vrot.slane %v10171_v35, 4 }
 0x60f   :  { %5459 = vmatprep.subr.bf16.mxu0 %v7162_v51 }
 0x610   :  { %5294 = vmatpush1.bf16.msra.mxu1 %v7247_v50 }
 0x612   :  { %5460 = vmatpush1.bf16.msra.mxu0 %v7160_v55  ;;  %v3854_v55 = vrot.slane %v10171_v35, 1 }
 0x613   :  { %5461 = vmatprep.subr.bf16.mxu0 %v7165_v44 }
 0x616   :  { %5462 = vmatpush1.bf16.msra.mxu0 %v7163_v3 }
 0x617   :  { %5463 = vmatprep.subr.bf16.mxu0 %v7168_v14 }
 0x61a   :  { %5464 = vmatpush1.bf16.msra.mxu0 %v7166_v56  ;;  %v7253_v56 = vld [vmem:[%s10820_s9 + $0x90] ss:$8 sps:$4 sm:$0xff]  }
 0x61b   :  { %5465 = vmatprep.subr.bf16.mxu0 %v7171_v26  ;;  %v7255_v26 = vld [vmem:[%s10820_s9 + $0x94] ss:$8 sps:$4 sm:$0xff]  }
 0x61c   :  { %5295 = vmatprep.subr.bf16.mxu1 %v7255_v26 }
 0x61d   :  { %5296 = vmatpush1.bf16.msra.mxu1 %v7253_v56 }
 0x61e   :  { %5466 = vmatpush1.bf16.msra.mxu0 %v7169_v15 }
 0x61f   :  { %5467 = vmatprep.subr.bf16.mxu0 %v7174_v59 }
 0x622   :  { %5468 = vmatpush1.bf16.msra.mxu0 %v7172_v6 }
 0x623   :  { %5469 = vmatprep.subr.bf16.mxu0 %v7177_v11 }
 0x626   :  { %5470 = vmatpush1.bf16.msra.mxu0 %v7175_v18  ;;  %v7261_v18 = vld [vmem:[%s10820_s9 + $0xa4] ss:$8 sps:$4 sm:$0xff]  }
 0x627   :  { %5471 = vmatprep.subr.bf16.mxu0 %v7180_v19  ;;  %5297 = vmatprep.subr.bf16.mxu1 %v7261_v18 }
 0x62a   :  { %5472 = vmatpush1.bf16.msra.mxu0 %v7178_v58 }
 0x62b   :  { %5482 = vmatprep.subr.bf16.mxu0 %v7183_v48 }
 0x64c   :  { %v3498_v62 = vpop.permute.xlu1 %3497 }
 0x64d   :  { %v10331_v1 = vmul.f32 %v3498_v62, %v9547_v42  ;;  %v3874_v42 = vrot.slane %v10171_v35, 5  ;;  %v3841_v62 = vrot.slane %v10133_v30, 6 }
 0x64e   :  { %v6791_v33 = vpop.permute.xlu0 %6790 }
 0x64f   :  { %v3867_v16 = vrot.slane %v10331_v1, 4  ;;  %v3852_v51 = vrot.slane %v10331_v1, 1  ;;  %v3872_v44 = vrot.slane %v10331_v1, 5  ;;  %v3851_v3 = vsel %vm861_vm1, %v10331_v1, %v10171_v35 }
 0x650   :  { %v3862_v53 = vrot.slane %v10331_v1, 3  ;;  %v3882_v31 = vrot.slane %v10331_v1, 7  ;;  %v6796_v12 = vpop.permute.xlu1 %6795  ;;  %v6793_v2 = vunpack.i.h.bf16 %v6791_v33  ;;  %v6792_v39 = vunpack.i.l.bf16 %v6791_v33 }
 0x651   :  { %v3871_v14 = vsel %vm861_vm1, %v3867_v16, %v3869_v8  ;;  %v3856_v6 = vsel %vm861_vm1, %v3852_v51, %v3854_v55  ;;  %v3876_v11 = vsel %vm861_vm1, %v3872_v44, %v3874_v42  ;;  %v6798_v36 = vunpack.i.h.bf16 %v6796_v12  ;;  %v7268_v44 = vld [vmem:[%s10820_s9 + $0xd0] ss:$8 sps:$4 sm:$0xff]  }
 0x652   :  { %v3512_v15 = vpop.permute.xlu0 %3511  ;;  %v6804_v59 = vpack.i.bf16 %v3851_v3, %v3871_v14  ;;  %v6809_v58 = vpack.i.bf16 %v3856_v6, %v3876_v11  ;;  %v3866_v4 = vsel %vm861_vm1, %v3862_v53, %v3864_v34  ;;  %v6797_v32 = vunpack.i.l.bf16 %v6796_v12  ;;  %v7181_v34 = vld [vmem:[%s10820_s9 + $0x500] ss:$8 sps:$4 sm:$0xff]  }
 0x653   :  { %v10358_v19 = vmul.f32 %v3512_v15, %v9592_v38  ;;  %v7259_v38 = vld [vmem:[%s10820_s9 + $0xa0] ss:$8 sps:$4 sm:$0xff]   ;;  %v3823_v16 = vrot.slane %v9992_v60, 2  ;;  %v4057_v8 = vsel %vm3591_vm9, %v6793_v2, %v6798_v36  ;;  %v3843_v55 = vrot.slane %v9992_v60, 6  ;;  %v7276_v15 = vld [vmem:[%s10820_s9 + $0xe4] ss:$8 sps:$4 sm:$0xff]  }
 0x654   :  { %6805 = vrot.lane.b32.xlu0 %v6804_v59, %s7448_s27  ;;  %6810 = vrot.lane.b32.xlu1 %v6809_v58, %s7458_s7  ;;  %v4060_v51 = vsel %vm3591_vm9, %v6792_v39, %v6797_v32 }
 0x655   :  { %v3884_v48 = vrot.slane %v10358_v19, 7  ;;  %5298 = vmatpush1.bf16.msra.mxu1 %v7259_v38  ;;  %v3825_v42 = vsel %vm861_vm1, %v3821_v52, %v3823_v16  ;;  %v3845_v26 = vsel %vm861_vm1, %v3841_v62, %v3843_v55 }
 0x656   :  { %5299 = vmatprep.subr.bf16.mxu1 %v7264_v21  ;;  %v4058_v59 = vsel %vm551_vm2, %v4057_v8, %v3825_v42  ;;  %v4061_v6 = vsel %vm551_vm2, %v4060_v51, %v3845_v26  ;;  %v7186_v21 = vld [vmem:[%s10820_s9 + $0x514] ss:$8 sps:$4 sm:$0xff]   ;;  %v7184_v51 = vld [vmem:[%s10820_s9 + $0x510] ss:$8 sps:$4 sm:$0xff]   ;;  %v7189_v42 = vld [vmem:[%s10820_s9 + $0x524] ss:$8 sps:$4 sm:$0xff]  }
 0x657   :  { %v3886_v57 = vsel %vm861_vm1, %v3882_v31, %v3884_v48 }
 0x658   :  { %v6814_v17 = vpack.i.bf16 %v3866_v4, %v3886_v57 }
 0x659   :  { %5300 = vmatpush1.bf16.msra.mxu1 %v7262_v45 }
 0x65a   :  { %6815 = vrot.lane.b32.xlu0 %v6814_v17, %s7457_s8  ;;  %5301 = vmatprep.subr.bf16.mxu1 %v7267_v27 }
 0x65d   :  { %5302 = vmatpush1.bf16.msra.mxu1 %v7265_v54  ;;  %v7280_v54 = vld [vmem:[%s10820_s9 + $0xf0] ss:$8 sps:$4 sm:$0xff]  }
 0x65e   :  { %5303 = vmatprep.subr.bf16.mxu1 %v7270_v63 }
 0x660   :  { %v3488_v50 = vpop.permute.xlu0 %3487 }
 0x661   :  { %v10398_v33 = vmul.f32 %v3488_v50, %v9521_v7  ;;  %5304 = vmatpush1.bf16.msra.mxu1 %v7268_v44  ;;  %v7274_v7 = vld [vmem:[%s10820_s9 + $0xe0] ss:$8 sps:$4 sm:$0xff]  }
 0x662   :  { %v6801_v3 = vpop.permute.xlu1 %6800  ;;  %5305 = vmatprep.subr.bf16.mxu1 %v7276_v15 }
 0x663   :  { %v6803_v14 = vunpack.i.h.bf16 %v6801_v3  ;;  %v6802_v56 = vunpack.i.l.bf16 %v6801_v3  ;;  %v3672_v38 = vrot.slane %v10398_v33, 1  ;;  %v3692_v4 = vrot.slane %v10398_v33, 5 }
 0x664   :  { %v3687_v57 = vrot.slane %v10398_v33, 4  ;;  %v3682_v17 = vrot.slane %v10398_v33, 3  ;;  %v3702_v45 = vrot.slane %v10398_v33, 7  ;;  %v3677_v32 = vrot.slane %v10398_v33, 2 }
 0x665   :  { %v4059_v11 = vsel %vm3938_vm10, %v4058_v59, %v6803_v14  ;;  %v4062_v18 = vsel %vm3938_vm10, %v4061_v6, %v6802_v56  ;;  %5306 = vmatpush1.bf16.msra.mxu1 %v7274_v7  ;;  %v3697_v2 = vrot.slane %v10398_v33, 6  ;;  %v3704_v56 = vrot.slane %v9754_v23, 7  ;;  %v7187_v59 = vld [vmem:[%s10820_s9 + $0x520] ss:$8 sps:$4 sm:$0xff]   ;;  %v7190_v7 = vld [vmem:[%s10820_s9 + $0x530] ss:$8 sps:$4 sm:$0xff]  }
 0x666   :  { %v4081_v58 = vpack.c.bf16 %v4059_v11, %v4059_v11  ;;  %v3500_v53 = vpop.permute.xlu1 %3499  ;;  %v4082_v48 = vpack.c.bf16 %v4062_v18, %v4062_v18  ;;  %v7192_v11 = vld [vmem:[%s10820_s9 + $0x534] ss:$8 sps:$4 sm:$0xff]  }
 0x667   :  { %v10415_v31 = vmul.f32 %v3500_v53, %v9552_v5  ;;  %v7282_v5 = vld [vmem:[%s10820_s9 + $0xf4] ss:$8 sps:$4 sm:$0xff]   ;;  %v3706_v15 = vsel %vm861_vm1, %v3702_v45, %v3704_v56  ;;  %v7193_v53 = vld [vmem:[%s10820_s9 + $0x540] ss:$8 sps:$4 sm:$0xff]  }
 0x668   :  { %5473 = vmatprep.mubr.bf16.mxu0 %v4082_v48  ;;  %5307 = vmatprep.subr.bf16.mxu1 %v7282_v5  ;;  %v7198_v48 = vld [vmem:[%s10820_s9 + $0x554] ss:$8 sps:$4 sm:$0xff]   ;;  %v3857_v5 = vrot.slane %v10331_v1, 2 }
 0x669   :  { %5474 = vmatmul.mubr.bf16.vlgmr.msra.gmra.mrb[56].mxu0 %v4081_v58  ;;  %v3674_v12 = vrot.slane %v10415_v31, 1  ;;  %v3694_v27 = vrot.slane %v10415_v31, 5  ;;  %v3689_v36 = vrot.slane %v10415_v31, 4  ;;  %v3684_v52 = vrot.slane %v10415_v31, 3  ;;  %5308 = vmatpush1.bf16.msra.mxu1 %v7280_v54  ;;  %v7195_v58 = vld [vmem:[%s10820_s9 + $0x544] ss:$8 sps:$4 sm:$0xff]  }
 0x66a   :  { %5483 = vmatpush1.bf16.msra.mxu0 %v7181_v34  ;;  %v3679_v63 = vrot.slane %v10415_v31, 2  ;;  %v3699_v39 = vrot.slane %v10415_v31, 6  ;;  %v3671_v16 = vsel %vm861_vm1, %v10398_v33, %v10415_v31  ;;  %v3887_v18 = vsel %vm861_vm1, %v10415_v31, %v10358_v19  ;;  %v7216_v34 = vld [vmem:[%s10820_s9 + $0x584] ss:$8 sps:$4 sm:$0xff]  }
 0x66b   :  { %v3676_v62 = vsel %vm861_vm1, %v3672_v38, %v3674_v12  ;;  %v3696_v50 = vsel %vm861_vm1, %v3692_v4, %v3694_v27  ;;  %v3691_v8 = vsel %vm861_vm1, %v3687_v57, %v3689_v36  ;;  %5484 = vmatprep.subr.bf16.mxu0 %v7186_v21  ;;  %v3686_v14 = vsel %vm861_vm1, %v3682_v17, %v3684_v52  ;;  %v7234_v38 = vld [vmem:[%s10820_s9 + $0x5b4] ss:$8 sps:$4 sm:$0xff]   ;;  %v7283_v21 = vld [vmem:[%s10822_s11 + $0x40] sm:$0xff]  }
 0x66c   :  { %v6824_v55 = vpack.i.bf16 %v3676_v62, %v3696_v50  ;;  %v6819_v44 = vpack.i.bf16 %v3671_v16, %v3691_v8  ;;  %v10452_v3 = vsel %vm861_vm1, %v3677_v32, %v3679_v63  ;;  %v10457_v26 = vsel %vm861_vm1, %v3697_v2, %v3699_v39  ;;  %6530 = vmatprep.subr.bf16.mxu1 %v7283_v21  ;;  %v7289_v21 = vld [vmem:[%s10822_s11 + $0x58] sm:$0xff]  }
 0x66d   :  { %v6829_v6 = vpack.i.bf16 %v3686_v14, %v3706_v15  ;;  %v3877_v12 = vrot.slane %v10331_v1, 6 }
 0x66e   :  { %6825 = vrot.lane.b32.xlu0 %v6824_v55, %s7458_s7  ;;  %6820 = vrot.lane.b32.xlu1 %v6819_v44, %s7448_s27  ;;  %v7277_v55 = vld [vmem:[%s10820_s9 + $0x610] ss:$8 sps:$4 sm:$0xff]   ;;  %v11004_v44 = vmov 0  }
 0x66f   :  { %5485 = vmatpush1.bf16.msra.mxu0 %v7184_v51  ;;  %v7279_v51 = vld [vmem:[%s10820_s9 + $0x614] ss:$8 sps:$4 sm:$0xff]  }
 0x670   :  { %5486 = vmatprep.subr.bf16.mxu0 %v7189_v42 }
 0x672   :  { %4070 = vrot.lane.b32.xlu0 %v3887_v18, %s7448_s27  ;;  %6830 = vrot.lane.b32.xlu1 %v6829_v6, %s7457_s8 }
 0x673   :  { %5487 = vmatpush1.bf16.msra.mxu0 %v7187_v59 }
 0x674   :  { %5488 = vmatprep.subr.bf16.mxu0 %v7192_v11 }
 0x676   :  { %3554 = vrot.lane.b32.xlu0 %v9743_v25, %s7448_s27  ;;  %3552 = vrot.lane.b32.xlu1 %v10398_v33, %s7448_s27  ;;  %v7196_v25 = vld [vmem:[%s10820_s9 + $0x550] ss:$8 sps:$4 sm:$0xff]   ;;  %v7204_v33 = vld [vmem:[%s10820_s9 + $0x564] ss:$8 sps:$4 sm:$0xff]  }
 0x677   :  { %5489 = vmatpush1.bf16.msra.mxu0 %v7190_v7 }
 0x678   :  { %5490 = vmatprep.subr.bf16.mxu0 %v7195_v58 }
 0x67a   :  { %3558 = vrot.lane.b32.xlu0 %v9973_v9, %s7448_s27  ;;  %3556 = vrot.lane.b32.xlu1 %v9808_v10, %s7448_s27  ;;  %v7202_v10 = vld [vmem:[%s10820_s9 + $0x560] ss:$8 sps:$4 sm:$0xff]   ;;  %v7210_v9 = vld [vmem:[%s10820_s9 + $0x574] ss:$8 sps:$4 sm:$0xff]  }
 0x67b   :  { %5491 = vmatpush1.bf16.msra.mxu0 %v7193_v53 }
 0x67c   :  { %5492 = vmatprep.subr.bf16.mxu0 %v7198_v48 }
 0x67e   :  { %3562 = vrot.lane.b32.xlu0 %v10331_v1, %s7448_s27  ;;  %3560 = vrot.lane.b32.xlu1 %v10133_v30, %s7448_s27  ;;  %v7208_v30 = vld [vmem:[%s10820_s9 + $0x570] ss:$8 sps:$4 sm:$0xff]  }
 0x67f   :  { %5493 = vmatpush1.bf16.msra.mxu0 %v7196_v25 }
 0x680   :  { %5494 = vmatprep.subr.bf16.mxu0 %v7204_v33 }
 0x682   :  { %3566 = vrot.lane.b32.xlu0 %v9754_v23, %s7448_s27  ;;  %3564 = vrot.lane.b32.xlu1 %v10415_v31, %s7448_s27  ;;  %v7214_v23 = vld [vmem:[%s10820_s9 + $0x580] ss:$8 sps:$4 sm:$0xff]   ;;  %v7222_v31 = vld [vmem:[%s10820_s9 + $0x594] ss:$8 sps:$4 sm:$0xff]  }
 0x683   :  { %5495 = vmatpush1.bf16.msra.mxu0 %v7202_v10 }
 0x684   :  { %5496 = vmatprep.subr.bf16.mxu0 %v7210_v9 }
 0x686   :  { %3570 = vrot.lane.b32.xlu0 %v9840_v29, %s7448_s27  ;;  %3568 = vrot.lane.b32.xlu1 %v9750_v24, %s7448_s27  ;;  %v7220_v24 = vld [vmem:[%s10820_s9 + $0x590] ss:$8 sps:$4 sm:$0xff]   ;;  %v7228_v29 = vld [vmem:[%s10820_s9 + $0x5a4] ss:$8 sps:$4 sm:$0xff]  }
 0x687   :  { %5497 = vmatpush1.bf16.msra.mxu0 %v7208_v30 }
 0x688   :  { %5498 = vmatprep.subr.bf16.mxu0 %v7216_v34 }
 0x68a   :  { %3574 = vrot.lane.b32.xlu0 %v10171_v35, %s7448_s27  ;;  %3572 = vrot.lane.b32.xlu1 %v9992_v60, %s7448_s27  ;;  %v7226_v60 = vld [vmem:[%s10820_s9 + $0x5a0] ss:$8 sps:$4 sm:$0xff]  }
 0x68b   :  { %5499 = vmatpush1.bf16.msra.mxu0 %v7214_v23 }
 0x68c   :  { %5500 = vmatprep.subr.bf16.mxu0 %v7222_v31 }
 0x68e   :  { %3619 = vrot.lane.b32.xlu0 %v10152_v47, %s7458_s7  ;;  %3576 = vrot.lane.b32.xlu1 %v10358_v19, %s7448_s27  ;;  %v7232_v47 = vld [vmem:[%s10820_s9 + $0x5b0] ss:$8 sps:$4 sm:$0xff]   ;;  %v7240_v19 = vld [vmem:[%s10820_s9 + $0x5c4] ss:$8 sps:$4 sm:$0xff]  }
 0x68f   :  { %5501 = vmatpush1.bf16.msra.mxu0 %v7220_v24 }
 0x690   :  { %5502 = vmatprep.subr.bf16.mxu0 %v7228_v29  ;;  %v7284_v29 = vld [vmem:[%s10822_s11] sm:$0xff]  }
 0x692   :  { %3623 = vrot.lane.b32.xlu0 %v9716_v43, %s7458_s7  ;;  %3621 = vrot.lane.b32.xlu1 %v9613_v46, %s7458_s7  ;;  %v7238_v46 = vld [vmem:[%s10820_s9 + $0x5c0] ss:$8 sps:$4 sm:$0xff]   ;;  %v7246_v43 = vld [vmem:[%s10820_s9 + $0x5d4] ss:$8 sps:$4 sm:$0xff]  }
 0x693   :  { %5503 = vmatpush1.bf16.msra.mxu0 %v7226_v60 }
 0x694   :  { %5504 = vmatprep.subr.bf16.mxu0 %v7234_v38  ;;  %v7286_v38 = vld [vmem:[%s10822_s11 + $0x8] sm:$0xff]  }
 0x696   :  { %3627 = vrot.lane.b32.xlu0 %v9964_v0, %s7458_s7  ;;  %3625 = vrot.lane.b32.xlu1 %v9799_v40, %s7458_s7  ;;  %v7244_v40 = vld [vmem:[%s10820_s9 + $0x5d0] ss:$8 sps:$4 sm:$0xff]   ;;  %v7252_v0 = vld [vmem:[%s10820_s9 + $0x5e4] ss:$8 sps:$4 sm:$0xff]  }
 0x697   :  { %5505 = vmatpush1.bf16.msra.mxu0 %v7232_v47  ;;  %v7287_v47 = vld [vmem:[%s10822_s11 + $0x50] sm:$0xff]  }
 0x698   :  { %5506 = vmatprep.subr.bf16.mxu0 %v7240_v19 }
 0x69a   :  { %3631 = vrot.lane.b32.xlu0 %v10160_v37, %s7458_s7  ;;  %3629 = vrot.lane.b32.xlu1 %v10125_v61, %s7458_s7  ;;  %v7250_v61 = vld [vmem:[%s10820_s9 + $0x5e0] ss:$8 sps:$4 sm:$0xff]   ;;  %v7258_v37 = vld [vmem:[%s10820_s9 + $0x5f4] ss:$8 sps:$4 sm:$0xff]  }
 0x69b   :  { %5507 = vmatpush1.bf16.msra.mxu0 %v7238_v46 }
 0x69c   :  { %5508 = vmatprep.subr.bf16.mxu0 %v7246_v43  ;;  %v7288_v43 = vld [vmem:[%s10822_s11 + $0x10] sm:$0xff]  }
 0x69e   :  { %3635 = vrot.lane.b32.xlu0 %v9621_v20, %s7458_s7  ;;  %3633 = vrot.lane.b32.xlu1 %v9619_v49, %s7458_s7  ;;  %v7256_v49 = vld [vmem:[%s10820_s9 + $0x5f0] ss:$8 sps:$4 sm:$0xff]   ;;  %v7273_v20 = vld [vmem:[%s10820_s9 + $0x604] ss:$8 sps:$4 sm:$0xff]  }
 0x69f   :  { %5509 = vmatpush1.bf16.msra.mxu0 %v7244_v40 }
 0x6a0   :  { %5510 = vmatprep.subr.bf16.mxu0 %v7252_v0 }
 0x6a2   :  { %3639 = vrot.lane.b32.xlu0 %v9805_v13, %s7458_s7  ;;  %3637 = vrot.lane.b32.xlu1 %v9734_v41, %s7458_s7 }
 0x6a3   :  { %5511 = vmatpush1.bf16.msra.mxu0 %v7250_v61  ;;  %v7290_v61 = vld [vmem:[%s10822_s11 + $0x18] sm:$0xff]  }
 0x6a4   :  { %5512 = vmatprep.subr.bf16.mxu0 %v7258_v37  ;;  %v7291_v37 = vld [vmem:[%s10822_s11 + $0x60] sm:$0xff]  }
 0x6a6   :  { %3643 = vrot.lane.b32.xlu0 %v10129_v28, %s7458_s7  ;;  %3641 = vrot.lane.b32.xlu1 %v10003_v22, %s7458_s7  ;;  %v3859_v28 = vrot.slane %v10171_v35, 2  ;;  %v3879_v22 = vrot.slane %v10171_v35, 6  ;;  %v7271_v35 = vld [vmem:[%s10820_s9 + $0x600] ss:$8 sps:$4 sm:$0xff]  }
 0x6a7   :  { %5513 = vmatpush1.bf16.msra.mxu0 %v7256_v49 }
 0x6a8   :  { %5523 = vmatprep.subr.bf16.mxu0 %v7273_v20  ;;  %v3861_v54 = vsel %vm861_vm1, %v3857_v5, %v3859_v28  ;;  %v3881_v2 = vsel %vm861_vm1, %v3877_v12, %v3879_v22 }
 0x6c6   :  { %v6806_v13 = vpop.permute.xlu0 %6805  ;;  %v6811_v41 = vpop.permute.xlu1 %6810 }
 0x6c7   :  { %v6808_v4 = vunpack.i.h.bf16 %v6806_v13  ;;  %v6807_v57 = vunpack.i.l.bf16 %v6806_v13  ;;  %v6813_v17 = vunpack.i.h.bf16 %v6811_v41  ;;  %v6812_v45 = vunpack.i.l.bf16 %v6811_v41 }
 0x6c9   :  { %v4063_v27 = vsel %vm3591_vm9, %v6808_v4, %v6813_v17  ;;  %v4066_v36 = vsel %vm3591_vm9, %v6807_v57, %v6812_v45 }
 0x6ca   :  { %v4064_v39 = vsel %vm551_vm2, %v4063_v27, %v3861_v54  ;;  %v4067_v62 = vsel %vm551_vm2, %v4066_v36, %v3881_v2  ;;  %v7292_v2 = vld [vmem:[%s10822_s11 + $0x20] sm:$0xff]  }
 0x6cc   :  { %v6816_v32 = vpop.permute.xlu0 %6815 }
 0x6cd   :  { %v6818_v52 = vunpack.i.h.bf16 %v6816_v32  ;;  %v6817_v63 = vunpack.i.l.bf16 %v6816_v32 }
 0x6cf   :  { %v4065_v1 = vsel %vm3938_vm10, %v4064_v39, %v6818_v52  ;;  %v4068_v50 = vsel %vm3938_vm10, %v4067_v62, %v6817_v63  ;;  %v7293_v39 = vld [vmem:[%s10822_s11 + $0x68] sm:$0xff]  }
 0x6d0   :  { %v4083_v16 = vpack.c.bf16 %v4065_v1, %v4065_v1  ;;  %v4084_v8 = vpack.c.bf16 %v4068_v50, %v4068_v50  ;;  %v7294_v62 = vld [vmem:[%s10822_s11 + $0x28] sm:$0xff]   ;;  %v7295_v1 = vld [vmem:[%s10822_s11 + $0x70] sm:$0xff]  }
 0x6d1   :  { %v7296_v50 = vld [vmem:[%s10822_s11 + $0x30] sm:$0xff]  }
 0x6d2   :  { %5514 = vmatprep.mubr.bf16.mxu0 %v4084_v8  ;;  %v7298_v8 = vld [vmem:[%s10822_s11 + $0x38] sm:$0xff]  }
 0x6d3   :  { %5515 = vmatmul.mubr.bf16.vlgmr.msra.gmra.mrb[56].mxu0 %v4083_v16  ;;  %v7297_v16 = vld [vmem:[%s10822_s11 + $0x78] sm:$0xff]  }
 0x6d4   :  { %5524 = vmatpush1.bf16.msra.mxu0 %v7271_v35  ;;  %5555 = vmatprep.mubr.bf16.mxu0 %v11004_v44  ;;  %v4282_v35 = vld [vmem:[%s10821_s10] sm:$0x3]  ;;  %v11005_v44 = vld [vmem:[#allocation5_spill] sm:$0xff] }
 0x6d5   :  { %5525 = vmatprep.subr.bf16.mxu0 %v7279_v51 }
 0x6d8   :  { %5526 = vmatpush1.bf16.msra.mxu0 %v7277_v55 }
 0x6e0   :  { %v6821_v42 = vpop.permute.xlu1 %6820  ;;  %v6826_v14 = vpop.permute.xlu0 %6825 }
 0x6e1   :  { %v6823_v56 = vunpack.i.h.bf16 %v6821_v42  ;;  %v6822_v15 = vunpack.i.l.bf16 %v6821_v42  ;;  %v6828_v59 = vunpack.i.h.bf16 %v6826_v14  ;;  %v6827_v6 = vunpack.i.l.bf16 %v6826_v14 }
 0x6e2   :  { %v11006_v42 = vsub.s32 0, %v11005_v44 }
 0x6e3   :  { %v3936_v11 = vsel %vm3591_vm9, %v6823_v56, %v6828_v59  ;;  %v3940_v18 = vsel %vm3591_vm9, %v6822_v15, %v6827_v6  ;;  %v11007_v15 = vsub.s32 1, %v11005_v44 }
 0x6e4   :  { %v6831_v7 = vpop.permute.xlu1 %6830  ;;  %v4071_v58 = vpop.permute.xlu0 %4070  ;;  %v3937_v33 = vsel %vm551_vm2, %v3936_v11, %v10452_v3  ;;  %v3941_v10 = vsel %vm551_vm2, %v3940_v18, %v10457_v26  ;;  %v7285_v3 = vld [vmem:[%s10822_s11 + $0x48] sm:$0xff]   ;;  %v4287_v14 = vrot.slane %v4282_v35, %v11006_v42 }
 0x6e5   :  { %v6833_v53 = vunpack.i.h.bf16 %v6831_v7  ;;  %v6832_v48 = vunpack.i.l.bf16 %v6831_v7  ;;  %v4085_v25 = vpack.c.bf16 %v4071_v58, %v4071_v58  ;;  %v4291_v59 = vrot.slane %v4282_v35, %v11007_v15 }
 0x6e7   :  { %v3939_v9 = vsel %vm3938_vm10, %v3937_v33, %v6833_v53  ;;  %6138 = vmatmul.mubr.msk.bf16.vlgmr.msra.gmra.mrb[56].mxu0 %vm3591_vm9, %v4085_v25  ;;  %v3942_v30 = vsel %vm3938_vm10, %v3941_v10, %v6832_v48 }
 0x6e8   :  { %v4073_v34 = vpack.c.bf16 %v3939_v9, %v3939_v9  ;;  %v3553_v23 = vpop.permute.xlu1 %3552  ;;  %v3555_v31 = vpop.permute.xlu0 %3554  ;;  %v4074_v24 = vpack.c.bf16 %v3942_v30, %v3942_v30 }
 0x6e9   :  { %3592 = vst.msk [vmem:[%s10826_s15] sm:$0xff] %vm3591_vm9, %v3553_v23  ;;  %3593 = vst.msk [vmem:[%s10826_s15 + $0x8] sm:$0xff] %vm3591_vm9, %v3555_v31  ;;  %v6139_v31 = vld [vmem:[%s10823_s12] ss:$0 sm:$0xff] }
 0x6ea   :  { %5309 = vmatprep.mubr.bf16.mxu1 %v4074_v24 }
 0x6eb   :  { %5310 = vmatmul.mubr.bf16.vlgmr.msra.gmra.mrb[168].mxu1 %v4073_v34 }
 0x6ec   :  { %v3557_v26 = vpop.permute.xlu1 %3556  ;;  %v3559_v60 = vpop.permute.xlu0 %3558  ;;  %6531 = vmatpush3.bf16.msra.mxu1 %v7284_v29 }
 0x6ed   :  { %3594 = vst.msk [vmem:[%s10826_s15 + $0x10] sm:$0xff] %vm3591_vm9, %v3557_v26  ;;  %3595 = vst.msk [vmem:[%s10826_s15 + $0x18] sm:$0xff] %vm3591_vm9, %v3559_v60  ;;  %6532 = vmatprep.subr.bf16.mxu1 %v7285_v3 }
 0x6f0   :  { %v3561_v19 = vpop.permute.xlu1 %3560  ;;  %v3563_v46 = vpop.permute.xlu0 %3562  ;;  %6533 = vmatpush3.bf16.msra.mxu1 %v7286_v38 }
 0x6f1   :  { %3596 = vst.msk [vmem:[%s10826_s15 + $0x20] sm:$0xff] %vm3591_vm9, %v3561_v19  ;;  %3597 = vst.msk [vmem:[%s10826_s15 + $0x28] sm:$0xff] %vm3591_vm9, %v3563_v46  ;;  %6534 = vmatprep.subr.bf16.mxu1 %v7287_v47 }
 0x6f4   :  { %v3565_v40 = vpop.permute.xlu1 %3564  ;;  %v3567_v0 = vpop.permute.xlu0 %3566  ;;  %6535 = vmatpush3.bf16.msra.mxu1 %v7288_v43 }
 0x6f5   :  { %3598 = vst.msk [vmem:[%s10826_s15 + $0x30] sm:$0xff] %vm3591_vm9, %v3565_v40  ;;  %3599 = vst.msk [vmem:[%s10826_s15 + $0x38] sm:$0xff] %vm3591_vm9, %v3567_v0  ;;  %6536 = vmatprep.subr.bf16.mxu1 %v7289_v21 }
 0x6f8   :  { %v3569_v49 = vpop.permute.xlu1 %3568  ;;  %v3571_v20 = vpop.permute.xlu0 %3570  ;;  %6537 = vmatpush3.bf16.msra.mxu1 %v7290_v61 }
 0x6f9   :  { %3600 = vst.msk [vmem:[%s10826_s15 + $0x40] sm:$0xff] %vm3591_vm9, %v3569_v49  ;;  %3601 = vst.msk [vmem:[%s10826_s15 + $0x48] sm:$0xff] %vm3591_vm9, %v3571_v20  ;;  %6538 = vmatprep.subr.bf16.mxu1 %v7291_v37 }
 0x6fc   :  { %v3573_v13 = vpop.permute.xlu1 %3572  ;;  %v3575_v41 = vpop.permute.xlu0 %3574  ;;  %6539 = vmatpush3.bf16.msra.mxu1 %v7292_v2 }
 0x6fd   :  { %3602 = vst.msk [vmem:[%s10826_s15 + $0x50] sm:$0xff] %vm3591_vm9, %v3573_v13  ;;  %3603 = vst.msk [vmem:[%s10826_s15 + $0x58] sm:$0xff] %vm3591_vm9, %v3575_v41  ;;  %6540 = vmatprep.subr.bf16.mxu1 %v7293_v39 }
 0x700   :  { %v3577_v4 = vpop.permute.xlu1 %3576  ;;  %v3620_v57 = vpop.permute.xlu0 %3619  ;;  %6541 = vmatpush3.bf16.msra.mxu1 %v7294_v62 }
 0x701   :  { %3605 = vst.msk [vmem:[%s10826_s15 + $0x60] sm:$0x3] %vm3604_vm11, %v3577_v4  ;;  %6542 = vmatprep.subr.bf16.mxu1 %v7295_v1 }
 0x702   :  { %3658 = vst.msk [vmem:[%s10827_s16] sm:$0xff] %vm3591_vm9, %v3620_v57 }
 0x704   :  { %v3622_v17 = vpop.permute.xlu1 %3621  ;;  %v3624_v45 = vpop.permute.xlu0 %3623  ;;  %6543 = vmatpush3.bf16.msra.mxu1 %v7296_v50 }
 0x705   :  { %3659 = vst.msk [vmem:[%s10827_s16 + $0x8] sm:$0xff] %vm3591_vm9, %v3622_v17  ;;  %3660 = vst.msk [vmem:[%s10827_s16 + $0x10] sm:$0xff] %vm3591_vm9, %v3624_v45  ;;  %6544 = vmatprep.subr.bf16.mxu1 %v7297_v16 }
 0x708   :  { %v3626_v5 = vpop.permute.xlu1 %3625  ;;  %v3628_v12 = vpop.permute.xlu0 %3627  ;;  %6545 = vmatpush3.bf16.msra.mxu1 %v7298_v8 }
 0x709   :  { %3661 = vst.msk [vmem:[%s10827_s16 + $0x18] sm:$0xff] %vm3591_vm9, %v3626_v5  ;;  %3662 = vst.msk [vmem:[%s10827_s16 + $0x20] sm:$0xff] %vm3591_vm9, %v3628_v12 }
 0x70c   :  { %v3630_v27 = vpop.permute.xlu1 %3629  ;;  %v3632_v36 = vpop.permute.xlu0 %3631 }
 0x70d   :  { %3663 = vst.msk [vmem:[%s10827_s16 + $0x28] sm:$0xff] %vm3591_vm9, %v3630_v27  ;;  %3664 = vst.msk [vmem:[%s10827_s16 + $0x30] sm:$0xff] %vm3591_vm9, %v3632_v36 }
 0x710   :  { %v3634_v28 = vpop.permute.xlu1 %3633  ;;  %v3636_v22 = vpop.permute.xlu0 %3635 }
 0x711   :  { %3665 = vst.msk [vmem:[%s10827_s16 + $0x38] sm:$0xff] %vm3591_vm9, %v3634_v28  ;;  %3666 = vst.msk [vmem:[%s10827_s16 + $0x40] sm:$0xff] %vm3591_vm9, %v3636_v22 }
 0x714   :  { %v3638_v32 = vpop.permute.xlu1 %3637  ;;  %v3640_v54 = vpop.permute.xlu0 %3639 }
 0x715   :  { %3667 = vst.msk [vmem:[%s10827_s16 + $0x48] sm:$0xff] %vm3591_vm9, %v3638_v32  ;;  %3668 = vst.msk [vmem:[%s10827_s16 + $0x50] sm:$0xff] %vm3591_vm9, %v3640_v54 }
 0x718   :  { %v3642_v52 = vpop.permute.xlu1 %3641  ;;  %v3644_v63 = vpop.permute.xlu0 %3643 }
 0x719   :  { %3669 = vst.msk [vmem:[%s10827_s16 + $0x58] sm:$0xff] %vm3591_vm9, %v3642_v52 }
 0x71a   :  { %3670 = vst.msk [vmem:[%s10827_s16 + $0x60] sm:$0x3] %vm3604_vm11, %v3644_v63 }
 0x7ba   :  { %v5557_v51 = vpop.f32.mrb[56].mxu0 }
 0x7bb   :  { %v5559_v55 = vpop.f32.mrb[57].mxu0 }
 0x7bc   :  { %v5561_v56 = vpop.f32.mrb[58].mxu0 }
 0x7bd   :  { %v5562_v6 = vpop.f32.mrb[59].mxu0 }
 0x7be   :  { %v5311_v11 = vpop.f32.mrb[168].mxu1 }
 0x7bf   :  { %v5312_v18 = vadd.f32 %v5311_v11, %v4287_v14  ;;  %v5313_v7 = vpop.f32.mrb[169].mxu1 }
 0x7c0   :  { %v5314_v58 = vadd.f32 %v5313_v7, %v4291_v59  ;;  %v5315_v53 = vpop.f32.mrb[170].mxu1 }
 0x7c1   :  { %v6633_v48 = vadd.f32 %v5557_v51, %v5312_v18  ;;  %v5316_v25 = vpop.f32.mrb[171].mxu1 }
 0x7c2   :  { %v6635_v33 = vadd.f32 %v5559_v55, %v5314_v58 }
 0x7c3   :  { %v5564_v10 = vmax.f32 %v6633_v48, 0.0 }
 0x7c4   :  { %v5565_v9 = vmax.f32 %v6635_v33, 0.0 }
 0x7c5   :  { %v5566_v34 = vpack.c.bf16 %v5564_v10, %v5564_v10 }
 0x7c6   :  { %v5567_v30 = vpack.c.bf16 %v5565_v9, %v5565_v9 }
 0x7c8   :  { %5735 = vmatprep.mubr.bf16.mxu1 %v5567_v30 }
 0x7c9   :  { %5736 = vmatmul.mubr.bf16.vlgmr.msra.gmra.mrb[172].mxu1 %v5566_v34 }
 0x89c   :  { %v6546_v23 = vpop.f32.mrb[172].mxu1 }
 0x89d   :  { %v6547_v24 = vpop.f32.mrb[173].mxu1 }
 0x89e   :  { %v6548_v29 = vadd.f32 %v6547_v24, %v6546_v23  ;;  %v6549_v3 = vpop.f32.mrb[174].mxu1 }
 0x89f   :  { %v6550_v26 = vpop.f32.mrb[175].mxu1 }
 0x8a0   :  { %v5738_v60 = vadd.f32 %v6548_v29, %v6139_v31 }
 0x8a2   :  { %5746 = vrot.lane.b32.xlu1 %v5738_v60, %s7460_s21  ;;  %5744 = vst.msk [vmem:[#allocation2] sm:$0x3] %vm5743_vm12, %v5738_v60 }
 0x8a3   :  { %7431 = shalt.err (!%p7428_p4)
}
 0x8a4   :  { %s7432_s4 = scalar_lea.hbm %s10824_s13, 32 }
 0x8a5   :  { %p7433_p5 = scmp.ne.s32.totalorder %s10824_s13, %s7432_s4  ;;  %p7436_p6 = scmp.lt.u32.totalorder %s7432_s4, %s10824_s13 }
 0x8a7   :  { %p7438_p7 = pnand %p7436_p6, %p7433_p5 }
 0x8a9   :  { %7441 = shalt.err (!%p7438_p7)
}
 0x8aa   :  { %5760 = dma.vmem_to_hbm [thread:$0]  %s5758_s20, 32, %s10824_s13, [#allocation3]   ;;  %vm5749_vm13 = vcmask 1024  }
 0x914   :  { %v5747_v38 = vpop.permute.xlu1 %5746 }
 0x915   :  { %5750 = vst.msk [vmem:[%s10825_s14] sm:$0x3] %vm5749_vm13, %v5747_v38 }
 0x916   :  { %7442 = dma.done.wait [#allocation3], 32  }
 0x917   :  { %7443 = vsyncadd [#allocation3], 4294967264 }
 0x918   :  { %5776 = vsyncpa [#allocation3], 1 }

</bundles_post_ra>
